<compile_context>
chip_gen: v7x
topology: tpu7x:2x2x1
jax: 0.10.0
libtpu: 0.0.40
codegen_flags: <defaults>
</compile_context>

<pallas_src>
import functools

import jax
import jax.numpy as jnp
from jax.experimental import pallas as pl
from jax.experimental.pallas import tpu as pltpu

_VMEM_WHOLE = pl.BlockSpec(memory_space=pltpu.MemorySpace.VMEM)
_VMEM_LIMIT = 32 * 1024 * 1024
NUM_CLASSES = 137


# ------------------------------ small helpers ------------------------------

def _round_up(x, m):
    return (x + m - 1) // m * m


def _pick_n_tile(cout):
    # 128-wide output tiles for <=128 channels, 256 otherwise.
    return 128 if cout <= 128 else 256


def _pick_k_tile(kp):
    # kp is a multiple of 128; pick the biggest candidate that divides it exactly
    # (so no K padding copy of the patches is ever needed for 128-padded cin).
    for tk in (768, 512, 384, 256, 128):
        if kp % tk == 0:
            return tk
    return 128


def _pick_m_tile(m):
    # Biggest tile that divides M (avoids row-padding copies); otherwise round up.
    if m % 512 == 0:
        return 512
    if m % 256 == 0:
        return 256
    return min(256, _round_up(m, 8))


# ----------------------------- Pallas kernels ------------------------------

def _matmul_bias_kernel(x_ref, w_ref, b_ref, o_ref, acc_ref, *, relu):
    # (tm, tk) @ (tk, tn) on the MXU, accumulated in f32 scratch over the K grid
    # axis; bias (+ReLU) fused on the final K step.  BN scale is pre-folded into w.
    @pl.when(pl.program_id(2) == 0)
    def _init():
        acc_ref[...] = jnp.zeros_like(acc_ref)

    acc_ref[...] += jnp.dot(x_ref[...], w_ref[...],
                            preferred_element_type=jnp.float32)

    @pl.when(pl.program_id(2) == pl.num_programs(2) - 1)
    def _finish():
        out = acc_ref[...] + b_ref[...]
        if relu:
            out = jnp.maximum(out, 0.0)
        o_ref[...] = out.astype(o_ref.dtype)


def _matmul_bias_res_kernel(x_ref, w_ref, b_ref, res_ref, o_ref, acc_ref, *, relu):
    # Same as above, plus the residual (identity) add fused before the ReLU.
    @pl.when(pl.program_id(2) == 0)
    def _init():
        acc_ref[...] = jnp.zeros_like(acc_ref)

    acc_ref[...] += jnp.dot(x_ref[...], w_ref[...],
                            preferred_element_type=jnp.float32)

    @pl.when(pl.program_id(2) == pl.num_programs(2) - 1)
    def _finish():
        out = acc_ref[...] + b_ref[...] + res_ref[...].astype(jnp.float32)
        if relu:
            out = jnp.maximum(out, 0.0)
        o_ref[...] = out.astype(o_ref.dtype)


def _maxpool_kernel(w_ref, o_ref):
    # w_ref: (9, tm, C) stacked 3x3 windows -> max over the window axis.
    o_ref[...] = jnp.max(w_ref[...], axis=0)


def _head_kernel(x_ref, w_ref, b_ref, o_ref):
    # adaptive_avg_pool2d(1) == mean over spatial, then Linear(512 -> 137), in f32.
    pooled = jnp.mean(x_ref[...].astype(jnp.float32), axis=1)       # (N, C)
    o_ref[...] = jnp.dot(pooled, w_ref[...],
                         preferred_element_type=jnp.float32) + b_ref[...]


# ------------------------------ glue helpers -------------------------------

def _im2col(x, kh, kw, stride, pad):
    """x: (N, H, W, C) -> patches (N*OH*OW, kh*kw*C), feature order (kh, kw, c)."""
    n, h, w, c = x.shape
    xp = jnp.pad(x, ((0, 0), (pad, pad), (pad, pad), (0, 0)))
    oh = (h + 2 * pad - kh) // stride + 1
    ow = (w + 2 * pad - kw) // stride + 1
    cols = []
    for di in range(kh):
        for dj in range(kw):
            cols.append(xp[:, di:di + stride * oh:stride,
                           dj:dj + stride * ow:stride, :])
    patches = jnp.concatenate(cols, axis=-1)                        # (N, OH, OW, kh*kw*C)
    return patches.reshape(n * oh * ow, kh * kw * c), oh, ow


def _conv_bn(x, w_mat, bias, kh, kw, stride, pad, relu=True, residual=None):
    """Conv2d (no bias) + folded BN (+ residual) (+ ReLU) via tiled Pallas matmul.

    x:      (N, H, W, Cin_p) bf16 activation, channels already lane-padded.
    w_mat:  (Kp, Np) bf16, BN scale folded, cin/K/cout zero-padded (from prep).
    bias:   (1, Np) f32, zero-padded.
    Output stays channel-padded at Np (never sliced along channels).
    """
    n, h, w, cin_p = x.shape
    Kp, Np = w_mat.shape
    K = kh * kw * cin_p
    assert Kp >= K and Kp % 128 == 0 and Np % 128 == 0, (Kp, K, Np)
    assert bias.shape == (1, Np), (bias.shape, Np)

    patches, oh, ow = _im2col(x, kh, kw, stride, pad)
    M = patches.shape[0]

    tn = min(_pick_n_tile(Np), Np)
    tk = _pick_k_tile(Kp)
    tm = _pick_m_tile(M)
    Mp = _round_up(M, tm)

    patches = patches.astype(jnp.bfloat16)
    if (Mp, Kp) != (M, K):
        patches = jnp.pad(patches, ((0, Mp - M), (0, Kp - K)))

    grid = (Mp // tm, Np // tn, Kp // tk)
    x_spec = pl.BlockSpec((tm, tk), lambda i, j, k: (i, k))
    w_spec = pl.BlockSpec((tk, tn), lambda i, j, k: (k, j))
    b_spec = pl.BlockSpec((1, tn), lambda i, j, k: (0, j))
    o_spec = pl.BlockSpec((tm, tn), lambda i, j, k: (i, j))
    out_shape = jax.ShapeDtypeStruct((Mp, Np), jnp.bfloat16)
    scratch = [pltpu.VMEM((tm, tn), jnp.float32)]
    cparams = pltpu.CompilerParams(
        dimension_semantics=("parallel", "parallel", "arbitrary"),
        vmem_limit_bytes=_VMEM_LIMIT)
    flops = 2 * Mp * Kp * Np

    if residual is None:
        bytes_accessed = 2 * (Mp * Kp + Kp * Np + Mp * Np) + 4 * Np
        out = pl.pallas_call(
            functools.partial(_matmul_bias_kernel, relu=relu),
            out_shape=out_shape, grid=grid,
            in_specs=[x_spec, w_spec, b_spec], out_specs=o_spec,
            scratch_shapes=scratch, compiler_params=cparams,
            cost_estimate=pl.CostEstimate(flops=flops, transcendentals=0,
                                          bytes_accessed=bytes_accessed),
        )(patches, w_mat, bias)
    else:
        res = residual.reshape(M, Np).astype(jnp.bfloat16)
        if Mp != M:
            res = jnp.pad(res, ((0, Mp - M), (0, 0)))
        r_spec = pl.BlockSpec((tm, tn), lambda i, j, k: (i, j))
        bytes_accessed = 2 * (Mp * Kp + Kp * Np + 2 * Mp * Np) + 4 * Np
        out = pl.pallas_call(
            functools.partial(_matmul_bias_res_kernel, relu=relu),
            out_shape=out_shape, grid=grid,
            in_specs=[x_spec, w_spec, b_spec, r_spec], out_specs=o_spec,
            scratch_shapes=scratch, compiler_params=cparams,
            cost_estimate=pl.CostEstimate(flops=flops, transcendentals=0,
                                          bytes_accessed=bytes_accessed),
        )(patches, w_mat, bias, res)

    if Mp != M:
        out = out[:M]
    return out.reshape(n, oh, ow, Np)


def _maxpool_3x3_s2_p1(x):
    """MaxPool2d(kernel=3, stride=2, padding=1) in NHWC, tiled over rows."""
    n, h, w, c = x.shape
    xp = jnp.pad(x, ((0, 0), (1, 1), (1, 1), (0, 0)), constant_values=-jnp.inf)
    oh = (h + 2 - 3) // 2 + 1
    ow = (w + 2 - 3) // 2 + 1
    wins = []
    for di in range(3):
        for dj in range(3):
            wins.append(xp[:, di:di + 2 * oh:2, dj:dj + 2 * ow:2, :])
    M = n * oh * ow
    stacked = jnp.stack(wins, axis=0).reshape(9, M, c)

    tm = min(512, _round_up(M, 8))
    Mp = _round_up(M, tm)
    if Mp != M:
        stacked = jnp.pad(stacked, ((0, 0), (0, Mp - M), (0, 0)),
                          constant_values=-jnp.inf)

    out = pl.pallas_call(
        _maxpool_kernel,
        out_shape=jax.ShapeDtypeStruct((Mp, c), x.dtype),
        grid=(Mp // tm,),
        in_specs=[pl.BlockSpec((9, tm, c), lambda i: (0, i, 0))],
        out_specs=pl.BlockSpec((tm, c), lambda i: (i, 0)),
        compiler_params=pltpu.CompilerParams(
            dimension_semantics=("parallel",), vmem_limit_bytes=_VMEM_LIMIT),
    )(stacked)
    return out[:M].reshape(n, oh, ow, c)


def _head(x, l0_wT, l0_b):
    """adaptive_avg_pool2d(x, 1).reshape(bs, -1) @ W.T + b fused in one kernel."""
    n, h, w, c = x.shape
    xr = x.reshape(n, h * w, c)
    out = pl.pallas_call(
        _head_kernel,
        out_shape=jax.ShapeDtypeStruct((n, l0_wT.shape[1]), jnp.float32),
        in_specs=[_VMEM_WHOLE, _VMEM_WHOLE, _VMEM_WHOLE], out_specs=_VMEM_WHOLE,
    )(xr, l0_wT, l0_b)
    return out[:, :NUM_CLASSES]


# --------------------- one-time parameter preparation ----------------------

def _prep_conv(w_oihw, bn, cin_pad):
    """Fold BN scale into the weights, pad cin to the activation's padded channel
    count, reshape OIHW -> (kh*kw*cin_pad, cout), zero-pad K/Cout to tile-friendly
    multiples and cast to bf16."""
    cout, cin, kh, kw = w_oihw.shape
    assert cin_pad >= cin, (cin_pad, cin)
    gamma, beta, mean, var = bn
    scale = gamma / jnp.sqrt(var + 1e-5)
    bias = (beta - mean * scale).reshape(1, cout)
    wmat = jnp.transpose(w_oihw, (2, 3, 1, 0))                      # (kh, kw, cin, cout)
    if cin_pad != cin:
        wmat = jnp.pad(wmat, ((0, 0), (0, 0), (0, cin_pad - cin), (0, 0)))
    wmat = wmat.reshape(kh * kw * cin_pad, cout) * scale[None, :]
    K = kh * kw * cin_pad
    Kp = _round_up(K, 128)
    Np = _round_up(cout, _pick_n_tile(cout))
    wmat = jnp.pad(wmat, ((0, Kp - K), (0, Np - cout))).astype(jnp.bfloat16)
    bias = jnp.pad(bias, ((0, 0), (0, Np - cout))).astype(jnp.float32)
    return {'w': wmat, 'b': bias}


def prepare_params(params):
    """Runs once outside jit: all weight layout transforms / BN folds / padding."""
    p = {}
    act_ch = 3                                                      # stem input channels
    p['stem'] = _prep_conv(params['conv1_w'], params['bn1'], act_ch)
    act_ch = p['stem']['w'].shape[1]                                # padded activation channels

    layers = []
    for layer in params['layers']:
        blocks = []
        for bp in layer:
            c1 = _prep_conv(bp['conv1_w'], bp['bn1'], act_ch)
            mid_ch = c1['w'].shape[1]
            c2 = _prep_conv(bp['conv2_w'], bp['bn2'], mid_ch)
            blk = {'c1': c1, 'c2': c2}
            if 'down_w' in bp:
                blk['down'] = _prep_conv(bp['down_w'], bp['down_bn'], act_ch)
            blocks.append(blk)
            act_ch = c2['w'].shape[1]
        layers.append(blocks)
    p['layers'] = layers

    out_p = _round_up(NUM_CLASSES, 128)                             # lane-dense head output
    l0_wT = params['l0_w'].T.astype(jnp.float32)                    # (512, 137)
    p['l0_wT'] = jnp.pad(l0_wT, ((0, 0), (0, out_p - NUM_CLASSES)))
    p['l0_b'] = jnp.pad(params['l0_b'].reshape(1, -1).astype(jnp.float32),
                        ((0, 0), (0, out_p - NUM_CLASSES)))
    return p


# ----------------------------- ResNet-34 model -----------------------------

def _basic_block(x, blk, stride):
    out = _conv_bn(x, blk['c1']['w'], blk['c1']['b'], 3, 3, stride, 1, relu=True)
    if 'down' in blk:
        identity = _conv_bn(x, blk['down']['w'], blk['down']['b'],
                            1, 1, stride, 0, relu=False)
    else:
        identity = x
    # conv2 + bn2 + residual add + final ReLU fused in one Pallas kernel.
    return _conv_bn(out, blk['c2']['w'], blk['c2']['b'], 3, 3, 1, 1,
                    relu=True, residual=identity)


def resnet34_forward(x_nchw, prepped):
    """x_nchw: (N, 3, H, W) float32 (PyTorch layout) -> logits (N, 137) f32."""
    x = jnp.transpose(x_nchw, (0, 2, 3, 1)).astype(jnp.bfloat16)    # NCHW -> NHWC bf16
    x = _conv_bn(x, prepped['stem']['w'], prepped['stem']['b'],
                 7, 7, 2, 3, relu=True)
    x = _maxpool_3x3_s2_p1(x)
    for li, layer in enumerate(prepped['layers']):
        for bi, blk in enumerate(layer):
            stride = 2 if (li > 0 and bi == 0) else 1
            x = _basic_block(x, blk, stride)
    return _head(x, prepped['l0_wT'], prepped['l0_b'])


# ------------------------- deterministic parameters ------------------------

def init_params(key):
    keys = iter(jax.random.split(key, 256))

    def conv_w(cout, cin, k):
        fan_in = cin * k * k
        return (jax.random.normal(next(keys), (cout, cin, k, k), jnp.float32)
                * jnp.sqrt(2.0 / fan_in))

    def bn(c):
        gamma = jnp.ones((c,), jnp.float32)
        beta = jnp.zeros((c,), jnp.float32)
        mean = jax.random.normal(next(keys), (c,), jnp.float32) * 0.1
        var = jnp.abs(jax.random.normal(next(keys), (c,), jnp.float32)) * 0.1 + 1.0
        return (gamma, beta, mean, var)

    params = {'conv1_w': conv_w(64, 3, 7), 'bn1': bn(64)}

    cfg = [(64, 3), (128, 4), (256, 6), (512, 3)]   # ResNet-34 BasicBlock layout
    layers = []
    cin = 64
    for cout, nblocks in cfg:
        layer = []
        for b in range(nblocks):
            in_ch = cin if b == 0 else cout
            bp = {'conv1_w': conv_w(cout, in_ch, 3), 'bn1': bn(cout),
                  'conv2_w': conv_w(cout, cout, 3), 'bn2': bn(cout)}
            if b == 0 and in_ch != cout:            # layer2/3/4 first block downsample
                bp['down_w'] = conv_w(cout, in_ch, 1)
                bp['down_bn'] = bn(cout)
            layer.append(bp)
        layers.append(layer)
        cin = cout
    params['layers'] = layers

    params['l0_w'] = (jax.random.normal(next(keys), (NUM_CLASSES, 512), jnp.float32)
                      * (1.0 / jnp.sqrt(512.0)))
    params['l0_b'] = jnp.zeros((NUM_CLASSES,), jnp.float32)
    return params


# ----------------------------------- main -----------------------------------

if __name__ == "__main__":
    # Small but architecture-consistent shapes: 3 input channels (ResNet stem),
    # 32x32 spatial so the 32x downsampling ends at 1x1 before global pooling.
    x = jax.random.normal(jax.random.PRNGKey(0), (2, 3, 32, 32), jnp.float32)
    params = init_params(jax.random.PRNGKey(42))
    prepped = prepare_params(params)            # BN fold / layout / padding, once

    fwd = jax.jit(resnet34_forward)
    out = fwd(x, prepped)
    jax.block_until_ready(out)

    assert out.shape == (2, NUM_CLASSES), out.shape
    assert out.dtype == jnp.float32
    assert bool(jnp.isfinite(out).all())
    print("KERNEL_OK")
</pallas_src>

<mosaic_0001>
module attributes {stable_mosaic.version = 11 : i64} {
  func.func @_matmul_bias_kernel(%arg0: i32, %arg1: i32, %arg2: i32, %arg3: memref<512x256xbf16, #tpu.memory_space<vmem>>, %arg4: memref<256x128xbf16, #tpu.memory_space<vmem>>, %arg5: memref<1x128xf32, #tpu.memory_space<vmem>>, %arg6: memref<512x128xbf16, #tpu.memory_space<vmem>>, %arg7: memref<512x128xf32, #tpu.memory_space<vmem>>) attributes {dimension_semantics = [#tpu.dimension_semantics<parallel>, #tpu.dimension_semantics<parallel>, #tpu.dimension_semantics<arbitrary>], iteration_bounds = array<i64: 1, 1, 1>, scalar_prefetch = 0 : i64, scratch_operands = 1 : i64, tpu.core_type = #tpu.core_type<tc>, window_params = [{transform_indices = @transform_0, window_bounds = array<i64: 512, 256>}, {transform_indices = @transform_1, window_bounds = array<i64: 256, 128>}, {transform_indices = @transform_2, window_bounds = array<i64: 1, 128>}, {transform_indices = @transform_3, window_bounds = array<i64: 512, 128>}]} {
    %c0_i32 = arith.constant 0 : i32
    %0 = arith.cmpi eq, %arg2, %c0_i32 : i32
    %1 = arith.extui %0 : i1 to i32
    %c0_i32_0 = arith.constant 0 : i32
    %2 = arith.cmpi ne, %1, %c0_i32_0 : i32
    scf.if %2 {
      %cst_10 = arith.constant 0.000000e+00 : f32
      %12 = vector.broadcast %cst_10 : f32 to vector<512x128xf32>
      %c0_11 = arith.constant 0 : index
      %c0_12 = arith.constant 0 : index
      %13 = vector.load %arg7[%c0_11, %c0_12] : memref<512x128xf32, #tpu.memory_space<vmem>>, vector<512x128xf32>
      tpu.vector_store %arg7[%c0_11, %c0_12], %12 {strides = array<i32>} : memref<512x128xf32, #tpu.memory_space<vmem>>, vector<512x128xf32>,
    } else {
    }
    %c0 = arith.constant 0 : index
    %c0_1 = arith.constant 0 : index
    %3 = vector.load %arg7[%c0, %c0_1] : memref<512x128xf32, #tpu.memory_space<vmem>>, vector<512x128xf32>
    %c0_2 = arith.constant 0 : index
    %c0_3 = arith.constant 0 : index
    %4 = vector.load %arg3[%c0_2, %c0_3] : memref<512x256xbf16, #tpu.memory_space<vmem>>, vector<512x256xbf16>
    %c0_4 = arith.constant 0 : index
    %c0_5 = arith.constant 0 : index
    %5 = vector.load %arg4[%c0_4, %c0_5] : memref<256x128xbf16, #tpu.memory_space<vmem>>, vector<256x128xbf16>
    %cst = arith.constant dense<0.000000e+00> : vector<512x128xf32>
    %6 = tpu.matmul %4, %5, %cst {dimension_numbers = #tpu.dot_dimension_numbers<[1], [0], [0], [1], [0, 0, 1, 1], [], []>} : vector<512x256xbf16>, vector<256x128xbf16>, vector<512x128xf32> -> vector<512x128xf32>
    %7 = arith.addf %3, %6 : vector<512x128xf32>
    %c0_6 = arith.constant 0 : index
    %c0_7 = arith.constant 0 : index
    %8 = vector.load %arg7[%c0_6, %c0_7] : memref<512x128xf32, #tpu.memory_space<vmem>>, vector<512x128xf32>
    tpu.vector_store %arg7[%c0_6, %c0_7], %7 {strides = array<i32>} : memref<512x128xf32, #tpu.memory_space<vmem>>, vector<512x128xf32>,
    %c0_i32_8 = arith.constant 0 : i32
    %9 = arith.cmpi eq, %arg2, %c0_i32_8 : i32
    %10 = arith.extui %9 : i1 to i32
    %c0_i32_9 = arith.constant 0 : i32
    %11 = arith.cmpi ne, %10, %c0_i32_9 : i32
    scf.if %11 {
      %c0_10 = arith.constant 0 : index
      %c0_11 = arith.constant 0 : index
      %12 = vector.load %arg7[%c0_10, %c0_11] : memref<512x128xf32, #tpu.memory_space<vmem>>, vector<512x128xf32>
      %c0_12 = arith.constant 0 : index
      %c0_13 = arith.constant 0 : index
      %13 = vector.load %arg5[%c0_12, %c0_13] : memref<1x128xf32, #tpu.memory_space<vmem>>, vector<1x128xf32>
      %14 = vector.broadcast %13 : vector<1x128xf32> to vector<512x128xf32>
      %15 = arith.addf %12, %14 : vector<512x128xf32>
      %cst_14 = arith.constant 0.000000e+00 : f32
      %16 = vector.broadcast %cst_14 : f32 to vector<512x128xf32>
      %17 = arith.maximumf %15, %16 : vector<512x128xf32>
      %18 = arith.truncf %17 : vector<512x128xf32> to vector<512x128xbf16>
      %c0_15 = arith.constant 0 : index
      %c0_16 = arith.constant 0 : index
      %19 = vector.load %arg6[%c0_15, %c0_16] : memref<512x128xbf16, #tpu.memory_space<vmem>>, vector<512x128xbf16>
      tpu.vector_store %arg6[%c0_15, %c0_16], %18 {strides = array<i32>} : memref<512x128xbf16, #tpu.memory_space<vmem>>, vector<512x128xbf16>,
    } else {
    }
    return
  }
  func.func @transform_0(%arg0: i32, %arg1: i32, %arg2: i32) -> (i32, i32) {
    %c0_i32 = arith.constant 0 : i32
    return %arg0, %arg2 : i32, i32
  }
  func.func @transform_1(%arg0: i32, %arg1: i32, %arg2: i32) -> (i32, i32) {
    %c0_i32 = arith.constant 0 : i32
    return %arg2, %arg1 : i32, i32
  }
  func.func @transform_2(%arg0: i32, %arg1: i32, %arg2: i32) -> (i32, i32) {
    %c0_i32 = arith.constant 0 : i32
    %c0_i32_0 = arith.constant 0 : i32
    return %c0_i32, %arg1 : i32, i32
  }
  func.func @transform_3(%arg0: i32, %arg1: i32, %arg2: i32) -> (i32, i32) {
    %c0_i32 = arith.constant 0 : i32
    return %arg0, %arg1 : i32, i32
  }
}

module attributes {stable_mosaic.version = 11 : i64} {
  func.func @_maxpool_kernel(%arg0: i32, %arg1: memref<9x128x128xbf16, #tpu.memory_space<vmem>>, %arg2: memref<128x128xbf16, #tpu.memory_space<vmem>>) attributes {dimension_semantics = [#tpu.dimension_semantics<parallel>], iteration_bounds = array<i64: 1>, scalar_prefetch = 0 : i64, scratch_operands = 0 : i64, tpu.core_type = #tpu.core_type<tc>, window_params = [{transform_indices = @transform_0, window_bounds = array<i64: 9, 128, 128>}, {transform_indices = @transform_1, window_bounds = array<i64: 128, 128>}]} {
    %c0 = arith.constant 0 : index
    %c0_0 = arith.constant 0 : index
    %c0_1 = arith.constant 0 : index
    %0 = vector.load %arg1[%c0, %c0_0, %c0_1] : memref<9x128x128xbf16, #tpu.memory_space<vmem>>, vector<9x128x128xbf16>
    %cst = arith.constant dense<0xFF80> : vector<128x128xbf16>
    %1 = vector.multi_reduction <maximumf>, %0, %cst [0] : vector<9x128x128xbf16> to vector<128x128xbf16>
    %c0_2 = arith.constant 0 : index
    %c0_3 = arith.constant 0 : index
    %2 = vector.load %arg2[%c0_2, %c0_3] : memref<128x128xbf16, #tpu.memory_space<vmem>>, vector<128x128xbf16>
    tpu.vector_store %arg2[%c0_2, %c0_3], %1 {strides = array<i32>} : memref<128x128xbf16, #tpu.memory_space<vmem>>, vector<128x128xbf16>,
    return
  }
  func.func @transform_0(%arg0: i32) -> (i32, i32, i32) {
    %c0_i32 = arith.constant 0 : i32
    %c0_i32_0 = arith.constant 0 : i32
    %c0_i32_1 = arith.constant 0 : i32
    return %c0_i32, %arg0, %c0_i32_0 : i32, i32, i32
  }
  func.func @transform_1(%arg0: i32) -> (i32, i32) {
    %c0_i32 = arith.constant 0 : i32
    %c0_i32_0 = arith.constant 0 : i32
    return %arg0, %c0_i32 : i32, i32
  }
}

module attributes {stable_mosaic.version = 11 : i64} {
  func.func @_matmul_bias_res_kernel(%arg0: i32, %arg1: i32, %arg2: i32, %arg3: memref<128x384xbf16, #tpu.memory_space<vmem>>, %arg4: memref<384x128xbf16, #tpu.memory_space<vmem>>, %arg5: memref<1x128xf32, #tpu.memory_space<vmem>>, %arg6: memref<128x128xbf16, #tpu.memory_space<vmem>>, %arg7: memref<128x128xbf16, #tpu.memory_space<vmem>>, %arg8: memref<128x128xf32, #tpu.memory_space<vmem>>) attributes {dimension_semantics = [#tpu.dimension_semantics<parallel>, #tpu.dimension_semantics<parallel>, #tpu.dimension_semantics<arbitrary>], iteration_bounds = array<i64: 1, 1, 3>, scalar_prefetch = 0 : i64, scratch_operands = 1 : i64, tpu.core_type = #tpu.core_type<tc>, window_params = [{transform_indices = @transform_0, window_bounds = array<i64: 128, 384>}, {transform_indices = @transform_1, window_bounds = array<i64: 384, 128>}, {transform_indices = @transform_2, window_bounds = array<i64: 1, 128>}, {transform_indices = @transform_3, window_bounds = array<i64: 128, 128>}, {transform_indices = @transform_4, window_bounds = array<i64: 128, 128>}]} {
    %c0_i32 = arith.constant 0 : i32
    %0 = arith.cmpi eq, %arg2, %c0_i32 : i32
    %1 = arith.extui %0 : i1 to i32
    %c0_i32_0 = arith.constant 0 : i32
    %2 = arith.cmpi ne, %1, %c0_i32_0 : i32
    scf.if %2 {
      %cst_9 = arith.constant 0.000000e+00 : f32
      %12 = vector.broadcast %cst_9 : f32 to vector<128x128xf32>
      %c0_10 = arith.constant 0 : index
      %c0_11 = arith.constant 0 : index
      %13 = vector.load %arg8[%c0_10, %c0_11] : memref<128x128xf32, #tpu.memory_space<vmem>>, vector<128x128xf32>
      tpu.vector_store %arg8[%c0_10, %c0_11], %12 {strides = array<i32>} : memref<128x128xf32, #tpu.memory_space<vmem>>, vector<128x128xf32>,
    } else {
    }
    %c0 = arith.constant 0 : index
    %c0_1 = arith.constant 0 : index
    %3 = vector.load %arg8[%c0, %c0_1] : memref<128x128xf32, #tpu.memory_space<vmem>>, vector<128x128xf32>
    %c0_2 = arith.constant 0 : index
    %c0_3 = arith.constant 0 : index
    %4 = vector.load %arg3[%c0_2, %c0_3] : memref<128x384xbf16, #tpu.memory_space<vmem>>, vector<128x384xbf16>
    %c0_4 = arith.constant 0 : index
    %c0_5 = arith.constant 0 : index
    %5 = vector.load %arg4[%c0_4, %c0_5] : memref<384x128xbf16, #tpu.memory_space<vmem>>, vector<384x128xbf16>
    %cst = arith.constant dense<0.000000e+00> : vector<128x128xf32>
    %6 = tpu.matmul %4, %5, %cst {dimension_numbers = #tpu.dot_dimension_numbers<[1], [0], [0], [1], [0, 0, 1, 1], [], []>} : vector<128x384xbf16>, vector<384x128xbf16>, vector<128x128xf32> -> vector<128x128xf32>
    %7 = arith.addf %3, %6 : vector<128x128xf32>
    %c0_6 = arith.constant 0 : index
    %c0_7 = arith.constant 0 : index
    %8 = vector.load %arg8[%c0_6, %c0_7] : memref<128x128xf32, #tpu.memory_space<vmem>>, vector<128x128xf32>
    tpu.vector_store %arg8[%c0_6, %c0_7], %7 {strides = array<i32>} : memref<128x128xf32, #tpu.memory_space<vmem>>, vector<128x128xf32>,
    %c2_i32 = arith.constant 2 : i32
    %9 = arith.cmpi eq, %arg2, %c2_i32 : i32
    %10 = arith.extui %9 : i1 to i32
    %c0_i32_8 = arith.constant 0 : i32
    %11 = arith.cmpi ne, %10, %c0_i32_8 : i32
    scf.if %11 {
      %c0_9 = arith.constant 0 : index
      %c0_10 = arith.constant 0 : index
      %12 = vector.load %arg8[%c0_9, %c0_10] : memref<128x128xf32, #tpu.memory_space<vmem>>, vector<128x128xf32>
      %c0_11 = arith.constant 0 : index
      %c0_12 = arith.constant 0 : index
      %13 = vector.load %arg5[%c0_11, %c0_12] : memref<1x128xf32, #tpu.memory_space<vmem>>, vector<1x128xf32>
      %14 = vector.broadcast %13 : vector<1x128xf32> to vector<128x128xf32>
      %15 = arith.addf %12, %14 : vector<128x128xf32>
      %c0_13 = arith.constant 0 : index
      %c0_14 = arith.constant 0 : index
      %16 = vector.load %arg6[%c0_13, %c0_14] : memref<128x128xbf16, #tpu.memory_space<vmem>>, vector<128x128xbf16>
      %17 = arith.extf %16 : vector<128x128xbf16> to vector<128x128xf32>
      %18 = arith.addf %15, %17 : vector<128x128xf32>
      %cst_15 = arith.constant 0.000000e+00 : f32
      %19 = vector.broadcast %cst_15 : f32 to vector<128x128xf32>
      %20 = arith.maximumf %18, %19 : vector<128x128xf32>
      %21 = arith.truncf %20 : vector<128x128xf32> to vector<128x128xbf16>
      %c0_16 = arith.constant 0 : index
      %c0_17 = arith.constant 0 : index
      %22 = vector.load %arg7[%c0_16, %c0_17] : memref<128x128xbf16, #tpu.memory_space<vmem>>, vector<128x128xbf16>
      tpu.vector_store %arg7[%c0_16, %c0_17], %21 {strides = array<i32>} : memref<128x128xbf16, #tpu.memory_space<vmem>>, vector<128x128xbf16>,
    } else {
    }
    return
  }
  func.func @transform_0(%arg0: i32, %arg1: i32, %arg2: i32) -> (i32, i32) {
    %c0_i32 = arith.constant 0 : i32
    return %arg0, %arg2 : i32, i32
  }
  func.func @transform_1(%arg0: i32, %arg1: i32, %arg2: i32) -> (i32, i32) {
    %c0_i32 = arith.constant 0 : i32
    return %arg2, %arg1 : i32, i32
  }
  func.func @transform_2(%arg0: i32, %arg1: i32, %arg2: i32) -> (i32, i32) {
    %c0_i32 = arith.constant 0 : i32
    %c0_i32_0 = arith.constant 0 : i32
    return %c0_i32, %arg1 : i32, i32
  }
  func.func @transform_3(%arg0: i32, %arg1: i32, %arg2: i32) -> (i32, i32) {
    %c0_i32 = arith.constant 0 : i32
    return %arg0, %arg1 : i32, i32
  }
  func.func @transform_4(%arg0: i32, %arg1: i32, %arg2: i32) -> (i32, i32) {
    %c0_i32 = arith.constant 0 : i32
    return %arg0, %arg1 : i32, i32
  }
}

module attributes {stable_mosaic.version = 11 : i64} {
  func.func @_matmul_bias_kernel(%arg0: i32, %arg1: i32, %arg2: i32, %arg3: memref<128x384xbf16, #tpu.memory_space<vmem>>, %arg4: memref<384x128xbf16, #tpu.memory_space<vmem>>, %arg5: memref<1x128xf32, #tpu.memory_space<vmem>>, %arg6: memref<128x128xbf16, #tpu.memory_space<vmem>>, %arg7: memref<128x128xf32, #tpu.memory_space<vmem>>) attributes {dimension_semantics = [#tpu.dimension_semantics<parallel>, #tpu.dimension_semantics<parallel>, #tpu.dimension_semantics<arbitrary>], iteration_bounds = array<i64: 1, 1, 3>, scalar_prefetch = 0 : i64, scratch_operands = 1 : i64, tpu.core_type = #tpu.core_type<tc>, window_params = [{transform_indices = @transform_0, window_bounds = array<i64: 128, 384>}, {transform_indices = @transform_1, window_bounds = array<i64: 384, 128>}, {transform_indices = @transform_2, window_bounds = array<i64: 1, 128>}, {transform_indices = @transform_3, window_bounds = array<i64: 128, 128>}]} {
    %c0_i32 = arith.constant 0 : i32
    %0 = arith.cmpi eq, %arg2, %c0_i32 : i32
    %1 = arith.extui %0 : i1 to i32
    %c0_i32_0 = arith.constant 0 : i32
    %2 = arith.cmpi ne, %1, %c0_i32_0 : i32
    scf.if %2 {
      %cst_9 = arith.constant 0.000000e+00 : f32
      %12 = vector.broadcast %cst_9 : f32 to vector<128x128xf32>
      %c0_10 = arith.constant 0 : index
      %c0_11 = arith.constant 0 : index
      %13 = vector.load %arg7[%c0_10, %c0_11] : memref<128x128xf32, #tpu.memory_space<vmem>>, vector<128x128xf32>
      tpu.vector_store %arg7[%c0_10, %c0_11], %12 {strides = array<i32>} : memref<128x128xf32, #tpu.memory_space<vmem>>, vector<128x128xf32>,
    } else {
    }
    %c0 = arith.constant 0 : index
    %c0_1 = arith.constant 0 : index
    %3 = vector.load %arg7[%c0, %c0_1] : memref<128x128xf32, #tpu.memory_space<vmem>>, vector<128x128xf32>
    %c0_2 = arith.constant 0 : index
    %c0_3 = arith.constant 0 : index
    %4 = vector.load %arg3[%c0_2, %c0_3] : memref<128x384xbf16, #tpu.memory_space<vmem>>, vector<128x384xbf16>
    %c0_4 = arith.constant 0 : index
    %c0_5 = arith.constant 0 : index
    %5 = vector.load %arg4[%c0_4, %c0_5] : memref<384x128xbf16, #tpu.memory_space<vmem>>, vector<384x128xbf16>
    %cst = arith.constant dense<0.000000e+00> : vector<128x128xf32>
    %6 = tpu.matmul %4, %5, %cst {dimension_numbers = #tpu.dot_dimension_numbers<[1], [0], [0], [1], [0, 0, 1, 1], [], []>} : vector<128x384xbf16>, vector<384x128xbf16>, vector<128x128xf32> -> vector<128x128xf32>
    %7 = arith.addf %3, %6 : vector<128x128xf32>
    %c0_6 = arith.constant 0 : index
    %c0_7 = arith.constant 0 : index
    %8 = vector.load %arg7[%c0_6, %c0_7] : memref<128x128xf32, #tpu.memory_space<vmem>>, vector<128x128xf32>
    tpu.vector_store %arg7[%c0_6, %c0_7], %7 {strides = array<i32>} : memref<128x128xf32, #tpu.memory_space<vmem>>, vector<128x128xf32>,
    %c2_i32 = arith.constant 2 : i32
    %9 = arith.cmpi eq, %arg2, %c2_i32 : i32
    %10 = arith.extui %9 : i1 to i32
    %c0_i32_8 = arith.constant 0 : i32
    %11 = arith.cmpi ne, %10, %c0_i32_8 : i32
    scf.if %11 {
      %c0_9 = arith.constant 0 : index
      %c0_10 = arith.constant 0 : index
      %12 = vector.load %arg7[%c0_9, %c0_10] : memref<128x128xf32, #tpu.memory_space<vmem>>, vector<128x128xf32>
      %c0_11 = arith.constant 0 : index
      %c0_12 = arith.constant 0 : index
      %13 = vector.load %arg5[%c0_11, %c0_12] : memref<1x128xf32, #tpu.memory_space<vmem>>, vector<1x128xf32>
      %14 = vector.broadcast %13 : vector<1x128xf32> to vector<128x128xf32>
      %15 = arith.addf %12, %14 : vector<128x128xf32>
      %cst_13 = arith.constant 0.000000e+00 : f32
      %16 = vector.broadcast %cst_13 : f32 to vector<128x128xf32>
      %17 = arith.maximumf %15, %16 : vector<128x128xf32>
      %18 = arith.truncf %17 : vector<128x128xf32> to vector<128x128xbf16>
      %c0_14 = arith.constant 0 : index
      %c0_15 = arith.constant 0 : index
      %19 = vector.load %arg6[%c0_14, %c0_15] : memref<128x128xbf16, #tpu.memory_space<vmem>>, vector<128x128xbf16>
      tpu.vector_store %arg6[%c0_14, %c0_15], %18 {strides = array<i32>} : memref<128x128xbf16, #tpu.memory_space<vmem>>, vector<128x128xbf16>,
    } else {
    }
    return
  }
  func.func @transform_0(%arg0: i32, %arg1: i32, %arg2: i32) -> (i32, i32) {
    %c0_i32 = arith.constant 0 : i32
    return %arg0, %arg2 : i32, i32
  }
  func.func @transform_1(%arg0: i32, %arg1: i32, %arg2: i32) -> (i32, i32) {
    %c0_i32 = arith.constant 0 : i32
    return %arg2, %arg1 : i32, i32
  }
  func.func @transform_2(%arg0: i32, %arg1: i32, %arg2: i32) -> (i32, i32) {
    %c0_i32 = arith.constant 0 : i32
    %c0_i32_0 = arith.constant 0 : i32
    return %c0_i32, %arg1 : i32, i32
  }
  func.func @transform_3(%arg0: i32, %arg1: i32, %arg2: i32) -> (i32, i32) {
    %c0_i32 = arith.constant 0 : i32
    return %arg0, %arg1 : i32, i32
  }
}

module attributes {stable_mosaic.version = 11 : i64} {
  func.func @_matmul_bias_kernel(%arg0: i32, %arg1: i32, %arg2: i32, %arg3: memref<32x384xbf16, #tpu.memory_space<vmem>>, %arg4: memref<384x128xbf16, #tpu.memory_space<vmem>>, %arg5: memref<1x128xf32, #tpu.memory_space<vmem>>, %arg6: memref<32x128xbf16, #tpu.memory_space<vmem>>, %arg7: memref<32x128xf32, #tpu.memory_space<vmem>>) attributes {dimension_semantics = [#tpu.dimension_semantics<parallel>, #tpu.dimension_semantics<parallel>, #tpu.dimension_semantics<arbitrary>], iteration_bounds = array<i64: 1, 1, 3>, scalar_prefetch = 0 : i64, scratch_operands = 1 : i64, tpu.core_type = #tpu.core_type<tc>, window_params = [{transform_indices = @transform_0, window_bounds = array<i64: 32, 384>}, {transform_indices = @transform_1, window_bounds = array<i64: 384, 128>}, {transform_indices = @transform_2, window_bounds = array<i64: 1, 128>}, {transform_indices = @transform_3, window_bounds = array<i64: 32, 128>}]} {
    %c0_i32 = arith.constant 0 : i32
    %0 = arith.cmpi eq, %arg2, %c0_i32 : i32
    %1 = arith.extui %0 : i1 to i32
    %c0_i32_0 = arith.constant 0 : i32
    %2 = arith.cmpi ne, %1, %c0_i32_0 : i32
    scf.if %2 {
      %cst_9 = arith.constant 0.000000e+00 : f32
      %12 = vector.broadcast %cst_9 : f32 to vector<32x128xf32>
      %c0_10 = arith.constant 0 : index
      %c0_11 = arith.constant 0 : index
      %13 = vector.load %arg7[%c0_10, %c0_11] : memref<32x128xf32, #tpu.memory_space<vmem>>, vector<32x128xf32>
      tpu.vector_store %arg7[%c0_10, %c0_11], %12 {strides = array<i32>} : memref<32x128xf32, #tpu.memory_space<vmem>>, vector<32x128xf32>,
    } else {
    }
    %c0 = arith.constant 0 : index
    %c0_1 = arith.constant 0 : index
    %3 = vector.load %arg7[%c0, %c0_1] : memref<32x128xf32, #tpu.memory_space<vmem>>, vector<32x128xf32>
    %c0_2 = arith.constant 0 : index
    %c0_3 = arith.constant 0 : index
    %4 = vector.load %arg3[%c0_2, %c0_3] : memref<32x384xbf16, #tpu.memory_space<vmem>>, vector<32x384xbf16>
    %c0_4 = arith.constant 0 : index
    %c0_5 = arith.constant 0 : index
    %5 = vector.load %arg4[%c0_4, %c0_5] : memref<384x128xbf16, #tpu.memory_space<vmem>>, vector<384x128xbf16>
    %cst = arith.constant dense<0.000000e+00> : vector<32x128xf32>
    %6 = tpu.matmul %4, %5, %cst {dimension_numbers = #tpu.dot_dimension_numbers<[1], [0], [0], [1], [0, 0, 1, 1], [], []>} : vector<32x384xbf16>, vector<384x128xbf16>, vector<32x128xf32> -> vector<32x128xf32>
    %7 = arith.addf %3, %6 : vector<32x128xf32>
    %c0_6 = arith.constant 0 : index
    %c0_7 = arith.constant 0 : index
    %8 = vector.load %arg7[%c0_6, %c0_7] : memref<32x128xf32, #tpu.memory_space<vmem>>, vector<32x128xf32>
    tpu.vector_store %arg7[%c0_6, %c0_7], %7 {strides = array<i32>} : memref<32x128xf32, #tpu.memory_space<vmem>>, vector<32x128xf32>,
    %c2_i32 = arith.constant 2 : i32
    %9 = arith.cmpi eq, %arg2, %c2_i32 : i32
    %10 = arith.extui %9 : i1 to i32
    %c0_i32_8 = arith.constant 0 : i32
    %11 = arith.cmpi ne, %10, %c0_i32_8 : i32
    scf.if %11 {
      %c0_9 = arith.constant 0 : index
      %c0_10 = arith.constant 0 : index
      %12 = vector.load %arg7[%c0_9, %c0_10] : memref<32x128xf32, #tpu.memory_space<vmem>>, vector<32x128xf32>
      %c0_11 = arith.constant 0 : index
      %c0_12 = arith.constant 0 : index
      %13 = vector.load %arg5[%c0_11, %c0_12] : memref<1x128xf32, #tpu.memory_space<vmem>>, vector<1x128xf32>
      %14 = vector.broadcast %13 : vector<1x128xf32> to vector<32x128xf32>
      %15 = arith.addf %12, %14 : vector<32x128xf32>
      %cst_13 = arith.constant 0.000000e+00 : f32
      %16 = vector.broadcast %cst_13 : f32 to vector<32x128xf32>
      %17 = arith.maximumf %15, %16 : vector<32x128xf32>
      %18 = arith.truncf %17 : vector<32x128xf32> to vector<32x128xbf16>
      %c0_14 = arith.constant 0 : index
      %c0_15 = arith.constant 0 : index
      %19 = vector.load %arg6[%c0_14, %c0_15] : memref<32x128xbf16, #tpu.memory_space<vmem>>, vector<32x128xbf16>
      tpu.vector_store %arg6[%c0_14, %c0_15], %18 {strides = array<i32>} : memref<32x128xbf16, #tpu.memory_space<vmem>>, vector<32x128xbf16>,
    } else {
    }
    return
  }
  func.func @transform_0(%arg0: i32, %arg1: i32, %arg2: i32) -> (i32, i32) {
    %c0_i32 = arith.constant 0 : i32
    return %arg0, %arg2 : i32, i32
  }
  func.func @transform_1(%arg0: i32, %arg1: i32, %arg2: i32) -> (i32, i32) {
    %c0_i32 = arith.constant 0 : i32
    return %arg2, %arg1 : i32, i32
  }
  func.func @transform_2(%arg0: i32, %arg1: i32, %arg2: i32) -> (i32, i32) {
    %c0_i32 = arith.constant 0 : i32
    %c0_i32_0 = arith.constant 0 : i32
    return %c0_i32, %arg1 : i32, i32
  }
  func.func @transform_3(%arg0: i32, %arg1: i32, %arg2: i32) -> (i32, i32) {
    %c0_i32 = arith.constant 0 : i32
    return %arg0, %arg1 : i32, i32
  }
}

module attributes {stable_mosaic.version = 11 : i64} {
  func.func @_matmul_bias_kernel(%arg0: i32, %arg1: i32, %arg2: i32, %arg3: memref<32x128xbf16, #tpu.memory_space<vmem>>, %arg4: memref<128x128xbf16, #tpu.memory_space<vmem>>, %arg5: memref<1x128xf32, #tpu.memory_space<vmem>>, %arg6: memref<32x128xbf16, #tpu.memory_space<vmem>>, %arg7: memref<32x128xf32, #tpu.memory_space<vmem>>) attributes {dimension_semantics = [#tpu.dimension_semantics<parallel>, #tpu.dimension_semantics<parallel>, #tpu.dimension_semantics<arbitrary>], iteration_bounds = array<i64: 1, 1, 1>, scalar_prefetch = 0 : i64, scratch_operands = 1 : i64, tpu.core_type = #tpu.core_type<tc>, window_params = [{transform_indices = @transform_0, window_bounds = array<i64: 32, 128>}, {transform_indices = @transform_1, window_bounds = array<i64: 128, 128>}, {transform_indices = @transform_2, window_bounds = array<i64: 1, 128>}, {transform_indices = @transform_3, window_bounds = array<i64: 32, 128>}]} {
    %c0_i32 = arith.constant 0 : i32
    %0 = arith.cmpi eq, %arg2, %c0_i32 : i32
    %1 = arith.extui %0 : i1 to i32
    %c0_i32_0 = arith.constant 0 : i32
    %2 = arith.cmpi ne, %1, %c0_i32_0 : i32
    scf.if %2 {
      %cst_10 = arith.constant 0.000000e+00 : f32
      %12 = vector.broadcast %cst_10 : f32 to vector<32x128xf32>
      %c0_11 = arith.constant 0 : index
      %c0_12 = arith.constant 0 : index
      %13 = vector.load %arg7[%c0_11, %c0_12] : memref<32x128xf32, #tpu.memory_space<vmem>>, vector<32x128xf32>
      tpu.vector_store %arg7[%c0_11, %c0_12], %12 {strides = array<i32>} : memref<32x128xf32, #tpu.memory_space<vmem>>, vector<32x128xf32>,
    } else {
    }
    %c0 = arith.constant 0 : index
    %c0_1 = arith.constant 0 : index
    %3 = vector.load %arg7[%c0, %c0_1] : memref<32x128xf32, #tpu.memory_space<vmem>>, vector<32x128xf32>
    %c0_2 = arith.constant 0 : index
    %c0_3 = arith.constant 0 : index
    %4 = vector.load %arg3[%c0_2, %c0_3] : memref<32x128xbf16, #tpu.memory_space<vmem>>, vector<32x128xbf16>
    %c0_4 = arith.constant 0 : index
    %c0_5 = arith.constant 0 : index
    %5 = vector.load %arg4[%c0_4, %c0_5] : memref<128x128xbf16, #tpu.memory_space<vmem>>, vector<128x128xbf16>
    %cst = arith.constant dense<0.000000e+00> : vector<32x128xf32>
    %6 = tpu.matmul %4, %5, %cst {dimension_numbers = #tpu.dot_dimension_numbers<[1], [0], [0], [1], [0, 0, 1, 1], [], []>} : vector<32x128xbf16>, vector<128x128xbf16>, vector<32x128xf32> -> vector<32x128xf32>
    %7 = arith.addf %3, %6 : vector<32x128xf32>
    %c0_6 = arith.constant 0 : index
    %c0_7 = arith.constant 0 : index
    %8 = vector.load %arg7[%c0_6, %c0_7] : memref<32x128xf32, #tpu.memory_space<vmem>>, vector<32x128xf32>
    tpu.vector_store %arg7[%c0_6, %c0_7], %7 {strides = array<i32>} : memref<32x128xf32, #tpu.memory_space<vmem>>, vector<32x128xf32>,
    %c0_i32_8 = arith.constant 0 : i32
    %9 = arith.cmpi eq, %arg2, %c0_i32_8 : i32
    %10 = arith.extui %9 : i1 to i32
    %c0_i32_9 = arith.constant 0 : i32
    %11 = arith.cmpi ne, %10, %c0_i32_9 : i32
    scf.if %11 {
      %c0_10 = arith.constant 0 : index
      %c0_11 = arith.constant 0 : index
      %12 = vector.load %arg7[%c0_10, %c0_11] : memref<32x128xf32, #tpu.memory_space<vmem>>, vector<32x128xf32>
      %c0_12 = arith.constant 0 : index
      %c0_13 = arith.constant 0 : index
      %13 = vector.load %arg5[%c0_12, %c0_13] : memref<1x128xf32, #tpu.memory_space<vmem>>, vector<1x128xf32>
      %14 = vector.broadcast %13 : vector<1x128xf32> to vector<32x128xf32>
      %15 = arith.addf %12, %14 : vector<32x128xf32>
      %16 = arith.truncf %15 : vector<32x128xf32> to vector<32x128xbf16>
      %c0_14 = arith.constant 0 : index
      %c0_15 = arith.constant 0 : index
      %17 = vector.load %arg6[%c0_14, %c0_15] : memref<32x128xbf16, #tpu.memory_space<vmem>>, vector<32x128xbf16>
      tpu.vector_store %arg6[%c0_14, %c0_15], %16 {strides = array<i32>} : memref<32x128xbf16, #tpu.memory_space<vmem>>, vector<32x128xbf16>,
    } else {
    }
    return
  }
  func.func @transform_0(%arg0: i32, %arg1: i32, %arg2: i32) -> (i32, i32) {
    %c0_i32 = arith.constant 0 : i32
    return %arg0, %arg2 : i32, i32
  }
  func.func @transform_1(%arg0: i32, %arg1: i32, %arg2: i32) -> (i32, i32) {
    %c0_i32 = arith.constant 0 : i32
    return %arg2, %arg1 : i32, i32
  }
  func.func @transform_2(%arg0: i32, %arg1: i32, %arg2: i32) -> (i32, i32) {
    %c0_i32 = arith.constant 0 : i32
    %c0_i32_0 = arith.constant 0 : i32
    return %c0_i32, %arg1 : i32, i32
  }
  func.func @transform_3(%arg0: i32, %arg1: i32, %arg2: i32) -> (i32, i32) {
    %c0_i32 = arith.constant 0 : i32
    return %arg0, %arg1 : i32, i32
  }
}

module attributes {stable_mosaic.version = 11 : i64} {
  func.func @_matmul_bias_res_kernel(%arg0: i32, %arg1: i32, %arg2: i32, %arg3: memref<32x384xbf16, #tpu.memory_space<vmem>>, %arg4: memref<384x128xbf16, #tpu.memory_space<vmem>>, %arg5: memref<1x128xf32, #tpu.memory_space<vmem>>, %arg6: memref<32x128xbf16, #tpu.memory_space<vmem>>, %arg7: memref<32x128xbf16, #tpu.memory_space<vmem>>, %arg8: memref<32x128xf32, #tpu.memory_space<vmem>>) attributes {dimension_semantics = [#tpu.dimension_semantics<parallel>, #tpu.dimension_semantics<parallel>, #tpu.dimension_semantics<arbitrary>], iteration_bounds = array<i64: 1, 1, 3>, scalar_prefetch = 0 : i64, scratch_operands = 1 : i64, tpu.core_type = #tpu.core_type<tc>, window_params = [{transform_indices = @transform_0, window_bounds = array<i64: 32, 384>}, {transform_indices = @transform_1, window_bounds = array<i64: 384, 128>}, {transform_indices = @transform_2, window_bounds = array<i64: 1, 128>}, {transform_indices = @transform_3, window_bounds = array<i64: 32, 128>}, {transform_indices = @transform_4, window_bounds = array<i64: 32, 128>}]} {
    %c0_i32 = arith.constant 0 : i32
    %0 = arith.cmpi eq, %arg2, %c0_i32 : i32
    %1 = arith.extui %0 : i1 to i32
    %c0_i32_0 = arith.constant 0 : i32
    %2 = arith.cmpi ne, %1, %c0_i32_0 : i32
    scf.if %2 {
      %cst_9 = arith.constant 0.000000e+00 : f32
      %12 = vector.broadcast %cst_9 : f32 to vector<32x128xf32>
      %c0_10 = arith.constant 0 : index
      %c0_11 = arith.constant 0 : index
      %13 = vector.load %arg8[%c0_10, %c0_11] : memref<32x128xf32, #tpu.memory_space<vmem>>, vector<32x128xf32>
      tpu.vector_store %arg8[%c0_10, %c0_11], %12 {strides = array<i32>} : memref<32x128xf32, #tpu.memory_space<vmem>>, vector<32x128xf32>,
    } else {
    }
    %c0 = arith.constant 0 : index
    %c0_1 = arith.constant 0 : index
    %3 = vector.load %arg8[%c0, %c0_1] : memref<32x128xf32, #tpu.memory_space<vmem>>, vector<32x128xf32>
    %c0_2 = arith.constant 0 : index
    %c0_3 = arith.constant 0 : index
    %4 = vector.load %arg3[%c0_2, %c0_3] : memref<32x384xbf16, #tpu.memory_space<vmem>>, vector<32x384xbf16>
    %c0_4 = arith.constant 0 : index
    %c0_5 = arith.constant 0 : index
    %5 = vector.load %arg4[%c0_4, %c0_5] : memref<384x128xbf16, #tpu.memory_space<vmem>>, vector<384x128xbf16>
    %cst = arith.constant dense<0.000000e+00> : vector<32x128xf32>
    %6 = tpu.matmul %4, %5, %cst {dimension_numbers = #tpu.dot_dimension_numbers<[1], [0], [0], [1], [0, 0, 1, 1], [], []>} : vector<32x384xbf16>, vector<384x128xbf16>, vector<32x128xf32> -> vector<32x128xf32>
    %7 = arith.addf %3, %6 : vector<32x128xf32>
    %c0_6 = arith.constant 0 : index
    %c0_7 = arith.constant 0 : index
    %8 = vector.load %arg8[%c0_6, %c0_7] : memref<32x128xf32, #tpu.memory_space<vmem>>, vector<32x128xf32>
    tpu.vector_store %arg8[%c0_6, %c0_7], %7 {strides = array<i32>} : memref<32x128xf32, #tpu.memory_space<vmem>>, vector<32x128xf32>,
    %c2_i32 = arith.constant 2 : i32
    %9 = arith.cmpi eq, %arg2, %c2_i32 : i32
    %10 = arith.extui %9 : i1 to i32
    %c0_i32_8 = arith.constant 0 : i32
    %11 = arith.cmpi ne, %10, %c0_i32_8 : i32
    scf.if %11 {
      %c0_9 = arith.constant 0 : index
      %c0_10 = arith.constant 0 : index
      %12 = vector.load %arg8[%c0_9, %c0_10] : memref<32x128xf32, #tpu.memory_space<vmem>>, vector<32x128xf32>
      %c0_11 = arith.constant 0 : index
      %c0_12 = arith.constant 0 : index
      %13 = vector.load %arg5[%c0_11, %c0_12] : memref<1x128xf32, #tpu.memory_space<vmem>>, vector<1x128xf32>
      %14 = vector.broadcast %13 : vector<1x128xf32> to vector<32x128xf32>
      %15 = arith.addf %12, %14 : vector<32x128xf32>
      %c0_13 = arith.constant 0 : index
      %c0_14 = arith.constant 0 : index
      %16 = vector.load %arg6[%c0_13, %c0_14] : memref<32x128xbf16, #tpu.memory_space<vmem>>, vector<32x128xbf16>
      %17 = arith.extf %16 : vector<32x128xbf16> to vector<32x128xf32>
      %18 = arith.addf %15, %17 : vector<32x128xf32>
      %cst_15 = arith.constant 0.000000e+00 : f32
      %19 = vector.broadcast %cst_15 : f32 to vector<32x128xf32>
      %20 = arith.maximumf %18, %19 : vector<32x128xf32>
      %21 = arith.truncf %20 : vector<32x128xf32> to vector<32x128xbf16>
      %c0_16 = arith.constant 0 : index
      %c0_17 = arith.constant 0 : index
      %22 = vector.load %arg7[%c0_16, %c0_17] : memref<32x128xbf16, #tpu.memory_space<vmem>>, vector<32x128xbf16>
      tpu.vector_store %arg7[%c0_16, %c0_17], %21 {strides = array<i32>} : memref<32x128xbf16, #tpu.memory_space<vmem>>, vector<32x128xbf16>,
    } else {
    }
    return
  }
  func.func @transform_0(%arg0: i32, %arg1: i32, %arg2: i32) -> (i32, i32) {
    %c0_i32 = arith.constant 0 : i32
    return %arg0, %arg2 : i32, i32
  }
  func.func @transform_1(%arg0: i32, %arg1: i32, %arg2: i32) -> (i32, i32) {
    %c0_i32 = arith.constant 0 : i32
    return %arg2, %arg1 : i32, i32
  }
  func.func @transform_2(%arg0: i32, %arg1: i32, %arg2: i32) -> (i32, i32) {
    %c0_i32 = arith.constant 0 : i32
    %c0_i32_0 = arith.constant 0 : i32
    return %c0_i32, %arg1 : i32, i32
  }
  func.func @transform_3(%arg0: i32, %arg1: i32, %arg2: i32) -> (i32, i32) {
    %c0_i32 = arith.constant 0 : i32
    return %arg0, %arg1 : i32, i32
  }
  func.func @transform_4(%arg0: i32, %arg1: i32, %arg2: i32) -> (i32, i32) {
    %c0_i32 = arith.constant 0 : i32
    return %arg0, %arg1 : i32, i32
  }
}

module attributes {stable_mosaic.version = 11 : i64} {
  func.func @_matmul_bias_kernel(%arg0: i32, %arg1: i32, %arg2: i32, %arg3: memref<8x384xbf16, #tpu.memory_space<vmem>>, %arg4: memref<384x256xbf16, #tpu.memory_space<vmem>>, %arg5: memref<1x256xf32, #tpu.memory_space<vmem>>, %arg6: memref<8x256xbf16, #tpu.memory_space<vmem>>, %arg7: memref<8x256xf32, #tpu.memory_space<vmem>>) attributes {dimension_semantics = [#tpu.dimension_semantics<parallel>, #tpu.dimension_semantics<parallel>, #tpu.dimension_semantics<arbitrary>], iteration_bounds = array<i64: 1, 1, 3>, scalar_prefetch = 0 : i64, scratch_operands = 1 : i64, tpu.core_type = #tpu.core_type<tc>, window_params = [{transform_indices = @transform_0, window_bounds = array<i64: 8, 384>}, {transform_indices = @transform_1, window_bounds = array<i64: 384, 256>}, {transform_indices = @transform_2, window_bounds = array<i64: 1, 256>}, {transform_indices = @transform_3, window_bounds = array<i64: 8, 256>}]} {
    %c0_i32 = arith.constant 0 : i32
    %0 = arith.cmpi eq, %arg2, %c0_i32 : i32
    %1 = arith.extui %0 : i1 to i32
    %c0_i32_0 = arith.constant 0 : i32
    %2 = arith.cmpi ne, %1, %c0_i32_0 : i32
    scf.if %2 {
      %cst_9 = arith.constant 0.000000e+00 : f32
      %12 = vector.broadcast %cst_9 : f32 to vector<8x256xf32>
      %c0_10 = arith.constant 0 : index
      %c0_11 = arith.constant 0 : index
      %13 = vector.load %arg7[%c0_10, %c0_11] : memref<8x256xf32, #tpu.memory_space<vmem>>, vector<8x256xf32>
      tpu.vector_store %arg7[%c0_10, %c0_11], %12 {strides = array<i32>} : memref<8x256xf32, #tpu.memory_space<vmem>>, vector<8x256xf32>,
    } else {
    }
    %c0 = arith.constant 0 : index
    %c0_1 = arith.constant 0 : index
    %3 = vector.load %arg7[%c0, %c0_1] : memref<8x256xf32, #tpu.memory_space<vmem>>, vector<8x256xf32>
    %c0_2 = arith.constant 0 : index
    %c0_3 = arith.constant 0 : index
    %4 = vector.load %arg3[%c0_2, %c0_3] : memref<8x384xbf16, #tpu.memory_space<vmem>>, vector<8x384xbf16>
    %c0_4 = arith.constant 0 : index
    %c0_5 = arith.constant 0 : index
    %5 = vector.load %arg4[%c0_4, %c0_5] : memref<384x256xbf16, #tpu.memory_space<vmem>>, vector<384x256xbf16>
    %cst = arith.constant dense<0.000000e+00> : vector<8x256xf32>
    %6 = tpu.matmul %4, %5, %cst {dimension_numbers = #tpu.dot_dimension_numbers<[1], [0], [0], [1], [0, 0, 1, 1], [], []>} : vector<8x384xbf16>, vector<384x256xbf16>, vector<8x256xf32> -> vector<8x256xf32>
    %7 = arith.addf %3, %6 : vector<8x256xf32>
    %c0_6 = arith.constant 0 : index
    %c0_7 = arith.constant 0 : index
    %8 = vector.load %arg7[%c0_6, %c0_7] : memref<8x256xf32, #tpu.memory_space<vmem>>, vector<8x256xf32>
    tpu.vector_store %arg7[%c0_6, %c0_7], %7 {strides = array<i32>} : memref<8x256xf32, #tpu.memory_space<vmem>>, vector<8x256xf32>,
    %c2_i32 = arith.constant 2 : i32
    %9 = arith.cmpi eq, %arg2, %c2_i32 : i32
    %10 = arith.extui %9 : i1 to i32
    %c0_i32_8 = arith.constant 0 : i32
    %11 = arith.cmpi ne, %10, %c0_i32_8 : i32
    scf.if %11 {
      %c0_9 = arith.constant 0 : index
      %c0_10 = arith.constant 0 : index
      %12 = vector.load %arg7[%c0_9, %c0_10] : memref<8x256xf32, #tpu.memory_space<vmem>>, vector<8x256xf32>
      %c0_11 = arith.constant 0 : index
      %c0_12 = arith.constant 0 : index
      %13 = vector.load %arg5[%c0_11, %c0_12] : memref<1x256xf32, #tpu.memory_space<vmem>>, vector<1x256xf32>
      %14 = vector.broadcast %13 : vector<1x256xf32> to vector<8x256xf32>
      %15 = arith.addf %12, %14 : vector<8x256xf32>
      %cst_13 = arith.constant 0.000000e+00 : f32
      %16 = vector.broadcast %cst_13 : f32 to vector<8x256xf32>
      %17 = arith.maximumf %15, %16 : vector<8x256xf32>
      %18 = arith.truncf %17 : vector<8x256xf32> to vector<8x256xbf16>
      %c0_14 = arith.constant 0 : index
      %c0_15 = arith.constant 0 : index
      %19 = vector.load %arg6[%c0_14, %c0_15] : memref<8x256xbf16, #tpu.memory_space<vmem>>, vector<8x256xbf16>
      tpu.vector_store %arg6[%c0_14, %c0_15], %18 {strides = array<i32>} : memref<8x256xbf16, #tpu.memory_space<vmem>>, vector<8x256xbf16>,
    } else {
    }
    return
  }
  func.func @transform_0(%arg0: i32, %arg1: i32, %arg2: i32) -> (i32, i32) {
    %c0_i32 = arith.constant 0 : i32
    return %arg0, %arg2 : i32, i32
  }
  func.func @transform_1(%arg0: i32, %arg1: i32, %arg2: i32) -> (i32, i32) {
    %c0_i32 = arith.constant 0 : i32
    return %arg2, %arg1 : i32, i32
  }
  func.func @transform_2(%arg0: i32, %arg1: i32, %arg2: i32) -> (i32, i32) {
    %c0_i32 = arith.constant 0 : i32
    %c0_i32_0 = arith.constant 0 : i32
    return %c0_i32, %arg1 : i32, i32
  }
  func.func @transform_3(%arg0: i32, %arg1: i32, %arg2: i32) -> (i32, i32) {
    %c0_i32 = arith.constant 0 : i32
    return %arg0, %arg1 : i32, i32
  }
}

module attributes {stable_mosaic.version = 11 : i64} {
  func.func @_matmul_bias_kernel(%arg0: i32, %arg1: i32, %arg2: i32, %arg3: memref<8x128xbf16, #tpu.memory_space<vmem>>, %arg4: memref<128x256xbf16, #tpu.memory_space<vmem>>, %arg5: memref<1x256xf32, #tpu.memory_space<vmem>>, %arg6: memref<8x256xbf16, #tpu.memory_space<vmem>>, %arg7: memref<8x256xf32, #tpu.memory_space<vmem>>) attributes {dimension_semantics = [#tpu.dimension_semantics<parallel>, #tpu.dimension_semantics<parallel>, #tpu.dimension_semantics<arbitrary>], iteration_bounds = array<i64: 1, 1, 1>, scalar_prefetch = 0 : i64, scratch_operands = 1 : i64, tpu.core_type = #tpu.core_type<tc>, window_params = [{transform_indices = @transform_0, window_bounds = array<i64: 8, 128>}, {transform_indices = @transform_1, window_bounds = array<i64: 128, 256>}, {transform_indices = @transform_2, window_bounds = array<i64: 1, 256>}, {transform_indices = @transform_3, window_bounds = array<i64: 8, 256>}]} {
    %c0_i32 = arith.constant 0 : i32
    %0 = arith.cmpi eq, %arg2, %c0_i32 : i32
    %1 = arith.extui %0 : i1 to i32
    %c0_i32_0 = arith.constant 0 : i32
    %2 = arith.cmpi ne, %1, %c0_i32_0 : i32
    scf.if %2 {
      %cst_10 = arith.constant 0.000000e+00 : f32
      %12 = vector.broadcast %cst_10 : f32 to vector<8x256xf32>
      %c0_11 = arith.constant 0 : index
      %c0_12 = arith.constant 0 : index
      %13 = vector.load %arg7[%c0_11, %c0_12] : memref<8x256xf32, #tpu.memory_space<vmem>>, vector<8x256xf32>
      tpu.vector_store %arg7[%c0_11, %c0_12], %12 {strides = array<i32>} : memref<8x256xf32, #tpu.memory_space<vmem>>, vector<8x256xf32>,
    } else {
    }
    %c0 = arith.constant 0 : index
    %c0_1 = arith.constant 0 : index
    %3 = vector.load %arg7[%c0, %c0_1] : memref<8x256xf32, #tpu.memory_space<vmem>>, vector<8x256xf32>
    %c0_2 = arith.constant 0 : index
    %c0_3 = arith.constant 0 : index
    %4 = vector.load %arg3[%c0_2, %c0_3] : memref<8x128xbf16, #tpu.memory_space<vmem>>, vector<8x128xbf16>
    %c0_4 = arith.constant 0 : index
    %c0_5 = arith.constant 0 : index
    %5 = vector.load %arg4[%c0_4, %c0_5] : memref<128x256xbf16, #tpu.memory_space<vmem>>, vector<128x256xbf16>
    %cst = arith.constant dense<0.000000e+00> : vector<8x256xf32>
    %6 = tpu.matmul %4, %5, %cst {dimension_numbers = #tpu.dot_dimension_numbers<[1], [0], [0], [1], [0, 0, 1, 1], [], []>} : vector<8x128xbf16>, vector<128x256xbf16>, vector<8x256xf32> -> vector<8x256xf32>
    %7 = arith.addf %3, %6 : vector<8x256xf32>
    %c0_6 = arith.constant 0 : index
    %c0_7 = arith.constant 0 : index
    %8 = vector.load %arg7[%c0_6, %c0_7] : memref<8x256xf32, #tpu.memory_space<vmem>>, vector<8x256xf32>
    tpu.vector_store %arg7[%c0_6, %c0_7], %7 {strides = array<i32>} : memref<8x256xf32, #tpu.memory_space<vmem>>, vector<8x256xf32>,
    %c0_i32_8 = arith.constant 0 : i32
    %9 = arith.cmpi eq, %arg2, %c0_i32_8 : i32
    %10 = arith.extui %9 : i1 to i32
    %c0_i32_9 = arith.constant 0 : i32
    %11 = arith.cmpi ne, %10, %c0_i32_9 : i32
    scf.if %11 {
      %c0_10 = arith.constant 0 : index
      %c0_11 = arith.constant 0 : index
      %12 = vector.load %arg7[%c0_10, %c0_11] : memref<8x256xf32, #tpu.memory_space<vmem>>, vector<8x256xf32>
      %c0_12 = arith.constant 0 : index
      %c0_13 = arith.constant 0 : index
      %13 = vector.load %arg5[%c0_12, %c0_13] : memref<1x256xf32, #tpu.memory_space<vmem>>, vector<1x256xf32>
      %14 = vector.broadcast %13 : vector<1x256xf32> to vector<8x256xf32>
      %15 = arith.addf %12, %14 : vector<8x256xf32>
      %16 = arith.truncf %15 : vector<8x256xf32> to vector<8x256xbf16>
      %c0_14 = arith.constant 0 : index
      %c0_15 = arith.constant 0 : index
      %17 = vector.load %arg6[%c0_14, %c0_15] : memref<8x256xbf16, #tpu.memory_space<vmem>>, vector<8x256xbf16>
      tpu.vector_store %arg6[%c0_14, %c0_15], %16 {strides = array<i32>} : memref<8x256xbf16, #tpu.memory_space<vmem>>, vector<8x256xbf16>,
    } else {
    }
    return
  }
  func.func @transform_0(%arg0: i32, %arg1: i32, %arg2: i32) -> (i32, i32) {
    %c0_i32 = arith.constant 0 : i32
    return %arg0, %arg2 : i32, i32
  }
  func.func @transform_1(%arg0: i32, %arg1: i32, %arg2: i32) -> (i32, i32) {
    %c0_i32 = arith.constant 0 : i32
    return %arg2, %arg1 : i32, i32
  }
  func.func @transform_2(%arg0: i32, %arg1: i32, %arg2: i32) -> (i32, i32) {
    %c0_i32 = arith.constant 0 : i32
    %c0_i32_0 = arith.constant 0 : i32
    return %c0_i32, %arg1 : i32, i32
  }
  func.func @transform_3(%arg0: i32, %arg1: i32, %arg2: i32) -> (i32, i32) {
    %c0_i32 = arith.constant 0 : i32
    return %arg0, %arg1 : i32, i32
  }
}

module attributes {stable_mosaic.version = 11 : i64} {
  func.func @_matmul_bias_kernel(%arg0: i32, %arg1: i32, %arg2: i32, %arg3: memref<8x768xbf16, #tpu.memory_space<vmem>>, %arg4: memref<768x256xbf16, #tpu.memory_space<vmem>>, %arg5: memref<1x256xf32, #tpu.memory_space<vmem>>, %arg6: memref<8x256xbf16, #tpu.memory_space<vmem>>, %arg7: memref<8x256xf32, #tpu.memory_space<vmem>>) attributes {dimension_semantics = [#tpu.dimension_semantics<parallel>, #tpu.dimension_semantics<parallel>, #tpu.dimension_semantics<arbitrary>], iteration_bounds = array<i64: 1, 1, 3>, scalar_prefetch = 0 : i64, scratch_operands = 1 : i64, tpu.core_type = #tpu.core_type<tc>, window_params = [{transform_indices = @transform_0, window_bounds = array<i64: 8, 768>}, {transform_indices = @transform_1, window_bounds = array<i64: 768, 256>}, {transform_indices = @transform_2, window_bounds = array<i64: 1, 256>}, {transform_indices = @transform_3, window_bounds = array<i64: 8, 256>}]} {
    %c0_i32 = arith.constant 0 : i32
    %0 = arith.cmpi eq, %arg2, %c0_i32 : i32
    %1 = arith.extui %0 : i1 to i32
    %c0_i32_0 = arith.constant 0 : i32
    %2 = arith.cmpi ne, %1, %c0_i32_0 : i32
    scf.if %2 {
      %cst_9 = arith.constant 0.000000e+00 : f32
      %12 = vector.broadcast %cst_9 : f32 to vector<8x256xf32>
      %c0_10 = arith.constant 0 : index
      %c0_11 = arith.constant 0 : index
      %13 = vector.load %arg7[%c0_10, %c0_11] : memref<8x256xf32, #tpu.memory_space<vmem>>, vector<8x256xf32>
      tpu.vector_store %arg7[%c0_10, %c0_11], %12 {strides = array<i32>} : memref<8x256xf32, #tpu.memory_space<vmem>>, vector<8x256xf32>,
    } else {
    }
    %c0 = arith.constant 0 : index
    %c0_1 = arith.constant 0 : index
    %3 = vector.load %arg7[%c0, %c0_1] : memref<8x256xf32, #tpu.memory_space<vmem>>, vector<8x256xf32>
    %c0_2 = arith.constant 0 : index
    %c0_3 = arith.constant 0 : index
    %4 = vector.load %arg3[%c0_2, %c0_3] : memref<8x768xbf16, #tpu.memory_space<vmem>>, vector<8x768xbf16>
    %c0_4 = arith.constant 0 : index
    %c0_5 = arith.constant 0 : index
    %5 = vector.load %arg4[%c0_4, %c0_5] : memref<768x256xbf16, #tpu.memory_space<vmem>>, vector<768x256xbf16>
    %cst = arith.constant dense<0.000000e+00> : vector<8x256xf32>
    %6 = tpu.matmul %4, %5, %cst {dimension_numbers = #tpu.dot_dimension_numbers<[1], [0], [0], [1], [0, 0, 1, 1], [], []>} : vector<8x768xbf16>, vector<768x256xbf16>, vector<8x256xf32> -> vector<8x256xf32>
    %7 = arith.addf %3, %6 : vector<8x256xf32>
    %c0_6 = arith.constant 0 : index
    %c0_7 = arith.constant 0 : index
    %8 = vector.load %arg7[%c0_6, %c0_7] : memref<8x256xf32, #tpu.memory_space<vmem>>, vector<8x256xf32>
    tpu.vector_store %arg7[%c0_6, %c0_7], %7 {strides = array<i32>} : memref<8x256xf32, #tpu.memory_space<vmem>>, vector<8x256xf32>,
    %c2_i32 = arith.constant 2 : i32
    %9 = arith.cmpi eq, %arg2, %c2_i32 : i32
    %10 = arith.extui %9 : i1 to i32
    %c0_i32_8 = arith.constant 0 : i32
    %11 = arith.cmpi ne, %10, %c0_i32_8 : i32
    scf.if %11 {
      %c0_9 = arith.constant 0 : index
      %c0_10 = arith.constant 0 : index
      %12 = vector.load %arg7[%c0_9, %c0_10] : memref<8x256xf32, #tpu.memory_space<vmem>>, vector<8x256xf32>
      %c0_11 = arith.constant 0 : index
      %c0_12 = arith.constant 0 : index
      %13 = vector.load %arg5[%c0_11, %c0_12] : memref<1x256xf32, #tpu.memory_space<vmem>>, vector<1x256xf32>
      %14 = vector.broadcast %13 : vector<1x256xf32> to vector<8x256xf32>
      %15 = arith.addf %12, %14 : vector<8x256xf32>
      %cst_13 = arith.constant 0.000000e+00 : f32
      %16 = vector.broadcast %cst_13 : f32 to vector<8x256xf32>
      %17 = arith.maximumf %15, %16 : vector<8x256xf32>
      %18 = arith.truncf %17 : vector<8x256xf32> to vector<8x256xbf16>
      %c0_14 = arith.constant 0 : index
      %c0_15 = arith.constant 0 : index
      %19 = vector.load %arg6[%c0_14, %c0_15] : memref<8x256xbf16, #tpu.memory_space<vmem>>, vector<8x256xbf16>
      tpu.vector_store %arg6[%c0_14, %c0_15], %18 {strides = array<i32>} : memref<8x256xbf16, #tpu.memory_space<vmem>>, vector<8x256xbf16>,
    } else {
    }
    return
  }
  func.func @transform_0(%arg0: i32, %arg1: i32, %arg2: i32) -> (i32, i32) {
    %c0_i32 = arith.constant 0 : i32
    return %arg0, %arg2 : i32, i32
  }
  func.func @transform_1(%arg0: i32, %arg1: i32, %arg2: i32) -> (i32, i32) {
    %c0_i32 = arith.constant 0 : i32
    return %arg2, %arg1 : i32, i32
  }
  func.func @transform_2(%arg0: i32, %arg1: i32, %arg2: i32) -> (i32, i32) {
    %c0_i32 = arith.constant 0 : i32
    %c0_i32_0 = arith.constant 0 : i32
    return %c0_i32, %arg1 : i32, i32
  }
  func.func @transform_3(%arg0: i32, %arg1: i32, %arg2: i32) -> (i32, i32) {
    %c0_i32 = arith.constant 0 : i32
    return %arg0, %arg1 : i32, i32
  }
}

module attributes {stable_mosaic.version = 11 : i64} {
  func.func @_matmul_bias_res_kernel(%arg0: i32, %arg1: i32, %arg2: i32, %arg3: memref<8x768xbf16, #tpu.memory_space<vmem>>, %arg4: memref<768x256xbf16, #tpu.memory_space<vmem>>, %arg5: memref<1x256xf32, #tpu.memory_space<vmem>>, %arg6: memref<8x256xbf16, #tpu.memory_space<vmem>>, %arg7: memref<8x256xbf16, #tpu.memory_space<vmem>>, %arg8: memref<8x256xf32, #tpu.memory_space<vmem>>) attributes {dimension_semantics = [#tpu.dimension_semantics<parallel>, #tpu.dimension_semantics<parallel>, #tpu.dimension_semantics<arbitrary>], iteration_bounds = array<i64: 1, 1, 3>, scalar_prefetch = 0 : i64, scratch_operands = 1 : i64, tpu.core_type = #tpu.core_type<tc>, window_params = [{transform_indices = @transform_0, window_bounds = array<i64: 8, 768>}, {transform_indices = @transform_1, window_bounds = array<i64: 768, 256>}, {transform_indices = @transform_2, window_bounds = array<i64: 1, 256>}, {transform_indices = @transform_3, window_bounds = array<i64: 8, 256>}, {transform_indices = @transform_4, window_bounds = array<i64: 8, 256>}]} {
    %c0_i32 = arith.constant 0 : i32
    %0 = arith.cmpi eq, %arg2, %c0_i32 : i32
    %1 = arith.extui %0 : i1 to i32
    %c0_i32_0 = arith.constant 0 : i32
    %2 = arith.cmpi ne, %1, %c0_i32_0 : i32
    scf.if %2 {
      %cst_9 = arith.constant 0.000000e+00 : f32
      %12 = vector.broadcast %cst_9 : f32 to vector<8x256xf32>
      %c0_10 = arith.constant 0 : index
      %c0_11 = arith.constant 0 : index
      %13 = vector.load %arg8[%c0_10, %c0_11] : memref<8x256xf32, #tpu.memory_space<vmem>>, vector<8x256xf32>
      tpu.vector_store %arg8[%c0_10, %c0_11], %12 {strides = array<i32>} : memref<8x256xf32, #tpu.memory_space<vmem>>, vector<8x256xf32>,
    } else {
    }
    %c0 = arith.constant 0 : index
    %c0_1 = arith.constant 0 : index
    %3 = vector.load %arg8[%c0, %c0_1] : memref<8x256xf32, #tpu.memory_space<vmem>>, vector<8x256xf32>
    %c0_2 = arith.constant 0 : index
    %c0_3 = arith.constant 0 : index
    %4 = vector.load %arg3[%c0_2, %c0_3] : memref<8x768xbf16, #tpu.memory_space<vmem>>, vector<8x768xbf16>
    %c0_4 = arith.constant 0 : index
    %c0_5 = arith.constant 0 : index
    %5 = vector.load %arg4[%c0_4, %c0_5] : memref<768x256xbf16, #tpu.memory_space<vmem>>, vector<768x256xbf16>
    %cst = arith.constant dense<0.000000e+00> : vector<8x256xf32>
    %6 = tpu.matmul %4, %5, %cst {dimension_numbers = #tpu.dot_dimension_numbers<[1], [0], [0], [1], [0, 0, 1, 1], [], []>} : vector<8x768xbf16>, vector<768x256xbf16>, vector<8x256xf32> -> vector<8x256xf32>
    %7 = arith.addf %3, %6 : vector<8x256xf32>
    %c0_6 = arith.constant 0 : index
    %c0_7 = arith.constant 0 : index
    %8 = vector.load %arg8[%c0_6, %c0_7] : memref<8x256xf32, #tpu.memory_space<vmem>>, vector<8x256xf32>
    tpu.vector_store %arg8[%c0_6, %c0_7], %7 {strides = array<i32>} : memref<8x256xf32, #tpu.memory_space<vmem>>, vector<8x256xf32>,
    %c2_i32 = arith.constant 2 : i32
    %9 = arith.cmpi eq, %arg2, %c2_i32 : i32
    %10 = arith.extui %9 : i1 to i32
    %c0_i32_8 = arith.constant 0 : i32
    %11 = arith.cmpi ne, %10, %c0_i32_8 : i32
    scf.if %11 {
      %c0_9 = arith.constant 0 : index
      %c0_10 = arith.constant 0 : index
      %12 = vector.load %arg8[%c0_9, %c0_10] : memref<8x256xf32, #tpu.memory_space<vmem>>, vector<8x256xf32>
      %c0_11 = arith.constant 0 : index
      %c0_12 = arith.constant 0 : index
      %13 = vector.load %arg5[%c0_11, %c0_12] : memref<1x256xf32, #tpu.memory_space<vmem>>, vector<1x256xf32>
      %14 = vector.broadcast %13 : vector<1x256xf32> to vector<8x256xf32>
      %15 = arith.addf %12, %14 : vector<8x256xf32>
      %c0_13 = arith.constant 0 : index
      %c0_14 = arith.constant 0 : index
      %16 = vector.load %arg6[%c0_13, %c0_14] : memref<8x256xbf16, #tpu.memory_space<vmem>>, vector<8x256xbf16>
      %17 = arith.extf %16 : vector<8x256xbf16> to vector<8x256xf32>
      %18 = arith.addf %15, %17 : vector<8x256xf32>
      %cst_15 = arith.constant 0.000000e+00 : f32
      %19 = vector.broadcast %cst_15 : f32 to vector<8x256xf32>
      %20 = arith.maximumf %18, %19 : vector<8x256xf32>
      %21 = arith.truncf %20 : vector<8x256xf32> to vector<8x256xbf16>
      %c0_16 = arith.constant 0 : index
      %c0_17 = arith.constant 0 : index
      %22 = vector.load %arg7[%c0_16, %c0_17] : memref<8x256xbf16, #tpu.memory_space<vmem>>, vector<8x256xbf16>
      tpu.vector_store %arg7[%c0_16, %c0_17], %21 {strides = array<i32>} : memref<8x256xbf16, #tpu.memory_space<vmem>>, vector<8x256xbf16>,
    } else {
    }
    return
  }
  func.func @transform_0(%arg0: i32, %arg1: i32, %arg2: i32) -> (i32, i32) {
    %c0_i32 = arith.constant 0 : i32
    return %arg0, %arg2 : i32, i32
  }
  func.func @transform_1(%arg0: i32, %arg1: i32, %arg2: i32) -> (i32, i32) {
    %c0_i32 = arith.constant 0 : i32
    return %arg2, %arg1 : i32, i32
  }
  func.func @transform_2(%arg0: i32, %arg1: i32, %arg2: i32) -> (i32, i32) {
    %c0_i32 = arith.constant 0 : i32
    %c0_i32_0 = arith.constant 0 : i32
    return %c0_i32, %arg1 : i32, i32
  }
  func.func @transform_3(%arg0: i32, %arg1: i32, %arg2: i32) -> (i32, i32) {
    %c0_i32 = arith.constant 0 : i32
    return %arg0, %arg1 : i32, i32
  }
  func.func @transform_4(%arg0: i32, %arg1: i32, %arg2: i32) -> (i32, i32) {
    %c0_i32 = arith.constant 0 : i32
    return %arg0, %arg1 : i32, i32
  }
}

module attributes {stable_mosaic.version = 11 : i64} {
  func.func @_matmul_bias_kernel(%arg0: i32, %arg1: i32, %arg2: i32, %arg3: memref<8x768xbf16, #tpu.memory_space<vmem>>, %arg4: memref<768x256xbf16, #tpu.memory_space<vmem>>, %arg5: memref<1x256xf32, #tpu.memory_space<vmem>>, %arg6: memref<8x256xbf16, #tpu.memory_space<vmem>>, %arg7: memref<8x256xf32, #tpu.memory_space<vmem>>) attributes {dimension_semantics = [#tpu.dimension_semantics<parallel>, #tpu.dimension_semantics<parallel>, #tpu.dimension_semantics<arbitrary>], iteration_bounds = array<i64: 1, 2, 3>, scalar_prefetch = 0 : i64, scratch_operands = 1 : i64, tpu.core_type = #tpu.core_type<tc>, window_params = [{transform_indices = @transform_0, window_bounds = array<i64: 8, 768>}, {transform_indices = @transform_1, window_bounds = array<i64: 768, 256>}, {transform_indices = @transform_2, window_bounds = array<i64: 1, 256>}, {transform_indices = @transform_3, window_bounds = array<i64: 8, 256>}]} {
    %c0_i32 = arith.constant 0 : i32
    %0 = arith.cmpi eq, %arg2, %c0_i32 : i32
    %1 = arith.extui %0 : i1 to i32
    %c0_i32_0 = arith.constant 0 : i32
    %2 = arith.cmpi ne, %1, %c0_i32_0 : i32
    scf.if %2 {
      %cst_9 = arith.constant 0.000000e+00 : f32
      %12 = vector.broadcast %cst_9 : f32 to vector<8x256xf32>
      %c0_10 = arith.constant 0 : index
      %c0_11 = arith.constant 0 : index
      %13 = vector.load %arg7[%c0_10, %c0_11] : memref<8x256xf32, #tpu.memory_space<vmem>>, vector<8x256xf32>
      tpu.vector_store %arg7[%c0_10, %c0_11], %12 {strides = array<i32>} : memref<8x256xf32, #tpu.memory_space<vmem>>, vector<8x256xf32>,
    } else {
    }
    %c0 = arith.constant 0 : index
    %c0_1 = arith.constant 0 : index
    %3 = vector.load %arg7[%c0, %c0_1] : memref<8x256xf32, #tpu.memory_space<vmem>>, vector<8x256xf32>
    %c0_2 = arith.constant 0 : index
    %c0_3 = arith.constant 0 : index
    %4 = vector.load %arg3[%c0_2, %c0_3] : memref<8x768xbf16, #tpu.memory_space<vmem>>, vector<8x768xbf16>
    %c0_4 = arith.constant 0 : index
    %c0_5 = arith.constant 0 : index
    %5 = vector.load %arg4[%c0_4, %c0_5] : memref<768x256xbf16, #tpu.memory_space<vmem>>, vector<768x256xbf16>
    %cst = arith.constant dense<0.000000e+00> : vector<8x256xf32>
    %6 = tpu.matmul %4, %5, %cst {dimension_numbers = #tpu.dot_dimension_numbers<[1], [0], [0], [1], [0, 0, 1, 1], [], []>} : vector<8x768xbf16>, vector<768x256xbf16>, vector<8x256xf32> -> vector<8x256xf32>
    %7 = arith.addf %3, %6 : vector<8x256xf32>
    %c0_6 = arith.constant 0 : index
    %c0_7 = arith.constant 0 : index
    %8 = vector.load %arg7[%c0_6, %c0_7] : memref<8x256xf32, #tpu.memory_space<vmem>>, vector<8x256xf32>
    tpu.vector_store %arg7[%c0_6, %c0_7], %7 {strides = array<i32>} : memref<8x256xf32, #tpu.memory_space<vmem>>, vector<8x256xf32>,
    %c2_i32 = arith.constant 2 : i32
    %9 = arith.cmpi eq, %arg2, %c2_i32 : i32
    %10 = arith.extui %9 : i1 to i32
    %c0_i32_8 = arith.constant 0 : i32
    %11 = arith.cmpi ne, %10, %c0_i32_8 : i32
    scf.if %11 {
      %c0_9 = arith.constant 0 : index
      %c0_10 = arith.constant 0 : index
      %12 = vector.load %arg7[%c0_9, %c0_10] : memref<8x256xf32, #tpu.memory_space<vmem>>, vector<8x256xf32>
      %c0_11 = arith.constant 0 : index
      %c0_12 = arith.constant 0 : index
      %13 = vector.load %arg5[%c0_11, %c0_12] : memref<1x256xf32, #tpu.memory_space<vmem>>, vector<1x256xf32>
      %14 = vector.broadcast %13 : vector<1x256xf32> to vector<8x256xf32>
      %15 = arith.addf %12, %14 : vector<8x256xf32>
      %cst_13 = arith.constant 0.000000e+00 : f32
      %16 = vector.broadcast %cst_13 : f32 to vector<8x256xf32>
      %17 = arith.maximumf %15, %16 : vector<8x256xf32>
      %18 = arith.truncf %17 : vector<8x256xf32> to vector<8x256xbf16>
      %c0_14 = arith.constant 0 : index
      %c0_15 = arith.constant 0 : index
      %19 = vector.load %arg6[%c0_14, %c0_15] : memref<8x256xbf16, #tpu.memory_space<vmem>>, vector<8x256xbf16>
      tpu.vector_store %arg6[%c0_14, %c0_15], %18 {strides = array<i32>} : memref<8x256xbf16, #tpu.memory_space<vmem>>, vector<8x256xbf16>,
    } else {
    }
    return
  }
  func.func @transform_0(%arg0: i32, %arg1: i32, %arg2: i32) -> (i32, i32) {
    %c0_i32 = arith.constant 0 : i32
    return %arg0, %arg2 : i32, i32
  }
  func.func @transform_1(%arg0: i32, %arg1: i32, %arg2: i32) -> (i32, i32) {
    %c0_i32 = arith.constant 0 : i32
    return %arg2, %arg1 : i32, i32
  }
  func.func @transform_2(%arg0: i32, %arg1: i32, %arg2: i32) -> (i32, i32) {
    %c0_i32 = arith.constant 0 : i32
    %c0_i32_0 = arith.constant 0 : i32
    return %c0_i32, %arg1 : i32, i32
  }
  func.func @transform_3(%arg0: i32, %arg1: i32, %arg2: i32) -> (i32, i32) {
    %c0_i32 = arith.constant 0 : i32
    return %arg0, %arg1 : i32, i32
  }
}

module attributes {stable_mosaic.version = 11 : i64} {
  func.func @_matmul_bias_res_kernel(%arg0: i32, %arg1: i32, %arg2: i32, %arg3: memref<8x768xbf16, #tpu.memory_space<vmem>>, %arg4: memref<768x256xbf16, #tpu.memory_space<vmem>>, %arg5: memref<1x256xf32, #tpu.memory_space<vmem>>, %arg6: memref<8x256xbf16, #tpu.memory_space<vmem>>, %arg7: memref<8x256xbf16, #tpu.memory_space<vmem>>, %arg8: memref<8x256xf32, #tpu.memory_space<vmem>>) attributes {dimension_semantics = [#tpu.dimension_semantics<parallel>, #tpu.dimension_semantics<parallel>, #tpu.dimension_semantics<arbitrary>], iteration_bounds = array<i64: 1, 2, 6>, scalar_prefetch = 0 : i64, scratch_operands = 1 : i64, tpu.core_type = #tpu.core_type<tc>, window_params = [{transform_indices = @transform_0, window_bounds = array<i64: 8, 768>}, {transform_indices = @transform_1, window_bounds = array<i64: 768, 256>}, {transform_indices = @transform_2, window_bounds = array<i64: 1, 256>}, {transform_indices = @transform_3, window_bounds = array<i64: 8, 256>}, {transform_indices = @transform_4, window_bounds = array<i64: 8, 256>}]} {
    %c0_i32 = arith.constant 0 : i32
    %0 = arith.cmpi eq, %arg2, %c0_i32 : i32
    %1 = arith.extui %0 : i1 to i32
    %c0_i32_0 = arith.constant 0 : i32
    %2 = arith.cmpi ne, %1, %c0_i32_0 : i32
    scf.if %2 {
      %cst_9 = arith.constant 0.000000e+00 : f32
      %12 = vector.broadcast %cst_9 : f32 to vector<8x256xf32>
      %c0_10 = arith.constant 0 : index
      %c0_11 = arith.constant 0 : index
      %13 = vector.load %arg8[%c0_10, %c0_11] : memref<8x256xf32, #tpu.memory_space<vmem>>, vector<8x256xf32>
      tpu.vector_store %arg8[%c0_10, %c0_11], %12 {strides = array<i32>} : memref<8x256xf32, #tpu.memory_space<vmem>>, vector<8x256xf32>,
    } else {
    }
    %c0 = arith.constant 0 : index
    %c0_1 = arith.constant 0 : index
    %3 = vector.load %arg8[%c0, %c0_1] : memref<8x256xf32, #tpu.memory_space<vmem>>, vector<8x256xf32>
    %c0_2 = arith.constant 0 : index
    %c0_3 = arith.constant 0 : index
    %4 = vector.load %arg3[%c0_2, %c0_3] : memref<8x768xbf16, #tpu.memory_space<vmem>>, vector<8x768xbf16>
    %c0_4 = arith.constant 0 : index
    %c0_5 = arith.constant 0 : index
    %5 = vector.load %arg4[%c0_4, %c0_5] : memref<768x256xbf16, #tpu.memory_space<vmem>>, vector<768x256xbf16>
    %cst = arith.constant dense<0.000000e+00> : vector<8x256xf32>
    %6 = tpu.matmul %4, %5, %cst {dimension_numbers = #tpu.dot_dimension_numbers<[1], [0], [0], [1], [0, 0, 1, 1], [], []>} : vector<8x768xbf16>, vector<768x256xbf16>, vector<8x256xf32> -> vector<8x256xf32>
    %7 = arith.addf %3, %6 : vector<8x256xf32>
    %c0_6 = arith.constant 0 : index
    %c0_7 = arith.constant 0 : index
    %8 = vector.load %arg8[%c0_6, %c0_7] : memref<8x256xf32, #tpu.memory_space<vmem>>, vector<8x256xf32>
    tpu.vector_store %arg8[%c0_6, %c0_7], %7 {strides = array<i32>} : memref<8x256xf32, #tpu.memory_space<vmem>>, vector<8x256xf32>,
    %c5_i32 = arith.constant 5 : i32
    %9 = arith.cmpi eq, %arg2, %c5_i32 : i32
    %10 = arith.extui %9 : i1 to i32
    %c0_i32_8 = arith.constant 0 : i32
    %11 = arith.cmpi ne, %10, %c0_i32_8 : i32
    scf.if %11 {
      %c0_9 = arith.constant 0 : index
      %c0_10 = arith.constant 0 : index
      %12 = vector.load %arg8[%c0_9, %c0_10] : memref<8x256xf32, #tpu.memory_space<vmem>>, vector<8x256xf32>
      %c0_11 = arith.constant 0 : index
      %c0_12 = arith.constant 0 : index
      %13 = vector.load %arg5[%c0_11, %c0_12] : memref<1x256xf32, #tpu.memory_space<vmem>>, vector<1x256xf32>
      %14 = vector.broadcast %13 : vector<1x256xf32> to vector<8x256xf32>
      %15 = arith.addf %12, %14 : vector<8x256xf32>
      %c0_13 = arith.constant 0 : index
      %c0_14 = arith.constant 0 : index
      %16 = vector.load %arg6[%c0_13, %c0_14] : memref<8x256xbf16, #tpu.memory_space<vmem>>, vector<8x256xbf16>
      %17 = arith.extf %16 : vector<8x256xbf16> to vector<8x256xf32>
      %18 = arith.addf %15, %17 : vector<8x256xf32>
      %cst_15 = arith.constant 0.000000e+00 : f32
      %19 = vector.broadcast %cst_15 : f32 to vector<8x256xf32>
      %20 = arith.maximumf %18, %19 : vector<8x256xf32>
      %21 = arith.truncf %20 : vector<8x256xf32> to vector<8x256xbf16>
      %c0_16 = arith.constant 0 : index
      %c0_17 = arith.constant 0 : index
      %22 = vector.load %arg7[%c0_16, %c0_17] : memref<8x256xbf16, #tpu.memory_space<vmem>>, vector<8x256xbf16>
      tpu.vector_store %arg7[%c0_16, %c0_17], %21 {strides = array<i32>} : memref<8x256xbf16, #tpu.memory_space<vmem>>, vector<8x256xbf16>,
    } else {
    }
    return
  }
  func.func @transform_0(%arg0: i32, %arg1: i32, %arg2: i32) -> (i32, i32) {
    %c0_i32 = arith.constant 0 : i32
    return %arg0, %arg2 : i32, i32
  }
  func.func @transform_1(%arg0: i32, %arg1: i32, %arg2: i32) -> (i32, i32) {
    %c0_i32 = arith.constant 0 : i32
    return %arg2, %arg1 : i32, i32
  }
  func.func @transform_2(%arg0: i32, %arg1: i32, %arg2: i32) -> (i32, i32) {
    %c0_i32 = arith.constant 0 : i32
    %c0_i32_0 = arith.constant 0 : i32
    return %c0_i32, %arg1 : i32, i32
  }
  func.func @transform_3(%arg0: i32, %arg1: i32, %arg2: i32) -> (i32, i32) {
    %c0_i32 = arith.constant 0 : i32
    return %arg0, %arg1 : i32, i32
  }
  func.func @transform_4(%arg0: i32, %arg1: i32, %arg2: i32) -> (i32, i32) {
    %c0_i32 = arith.constant 0 : i32
    return %arg0, %arg1 : i32, i32
  }
}

module attributes {stable_mosaic.version = 11 : i64} {
  func.func @_matmul_bias_kernel(%arg0: i32, %arg1: i32, %arg2: i32, %arg3: memref<8x256xbf16, #tpu.memory_space<vmem>>, %arg4: memref<256x256xbf16, #tpu.memory_space<vmem>>, %arg5: memref<1x256xf32, #tpu.memory_space<vmem>>, %arg6: memref<8x256xbf16, #tpu.memory_space<vmem>>, %arg7: memref<8x256xf32, #tpu.memory_space<vmem>>) attributes {dimension_semantics = [#tpu.dimension_semantics<parallel>, #tpu.dimension_semantics<parallel>, #tpu.dimension_semantics<arbitrary>], iteration_bounds = array<i64: 1, 2, 1>, scalar_prefetch = 0 : i64, scratch_operands = 1 : i64, tpu.core_type = #tpu.core_type<tc>, window_params = [{transform_indices = @transform_0, window_bounds = array<i64: 8, 256>}, {transform_indices = @transform_1, window_bounds = array<i64: 256, 256>}, {transform_indices = @transform_2, window_bounds = array<i64: 1, 256>}, {transform_indices = @transform_3, window_bounds = array<i64: 8, 256>}]} {
    %c0_i32 = arith.constant 0 : i32
    %0 = arith.cmpi eq, %arg2, %c0_i32 : i32
    %1 = arith.extui %0 : i1 to i32
    %c0_i32_0 = arith.constant 0 : i32
    %2 = arith.cmpi ne, %1, %c0_i32_0 : i32
    scf.if %2 {
      %cst_10 = arith.constant 0.000000e+00 : f32
      %12 = vector.broadcast %cst_10 : f32 to vector<8x256xf32>
      %c0_11 = arith.constant 0 : index
      %c0_12 = arith.constant 0 : index
      %13 = vector.load %arg7[%c0_11, %c0_12] : memref<8x256xf32, #tpu.memory_space<vmem>>, vector<8x256xf32>
      tpu.vector_store %arg7[%c0_11, %c0_12], %12 {strides = array<i32>} : memref<8x256xf32, #tpu.memory_space<vmem>>, vector<8x256xf32>,
    } else {
    }
    %c0 = arith.constant 0 : index
    %c0_1 = arith.constant 0 : index
    %3 = vector.load %arg7[%c0, %c0_1] : memref<8x256xf32, #tpu.memory_space<vmem>>, vector<8x256xf32>
    %c0_2 = arith.constant 0 : index
    %c0_3 = arith.constant 0 : index
    %4 = vector.load %arg3[%c0_2, %c0_3] : memref<8x256xbf16, #tpu.memory_space<vmem>>, vector<8x256xbf16>
    %c0_4 = arith.constant 0 : index
    %c0_5 = arith.constant 0 : index
    %5 = vector.load %arg4[%c0_4, %c0_5] : memref<256x256xbf16, #tpu.memory_space<vmem>>, vector<256x256xbf16>
    %cst = arith.constant dense<0.000000e+00> : vector<8x256xf32>
    %6 = tpu.matmul %4, %5, %cst {dimension_numbers = #tpu.dot_dimension_numbers<[1], [0], [0], [1], [0, 0, 1, 1], [], []>} : vector<8x256xbf16>, vector<256x256xbf16>, vector<8x256xf32> -> vector<8x256xf32>
    %7 = arith.addf %3, %6 : vector<8x256xf32>
    %c0_6 = arith.constant 0 : index
    %c0_7 = arith.constant 0 : index
    %8 = vector.load %arg7[%c0_6, %c0_7] : memref<8x256xf32, #tpu.memory_space<vmem>>, vector<8x256xf32>
    tpu.vector_store %arg7[%c0_6, %c0_7], %7 {strides = array<i32>} : memref<8x256xf32, #tpu.memory_space<vmem>>, vector<8x256xf32>,
    %c0_i32_8 = arith.constant 0 : i32
    %9 = arith.cmpi eq, %arg2, %c0_i32_8 : i32
    %10 = arith.extui %9 : i1 to i32
    %c0_i32_9 = arith.constant 0 : i32
    %11 = arith.cmpi ne, %10, %c0_i32_9 : i32
    scf.if %11 {
      %c0_10 = arith.constant 0 : index
      %c0_11 = arith.constant 0 : index
      %12 = vector.load %arg7[%c0_10, %c0_11] : memref<8x256xf32, #tpu.memory_space<vmem>>, vector<8x256xf32>
      %c0_12 = arith.constant 0 : index
      %c0_13 = arith.constant 0 : index
      %13 = vector.load %arg5[%c0_12, %c0_13] : memref<1x256xf32, #tpu.memory_space<vmem>>, vector<1x256xf32>
      %14 = vector.broadcast %13 : vector<1x256xf32> to vector<8x256xf32>
      %15 = arith.addf %12, %14 : vector<8x256xf32>
      %16 = arith.truncf %15 : vector<8x256xf32> to vector<8x256xbf16>
      %c0_14 = arith.constant 0 : index
      %c0_15 = arith.constant 0 : index
      %17 = vector.load %arg6[%c0_14, %c0_15] : memref<8x256xbf16, #tpu.memory_space<vmem>>, vector<8x256xbf16>
      tpu.vector_store %arg6[%c0_14, %c0_15], %16 {strides = array<i32>} : memref<8x256xbf16, #tpu.memory_space<vmem>>, vector<8x256xbf16>,
    } else {
    }
    return
  }
  func.func @transform_0(%arg0: i32, %arg1: i32, %arg2: i32) -> (i32, i32) {
    %c0_i32 = arith.constant 0 : i32
    return %arg0, %arg2 : i32, i32
  }
  func.func @transform_1(%arg0: i32, %arg1: i32, %arg2: i32) -> (i32, i32) {
    %c0_i32 = arith.constant 0 : i32
    return %arg2, %arg1 : i32, i32
  }
  func.func @transform_2(%arg0: i32, %arg1: i32, %arg2: i32) -> (i32, i32) {
    %c0_i32 = arith.constant 0 : i32
    %c0_i32_0 = arith.constant 0 : i32
    return %c0_i32, %arg1 : i32, i32
  }
  func.func @transform_3(%arg0: i32, %arg1: i32, %arg2: i32) -> (i32, i32) {
    %c0_i32 = arith.constant 0 : i32
    return %arg0, %arg1 : i32, i32
  }
}

module attributes {stable_mosaic.version = 11 : i64} {
  func.func @_matmul_bias_kernel(%arg0: i32, %arg1: i32, %arg2: i32, %arg3: memref<8x768xbf16, #tpu.memory_space<vmem>>, %arg4: memref<768x256xbf16, #tpu.memory_space<vmem>>, %arg5: memref<1x256xf32, #tpu.memory_space<vmem>>, %arg6: memref<8x256xbf16, #tpu.memory_space<vmem>>, %arg7: memref<8x256xf32, #tpu.memory_space<vmem>>) attributes {dimension_semantics = [#tpu.dimension_semantics<parallel>, #tpu.dimension_semantics<parallel>, #tpu.dimension_semantics<arbitrary>], iteration_bounds = array<i64: 1, 2, 6>, scalar_prefetch = 0 : i64, scratch_operands = 1 : i64, tpu.core_type = #tpu.core_type<tc>, window_params = [{transform_indices = @transform_0, window_bounds = array<i64: 8, 768>}, {transform_indices = @transform_1, window_bounds = array<i64: 768, 256>}, {transform_indices = @transform_2, window_bounds = array<i64: 1, 256>}, {transform_indices = @transform_3, window_bounds = array<i64: 8, 256>}]} {
    %c0_i32 = arith.constant 0 : i32
    %0 = arith.cmpi eq, %arg2, %c0_i32 : i32
    %1 = arith.extui %0 : i1 to i32
    %c0_i32_0 = arith.constant 0 : i32
    %2 = arith.cmpi ne, %1, %c0_i32_0 : i32
    scf.if %2 {
      %cst_9 = arith.constant 0.000000e+00 : f32
      %12 = vector.broadcast %cst_9 : f32 to vector<8x256xf32>
      %c0_10 = arith.constant 0 : index
      %c0_11 = arith.constant 0 : index
      %13 = vector.load %arg7[%c0_10, %c0_11] : memref<8x256xf32, #tpu.memory_space<vmem>>, vector<8x256xf32>
      tpu.vector_store %arg7[%c0_10, %c0_11], %12 {strides = array<i32>} : memref<8x256xf32, #tpu.memory_space<vmem>>, vector<8x256xf32>,
    } else {
    }
    %c0 = arith.constant 0 : index
    %c0_1 = arith.constant 0 : index
    %3 = vector.load %arg7[%c0, %c0_1] : memref<8x256xf32, #tpu.memory_space<vmem>>, vector<8x256xf32>
    %c0_2 = arith.constant 0 : index
    %c0_3 = arith.constant 0 : index
    %4 = vector.load %arg3[%c0_2, %c0_3] : memref<8x768xbf16, #tpu.memory_space<vmem>>, vector<8x768xbf16>
    %c0_4 = arith.constant 0 : index
    %c0_5 = arith.constant 0 : index
    %5 = vector.load %arg4[%c0_4, %c0_5] : memref<768x256xbf16, #tpu.memory_space<vmem>>, vector<768x256xbf16>
    %cst = arith.constant dense<0.000000e+00> : vector<8x256xf32>
    %6 = tpu.matmul %4, %5, %cst {dimension_numbers = #tpu.dot_dimension_numbers<[1], [0], [0], [1], [0, 0, 1, 1], [], []>} : vector<8x768xbf16>, vector<768x256xbf16>, vector<8x256xf32> -> vector<8x256xf32>
    %7 = arith.addf %3, %6 : vector<8x256xf32>
    %c0_6 = arith.constant 0 : index
    %c0_7 = arith.constant 0 : index
    %8 = vector.load %arg7[%c0_6, %c0_7] : memref<8x256xf32, #tpu.memory_space<vmem>>, vector<8x256xf32>
    tpu.vector_store %arg7[%c0_6, %c0_7], %7 {strides = array<i32>} : memref<8x256xf32, #tpu.memory_space<vmem>>, vector<8x256xf32>,
    %c5_i32 = arith.constant 5 : i32
    %9 = arith.cmpi eq, %arg2, %c5_i32 : i32
    %10 = arith.extui %9 : i1 to i32
    %c0_i32_8 = arith.constant 0 : i32
    %11 = arith.cmpi ne, %10, %c0_i32_8 : i32
    scf.if %11 {
      %c0_9 = arith.constant 0 : index
      %c0_10 = arith.constant 0 : index
      %12 = vector.load %arg7[%c0_9, %c0_10] : memref<8x256xf32, #tpu.memory_space<vmem>>, vector<8x256xf32>
      %c0_11 = arith.constant 0 : index
      %c0_12 = arith.constant 0 : index
      %13 = vector.load %arg5[%c0_11, %c0_12] : memref<1x256xf32, #tpu.memory_space<vmem>>, vector<1x256xf32>
      %14 = vector.broadcast %13 : vector<1x256xf32> to vector<8x256xf32>
      %15 = arith.addf %12, %14 : vector<8x256xf32>
      %cst_13 = arith.constant 0.000000e+00 : f32
      %16 = vector.broadcast %cst_13 : f32 to vector<8x256xf32>
      %17 = arith.maximumf %15, %16 : vector<8x256xf32>
      %18 = arith.truncf %17 : vector<8x256xf32> to vector<8x256xbf16>
      %c0_14 = arith.constant 0 : index
      %c0_15 = arith.constant 0 : index
      %19 = vector.load %arg6[%c0_14, %c0_15] : memref<8x256xbf16, #tpu.memory_space<vmem>>, vector<8x256xbf16>
      tpu.vector_store %arg6[%c0_14, %c0_15], %18 {strides = array<i32>} : memref<8x256xbf16, #tpu.memory_space<vmem>>, vector<8x256xbf16>,
    } else {
    }
    return
  }
  func.func @transform_0(%arg0: i32, %arg1: i32, %arg2: i32) -> (i32, i32) {
    %c0_i32 = arith.constant 0 : i32
    return %arg0, %arg2 : i32, i32
  }
  func.func @transform_1(%arg0: i32, %arg1: i32, %arg2: i32) -> (i32, i32) {
    %c0_i32 = arith.constant 0 : i32
    return %arg2, %arg1 : i32, i32
  }
  func.func @transform_2(%arg0: i32, %arg1: i32, %arg2: i32) -> (i32, i32) {
    %c0_i32 = arith.constant 0 : i32
    %c0_i32_0 = arith.constant 0 : i32
    return %c0_i32, %arg1 : i32, i32
  }
  func.func @transform_3(%arg0: i32, %arg1: i32, %arg2: i32) -> (i32, i32) {
    %c0_i32 = arith.constant 0 : i32
    return %arg0, %arg1 : i32, i32
  }
}

module attributes {stable_mosaic.version = 11 : i64} {
  func.func @_head_kernel(%arg0: memref<2x1x512xbf16, #tpu.memory_space<vmem>>, %arg1: memref<512x256xf32, #tpu.memory_space<vmem>>, %arg2: memref<1x256xf32, #tpu.memory_space<vmem>>, %arg3: memref<2x256xf32, #tpu.memory_space<vmem>>) attributes {dimension_semantics = [], scalar_prefetch = 0 : i64, scratch_operands = 0 : i64, tpu.core_type = #tpu.core_type<tc>} {
    %c0 = arith.constant 0 : index
    %c0_0 = arith.constant 0 : index
    %c0_1 = arith.constant 0 : index
    %0 = vector.load %arg0[%c0, %c0_0, %c0_1] : memref<2x1x512xbf16, #tpu.memory_space<vmem>>, vector<2x1x512xbf16>
    %1 = arith.extf %0 : vector<2x1x512xbf16> to vector<2x1x512xf32>
    %cst = arith.constant dense<0.000000e+00> : vector<2x512xf32>
    %2 = vector.multi_reduction <add>, %1, %cst [1] : vector<2x1x512xf32> to vector<2x512xf32>
    %cst_2 = arith.constant 1.000000e+00 : f32
    %3 = vector.broadcast %cst_2 : f32 to vector<2x512xf32>
    %4 = arith.divf %2, %3 : vector<2x512xf32>
    %c0_3 = arith.constant 0 : index
    %c0_4 = arith.constant 0 : index
    %5 = vector.load %arg1[%c0_3, %c0_4] : memref<512x256xf32, #tpu.memory_space<vmem>>, vector<512x256xf32>
    %cst_5 = arith.constant dense<0.000000e+00> : vector<2x256xf32>
    %6 = tpu.matmul %4, %5, %cst_5 {dimension_numbers = #tpu.dot_dimension_numbers<[1], [0], [0], [1], [0, 0, 1, 1], [], []>} : vector<2x512xf32>, vector<512x256xf32>, vector<2x256xf32> -> vector<2x256xf32>
    %c0_6 = arith.constant 0 : index
    %c0_7 = arith.constant 0 : index
    %7 = vector.load %arg2[%c0_6, %c0_7] : memref<1x256xf32, #tpu.memory_space<vmem>>, vector<1x256xf32>
    %8 = vector.broadcast %7 : vector<1x256xf32> to vector<2x256xf32>
    %9 = arith.addf %6, %8 : vector<2x256xf32>
    %c0_8 = arith.constant 0 : index
    %c0_9 = arith.constant 0 : index
    %10 = vector.load %arg3[%c0_8, %c0_9] : memref<2x256xf32, #tpu.memory_space<vmem>>, vector<2x256xf32>
    tpu.vector_store %arg3[%c0_8, %c0_9], %9 {strides = array<i32>} : memref<2x256xf32, #tpu.memory_space<vmem>>, vector<2x256xf32>,
    return
  }
}

</mosaic_0001>

<bundles_post_ra>
// kernel: resnet34_forward.39
= control target key start
LH: loop header
LB: loop body
LE: loop exit
PB: predicated region body
PF: predicated region fallthrough
CT: control target
= control target key end

     0   :  { %vm153_vm0 = vcmask 1043456   ;;  %s1400_s0 = inlined_call_operand.vmem [shape: bf16[9,128,128], index: 0, kind: input, shape index: {}]   ;;  %s1401_s1 = inlined_call_operand.vmem [shape: bf16[128,128], index: 1, kind: output, shape index: {}]  }
   0x1   :  { %v9_v0 = vld [vmem:[%s1400_s0] sm:$0xf]  ;;  %v10_v3 = vld [vmem:[%s1400_s0 + $0x4] sm:$0xf]  ;;  %v11_v39 = vld [vmem:[%s1400_s0 + $0x8] sm:$0xf] }
   0x2   :  { %v25_v1 = vld [vmem:[%s1400_s0 + $0x40] sm:$0xf]  ;;  %v26_v4 = vld [vmem:[%s1400_s0 + $0x44] sm:$0xf]  ;;  %v156_v7 = vsel %vm153_vm0, %v9_v0, 4286644096 }
   0x3   :  { %v41_v2 = vld [vmem:[%s1400_s0 + $0x80] sm:$0xf]  ;;  %v42_v5 = vld [vmem:[%s1400_s0 + $0x84] sm:$0xf]  ;;  %v159_v8 = vsel %vm153_vm0, %v25_v1, 4286644096 }
   0x4   :  { %v57_v6 = vld [vmem:[%s1400_s0 + $0xc0] sm:$0xf]  ;;  %v163_v9 = vsel %vm153_vm0, %v41_v2, 4286644096  ;;  %v161_v11 = vmax.bf16 %v159_v8, %v156_v7  ;;  %v58_v12 = vld [vmem:[%s1400_s0 + $0xc4] sm:$0xf] }
   0x5   :  { %v73_v10 = vld [vmem:[%s1400_s0 + $0x100] sm:$0xf]  ;;  %v167_v14 = vsel %vm153_vm0, %v57_v6, 4286644096  ;;  %v191_v16 = vsel %vm153_vm0, %v10_v3, 4286644096 }
   0x6   :  { %v89_v13 = vld [vmem:[%s1400_s0 + $0x140] sm:$0xf]  ;;  %v165_v15 = vmax.bf16 %v163_v9, %v161_v11  ;;  %v194_v17 = vsel %vm153_vm0, %v26_v4, 4286644096  ;;  %v198_v18 = vsel %vm153_vm0, %v42_v5, 4286644096 }
   0x7   :  { %v74_v19 = vld [vmem:[%s1400_s0 + $0x104] sm:$0xf]  ;;  %v171_v20 = vsel %vm153_vm0, %v73_v10, 4286644096  ;;  %v196_v21 = vmax.bf16 %v194_v17, %v191_v16  ;;  %v105_v23 = vld [vmem:[%s1400_s0 + $0x180] sm:$0xf] }
   0x8   :  { %v90_v22 = vld [vmem:[%s1400_s0 + $0x144] sm:$0xf]  ;;  %v169_v24 = vmax.bf16 %v167_v14, %v165_v15  ;;  %v202_v25 = vsel %vm153_vm0, %v58_v12, 4286644096  ;;  %v175_v27 = vsel %vm153_vm0, %v89_v13, 4286644096 }
   0x9   :  { %v106_v26 = vld [vmem:[%s1400_s0 + $0x184] sm:$0xf]  ;;  %v200_v28 = vmax.bf16 %v198_v18, %v196_v21  ;;  %v121_v29 = vld [vmem:[%s1400_s0 + $0x1c0] sm:$0xf]  ;;  %v206_v32 = vsel %vm153_vm0, %v74_v19, 4286644096 }
   0xa   :  { %v137_v30 = vld [vmem:[%s1400_s0 + $0x200] sm:$0xf]  ;;  %v173_v31 = vmax.bf16 %v171_v20, %v169_v24  ;;  %v122_v33 = vld [vmem:[%s1400_s0 + $0x1c4] sm:$0xf]  ;;  %v179_v34 = vsel %vm153_vm0, %v105_v23, 4286644096 }
   0xb   :  { %v204_v35 = vmax.bf16 %v202_v25, %v200_v28  ;;  %v210_v36 = vsel %vm153_vm0, %v90_v22, 4286644096  ;;  %v138_v37 = vld [vmem:[%s1400_s0 + $0x204] sm:$0xf]  ;;  %v27_v40 = vld [vmem:[%s1400_s0 + $0x48] sm:$0xf] }
   0xc   :  { %v177_v38 = vmax.bf16 %v175_v27, %v173_v31  ;;  %v43_v41 = vld [vmem:[%s1400_s0 + $0x88] sm:$0xf]  ;;  %v183_v42 = vsel %vm153_vm0, %v121_v29, 4286644096  ;;  %v187_v43 = vsel %vm153_vm0, %v137_v30, 4286644096 }
   0xd   :  { %v208_v44 = vmax.bf16 %v206_v32, %v204_v35  ;;  %v214_v45 = vsel %vm153_vm0, %v106_v26, 4286644096  ;;  %v12_v47 = vld [vmem:[%s1400_s0 + $0xc] sm:$0xf]  ;;  %v59_v48 = vld [vmem:[%s1400_s0 + $0xc8] sm:$0xf] }
   0xe   :  { %v181_v46 = vmax.bf16 %v179_v34, %v177_v38  ;;  %v75_v49 = vld [vmem:[%s1400_s0 + $0x108] sm:$0xf]  ;;  %v226_v51 = vsel %vm153_vm0, %v11_v39, 4286644096  ;;  %v229_v52 = vsel %vm153_vm0, %v27_v40, 4286644096 }
   0xf   :  { %v212_v50 = vmax.bf16 %v210_v36, %v208_v44  ;;  %v233_v53 = vsel %vm153_vm0, %v43_v41, 4286644096  ;;  %v218_v55 = vsel %vm153_vm0, %v122_v33, 4286644096  ;;  %v28_v56 = vld [vmem:[%s1400_s0 + $0x4c] sm:$0xf]  ;;  %v231_v58 = vmax.bf16 %v229_v52, %v226_v51 }
  0x10   :  { %v185_v54 = vmax.bf16 %v183_v42, %v181_v46  ;;  %v44_v57 = vld [vmem:[%s1400_s0 + $0x8c] sm:$0xf]  ;;  %v222_v60 = vsel %vm153_vm0, %v138_v37, 4286644096  ;;  %v237_v62 = vsel %vm153_vm0, %v59_v48, 4286644096 }
  0x11   :  { %v216_v59 = vmax.bf16 %v214_v45, %v212_v50  ;;  %v60_v61 = vld [vmem:[%s1400_s0 + $0xcc] sm:$0xf]  ;;  %v91_v63 = vld [vmem:[%s1400_s0 + $0x148] sm:$0xf]  ;;  %v235_v0 = vmax.bf16 %v233_v53, %v231_v58  ;;  %v241_v1 = vsel %vm153_vm0, %v75_v49, 4286644096 }
  0x12   :  { %v261_v2 = vsel %vm153_vm0, %v12_v47, 4286644096  ;;  %v189_v3 = vmax.bf16 %v187_v43, %v185_v54  ;;  %v264_v5 = vsel %vm153_vm0, %v28_v56, 4286644096  ;;  %v268_v6 = vsel %vm153_vm0, %v44_v57, 4286644096 }
  0x13   :  { %v220_v4 = vmax.bf16 %v218_v55, %v216_v59  ;;  %v76_v7 = vld [vmem:[%s1400_s0 + $0x10c] sm:$0xf]  ;;  %v107_v8 = vld [vmem:[%s1400_s0 + $0x188] sm:$0xf]  ;;  %v239_v9 = vmax.bf16 %v237_v62, %v235_v0  ;;  %v266_v10 = vmax.bf16 %v264_v5, %v261_v2  ;;  %v245_v12 = vsel %vm153_vm0, %v91_v63, 4286644096 }
  0x14   :  { %v272_v13 = vsel %vm153_vm0, %v60_v61, 4286644096  ;;  %v92_v14 = vld [vmem:[%s1400_s0 + $0x14c] sm:$0xf]  ;;  %v123_v16 = vld [vmem:[%s1400_s0 + $0x1c8] sm:$0xf] }
  0x15   :  { %v224_v11 = vmax.bf16 %v222_v60, %v220_v4  ;;  %v108_v15 = vld [vmem:[%s1400_s0 + $0x18c] sm:$0xf]  ;;  %v243_v17 = vmax.bf16 %v241_v1, %v239_v9  ;;  %v270_v18 = vmax.bf16 %v268_v6, %v266_v10  ;;  %v139_v20 = vld [vmem:[%s1400_s0 + $0x208] sm:$0xf]  ;;  %v249_v21 = vsel %vm153_vm0, %v107_v8, 4286644096 }
  0x16   :  { %v276_v22 = vsel %vm153_vm0, %v76_v7, 4286644096  ;;  %v124_v23 = vld [vmem:[%s1400_s0 + $0x1cc] sm:$0xf]  ;;  %v13_v26 = vld [vmem:[%s1400_s0 + $0x10] sm:$0xf] }
  0x17   :  { %v775_v19 = vcombine.low %v189_v3, %v224_v11  ;;  %v247_v24 = vmax.bf16 %v245_v12, %v243_v17  ;;  %v274_v25 = vmax.bf16 %v272_v13, %v270_v18  ;;  %v29_v27 = vld [vmem:[%s1400_s0 + $0x50] sm:$0xf]  ;;  %v140_v29 = vld [vmem:[%s1400_s0 + $0x20c] sm:$0xf]  ;;  %v253_v30 = vsel %vm153_vm0, %v123_v16, 4286644096 }
  0x18   :  { %v45_v28 = vld [vmem:[%s1400_s0 + $0x90] sm:$0xf]  ;;  %v280_v31 = vsel %vm153_vm0, %v92_v14, 4286644096  ;;  %v257_v33 = vsel %vm153_vm0, %v139_v20, 4286644096 }
  0x19   :  { %739 = vst [vmem:[%s1401_s1] sm:$0xff] %v775_v19   ;;  %v251_v32 = vmax.bf16 %v249_v21, %v247_v24  ;;  %v278_v34 = vmax.bf16 %v276_v22, %v274_v25  ;;  %v284_v35 = vsel %vm153_vm0, %v108_v15, 4286644096  ;;  %v61_v36 = vld [vmem:[%s1400_s0 + $0xd0] sm:$0xf]  ;;  %v296_v37 = vsel %vm153_vm0, %v13_v26, 4286644096 }
  0x1a   :  { %v299_v38 = vsel %vm153_vm0, %v29_v27, 4286644096  ;;  %v303_v39 = vsel %vm153_vm0, %v45_v28, 4286644096  ;;  %v14_v42 = vld [vmem:[%s1400_s0 + $0x14] sm:$0xf] }
  0x1b   :  { %v255_v40 = vmax.bf16 %v253_v30, %v251_v32  ;;  %v282_v41 = vmax.bf16 %v280_v31, %v278_v34  ;;  %v30_v43 = vld [vmem:[%s1400_s0 + $0x54] sm:$0xf]  ;;  %v77_v44 = vld [vmem:[%s1400_s0 + $0x110] sm:$0xf]  ;;  %v301_v45 = vmax.bf16 %v299_v38, %v296_v37  ;;  %v288_v46 = vsel %vm153_vm0, %v124_v23, 4286644096 }
  0x1c   :  { %v46_v47 = vld [vmem:[%s1400_s0 + $0x94] sm:$0xf]  ;;  %v307_v48 = vsel %vm153_vm0, %v61_v36, 4286644096  ;;  %v292_v50 = vsel %vm153_vm0, %v140_v29, 4286644096 }
  0x1d   :  { %v286_v49 = vmax.bf16 %v284_v35, %v282_v41  ;;  %v62_v51 = vld [vmem:[%s1400_s0 + $0xd4] sm:$0xf]  ;;  %v93_v52 = vld [vmem:[%s1400_s0 + $0x150] sm:$0xf]  ;;  %v305_v53 = vmax.bf16 %v303_v39, %v301_v45  ;;  %v259_v54 = vmax.bf16 %v257_v33, %v255_v40  ;;  %v311_v55 = vsel %vm153_vm0, %v77_v44, 4286644096 }
  0x1e   :  { %v331_v56 = vsel %vm153_vm0, %v14_v42, 4286644096  ;;  %v334_v57 = vsel %vm153_vm0, %v30_v43, 4286644096  ;;  %v78_v59 = vld [vmem:[%s1400_s0 + $0x114] sm:$0xf] }
  0x1f   :  { %v290_v58 = vmax.bf16 %v288_v46, %v286_v49  ;;  %v109_v60 = vld [vmem:[%s1400_s0 + $0x190] sm:$0xf]  ;;  %v309_v61 = vmax.bf16 %v307_v48, %v305_v53  ;;  %v336_v62 = vmax.bf16 %v334_v57, %v331_v56  ;;  %v338_v63 = vsel %vm153_vm0, %v46_v47, 4286644096  ;;  %v94_v3 = vld [vmem:[%s1400_s0 + $0x154] sm:$0xf] }
  0x20   :  { %v315_v0 = vsel %vm153_vm0, %v93_v52, 4286644096  ;;  %v342_v1 = vsel %vm153_vm0, %v62_v51, 4286644096  ;;  %v110_v4 = vld [vmem:[%s1400_s0 + $0x194] sm:$0xf] }
  0x21   :  { %v294_v2 = vmax.bf16 %v292_v50, %v290_v58  ;;  %v125_v5 = vld [vmem:[%s1400_s0 + $0x1d0] sm:$0xf]  ;;  %v313_v6 = vmax.bf16 %v311_v55, %v309_v61  ;;  %v340_v7 = vmax.bf16 %v338_v63, %v336_v62  ;;  %v319_v9 = vsel %vm153_vm0, %v109_v60, 4286644096  ;;  %v126_v12 = vld [vmem:[%s1400_s0 + $0x1d4] sm:$0xf] }
  0x22   :  { %v141_v8 = vld [vmem:[%s1400_s0 + $0x210] sm:$0xf]  ;;  %v346_v10 = vsel %vm153_vm0, %v78_v59, 4286644096  ;;  %v15_v15 = vld [vmem:[%s1400_s0 + $0x18] sm:$0xf] }
  0x23   :  { %v776_v11 = vcombine.low %v259_v54, %v294_v2  ;;  %v317_v13 = vmax.bf16 %v315_v0, %v313_v6  ;;  %v344_v14 = vmax.bf16 %v342_v1, %v340_v7  ;;  %v31_v16 = vld [vmem:[%s1400_s0 + $0x58] sm:$0xf]  ;;  %v142_v18 = vld [vmem:[%s1400_s0 + $0x214] sm:$0xf]  ;;  %v323_v19 = vsel %vm153_vm0, %v125_v5, 4286644096 }
  0x24   :  { %v47_v17 = vld [vmem:[%s1400_s0 + $0x98] sm:$0xf]  ;;  %v350_v20 = vsel %vm153_vm0, %v94_v3, 4286644096  ;;  %v354_v23 = vsel %vm153_vm0, %v110_v4, 4286644096 }
  0x25   :  { %777 = vst [vmem:[%s1401_s1 + $0x8] sm:$0xff] %v776_v11   ;;  %v321_v21 = vmax.bf16 %v319_v9, %v317_v13  ;;  %v348_v22 = vmax.bf16 %v346_v10, %v344_v14  ;;  %v16_v24 = vld [vmem:[%s1400_s0 + $0x1c] sm:$0xf]  ;;  %v63_v25 = vld [vmem:[%s1400_s0 + $0xd8] sm:$0xf] }
  0x26   :  { %v366_v26 = vsel %vm153_vm0, %v15_v15, 4286644096  ;;  %v369_v27 = vsel %vm153_vm0, %v31_v16, 4286644096  ;;  %v373_v28 = vsel %vm153_vm0, %v47_v17, 4286644096 }
  0x27   :  { %v325_v29 = vmax.bf16 %v323_v19, %v321_v21  ;;  %v327_v30 = vsel %vm153_vm0, %v141_v8, 4286644096  ;;  %v352_v31 = vmax.bf16 %v350_v20, %v348_v22  ;;  %v32_v32 = vld [vmem:[%s1400_s0 + $0x5c] sm:$0xf]  ;;  %v79_v33 = vld [vmem:[%s1400_s0 + $0x118] sm:$0xf]  ;;  %v371_v34 = vmax.bf16 %v369_v27, %v366_v26 }
  0x28   :  { %v358_v35 = vsel %vm153_vm0, %v126_v12, 4286644096  ;;  %v48_v36 = vld [vmem:[%s1400_s0 + $0x9c] sm:$0xf]  ;;  %v377_v37 = vsel %vm153_vm0, %v63_v25, 4286644096 }
  0x29   :  { %v356_v38 = vmax.bf16 %v354_v23, %v352_v31  ;;  %v362_v39 = vsel %vm153_vm0, %v142_v18, 4286644096  ;;  %v64_v40 = vld [vmem:[%s1400_s0 + $0xdc] sm:$0xf]  ;;  %v95_v41 = vld [vmem:[%s1400_s0 + $0x158] sm:$0xf]  ;;  %v375_v42 = vmax.bf16 %v373_v28, %v371_v34  ;;  %v329_v43 = vmax.bf16 %v327_v30, %v325_v29 }
  0x2a   :  { %v381_v44 = vsel %vm153_vm0, %v79_v33, 4286644096  ;;  %v401_v45 = vsel %vm153_vm0, %v16_v24, 4286644096  ;;  %v404_v46 = vsel %vm153_vm0, %v32_v32, 4286644096 }
  0x2b   :  { %v360_v47 = vmax.bf16 %v358_v35, %v356_v38  ;;  %v80_v48 = vld [vmem:[%s1400_s0 + $0x11c] sm:$0xf]  ;;  %v111_v49 = vld [vmem:[%s1400_s0 + $0x198] sm:$0xf]  ;;  %v379_v50 = vmax.bf16 %v377_v37, %v375_v42  ;;  %v406_v51 = vmax.bf16 %v404_v46, %v401_v45  ;;  %v408_v52 = vsel %vm153_vm0, %v48_v36, 4286644096 }
  0x2c   :  { %v385_v53 = vsel %vm153_vm0, %v95_v41, 4286644096  ;;  %v412_v54 = vsel %vm153_vm0, %v64_v40, 4286644096  ;;  %v96_v56 = vld [vmem:[%s1400_s0 + $0x15c] sm:$0xf] }
  0x2d   :  { %v364_v55 = vmax.bf16 %v362_v39, %v360_v47  ;;  %v112_v57 = vld [vmem:[%s1400_s0 + $0x19c] sm:$0xf]  ;;  %v127_v58 = vld [vmem:[%s1400_s0 + $0x1d8] sm:$0xf]  ;;  %v383_v59 = vmax.bf16 %v381_v44, %v379_v50  ;;  %v410_v60 = vmax.bf16 %v408_v52, %v406_v51  ;;  %v389_v62 = vsel %vm153_vm0, %v111_v49, 4286644096 }
  0x2e   :  { %v143_v61 = vld [vmem:[%s1400_s0 + $0x218] sm:$0xf]  ;;  %v416_v63 = vsel %vm153_vm0, %v80_v48, 4286644096  ;;  %v128_v1 = vld [vmem:[%s1400_s0 + $0x1dc] sm:$0xf] }
  0x2f   :  { %v778_v0 = vcombine.low %v329_v43, %v364_v55  ;;  %v387_v2 = vmax.bf16 %v385_v53, %v383_v59  ;;  %v414_v3 = vmax.bf16 %v412_v54, %v410_v60  ;;  %v17_v4 = vld [vmem:[%s1400_s0 + $0x20] sm:$0xf]  ;;  %v144_v7 = vld [vmem:[%s1400_s0 + $0x21c] sm:$0xf]  ;;  %v393_v8 = vsel %vm153_vm0, %v127_v58, 4286644096 }
  0x30   :  { %v33_v5 = vld [vmem:[%s1400_s0 + $0x60] sm:$0xf]  ;;  %v420_v9 = vsel %vm153_vm0, %v96_v56, 4286644096  ;;  %v424_v12 = vsel %vm153_vm0, %v112_v57, 4286644096 }
  0x31   :  { %v49_v6 = vld [vmem:[%s1400_s0 + $0xa0] sm:$0xf]  ;;  %779 = vst [vmem:[%s1401_s1 + $0x10] sm:$0xff] %v778_v0   ;;  %v391_v10 = vmax.bf16 %v389_v62, %v387_v2  ;;  %v418_v11 = vmax.bf16 %v416_v63, %v414_v3  ;;  %v18_v13 = vld [vmem:[%s1400_s0 + $0x24] sm:$0xf] }
  0x32   :  { %v65_v14 = vld [vmem:[%s1400_s0 + $0xe0] sm:$0xf]  ;;  %v436_v15 = vsel %vm153_vm0, %v17_v4, 4286644096  ;;  %v439_v16 = vsel %vm153_vm0, %v33_v5, 4286644096 }
  0x33   :  { %v443_v17 = vsel %vm153_vm0, %v49_v6, 4286644096  ;;  %v395_v18 = vmax.bf16 %v393_v8, %v391_v10  ;;  %v397_v19 = vsel %vm153_vm0, %v143_v61, 4286644096  ;;  %v422_v20 = vmax.bf16 %v420_v9, %v418_v11  ;;  %v34_v21 = vld [vmem:[%s1400_s0 + $0x64] sm:$0xf] }
  0x34   :  { %v81_v22 = vld [vmem:[%s1400_s0 + $0x120] sm:$0xf]  ;;  %v441_v23 = vmax.bf16 %v439_v16, %v436_v15  ;;  %v428_v24 = vsel %vm153_vm0, %v128_v1, 4286644096  ;;  %v50_v25 = vld [vmem:[%s1400_s0 + $0xa4] sm:$0xf] }
  0x35   :  { %v447_v26 = vsel %vm153_vm0, %v65_v14, 4286644096  ;;  %v426_v27 = vmax.bf16 %v424_v12, %v422_v20  ;;  %v432_v28 = vsel %vm153_vm0, %v144_v7, 4286644096  ;;  %v66_v29 = vld [vmem:[%s1400_s0 + $0xe4] sm:$0xf]  ;;  %v399_v32 = vmax.bf16 %v397_v19, %v395_v18 }
  0x36   :  { %v97_v30 = vld [vmem:[%s1400_s0 + $0x160] sm:$0xf]  ;;  %v445_v31 = vmax.bf16 %v443_v17, %v441_v23  ;;  %v451_v33 = vsel %vm153_vm0, %v81_v22, 4286644096  ;;  %v471_v34 = vsel %vm153_vm0, %v18_v13, 4286644096 }
  0x37   :  { %v474_v35 = vsel %vm153_vm0, %v34_v21, 4286644096  ;;  %v430_v36 = vmax.bf16 %v428_v24, %v426_v27  ;;  %v82_v37 = vld [vmem:[%s1400_s0 + $0x124] sm:$0xf]  ;;  %v113_v38 = vld [vmem:[%s1400_s0 + $0x1a0] sm:$0xf] }
  0x38   :  { %v449_v39 = vmax.bf16 %v447_v26, %v445_v31  ;;  %v476_v40 = vmax.bf16 %v474_v35, %v471_v34  ;;  %v478_v41 = vsel %vm153_vm0, %v50_v25, 4286644096  ;;  %v455_v42 = vsel %vm153_vm0, %v97_v30, 4286644096  ;;  %v98_v45 = vld [vmem:[%s1400_s0 + $0x164] sm:$0xf] }
  0x39   :  { %v482_v43 = vsel %vm153_vm0, %v66_v29, 4286644096  ;;  %v434_v44 = vmax.bf16 %v432_v28, %v430_v36  ;;  %v114_v46 = vld [vmem:[%s1400_s0 + $0x1a4] sm:$0xf]  ;;  %v129_v47 = vld [vmem:[%s1400_s0 + $0x1e0] sm:$0xf] }
  0x3a   :  { %v453_v48 = vmax.bf16 %v451_v33, %v449_v39  ;;  %v480_v49 = vmax.bf16 %v478_v41, %v476_v40  ;;  %v145_v50 = vld [vmem:[%s1400_s0 + $0x220] sm:$0xf]  ;;  %v459_v51 = vsel %vm153_vm0, %v113_v38, 4286644096  ;;  %v486_v52 = vsel %vm153_vm0, %v82_v37, 4286644096 }
  0x3b   :  { %v780_v53 = vcombine.low %v399_v32, %v434_v44  ;;  %v130_v54 = vld [vmem:[%s1400_s0 + $0x1e4] sm:$0xf]  ;;  %v19_v57 = vld [vmem:[%s1400_s0 + $0x28] sm:$0xf]  ;;  %v463_v61 = vsel %vm153_vm0, %v129_v47, 4286644096 }
  0x3c   :  { %v457_v55 = vmax.bf16 %v455_v42, %v453_v48  ;;  %v484_v56 = vmax.bf16 %v482_v43, %v480_v49  ;;  %v35_v58 = vld [vmem:[%s1400_s0 + $0x68] sm:$0xf]  ;;  %v146_v60 = vld [vmem:[%s1400_s0 + $0x224] sm:$0xf]  ;;  %v490_v62 = vsel %vm153_vm0, %v98_v45, 4286644096 }
  0x3d   :  { %v51_v59 = vld [vmem:[%s1400_s0 + $0xa8] sm:$0xf]  ;;  %781 = vst [vmem:[%s1401_s1 + $0x18] sm:$0xff] %v780_v53   ;;  %v494_v1 = vsel %vm153_vm0, %v114_v46, 4286644096 }
  0x3e   :  { %v461_v63 = vmax.bf16 %v459_v51, %v457_v55  ;;  %v488_v0 = vmax.bf16 %v486_v52, %v484_v56  ;;  %v20_v2 = vld [vmem:[%s1400_s0 + $0x2c] sm:$0xf]  ;;  %v67_v3 = vld [vmem:[%s1400_s0 + $0xe8] sm:$0xf]  ;;  %v506_v4 = vsel %vm153_vm0, %v19_v57, 4286644096 }
  0x3f   :  { %v509_v5 = vsel %vm153_vm0, %v35_v58, 4286644096  ;;  %v513_v6 = vsel %vm153_vm0, %v51_v59, 4286644096  ;;  %v467_v8 = vsel %vm153_vm0, %v145_v50, 4286644096 }
  0x40   :  { %v465_v7 = vmax.bf16 %v463_v61, %v461_v63  ;;  %v492_v9 = vmax.bf16 %v490_v62, %v488_v0  ;;  %v36_v10 = vld [vmem:[%s1400_s0 + $0x6c] sm:$0xf]  ;;  %v83_v11 = vld [vmem:[%s1400_s0 + $0x128] sm:$0xf]  ;;  %v511_v12 = vmax.bf16 %v509_v5, %v506_v4  ;;  %v498_v13 = vsel %vm153_vm0, %v130_v54, 4286644096 }
  0x41   :  { %v52_v14 = vld [vmem:[%s1400_s0 + $0xac] sm:$0xf]  ;;  %v517_v15 = vsel %vm153_vm0, %v67_v3, 4286644096  ;;  %v502_v17 = vsel %vm153_vm0, %v146_v60, 4286644096 }
  0x42   :  { %v496_v16 = vmax.bf16 %v494_v1, %v492_v9  ;;  %v68_v18 = vld [vmem:[%s1400_s0 + $0xec] sm:$0xf]  ;;  %v99_v19 = vld [vmem:[%s1400_s0 + $0x168] sm:$0xf]  ;;  %v515_v20 = vmax.bf16 %v513_v6, %v511_v12  ;;  %v469_v21 = vmax.bf16 %v467_v8, %v465_v7  ;;  %v521_v22 = vsel %vm153_vm0, %v83_v11, 4286644096 }
  0x43   :  { %v541_v23 = vsel %vm153_vm0, %v20_v2, 4286644096  ;;  %v544_v24 = vsel %vm153_vm0, %v36_v10, 4286644096  ;;  %v84_v26 = vld [vmem:[%s1400_s0 + $0x12c] sm:$0xf] }
  0x44   :  { %v500_v25 = vmax.bf16 %v498_v13, %v496_v16  ;;  %v115_v27 = vld [vmem:[%s1400_s0 + $0x1a8] sm:$0xf]  ;;  %v519_v28 = vmax.bf16 %v517_v15, %v515_v20  ;;  %v546_v29 = vmax.bf16 %v544_v24, %v541_v23  ;;  %v548_v30 = vsel %vm153_vm0, %v52_v14, 4286644096  ;;  %v100_v34 = vld [vmem:[%s1400_s0 + $0x16c] sm:$0xf] }
  0x45   :  { %v525_v31 = vsel %vm153_vm0, %v99_v19, 4286644096  ;;  %v552_v32 = vsel %vm153_vm0, %v68_v18, 4286644096  ;;  %v116_v35 = vld [vmem:[%s1400_s0 + $0x1ac] sm:$0xf] }
  0x46   :  { %v504_v33 = vmax.bf16 %v502_v17, %v500_v25  ;;  %v131_v36 = vld [vmem:[%s1400_s0 + $0x1e8] sm:$0xf]  ;;  %v523_v37 = vmax.bf16 %v521_v22, %v519_v28  ;;  %v550_v38 = vmax.bf16 %v548_v30, %v546_v29  ;;  %v529_v40 = vsel %vm153_vm0, %v115_v27, 4286644096  ;;  %v132_v43 = vld [vmem:[%s1400_s0 + $0x1ec] sm:$0xf] }
  0x47   :  { %v147_v39 = vld [vmem:[%s1400_s0 + $0x228] sm:$0xf]  ;;  %v556_v41 = vsel %vm153_vm0, %v84_v26, 4286644096  ;;  %v21_v46 = vld [vmem:[%s1400_s0 + $0x30] sm:$0xf] }
  0x48   :  { %v782_v42 = vcombine.low %v469_v21, %v504_v33  ;;  %v527_v44 = vmax.bf16 %v525_v31, %v523_v37  ;;  %v554_v45 = vmax.bf16 %v552_v32, %v550_v38  ;;  %v37_v47 = vld [vmem:[%s1400_s0 + $0x70] sm:$0xf]  ;;  %v148_v49 = vld [vmem:[%s1400_s0 + $0x22c] sm:$0xf]  ;;  %v533_v50 = vsel %vm153_vm0, %v131_v36, 4286644096 }
  0x49   :  { %v53_v48 = vld [vmem:[%s1400_s0 + $0xb0] sm:$0xf]  ;;  %v560_v51 = vsel %vm153_vm0, %v100_v34, 4286644096  ;;  %v564_v54 = vsel %vm153_vm0, %v116_v35, 4286644096 }
  0x4a   :  { %783 = vst [vmem:[%s1401_s1 + $0x20] sm:$0xff] %v782_v42   ;;  %v531_v52 = vmax.bf16 %v529_v40, %v527_v44  ;;  %v558_v53 = vmax.bf16 %v556_v41, %v554_v45  ;;  %v22_v55 = vld [vmem:[%s1400_s0 + $0x34] sm:$0xf]  ;;  %v69_v56 = vld [vmem:[%s1400_s0 + $0xf0] sm:$0xf] }
  0x4b   :  { %v576_v57 = vsel %vm153_vm0, %v21_v46, 4286644096  ;;  %v579_v58 = vsel %vm153_vm0, %v37_v47, 4286644096  ;;  %v583_v59 = vsel %vm153_vm0, %v53_v48, 4286644096 }
  0x4c   :  { %v535_v60 = vmax.bf16 %v533_v50, %v531_v52  ;;  %v537_v61 = vsel %vm153_vm0, %v147_v39, 4286644096  ;;  %v562_v62 = vmax.bf16 %v560_v51, %v558_v53  ;;  %v38_v63 = vld [vmem:[%s1400_s0 + $0x74] sm:$0xf]  ;;  %v85_v0 = vld [vmem:[%s1400_s0 + $0x130] sm:$0xf]  ;;  %v581_v1 = vmax.bf16 %v579_v58, %v576_v57 }
  0x4d   :  { %v568_v2 = vsel %vm153_vm0, %v132_v43, 4286644096  ;;  %v54_v3 = vld [vmem:[%s1400_s0 + $0xb4] sm:$0xf]  ;;  %v587_v4 = vsel %vm153_vm0, %v69_v56, 4286644096 }
  0x4e   :  { %v566_v5 = vmax.bf16 %v564_v54, %v562_v62  ;;  %v572_v6 = vsel %vm153_vm0, %v148_v49, 4286644096  ;;  %v70_v7 = vld [vmem:[%s1400_s0 + $0xf4] sm:$0xf]  ;;  %v101_v8 = vld [vmem:[%s1400_s0 + $0x170] sm:$0xf]  ;;  %v585_v9 = vmax.bf16 %v583_v59, %v581_v1  ;;  %v539_v10 = vmax.bf16 %v537_v61, %v535_v60 }
  0x4f   :  { %v591_v11 = vsel %vm153_vm0, %v85_v0, 4286644096  ;;  %v611_v12 = vsel %vm153_vm0, %v22_v55, 4286644096  ;;  %v614_v13 = vsel %vm153_vm0, %v38_v63, 4286644096 }
  0x50   :  { %v570_v14 = vmax.bf16 %v568_v2, %v566_v5  ;;  %v86_v15 = vld [vmem:[%s1400_s0 + $0x134] sm:$0xf]  ;;  %v117_v16 = vld [vmem:[%s1400_s0 + $0x1b0] sm:$0xf]  ;;  %v589_v17 = vmax.bf16 %v587_v4, %v585_v9  ;;  %v616_v18 = vmax.bf16 %v614_v13, %v611_v12  ;;  %v618_v19 = vsel %vm153_vm0, %v54_v3, 4286644096 }
  0x51   :  { %v595_v20 = vsel %vm153_vm0, %v101_v8, 4286644096  ;;  %v622_v21 = vsel %vm153_vm0, %v70_v7, 4286644096  ;;  %v102_v23 = vld [vmem:[%s1400_s0 + $0x174] sm:$0xf] }
  0x52   :  { %v574_v22 = vmax.bf16 %v572_v6, %v570_v14  ;;  %v118_v24 = vld [vmem:[%s1400_s0 + $0x1b4] sm:$0xf]  ;;  %v133_v25 = vld [vmem:[%s1400_s0 + $0x1f0] sm:$0xf]  ;;  %v593_v26 = vmax.bf16 %v591_v11, %v589_v17  ;;  %v620_v27 = vmax.bf16 %v618_v19, %v616_v18  ;;  %v599_v29 = vsel %vm153_vm0, %v117_v16, 4286644096 }
  0x53   :  { %v149_v28 = vld [vmem:[%s1400_s0 + $0x230] sm:$0xf]  ;;  %v626_v30 = vsel %vm153_vm0, %v86_v15, 4286644096  ;;  %v134_v32 = vld [vmem:[%s1400_s0 + $0x1f4] sm:$0xf] }
  0x54   :  { %v784_v31 = vcombine.low %v539_v10, %v574_v22  ;;  %v597_v33 = vmax.bf16 %v595_v20, %v593_v26  ;;  %v624_v34 = vmax.bf16 %v622_v21, %v620_v27  ;;  %v23_v35 = vld [vmem:[%s1400_s0 + $0x38] sm:$0xf]  ;;  %v150_v38 = vld [vmem:[%s1400_s0 + $0x234] sm:$0xf]  ;;  %v603_v39 = vsel %vm153_vm0, %v133_v25, 4286644096 }
  0x55   :  { %v39_v36 = vld [vmem:[%s1400_s0 + $0x78] sm:$0xf]  ;;  %v630_v40 = vsel %vm153_vm0, %v102_v23, 4286644096  ;;  %v634_v43 = vsel %vm153_vm0, %v118_v24, 4286644096 }
  0x56   :  { %v55_v37 = vld [vmem:[%s1400_s0 + $0xb8] sm:$0xf]  ;;  %785 = vst [vmem:[%s1401_s1 + $0x28] sm:$0xff] %v784_v31   ;;  %v601_v41 = vmax.bf16 %v599_v29, %v597_v33  ;;  %v628_v42 = vmax.bf16 %v626_v30, %v624_v34  ;;  %v24_v44 = vld [vmem:[%s1400_s0 + $0x3c] sm:$0xf] }
  0x57   :  { %v71_v45 = vld [vmem:[%s1400_s0 + $0xf8] sm:$0xf]  ;;  %v646_v46 = vsel %vm153_vm0, %v23_v35, 4286644096  ;;  %v649_v47 = vsel %vm153_vm0, %v39_v36, 4286644096 }
  0x58   :  { %v653_v48 = vsel %vm153_vm0, %v55_v37, 4286644096  ;;  %v605_v49 = vmax.bf16 %v603_v39, %v601_v41  ;;  %v607_v50 = vsel %vm153_vm0, %v149_v28, 4286644096  ;;  %v632_v51 = vmax.bf16 %v630_v40, %v628_v42  ;;  %v40_v52 = vld [vmem:[%s1400_s0 + $0x7c] sm:$0xf] }
  0x59   :  { %v87_v53 = vld [vmem:[%s1400_s0 + $0x138] sm:$0xf]  ;;  %v651_v54 = vmax.bf16 %v649_v47, %v646_v46  ;;  %v638_v55 = vsel %vm153_vm0, %v134_v32, 4286644096  ;;  %v56_v56 = vld [vmem:[%s1400_s0 + $0xbc] sm:$0xf] }
  0x5a   :  { %v657_v57 = vsel %vm153_vm0, %v71_v45, 4286644096  ;;  %v636_v58 = vmax.bf16 %v634_v43, %v632_v51  ;;  %v642_v59 = vsel %vm153_vm0, %v150_v38, 4286644096  ;;  %v72_v60 = vld [vmem:[%s1400_s0 + $0xfc] sm:$0xf]  ;;  %v609_v63 = vmax.bf16 %v607_v50, %v605_v49 }
  0x5b   :  { %v103_v61 = vld [vmem:[%s1400_s0 + $0x178] sm:$0xf]  ;;  %v655_v62 = vmax.bf16 %v653_v48, %v651_v54  ;;  %v661_v0 = vsel %vm153_vm0, %v87_v53, 4286644096  ;;  %v681_v1 = vsel %vm153_vm0, %v24_v44, 4286644096 }
  0x5c   :  { %v684_v2 = vsel %vm153_vm0, %v40_v52, 4286644096  ;;  %v640_v3 = vmax.bf16 %v638_v55, %v636_v58  ;;  %v88_v4 = vld [vmem:[%s1400_s0 + $0x13c] sm:$0xf]  ;;  %v119_v5 = vld [vmem:[%s1400_s0 + $0x1b8] sm:$0xf] }
  0x5d   :  { %v659_v6 = vmax.bf16 %v657_v57, %v655_v62  ;;  %v686_v7 = vmax.bf16 %v684_v2, %v681_v1  ;;  %v688_v8 = vsel %vm153_vm0, %v56_v56, 4286644096  ;;  %v665_v9 = vsel %vm153_vm0, %v103_v61, 4286644096  ;;  %v104_v12 = vld [vmem:[%s1400_s0 + $0x17c] sm:$0xf] }
  0x5e   :  { %v692_v10 = vsel %vm153_vm0, %v72_v60, 4286644096  ;;  %v644_v11 = vmax.bf16 %v642_v59, %v640_v3  ;;  %v135_v13 = vld [vmem:[%s1400_s0 + $0x1f8] sm:$0xf]  ;;  %v669_v16 = vsel %vm153_vm0, %v119_v5, 4286644096 }
  0x5f   :  { %v663_v14 = vmax.bf16 %v661_v0, %v659_v6  ;;  %v690_v15 = vmax.bf16 %v688_v8, %v686_v7  ;;  %v696_v17 = vsel %vm153_vm0, %v88_v4, 4286644096  ;;  %v120_v19 = vld [vmem:[%s1400_s0 + $0x1bc] sm:$0xf]  ;;  %v673_v22 = vsel %vm153_vm0, %v135_v13, 4286644096 }
  0x60   :  { %v786_v18 = vcombine.low %v609_v63, %v644_v11  ;;  %v700_v23 = vsel %vm153_vm0, %v104_v12, 4286644096  ;;  %v136_v24 = vld [vmem:[%s1400_s0 + $0x1fc] sm:$0xf]  ;;  %v151_v25 = vld [vmem:[%s1400_s0 + $0x238] sm:$0xf] }
  0x61   :  { %v667_v20 = vmax.bf16 %v665_v9, %v663_v14  ;;  %v694_v21 = vmax.bf16 %v692_v10, %v690_v15  ;;  %v704_v28 = vsel %vm153_vm0, %v120_v19, 4286644096  ;;  %v152_v29 = vld [vmem:[%s1400_s0 + $0x23c] sm:$0xf]  ;;  %v677_v32 = vsel %vm153_vm0, %v151_v25, 4286644096 }
  0x62   :  { %787 = vst [vmem:[%s1401_s1 + $0x30] sm:$0xff] %v786_v18   ;;  %v708_v33 = vsel %vm153_vm0, %v136_v24, 4286644096  ;;  %v712_v35 = vsel %vm153_vm0, %v152_v29, 4286644096 }
  0x63   :  { %v671_v26 = vmax.bf16 %v669_v16, %v667_v20  ;;  %v698_v27 = vmax.bf16 %v696_v17, %v694_v21 }
  0x65   :  { %v675_v30 = vmax.bf16 %v673_v22, %v671_v26  ;;  %v702_v31 = vmax.bf16 %v700_v23, %v698_v27 }
  0x67   :  { %v706_v34 = vmax.bf16 %v704_v28, %v702_v31  ;;  %v679_v36 = vmax.bf16 %v677_v32, %v675_v30 }
  0x69   :  { %v710_v37 = vmax.bf16 %v708_v33, %v706_v34 }
  0x6b   :  { %v714_v38 = vmax.bf16 %v712_v35, %v710_v37 }
  0x6d   :  { %v788_v39 = vcombine.low %v679_v36, %v714_v38 }
  0x6f   :  { %789 = vst [vmem:[%s1401_s1 + $0x38] sm:$0xff] %v788_v39  }

// kernel: resnet34_forward.38
= control target key start
LH: loop header
LB: loop body
LE: loop exit
PB: predicated region body
PF: predicated region fallthrough
CT: control target
= control target key end

     0   :  { %v2147_v0 = vmov 0   ;;  %s2605_s1 = inlined_call_operand.vmem [shape: bf16[256,128], index: 1, kind: input, shape index: {}]   ;;  %s2606_s0 = inlined_call_operand.vmem [shape: bf16[512,256], index: 0, kind: input, shape index: {}]   ;;  %s2607_s2 = inlined_call_operand.vmem [shape: f32[1,128], index: 2, kind: input, shape index: {}]   ;;  %s2608_s3 = inlined_call_operand.vmem [shape: bf16[512,128], index: 3, kind: output, shape index: {}]  }
   0x1   :  { %659 = vmatprep.subr.bf16.mxu0 %v2147_v0  ;;  %2002 = vmatprep.subr.bf16.mxu1 %v2147_v0  ;;  %v2035_v1 = vld [vmem:[%s2605_s1] sm:$0xff]   ;;  %v2036_v2 = vld [vmem:[%s2605_s1 + $0x8] sm:$0xff]   ;;  %v2037_v3 = vld [vmem:[%s2605_s1 + $0x10] sm:$0xff]  }
   0x2   :  { %660 = vmatpush1.bf16.msra.mxu0 %v2035_v1  ;;  %2018 = vmatpush1.bf16.msra.mxu1 %v2035_v1  ;;  %v2038_v4 = vld [vmem:[%s2605_s1 + $0x18] sm:$0xff]   ;;  %v2039_v5 = vld [vmem:[%s2605_s1 + $0x20] sm:$0xff]   ;;  %v2040_v7 = vld [vmem:[%s2605_s1 + $0x28] sm:$0xff]  }
   0x3   :  { %661 = vmatprep.subr.bf16.mxu0 %v2147_v0  ;;  %2003 = vmatprep.subr.bf16.mxu1 %v2147_v0  ;;  %v2053_v6 = vld [vmem:[%s2606_s0 + $0x4] ss:$8 sps:$4 sm:$0xff]   ;;  %v2041_v9 = vld [vmem:[%s2605_s1 + $0x30] sm:$0xff]   ;;  %v2042_v10 = vld [vmem:[%s2605_s1 + $0x38] sm:$0xff]  }
   0x4   :  { %v2056_v8 = vld [vmem:[%s2606_s0 + $0x104] ss:$8 sps:$4 sm:$0xff]   ;;  %691 = vmatprep.mubr.bf16.mxu0 %v2053_v6  ;;  %v2045_v13 = vld [vmem:[%s2605_s1 + $0x50] sm:$0xff]   ;;  %v2046_v14 = vld [vmem:[%s2605_s1 + $0x58] sm:$0xff]  }
   0x5   :  { %819 = vmatprep.mubr.bf16.mxu1 %v2056_v8  ;;  %v2043_v11 = vld [vmem:[%s2605_s1 + $0x40] sm:$0xff]   ;;  %v2044_v12 = vld [vmem:[%s2605_s1 + $0x48] sm:$0xff]   ;;  %v2049_v17 = vld [vmem:[%s2605_s1 + $0x70] sm:$0xff]  }
   0x6   :  { %662 = vmatpush1.bf16.msra.mxu0 %v2036_v2  ;;  %2019 = vmatpush1.bf16.msra.mxu1 %v2036_v2  ;;  %v2047_v15 = vld [vmem:[%s2605_s1 + $0x60] sm:$0xff]   ;;  %v2048_v16 = vld [vmem:[%s2605_s1 + $0x68] sm:$0xff]   ;;  %v2050_v18 = vld [vmem:[%s2605_s1 + $0x78] sm:$0xff]  }
   0x7   :  { %663 = vmatprep.subr.bf16.mxu0 %v2147_v0  ;;  %2004 = vmatprep.subr.bf16.mxu1 %v2147_v0  ;;  %v2051_v19 = vld [vmem:[%s2606_s0] ss:$8 sps:$4 sm:$0xff]   ;;  %v2057_v21 = vld [vmem:[%s2606_s0 + $0x14] ss:$8 sps:$4 sm:$0xff]   ;;  %v2061_v23 = vld [vmem:[%s2606_s0 + $0x10] ss:$8 sps:$4 sm:$0xff]  }
   0x8   :  { %v2054_v20 = vld [vmem:[%s2606_s0 + $0x100] ss:$8 sps:$4 sm:$0xff]   ;;  %v2059_v22 = vld [vmem:[%s2606_s0 + $0x114] ss:$8 sps:$4 sm:$0xff]   ;;  %v2062_v24 = vld [vmem:[%s2606_s0 + $0x110] ss:$8 sps:$4 sm:$0xff]  }
   0x9   :  { %v2063_v25 = vld [vmem:[%s2606_s0 + $0x24] ss:$8 sps:$4 sm:$0xff]   ;;  %v2067_v27 = vld [vmem:[%s2606_s0 + $0x20] ss:$8 sps:$4 sm:$0xff]   ;;  %v2069_v29 = vld [vmem:[%s2606_s0 + $0x34] ss:$8 sps:$4 sm:$0xff]  }
   0xa   :  { %664 = vmatpush1.bf16.msra.mxu0 %v2037_v3  ;;  %2020 = vmatpush1.bf16.msra.mxu1 %v2037_v3  ;;  %v2065_v26 = vld [vmem:[%s2606_s0 + $0x124] ss:$8 sps:$4 sm:$0xff]   ;;  %v2068_v28 = vld [vmem:[%s2606_s0 + $0x120] ss:$8 sps:$4 sm:$0xff]   ;;  %v2071_v30 = vld [vmem:[%s2606_s0 + $0x134] ss:$8 sps:$4 sm:$0xff]  }
   0xb   :  { %665 = vmatprep.subr.bf16.mxu0 %v2147_v0  ;;  %2005 = vmatprep.subr.bf16.mxu1 %v2147_v0  ;;  %v2073_v31 = vld [vmem:[%s2606_s0 + $0x30] ss:$8 sps:$4 sm:$0xff]   ;;  %v2075_v33 = vld [vmem:[%s2606_s0 + $0x44] ss:$8 sps:$4 sm:$0xff]   ;;  %v2079_v35 = vld [vmem:[%s2606_s0 + $0x40] ss:$8 sps:$4 sm:$0xff]  }
   0xc   :  { %v2074_v32 = vld [vmem:[%s2606_s0 + $0x130] ss:$8 sps:$4 sm:$0xff]   ;;  %v2077_v34 = vld [vmem:[%s2606_s0 + $0x144] ss:$8 sps:$4 sm:$0xff]   ;;  %v2080_v36 = vld [vmem:[%s2606_s0 + $0x140] ss:$8 sps:$4 sm:$0xff]  }
   0xd   :  { %v2081_v37 = vld [vmem:[%s2606_s0 + $0x54] ss:$8 sps:$4 sm:$0xff]   ;;  %v2085_v39 = vld [vmem:[%s2606_s0 + $0x50] ss:$8 sps:$4 sm:$0xff]   ;;  %v2087_v41 = vld [vmem:[%s2606_s0 + $0x64] ss:$8 sps:$4 sm:$0xff]  }
   0xe   :  { %666 = vmatpush1.bf16.msra.mxu0 %v2038_v4  ;;  %2021 = vmatpush1.bf16.msra.mxu1 %v2038_v4  ;;  %v2083_v38 = vld [vmem:[%s2606_s0 + $0x154] ss:$8 sps:$4 sm:$0xff]   ;;  %v2086_v40 = vld [vmem:[%s2606_s0 + $0x150] ss:$8 sps:$4 sm:$0xff]   ;;  %v2089_v42 = vld [vmem:[%s2606_s0 + $0x164] ss:$8 sps:$4 sm:$0xff]  }
   0xf   :  { %667 = vmatprep.subr.bf16.mxu0 %v2147_v0  ;;  %2006 = vmatprep.subr.bf16.mxu1 %v2147_v0  ;;  %v2091_v43 = vld [vmem:[%s2606_s0 + $0x60] ss:$8 sps:$4 sm:$0xff]   ;;  %v2093_v45 = vld [vmem:[%s2606_s0 + $0x74] ss:$8 sps:$4 sm:$0xff]   ;;  %v2097_v47 = vld [vmem:[%s2606_s0 + $0x70] ss:$8 sps:$4 sm:$0xff]  }
  0x10   :  { %v2092_v44 = vld [vmem:[%s2606_s0 + $0x160] ss:$8 sps:$4 sm:$0xff]   ;;  %v2095_v46 = vld [vmem:[%s2606_s0 + $0x174] ss:$8 sps:$4 sm:$0xff]   ;;  %v2098_v48 = vld [vmem:[%s2606_s0 + $0x170] ss:$8 sps:$4 sm:$0xff]  }
  0x11   :  { %v2099_v49 = vld [vmem:[%s2606_s0 + $0x84] ss:$8 sps:$4 sm:$0xff]   ;;  %v2103_v51 = vld [vmem:[%s2606_s0 + $0x80] ss:$8 sps:$4 sm:$0xff]   ;;  %v2105_v53 = vld [vmem:[%s2606_s0 + $0x94] ss:$8 sps:$4 sm:$0xff]  }
  0x12   :  { %668 = vmatpush1.bf16.msra.mxu0 %v2039_v5  ;;  %2022 = vmatpush1.bf16.msra.mxu1 %v2039_v5  ;;  %v2101_v50 = vld [vmem:[%s2606_s0 + $0x184] ss:$8 sps:$4 sm:$0xff]   ;;  %v2104_v52 = vld [vmem:[%s2606_s0 + $0x180] ss:$8 sps:$4 sm:$0xff]   ;;  %v2107_v54 = vld [vmem:[%s2606_s0 + $0x194] ss:$8 sps:$4 sm:$0xff]  }
  0x13   :  { %669 = vmatprep.subr.bf16.mxu0 %v2147_v0  ;;  %2007 = vmatprep.subr.bf16.mxu1 %v2147_v0  ;;  %v2109_v55 = vld [vmem:[%s2606_s0 + $0x90] ss:$8 sps:$4 sm:$0xff]   ;;  %v2111_v57 = vld [vmem:[%s2606_s0 + $0xa4] ss:$8 sps:$4 sm:$0xff]   ;;  %v2115_v59 = vld [vmem:[%s2606_s0 + $0xa0] ss:$8 sps:$4 sm:$0xff]  }
  0x14   :  { %v2110_v56 = vld [vmem:[%s2606_s0 + $0x190] ss:$8 sps:$4 sm:$0xff]   ;;  %v2113_v58 = vld [vmem:[%s2606_s0 + $0x1a4] ss:$8 sps:$4 sm:$0xff]   ;;  %v2116_v60 = vld [vmem:[%s2606_s0 + $0x1a0] ss:$8 sps:$4 sm:$0xff]  }
  0x15   :  { %v2117_v61 = vld [vmem:[%s2606_s0 + $0xb4] ss:$8 sps:$4 sm:$0xff]   ;;  %v2121_v63 = vld [vmem:[%s2606_s0 + $0xb0] ss:$8 sps:$4 sm:$0xff]   ;;  %v2123_v1 = vld [vmem:[%s2606_s0 + $0xc4] ss:$8 sps:$4 sm:$0xff]  }
  0x16   :  { %670 = vmatpush1.bf16.msra.mxu0 %v2040_v7  ;;  %2023 = vmatpush1.bf16.msra.mxu1 %v2040_v7  ;;  %v2119_v62 = vld [vmem:[%s2606_s0 + $0x1b4] ss:$8 sps:$4 sm:$0xff]   ;;  %v2125_v2 = vld [vmem:[%s2606_s0 + $0x1c4] ss:$8 sps:$4 sm:$0xff]   ;;  %v2127_v3 = vld [vmem:[%s2606_s0 + $0xc0] ss:$8 sps:$4 sm:$0xff]  }
  0x17   :  { %671 = vmatprep.subr.bf16.mxu0 %v2147_v0  ;;  %2008 = vmatprep.subr.bf16.mxu1 %v2147_v0  ;;  %v2128_v4 = vld [vmem:[%s2606_s0 + $0x1c0] ss:$8 sps:$4 sm:$0xff]   ;;  %v2129_v5 = vld [vmem:[%s2606_s0 + $0xd4] ss:$8 sps:$4 sm:$0xff]   ;;  %v2133_v7 = vld [vmem:[%s2606_s0 + $0xd0] ss:$8 sps:$4 sm:$0xff]  }
  0x18   :  { %v2131_v6 = vld [vmem:[%s2606_s0 + $0x1d4] ss:$8 sps:$4 sm:$0xff]   ;;  %v2134_v8 = vld [vmem:[%s2606_s0 + $0x1d0] ss:$8 sps:$4 sm:$0xff]  }
  0x1a   :  { %672 = vmatpush1.bf16.msra.mxu0 %v2041_v9  ;;  %2024 = vmatpush1.bf16.msra.mxu1 %v2041_v9  ;;  %v2135_v9 = vld [vmem:[%s2606_s0 + $0xe4] ss:$8 sps:$4 sm:$0xff]  }
  0x1b   :  { %673 = vmatprep.subr.bf16.mxu0 %v2147_v0  ;;  %2009 = vmatprep.subr.bf16.mxu1 %v2147_v0 }
  0x1e   :  { %674 = vmatpush1.bf16.msra.mxu0 %v2042_v10  ;;  %2025 = vmatpush1.bf16.msra.mxu1 %v2042_v10  ;;  %v2137_v10 = vld [vmem:[%s2606_s0 + $0x1e4] ss:$8 sps:$4 sm:$0xff]  }
  0x1f   :  { %675 = vmatprep.subr.bf16.mxu0 %v2147_v0  ;;  %2010 = vmatprep.subr.bf16.mxu1 %v2147_v0 }
  0x22   :  { %676 = vmatpush1.bf16.msra.mxu0 %v2043_v11  ;;  %2026 = vmatpush1.bf16.msra.mxu1 %v2043_v11  ;;  %v2139_v11 = vld [vmem:[%s2606_s0 + $0xe0] ss:$8 sps:$4 sm:$0xff]  }
  0x23   :  { %677 = vmatprep.subr.bf16.mxu0 %v2147_v0  ;;  %2011 = vmatprep.subr.bf16.mxu1 %v2147_v0 }
  0x26   :  { %678 = vmatpush1.bf16.msra.mxu0 %v2044_v12  ;;  %2027 = vmatpush1.bf16.msra.mxu1 %v2044_v12  ;;  %v2140_v12 = vld [vmem:[%s2606_s0 + $0x1e0] ss:$8 sps:$4 sm:$0xff]  }
  0x27   :  { %679 = vmatprep.subr.bf16.mxu0 %v2147_v0  ;;  %2012 = vmatprep.subr.bf16.mxu1 %v2147_v0 }
  0x2a   :  { %680 = vmatpush1.bf16.msra.mxu0 %v2045_v13  ;;  %2028 = vmatpush1.bf16.msra.mxu1 %v2045_v13  ;;  %v2141_v13 = vld [vmem:[%s2606_s0 + $0xf4] ss:$8 sps:$4 sm:$0xff]  }
  0x2b   :  { %681 = vmatprep.subr.bf16.mxu0 %v2147_v0  ;;  %2013 = vmatprep.subr.bf16.mxu1 %v2147_v0 }
  0x2e   :  { %682 = vmatpush1.bf16.msra.mxu0 %v2046_v14  ;;  %2029 = vmatpush1.bf16.msra.mxu1 %v2046_v14  ;;  %v2143_v14 = vld [vmem:[%s2606_s0 + $0x1f4] ss:$8 sps:$4 sm:$0xff]  }
  0x2f   :  { %683 = vmatprep.subr.bf16.mxu0 %v2147_v0  ;;  %2014 = vmatprep.subr.bf16.mxu1 %v2147_v0 }
  0x32   :  { %684 = vmatpush1.bf16.msra.mxu0 %v2047_v15  ;;  %2030 = vmatpush1.bf16.msra.mxu1 %v2047_v15  ;;  %v2145_v15 = vld [vmem:[%s2606_s0 + $0xf0] ss:$8 sps:$4 sm:$0xff]  }
  0x33   :  { %685 = vmatprep.subr.bf16.mxu0 %v2147_v0  ;;  %2015 = vmatprep.subr.bf16.mxu1 %v2147_v0 }
  0x36   :  { %686 = vmatpush1.bf16.msra.mxu0 %v2048_v16  ;;  %2031 = vmatpush1.bf16.msra.mxu1 %v2048_v16  ;;  %v2146_v16 = vld [vmem:[%s2606_s0 + $0x1f0] ss:$8 sps:$4 sm:$0xff]  }
  0x37   :  { %687 = vmatprep.subr.bf16.mxu0 %v2147_v0  ;;  %2016 = vmatprep.subr.bf16.mxu1 %v2147_v0 }
  0x3a   :  { %688 = vmatpush1.bf16.msra.mxu0 %v2049_v17  ;;  %2032 = vmatpush1.bf16.msra.mxu1 %v2049_v17  ;;  %v2443_v17 = vld [vmem:[%s2607_s2] ss:$0 sm:$0xff] }
  0x3b   :  { %689 = vmatprep.subr.bf16.mxu0 %v2147_v0  ;;  %2017 = vmatprep.subr.bf16.mxu1 %v2147_v0  ;;  %v2122_v0 = vld [vmem:[%s2606_s0 + $0x1b0] ss:$8 sps:$4 sm:$0xff]  }
  0x3e   :  { %690 = vmatpush1.bf16.msra.mxu0 %v2050_v18  ;;  %2033 = vmatpush1.bf16.msra.mxu1 %v2050_v18 }
  0x41   :  { %692 = vmatmul.mubr.bf16.vlgmr.msra.gmra.mrb[0].mxu0 %v2051_v19  ;;  %820 = vmatmul.mubr.bf16.vlgmr.msra.gmra.mrb[0].mxu1 %v2054_v20 }
  0x42   :  { %699 = vmatprep.mubr.bf16.mxu0 %v2057_v21  ;;  %827 = vmatprep.mubr.bf16.mxu1 %v2059_v22 }
  0x49   :  { %700 = vmatmul.mubr.bf16.gmra.mrb[4].mxu0 %v2061_v23  ;;  %828 = vmatmul.mubr.bf16.gmra.mrb[4].mxu1 %v2062_v24 }
  0x4a   :  { %707 = vmatprep.mubr.bf16.mxu0 %v2063_v25  ;;  %835 = vmatprep.mubr.bf16.mxu1 %v2065_v26 }
  0x51   :  { %708 = vmatmul.mubr.bf16.gmra.mrb[8].mxu0 %v2067_v27  ;;  %836 = vmatmul.mubr.bf16.gmra.mrb[8].mxu1 %v2068_v28 }
  0x52   :  { %715 = vmatprep.mubr.bf16.mxu0 %v2069_v29  ;;  %843 = vmatprep.mubr.bf16.mxu1 %v2071_v30 }
  0x59   :  { %716 = vmatmul.mubr.bf16.gmra.mrb[12].mxu0 %v2073_v31  ;;  %844 = vmatmul.mubr.bf16.gmra.mrb[12].mxu1 %v2074_v32 }
  0x5a   :  { %723 = vmatprep.mubr.bf16.mxu0 %v2075_v33  ;;  %851 = vmatprep.mubr.bf16.mxu1 %v2077_v34 }
  0x61   :  { %724 = vmatmul.mubr.bf16.gmra.mrb[16].mxu0 %v2079_v35  ;;  %852 = vmatmul.mubr.bf16.gmra.mrb[16].mxu1 %v2080_v36 }
  0x62   :  { %731 = vmatprep.mubr.bf16.mxu0 %v2081_v37  ;;  %859 = vmatprep.mubr.bf16.mxu1 %v2083_v38 }
  0x69   :  { %732 = vmatmul.mubr.bf16.gmra.mrb[20].mxu0 %v2085_v39  ;;  %860 = vmatmul.mubr.bf16.gmra.mrb[20].mxu1 %v2086_v40 }
  0x6a   :  { %739 = vmatprep.mubr.bf16.mxu0 %v2087_v41  ;;  %867 = vmatprep.mubr.bf16.mxu1 %v2089_v42 }
  0x71   :  { %740 = vmatmul.mubr.bf16.gmra.mrb[24].mxu0 %v2091_v43  ;;  %868 = vmatmul.mubr.bf16.gmra.mrb[24].mxu1 %v2092_v44 }
  0x72   :  { %747 = vmatprep.mubr.bf16.mxu0 %v2093_v45  ;;  %875 = vmatprep.mubr.bf16.mxu1 %v2095_v46 }
  0x79   :  { %748 = vmatmul.mubr.bf16.gmra.mrb[28].mxu0 %v2097_v47  ;;  %876 = vmatmul.mubr.bf16.gmra.mrb[28].mxu1 %v2098_v48 }
  0x7a   :  { %755 = vmatprep.mubr.bf16.mxu0 %v2099_v49  ;;  %883 = vmatprep.mubr.bf16.mxu1 %v2101_v50 }
  0x81   :  { %756 = vmatmul.mubr.bf16.gmra.mrb[32].mxu0 %v2103_v51  ;;  %884 = vmatmul.mubr.bf16.gmra.mrb[32].mxu1 %v2104_v52 }
  0x82   :  { %763 = vmatprep.mubr.bf16.mxu0 %v2105_v53  ;;  %891 = vmatprep.mubr.bf16.mxu1 %v2107_v54 }
  0x89   :  { %764 = vmatmul.mubr.bf16.gmra.mrb[36].mxu0 %v2109_v55  ;;  %892 = vmatmul.mubr.bf16.gmra.mrb[36].mxu1 %v2110_v56 }
  0x8a   :  { %771 = vmatprep.mubr.bf16.mxu0 %v2111_v57  ;;  %899 = vmatprep.mubr.bf16.mxu1 %v2113_v58 }
  0x91   :  { %772 = vmatmul.mubr.bf16.gmra.mrb[40].mxu0 %v2115_v59  ;;  %900 = vmatmul.mubr.bf16.gmra.mrb[40].mxu1 %v2116_v60 }
  0x92   :  { %779 = vmatprep.mubr.bf16.mxu0 %v2117_v61  ;;  %907 = vmatprep.mubr.bf16.mxu1 %v2119_v62 }
  0x99   :  { %780 = vmatmul.mubr.bf16.gmra.mrb[44].mxu0 %v2121_v63  ;;  %908 = vmatmul.mubr.bf16.gmra.mrb[44].mxu1 %v2122_v0 }
  0x9a   :  { %787 = vmatprep.mubr.bf16.mxu0 %v2123_v1  ;;  %915 = vmatprep.mubr.bf16.mxu1 %v2125_v2 }
  0xa1   :  { %788 = vmatmul.mubr.bf16.gmra.mrb[48].mxu0 %v2127_v3  ;;  %916 = vmatmul.mubr.bf16.gmra.mrb[48].mxu1 %v2128_v4 }
  0xa2   :  { %795 = vmatprep.mubr.bf16.mxu0 %v2129_v5  ;;  %923 = vmatprep.mubr.bf16.mxu1 %v2131_v6 }
  0xa9   :  { %796 = vmatmul.mubr.bf16.gmra.mrb[52].mxu0 %v2133_v7  ;;  %924 = vmatmul.mubr.bf16.gmra.mrb[52].mxu1 %v2134_v8 }
  0xaa   :  { %803 = vmatprep.mubr.bf16.mxu0 %v2135_v9  ;;  %931 = vmatprep.mubr.bf16.mxu1 %v2137_v10 }
  0xb1   :  { %804 = vmatmul.mubr.bf16.gmra.mrb[56].mxu0 %v2139_v11  ;;  %932 = vmatmul.mubr.bf16.gmra.mrb[56].mxu1 %v2140_v12 }
  0xb2   :  { %811 = vmatprep.mubr.bf16.mxu0 %v2141_v13  ;;  %939 = vmatprep.mubr.bf16.mxu1 %v2143_v14 }
  0xb9   :  { %812 = vmatmul.mubr.bf16.gmra.mrb[60].mxu0 %v2145_v15  ;;  %940 = vmatmul.mubr.bf16.gmra.mrb[60].mxu1 %v2146_v16 }
 0x114   :  { %v693_v18 = vpop.f32.mrb[0].mxu0  ;;  %v821_v19 = vpop.f32.mrb[0].mxu1 }
 0x115   :  { %v1150_v20 = vadd.f32 %v2443_v17, %v693_v18  ;;  %v1182_v21 = vadd.f32 %v2443_v17, %v821_v19  ;;  %v695_v22 = vpop.f32.mrb[1].mxu0  ;;  %v823_v23 = vpop.f32.mrb[1].mxu1 }
 0x116   :  { %v696_v24 = vpop.f32.mrb[2].mxu0  ;;  %v824_v25 = vpop.f32.mrb[2].mxu1 }
 0x117   :  { %v1151_v26 = vadd.f32 %v2443_v17, %v696_v24  ;;  %v1183_v27 = vadd.f32 %v2443_v17, %v824_v25  ;;  %v698_v28 = vpop.f32.mrb[3].mxu0  ;;  %v826_v29 = vpop.f32.mrb[3].mxu1  ;;  %v1214_v30 = vmax.f32 %v1150_v20, 0.0  ;;  %v1246_v31 = vmax.f32 %v1182_v21, 0.0 }
 0x119   :  { %v1215_v32 = vmax.f32 %v1151_v26, 0.0  ;;  %v1247_v33 = vmax.f32 %v1183_v27, 0.0 }
 0x11b   :  { %v1814_v34 = vpack.c.bf16 %v1215_v32, %v1214_v30  ;;  %v1894_v35 = vpack.c.bf16 %v1247_v33, %v1246_v31 }
 0x11c   :  { %v701_v36 = vpop.f32.mrb[4].mxu0  ;;  %v829_v37 = vpop.f32.mrb[4].mxu1 }
 0x11d   :  { %1815 = vst [vmem:[%s2608_s3] sm:$0xff] %v1814_v34   ;;  %1986 = vst [vmem:[%s2608_s3 + $0x80] sm:$0xff] %v1894_v35   ;;  %v1152_v38 = vadd.f32 %v2443_v17, %v701_v36  ;;  %v1184_v39 = vadd.f32 %v2443_v17, %v829_v37  ;;  %v703_v40 = vpop.f32.mrb[5].mxu0  ;;  %v831_v41 = vpop.f32.mrb[5].mxu1 }
 0x11e   :  { %v704_v42 = vpop.f32.mrb[6].mxu0  ;;  %v832_v43 = vpop.f32.mrb[6].mxu1 }
 0x11f   :  { %v1153_v44 = vadd.f32 %v2443_v17, %v704_v42  ;;  %v1185_v45 = vadd.f32 %v2443_v17, %v832_v43  ;;  %v706_v46 = vpop.f32.mrb[7].mxu0  ;;  %v834_v47 = vpop.f32.mrb[7].mxu1  ;;  %v1216_v48 = vmax.f32 %v1152_v38, 0.0  ;;  %v1248_v49 = vmax.f32 %v1184_v39, 0.0 }
 0x121   :  { %v1217_v50 = vmax.f32 %v1153_v44, 0.0  ;;  %v1249_v51 = vmax.f32 %v1185_v45, 0.0 }
 0x123   :  { %v1819_v52 = vpack.c.bf16 %v1217_v50, %v1216_v48  ;;  %v1899_v53 = vpack.c.bf16 %v1249_v51, %v1248_v49 }
 0x124   :  { %v709_v54 = vpop.f32.mrb[8].mxu0  ;;  %v837_v55 = vpop.f32.mrb[8].mxu1 }
 0x125   :  { %1971 = vst [vmem:[%s2608_s3 + $0x8] sm:$0xff] %v1819_v52   ;;  %1987 = vst [vmem:[%s2608_s3 + $0x88] sm:$0xff] %v1899_v53   ;;  %v1154_v56 = vadd.f32 %v2443_v17, %v709_v54  ;;  %v1186_v57 = vadd.f32 %v2443_v17, %v837_v55  ;;  %v711_v58 = vpop.f32.mrb[9].mxu0  ;;  %v839_v59 = vpop.f32.mrb[9].mxu1 }
 0x126   :  { %v712_v60 = vpop.f32.mrb[10].mxu0  ;;  %v840_v61 = vpop.f32.mrb[10].mxu1 }
 0x127   :  { %v1155_v62 = vadd.f32 %v2443_v17, %v712_v60  ;;  %v1187_v63 = vadd.f32 %v2443_v17, %v840_v61  ;;  %v714_v0 = vpop.f32.mrb[11].mxu0  ;;  %v842_v1 = vpop.f32.mrb[11].mxu1  ;;  %v1218_v2 = vmax.f32 %v1154_v56, 0.0  ;;  %v1250_v3 = vmax.f32 %v1186_v57, 0.0 }
 0x129   :  { %v1219_v4 = vmax.f32 %v1155_v62, 0.0  ;;  %v1251_v5 = vmax.f32 %v1187_v63, 0.0 }
 0x12b   :  { %v1824_v6 = vpack.c.bf16 %v1219_v4, %v1218_v2  ;;  %v1904_v7 = vpack.c.bf16 %v1251_v5, %v1250_v3 }
 0x12c   :  { %v717_v8 = vpop.f32.mrb[12].mxu0  ;;  %v845_v9 = vpop.f32.mrb[12].mxu1 }
 0x12d   :  { %1972 = vst [vmem:[%s2608_s3 + $0x10] sm:$0xff] %v1824_v6   ;;  %1988 = vst [vmem:[%s2608_s3 + $0x90] sm:$0xff] %v1904_v7   ;;  %v1156_v10 = vadd.f32 %v2443_v17, %v717_v8  ;;  %v1188_v11 = vadd.f32 %v2443_v17, %v845_v9  ;;  %v719_v12 = vpop.f32.mrb[13].mxu0  ;;  %v847_v13 = vpop.f32.mrb[13].mxu1 }
 0x12e   :  { %v720_v14 = vpop.f32.mrb[14].mxu0  ;;  %v848_v15 = vpop.f32.mrb[14].mxu1 }
 0x12f   :  { %v1157_v16 = vadd.f32 %v2443_v17, %v720_v14  ;;  %v1189_v18 = vadd.f32 %v2443_v17, %v848_v15  ;;  %v722_v19 = vpop.f32.mrb[15].mxu0  ;;  %v850_v20 = vpop.f32.mrb[15].mxu1  ;;  %v1220_v21 = vmax.f32 %v1156_v10, 0.0  ;;  %v1252_v22 = vmax.f32 %v1188_v11, 0.0 }
 0x131   :  { %v1221_v23 = vmax.f32 %v1157_v16, 0.0  ;;  %v1253_v24 = vmax.f32 %v1189_v18, 0.0 }
 0x133   :  { %v1829_v25 = vpack.c.bf16 %v1221_v23, %v1220_v21  ;;  %v1909_v26 = vpack.c.bf16 %v1253_v24, %v1252_v22 }
 0x134   :  { %v725_v27 = vpop.f32.mrb[16].mxu0  ;;  %v853_v28 = vpop.f32.mrb[16].mxu1 }
 0x135   :  { %1973 = vst [vmem:[%s2608_s3 + $0x18] sm:$0xff] %v1829_v25   ;;  %1989 = vst [vmem:[%s2608_s3 + $0x98] sm:$0xff] %v1909_v26   ;;  %v1158_v29 = vadd.f32 %v2443_v17, %v725_v27  ;;  %v1190_v30 = vadd.f32 %v2443_v17, %v853_v28  ;;  %v727_v31 = vpop.f32.mrb[17].mxu0  ;;  %v855_v32 = vpop.f32.mrb[17].mxu1 }
 0x136   :  { %v728_v33 = vpop.f32.mrb[18].mxu0  ;;  %v856_v34 = vpop.f32.mrb[18].mxu1 }
 0x137   :  { %v1159_v35 = vadd.f32 %v2443_v17, %v728_v33  ;;  %v1191_v36 = vadd.f32 %v2443_v17, %v856_v34  ;;  %v730_v37 = vpop.f32.mrb[19].mxu0  ;;  %v858_v38 = vpop.f32.mrb[19].mxu1  ;;  %v1222_v39 = vmax.f32 %v1158_v29, 0.0  ;;  %v1254_v40 = vmax.f32 %v1190_v30, 0.0 }
 0x139   :  { %v1223_v41 = vmax.f32 %v1159_v35, 0.0  ;;  %v1255_v42 = vmax.f32 %v1191_v36, 0.0 }
 0x13b   :  { %v1834_v43 = vpack.c.bf16 %v1223_v41, %v1222_v39  ;;  %v1914_v44 = vpack.c.bf16 %v1255_v42, %v1254_v40 }
 0x13c   :  { %v733_v45 = vpop.f32.mrb[20].mxu0  ;;  %v861_v46 = vpop.f32.mrb[20].mxu1 }
 0x13d   :  { %1974 = vst [vmem:[%s2608_s3 + $0x20] sm:$0xff] %v1834_v43   ;;  %1990 = vst [vmem:[%s2608_s3 + $0xa0] sm:$0xff] %v1914_v44   ;;  %v1160_v47 = vadd.f32 %v2443_v17, %v733_v45  ;;  %v1192_v48 = vadd.f32 %v2443_v17, %v861_v46  ;;  %v735_v49 = vpop.f32.mrb[21].mxu0  ;;  %v863_v50 = vpop.f32.mrb[21].mxu1 }
 0x13e   :  { %v736_v51 = vpop.f32.mrb[22].mxu0  ;;  %v864_v52 = vpop.f32.mrb[22].mxu1 }
 0x13f   :  { %v1161_v53 = vadd.f32 %v2443_v17, %v736_v51  ;;  %v1193_v54 = vadd.f32 %v2443_v17, %v864_v52  ;;  %v738_v55 = vpop.f32.mrb[23].mxu0  ;;  %v866_v56 = vpop.f32.mrb[23].mxu1  ;;  %v1224_v57 = vmax.f32 %v1160_v47, 0.0  ;;  %v1256_v58 = vmax.f32 %v1192_v48, 0.0 }
 0x141   :  { %v1225_v59 = vmax.f32 %v1161_v53, 0.0  ;;  %v1257_v60 = vmax.f32 %v1193_v54, 0.0 }
 0x143   :  { %v1839_v61 = vpack.c.bf16 %v1225_v59, %v1224_v57  ;;  %v1919_v62 = vpack.c.bf16 %v1257_v60, %v1256_v58 }
 0x144   :  { %v741_v63 = vpop.f32.mrb[24].mxu0  ;;  %v869_v0 = vpop.f32.mrb[24].mxu1 }
 0x145   :  { %1975 = vst [vmem:[%s2608_s3 + $0x28] sm:$0xff] %v1839_v61   ;;  %1991 = vst [vmem:[%s2608_s3 + $0xa8] sm:$0xff] %v1919_v62   ;;  %v1162_v1 = vadd.f32 %v2443_v17, %v741_v63  ;;  %v1194_v2 = vadd.f32 %v2443_v17, %v869_v0  ;;  %v743_v3 = vpop.f32.mrb[25].mxu0  ;;  %v871_v4 = vpop.f32.mrb[25].mxu1 }
 0x146   :  { %v744_v5 = vpop.f32.mrb[26].mxu0  ;;  %v872_v6 = vpop.f32.mrb[26].mxu1 }
 0x147   :  { %v1163_v7 = vadd.f32 %v2443_v17, %v744_v5  ;;  %v1195_v8 = vadd.f32 %v2443_v17, %v872_v6  ;;  %v746_v9 = vpop.f32.mrb[27].mxu0  ;;  %v874_v10 = vpop.f32.mrb[27].mxu1  ;;  %v1226_v11 = vmax.f32 %v1162_v1, 0.0  ;;  %v1258_v12 = vmax.f32 %v1194_v2, 0.0 }
 0x149   :  { %v1227_v13 = vmax.f32 %v1163_v7, 0.0  ;;  %v1259_v14 = vmax.f32 %v1195_v8, 0.0 }
 0x14b   :  { %v1844_v15 = vpack.c.bf16 %v1227_v13, %v1226_v11  ;;  %v1924_v16 = vpack.c.bf16 %v1259_v14, %v1258_v12 }
 0x14c   :  { %v749_v18 = vpop.f32.mrb[28].mxu0  ;;  %v877_v19 = vpop.f32.mrb[28].mxu1 }
 0x14d   :  { %1976 = vst [vmem:[%s2608_s3 + $0x30] sm:$0xff] %v1844_v15   ;;  %1992 = vst [vmem:[%s2608_s3 + $0xb0] sm:$0xff] %v1924_v16   ;;  %v1164_v20 = vadd.f32 %v2443_v17, %v749_v18  ;;  %v1196_v21 = vadd.f32 %v2443_v17, %v877_v19  ;;  %v751_v22 = vpop.f32.mrb[29].mxu0  ;;  %v879_v23 = vpop.f32.mrb[29].mxu1 }
 0x14e   :  { %v752_v24 = vpop.f32.mrb[30].mxu0  ;;  %v880_v25 = vpop.f32.mrb[30].mxu1 }
 0x14f   :  { %v1165_v26 = vadd.f32 %v2443_v17, %v752_v24  ;;  %v1197_v27 = vadd.f32 %v2443_v17, %v880_v25  ;;  %v754_v28 = vpop.f32.mrb[31].mxu0  ;;  %v882_v29 = vpop.f32.mrb[31].mxu1  ;;  %v1228_v30 = vmax.f32 %v1164_v20, 0.0  ;;  %v1260_v31 = vmax.f32 %v1196_v21, 0.0 }
 0x151   :  { %v1229_v32 = vmax.f32 %v1165_v26, 0.0  ;;  %v1261_v33 = vmax.f32 %v1197_v27, 0.0 }
 0x153   :  { %v1849_v34 = vpack.c.bf16 %v1229_v32, %v1228_v30  ;;  %v1929_v35 = vpack.c.bf16 %v1261_v33, %v1260_v31 }
 0x154   :  { %v757_v36 = vpop.f32.mrb[32].mxu0  ;;  %v885_v37 = vpop.f32.mrb[32].mxu1 }
 0x155   :  { %1977 = vst [vmem:[%s2608_s3 + $0x38] sm:$0xff] %v1849_v34   ;;  %1993 = vst [vmem:[%s2608_s3 + $0xb8] sm:$0xff] %v1929_v35   ;;  %v1166_v38 = vadd.f32 %v2443_v17, %v757_v36  ;;  %v1198_v39 = vadd.f32 %v2443_v17, %v885_v37  ;;  %v759_v40 = vpop.f32.mrb[33].mxu0  ;;  %v887_v41 = vpop.f32.mrb[33].mxu1 }
 0x156   :  { %v760_v42 = vpop.f32.mrb[34].mxu0  ;;  %v888_v43 = vpop.f32.mrb[34].mxu1 }
 0x157   :  { %v1167_v44 = vadd.f32 %v2443_v17, %v760_v42  ;;  %v1199_v45 = vadd.f32 %v2443_v17, %v888_v43  ;;  %v762_v46 = vpop.f32.mrb[35].mxu0  ;;  %v890_v47 = vpop.f32.mrb[35].mxu1  ;;  %v1230_v48 = vmax.f32 %v1166_v38, 0.0  ;;  %v1262_v49 = vmax.f32 %v1198_v39, 0.0 }
 0x159   :  { %v1231_v50 = vmax.f32 %v1167_v44, 0.0  ;;  %v1263_v51 = vmax.f32 %v1199_v45, 0.0 }
 0x15b   :  { %v1854_v52 = vpack.c.bf16 %v1231_v50, %v1230_v48  ;;  %v1934_v53 = vpack.c.bf16 %v1263_v51, %v1262_v49 }
 0x15c   :  { %v765_v54 = vpop.f32.mrb[36].mxu0  ;;  %v893_v55 = vpop.f32.mrb[36].mxu1 }
 0x15d   :  { %1978 = vst [vmem:[%s2608_s3 + $0x40] sm:$0xff] %v1854_v52   ;;  %1994 = vst [vmem:[%s2608_s3 + $0xc0] sm:$0xff] %v1934_v53   ;;  %v1168_v56 = vadd.f32 %v2443_v17, %v765_v54  ;;  %v1200_v57 = vadd.f32 %v2443_v17, %v893_v55  ;;  %v767_v58 = vpop.f32.mrb[37].mxu0  ;;  %v895_v59 = vpop.f32.mrb[37].mxu1 }
 0x15e   :  { %v768_v60 = vpop.f32.mrb[38].mxu0  ;;  %v896_v61 = vpop.f32.mrb[38].mxu1 }
 0x15f   :  { %v1169_v62 = vadd.f32 %v2443_v17, %v768_v60  ;;  %v1201_v63 = vadd.f32 %v2443_v17, %v896_v61  ;;  %v770_v0 = vpop.f32.mrb[39].mxu0  ;;  %v898_v1 = vpop.f32.mrb[39].mxu1  ;;  %v1232_v2 = vmax.f32 %v1168_v56, 0.0  ;;  %v1264_v3 = vmax.f32 %v1200_v57, 0.0 }
 0x161   :  { %v1233_v4 = vmax.f32 %v1169_v62, 0.0  ;;  %v1265_v5 = vmax.f32 %v1201_v63, 0.0 }
 0x163   :  { %v1859_v6 = vpack.c.bf16 %v1233_v4, %v1232_v2  ;;  %v1939_v7 = vpack.c.bf16 %v1265_v5, %v1264_v3 }
 0x164   :  { %v773_v8 = vpop.f32.mrb[40].mxu0  ;;  %v901_v9 = vpop.f32.mrb[40].mxu1 }
 0x165   :  { %1979 = vst [vmem:[%s2608_s3 + $0x48] sm:$0xff] %v1859_v6   ;;  %1995 = vst [vmem:[%s2608_s3 + $0xc8] sm:$0xff] %v1939_v7   ;;  %v1170_v10 = vadd.f32 %v2443_v17, %v773_v8  ;;  %v1202_v11 = vadd.f32 %v2443_v17, %v901_v9  ;;  %v775_v12 = vpop.f32.mrb[41].mxu0  ;;  %v903_v13 = vpop.f32.mrb[41].mxu1 }
 0x166   :  { %v776_v14 = vpop.f32.mrb[42].mxu0  ;;  %v904_v15 = vpop.f32.mrb[42].mxu1 }
 0x167   :  { %v1171_v16 = vadd.f32 %v2443_v17, %v776_v14  ;;  %v1203_v18 = vadd.f32 %v2443_v17, %v904_v15  ;;  %v778_v19 = vpop.f32.mrb[43].mxu0  ;;  %v906_v20 = vpop.f32.mrb[43].mxu1  ;;  %v1234_v21 = vmax.f32 %v1170_v10, 0.0  ;;  %v1266_v22 = vmax.f32 %v1202_v11, 0.0 }
 0x169   :  { %v1235_v23 = vmax.f32 %v1171_v16, 0.0  ;;  %v1267_v24 = vmax.f32 %v1203_v18, 0.0 }
 0x16b   :  { %v1864_v25 = vpack.c.bf16 %v1235_v23, %v1234_v21  ;;  %v1944_v26 = vpack.c.bf16 %v1267_v24, %v1266_v22 }
 0x16c   :  { %v781_v27 = vpop.f32.mrb[44].mxu0  ;;  %v909_v28 = vpop.f32.mrb[44].mxu1 }
 0x16d   :  { %1980 = vst [vmem:[%s2608_s3 + $0x50] sm:$0xff] %v1864_v25   ;;  %1996 = vst [vmem:[%s2608_s3 + $0xd0] sm:$0xff] %v1944_v26   ;;  %v1172_v29 = vadd.f32 %v2443_v17, %v781_v27  ;;  %v1204_v30 = vadd.f32 %v2443_v17, %v909_v28  ;;  %v783_v31 = vpop.f32.mrb[45].mxu0  ;;  %v911_v32 = vpop.f32.mrb[45].mxu1 }
 0x16e   :  { %v784_v33 = vpop.f32.mrb[46].mxu0  ;;  %v912_v34 = vpop.f32.mrb[46].mxu1 }
 0x16f   :  { %v1173_v35 = vadd.f32 %v2443_v17, %v784_v33  ;;  %v1205_v36 = vadd.f32 %v2443_v17, %v912_v34  ;;  %v786_v37 = vpop.f32.mrb[47].mxu0  ;;  %v914_v38 = vpop.f32.mrb[47].mxu1  ;;  %v1236_v39 = vmax.f32 %v1172_v29, 0.0  ;;  %v1268_v40 = vmax.f32 %v1204_v30, 0.0 }
 0x171   :  { %v1237_v41 = vmax.f32 %v1173_v35, 0.0  ;;  %v1269_v42 = vmax.f32 %v1205_v36, 0.0 }
 0x173   :  { %v1869_v43 = vpack.c.bf16 %v1237_v41, %v1236_v39  ;;  %v1949_v44 = vpack.c.bf16 %v1269_v42, %v1268_v40 }
 0x174   :  { %v789_v45 = vpop.f32.mrb[48].mxu0  ;;  %v917_v46 = vpop.f32.mrb[48].mxu1 }
 0x175   :  { %1981 = vst [vmem:[%s2608_s3 + $0x58] sm:$0xff] %v1869_v43   ;;  %1997 = vst [vmem:[%s2608_s3 + $0xd8] sm:$0xff] %v1949_v44   ;;  %v1174_v47 = vadd.f32 %v2443_v17, %v789_v45  ;;  %v1206_v48 = vadd.f32 %v2443_v17, %v917_v46  ;;  %v791_v49 = vpop.f32.mrb[49].mxu0  ;;  %v919_v50 = vpop.f32.mrb[49].mxu1 }
 0x176   :  { %v792_v51 = vpop.f32.mrb[50].mxu0  ;;  %v920_v52 = vpop.f32.mrb[50].mxu1 }
 0x177   :  { %v1175_v53 = vadd.f32 %v2443_v17, %v792_v51  ;;  %v1207_v54 = vadd.f32 %v2443_v17, %v920_v52  ;;  %v794_v55 = vpop.f32.mrb[51].mxu0  ;;  %v922_v56 = vpop.f32.mrb[51].mxu1  ;;  %v1238_v57 = vmax.f32 %v1174_v47, 0.0  ;;  %v1270_v58 = vmax.f32 %v1206_v48, 0.0 }
 0x179   :  { %v1239_v59 = vmax.f32 %v1175_v53, 0.0  ;;  %v1271_v60 = vmax.f32 %v1207_v54, 0.0 }
 0x17b   :  { %v1874_v61 = vpack.c.bf16 %v1239_v59, %v1238_v57  ;;  %v1954_v62 = vpack.c.bf16 %v1271_v60, %v1270_v58 }
 0x17c   :  { %v797_v63 = vpop.f32.mrb[52].mxu0  ;;  %v925_v0 = vpop.f32.mrb[52].mxu1 }
 0x17d   :  { %1982 = vst [vmem:[%s2608_s3 + $0x60] sm:$0xff] %v1874_v61   ;;  %1998 = vst [vmem:[%s2608_s3 + $0xe0] sm:$0xff] %v1954_v62   ;;  %v1176_v1 = vadd.f32 %v2443_v17, %v797_v63  ;;  %v1208_v2 = vadd.f32 %v2443_v17, %v925_v0  ;;  %v799_v3 = vpop.f32.mrb[53].mxu0  ;;  %v927_v4 = vpop.f32.mrb[53].mxu1 }
 0x17e   :  { %v800_v5 = vpop.f32.mrb[54].mxu0  ;;  %v928_v6 = vpop.f32.mrb[54].mxu1 }
 0x17f   :  { %v1177_v7 = vadd.f32 %v2443_v17, %v800_v5  ;;  %v1209_v8 = vadd.f32 %v2443_v17, %v928_v6  ;;  %v802_v9 = vpop.f32.mrb[55].mxu0  ;;  %v930_v10 = vpop.f32.mrb[55].mxu1  ;;  %v1240_v11 = vmax.f32 %v1176_v1, 0.0  ;;  %v1272_v12 = vmax.f32 %v1208_v2, 0.0 }
 0x181   :  { %v1241_v13 = vmax.f32 %v1177_v7, 0.0  ;;  %v1273_v14 = vmax.f32 %v1209_v8, 0.0 }
 0x183   :  { %v1879_v15 = vpack.c.bf16 %v1241_v13, %v1240_v11  ;;  %v1959_v16 = vpack.c.bf16 %v1273_v14, %v1272_v12 }
 0x184   :  { %v805_v18 = vpop.f32.mrb[56].mxu0  ;;  %v933_v19 = vpop.f32.mrb[56].mxu1 }
 0x185   :  { %1983 = vst [vmem:[%s2608_s3 + $0x68] sm:$0xff] %v1879_v15   ;;  %1999 = vst [vmem:[%s2608_s3 + $0xe8] sm:$0xff] %v1959_v16   ;;  %v1178_v20 = vadd.f32 %v2443_v17, %v805_v18  ;;  %v1210_v21 = vadd.f32 %v2443_v17, %v933_v19  ;;  %v807_v22 = vpop.f32.mrb[57].mxu0  ;;  %v935_v23 = vpop.f32.mrb[57].mxu1 }
 0x186   :  { %v808_v24 = vpop.f32.mrb[58].mxu0  ;;  %v936_v25 = vpop.f32.mrb[58].mxu1 }
 0x187   :  { %v1179_v26 = vadd.f32 %v2443_v17, %v808_v24  ;;  %v1211_v27 = vadd.f32 %v2443_v17, %v936_v25  ;;  %v810_v28 = vpop.f32.mrb[59].mxu0  ;;  %v938_v29 = vpop.f32.mrb[59].mxu1  ;;  %v1242_v30 = vmax.f32 %v1178_v20, 0.0  ;;  %v1274_v31 = vmax.f32 %v1210_v21, 0.0 }
 0x189   :  { %v1243_v32 = vmax.f32 %v1179_v26, 0.0  ;;  %v1275_v33 = vmax.f32 %v1211_v27, 0.0 }
 0x18b   :  { %v1884_v34 = vpack.c.bf16 %v1243_v32, %v1242_v30  ;;  %v1964_v35 = vpack.c.bf16 %v1275_v33, %v1274_v31 }
 0x18c   :  { %v813_v36 = vpop.f32.mrb[60].mxu0  ;;  %v941_v37 = vpop.f32.mrb[60].mxu1 }
 0x18d   :  { %1984 = vst [vmem:[%s2608_s3 + $0x70] sm:$0xff] %v1884_v34   ;;  %2000 = vst [vmem:[%s2608_s3 + $0xf0] sm:$0xff] %v1964_v35   ;;  %v1180_v38 = vadd.f32 %v2443_v17, %v813_v36  ;;  %v1212_v39 = vadd.f32 %v2443_v17, %v941_v37  ;;  %v815_v40 = vpop.f32.mrb[61].mxu0  ;;  %v943_v41 = vpop.f32.mrb[61].mxu1 }
 0x18e   :  { %v816_v42 = vpop.f32.mrb[62].mxu0  ;;  %v944_v43 = vpop.f32.mrb[62].mxu1 }
 0x18f   :  { %v1181_v44 = vadd.f32 %v2443_v17, %v816_v42  ;;  %v1213_v45 = vadd.f32 %v2443_v17, %v944_v43  ;;  %v818_v46 = vpop.f32.mrb[63].mxu0  ;;  %v946_v47 = vpop.f32.mrb[63].mxu1  ;;  %v1244_v48 = vmax.f32 %v1180_v38, 0.0  ;;  %v1276_v49 = vmax.f32 %v1212_v39, 0.0 }
 0x191   :  { %v1245_v50 = vmax.f32 %v1181_v44, 0.0  ;;  %v1277_v51 = vmax.f32 %v1213_v45, 0.0 }
 0x193   :  { %v1889_v52 = vpack.c.bf16 %v1245_v50, %v1244_v48  ;;  %v1969_v53 = vpack.c.bf16 %v1277_v51, %v1276_v49 }
 0x195   :  { %1985 = vst [vmem:[%s2608_s3 + $0x78] sm:$0xff] %v1889_v52   ;;  %2001 = vst [vmem:[%s2608_s3 + $0xf8] sm:$0xff] %v1969_v53  }

// kernel: resnet34_forward.41
= control target key start
LH: loop header
LB: loop body
LE: loop exit
PB: predicated region body
PF: predicated region fallthrough
CT: control target
= control target key end

     0   :  { %s1830_s15 = smov 0   ;;  %s1832_s16 = smov 0   ;;  %s2086_s0 = inlined_call_operand.vmem [shape: bf16[128,1152], index: 0, kind: input, shape index: {}]   ;;  %s2087_s1 = inlined_call_operand.vmem [shape: bf16[1152,128], index: 1, kind: input, shape index: {}]   ;;  %s2088_s2 = inlined_call_operand.vmem [shape: f32[1,128], index: 2, kind: input, shape index: {}]   ;;  %s2089_s3 = inlined_call_operand.vmem [shape: bf16[128,128], index: 3, kind: input, shape index: {}]   ;;  %s2090_s4 = inlined_call_operand.vmem [shape: bf16[128,128], index: 4, kind: output, shape index: {}]  }
   0x1   :  { %s1834_s17 = smov 0   ;;  %s1836_s18 = smov 0  }
   0x2   :  { %s1838_s19 = smov 0  }
   0x3 LB: > { %s26_s20 = sadd.s32 1, %s1798_s18  ;;  %p49_p1 = scmp.ne.s32.totalorder %s1790_s16, %s1786_s15  ;;  %s1802_s19 = sphi %s1838_s19, %s14_s19   ;;  %s1798_s18 = sphi %s1836_s18, %s2094_s18   ;;  %s1794_s17 = sphi %s1834_s17, %s2093_s17   ;;  %s1790_s16 = sphi %s1832_s16, %s2092_s16   ;;  %s1786_s15 = sphi %s1830_s15, %s2091_s15  }
   0x4   : > { %p27_p0 = scmp.ge.s32.totalorder %s26_s20, 3  ;;  %p50_p2 = scmp.eq.s32.totalorder %s1802_s19, 0 }
   0x5   : > { %s42_s22 = sadd.s32 1, %s1790_s16  ;;  %p1343_p5 = scmp.ge.s32.totalorder %s1802_s19, 3 }
   0x6   : > { %s2096_s20 = smov (%p27_p0, %s26_s20), 0  ;;  %p51_p3 = por %p50_p2, %p49_p1 }
   0x7   : > { %s38_s21 = ssub.s32 %s1798_s18, %s2096_s20  ;;  %203 = sbr.rel (%p1343_p5) target bundleno = 37 (0x25), region = 24 }
   0x8   : > { %p40_p4 = scmp.eq.s32.totalorder %s38_s21, 0 }
   0xa   : > { %s1865_s23 = scalar_select %p40_p4, %s1790_s16, %s42_s22  }
   0xe   : > { %206 = sbr.rel (!%p51_p3) target bundleno = 37 (0x25), region = 28  ;;  %s208_s24 = sand.u32 (%p51_p3), 1, %s1790_s16  }
   0xf   : > { %s1450_s25 = smul.u32 (%p51_p3), 12, %s1798_s18 }
  0x10   : > { %s1665_s26 = smul.u32 (%p51_p3), 192, %s208_s24 }
  0x11   : > { %s1873_s29 = scalar_lea.vmem (%p51_p3), %s2086_s0, %s1450_s25 }
  0x12   : > { %v231_v0 = vld [vmem:[%s1873_s29] sm:$0xff] (%p51_p3)  ;;  %v235_v2 = vld [vmem:[%s1873_s29 + $0x48] sm:$0xff] (%p51_p3)  ;;  %s1878_s30 = scalar_lea.vmem (%p51_p3), [#allocation3], %s1665_s26  ;;  %v239_v4 = vld [vmem:[%s1873_s29 + $0x90] sm:$0xff] (%p51_p3) }
  0x13   : > { %v233_v1 = vld [vmem:[%s1873_s29 + $0x24] sm:$0xff] (%p51_p3)  ;;  %232 = vst [vmem:[%s1878_s30] sm:$0xff] (%p51_p3), %v231_v0  ;;  %236 = vst [vmem:[%s1878_s30 + $0x18] sm:$0xff] (%p51_p3), %v235_v2  ;;  %v237_v3 = vld [vmem:[%s1873_s29 + $0x6c] sm:$0xff] (%p51_p3) }
  0x14   : > { %234 = vst [vmem:[%s1878_s30 + $0xc] sm:$0xff] (%p51_p3), %v233_v1  ;;  %v241_v5 = vld [vmem:[%s1873_s29 + $0xb4] sm:$0xff] (%p51_p3)  ;;  %238 = vst [vmem:[%s1878_s30 + $0x24] sm:$0xff] (%p51_p3), %v237_v3  ;;  %v245_v7 = vld [vmem:[%s1873_s29 + $0xfc] sm:$0xff] (%p51_p3) }
  0x15   : > { %240 = vst [vmem:[%s1878_s30 + $0x30] sm:$0xff] %v239_v4  ;;  %242 = vst [vmem:[%s1878_s30 + $0x3c] sm:$0xff] %v241_v5  ;;  %v243_v6 = vld [vmem:[%s1873_s29 + $0xd8] sm:$0xff]  ;;  %v247_v8 = vld [vmem:[%s1873_s29 + $0x120] sm:$0xff] }
  0x16   : > { %244 = vst [vmem:[%s1878_s30 + $0x48] sm:$0xff] %v243_v6  ;;  %246 = vst [vmem:[%s1878_s30 + $0x54] sm:$0xff] %v245_v7  ;;  %v249_v9 = vld [vmem:[%s1873_s29 + $0x144] sm:$0xff]  ;;  %v253_v11 = vld [vmem:[%s1873_s29 + $0x18c] sm:$0xff] }
  0x17   : > { %248 = vst [vmem:[%s1878_s30 + $0x60] sm:$0xff] %v247_v8  ;;  %v251_v10 = vld [vmem:[%s1873_s29 + $0x168] sm:$0xff]  ;;  %250 = vst [vmem:[%s1878_s30 + $0x6c] sm:$0xff] %v249_v9  ;;  %v255_v12 = vld [vmem:[%s1873_s29 + $0x1b0] sm:$0xff] }
  0x18   : > { %252 = vst [vmem:[%s1878_s30 + $0x78] sm:$0xff] %v251_v10  ;;  %254 = vst [vmem:[%s1878_s30 + $0x84] sm:$0xff] %v253_v11  ;;  %v257_v13 = vld [vmem:[%s1873_s29 + $0x1d4] sm:$0xff]  ;;  %v261_v15 = vld [vmem:[%s1873_s29 + $0x21c] sm:$0xff] }
  0x19   : > { %v259_v14 = vld [vmem:[%s1873_s29 + $0x1f8] sm:$0xff]  ;;  %256 = vst [vmem:[%s1878_s30 + $0x90] sm:$0xff] %v255_v12  ;;  %258 = vst [vmem:[%s1878_s30 + $0x9c] sm:$0xff] %v257_v13  ;;  %v1345_v16 = vld [vmem:[%s1873_s29 + $0x8] sm:$0xf] }
  0x1a   : > { %260 = vst [vmem:[%s1878_s30 + $0xa8] sm:$0xff] %v259_v14  ;;  %v1347_v17 = vld [vmem:[%s1873_s29 + $0x2c] sm:$0xf]  ;;  %262 = vst [vmem:[%s1878_s30 + $0xb4] sm:$0xff] %v261_v15  ;;  %v1349_v18 = vld [vmem:[%s1873_s29 + $0x50] sm:$0xf] }
  0x1b   : > { %1346 = vst [vmem:[%s1878_s30 + $0x8] sm:$0xf] %v1345_v16  ;;  %1348 = vst [vmem:[%s1878_s30 + $0x14] sm:$0xf] %v1347_v17  ;;  %v1351_v19 = vld [vmem:[%s1873_s29 + $0x74] sm:$0xf] }
  0x1c   : > { %v1353_v20 = vld [vmem:[%s1873_s29 + $0x98] sm:$0xf]  ;;  %1350 = vst [vmem:[%s1878_s30 + $0x20] sm:$0xf] %v1349_v18  ;;  %1352 = vst [vmem:[%s1878_s30 + $0x2c] sm:$0xf] %v1351_v19 }
  0x1d   : > { %1354 = vst [vmem:[%s1878_s30 + $0x38] sm:$0xf] %v1353_v20  ;;  %v1355_v21 = vld [vmem:[%s1873_s29 + $0xbc] sm:$0xf]  ;;  %v1357_v22 = vld [vmem:[%s1873_s29 + $0xe0] sm:$0xf] }
  0x1e   : > { %v1359_v23 = vld [vmem:[%s1873_s29 + $0x104] sm:$0xf]  ;;  %1356 = vst [vmem:[%s1878_s30 + $0x44] sm:$0xf] %v1355_v21  ;;  %1358 = vst [vmem:[%s1878_s30 + $0x50] sm:$0xf] %v1357_v22 }
  0x1f   : > { %1360 = vst [vmem:[%s1878_s30 + $0x5c] sm:$0xf] %v1359_v23  ;;  %v1361_v24 = vld [vmem:[%s1873_s29 + $0x128] sm:$0xf]  ;;  %v1363_v25 = vld [vmem:[%s1873_s29 + $0x14c] sm:$0xf] }
  0x20   : > { %v1365_v26 = vld [vmem:[%s1873_s29 + $0x170] sm:$0xf]  ;;  %1362 = vst [vmem:[%s1878_s30 + $0x68] sm:$0xf] %v1361_v24  ;;  %1364 = vst [vmem:[%s1878_s30 + $0x74] sm:$0xf] %v1363_v25 }
  0x21   : > { %1366 = vst [vmem:[%s1878_s30 + $0x80] sm:$0xf] %v1365_v26  ;;  %v1367_v27 = vld [vmem:[%s1873_s29 + $0x194] sm:$0xf]  ;;  %v1369_v28 = vld [vmem:[%s1873_s29 + $0x1b8] sm:$0xf] }
  0x22   : > { %v1371_v29 = vld [vmem:[%s1873_s29 + $0x1dc] sm:$0xf]  ;;  %1368 = vst [vmem:[%s1878_s30 + $0x8c] sm:$0xf] %v1367_v27  ;;  %1370 = vst [vmem:[%s1878_s30 + $0x98] sm:$0xf] %v1369_v28 }
  0x23   : > { %1372 = vst [vmem:[%s1878_s30 + $0xa4] sm:$0xf] %v1371_v29  ;;  %v1373_v30 = vld [vmem:[%s1873_s29 + $0x200] sm:$0xf]  ;;  %v1375_v31 = vld [vmem:[%s1873_s29 + $0x224] sm:$0xf] }
  0x24   : > { %1374 = vst [vmem:[%s1878_s30 + $0xb0] sm:$0xf] %v1373_v30  ;;  %1376 = vst [vmem:[%s1878_s30 + $0xbc] sm:$0xf] %v1375_v31 }
  0x25 PF: > { %p1377_p6 = scmp.ge.s32.totalorder %s1802_s19, 1  ;;  %p318_p7 = scmp.lt.s32.totalorder %s1802_s19, 4 }
  0x27   : > { %p319_p8 = pnand %p1377_p6, %p318_p7 }
  0x28   : > { %s325_s5 = sand.u32 (!%p319_p8), 1, %s1786_s15   ;;  %s374_s6 = smul.u32 (!%p319_p8), 48, %s1794_s17 }
  0x29   : > { %322 = sbr.rel (%p319_p8) target bundleno = 385 (0x181), region = 58  ;;  %p1379_p10 = scmp.ne.s32.totalorder (!%p319_p8), %s1794_s17, 0 }
  0x2a   : > { %s1666_s7 = smul.u32 (!%p319_p8), 192, %s325_s5  ;;  %p375_p9 = scmp.lt.s32.totalorder (!%p319_p8), %s374_s6, 143 }
  0x2c   : > { %s1950_s12 = scalar_lea.vmem (!%p319_p8), [#allocation3], %s1666_s7 }
  0x30   : > { %s2098_s6 = smov (!%p375_p9, %s374_s6), 143  ;;  %408 = sbr.rel (%p1379_p10) target bundleno = 58 (0x3a), region = 66 }
  0x31   : > { %s1378_s8 = sshll.u32 %s2098_s6, 2  ;;  %v1804_v32 = vmov (!%p1379_p10), 0.0  }
  0x32   : > { %s1948_s11 = scalar_lea.vmem %s2087_s1, %s1378_s8  ;;  %409 = vst [vmem:[#allocation2] sm:$0xff] (!%p1379_p10), %v1804_v32  ;;  %410 = vst [vmem:[#allocation2 + $0x8] sm:$0xff] (!%p1379_p10), %v1804_v32 }
  0x33   : > { %411 = vst [vmem:[#allocation2 + $0x10] sm:$0xff] (!%p1379_p10), %v1804_v32  ;;  %412 = vst [vmem:[#allocation2 + $0x18] sm:$0xff] (!%p1379_p10), %v1804_v32 }
  0x34   : > { %413 = vst [vmem:[#allocation2 + $0x20] sm:$0xff] (!%p1379_p10), %v1804_v32  ;;  %414 = vst [vmem:[#allocation2 + $0x28] sm:$0xff] (!%p1379_p10), %v1804_v32 }
  0x35   : > { %415 = vst [vmem:[#allocation2 + $0x30] sm:$0xff] (!%p1379_p10), %v1804_v32  ;;  %416 = vst [vmem:[#allocation2 + $0x38] sm:$0xff] (!%p1379_p10), %v1804_v32 }
  0x36   : > { %417 = vst [vmem:[#allocation2 + $0x40] sm:$0xff] (!%p1379_p10), %v1804_v32  ;;  %418 = vst [vmem:[#allocation2 + $0x48] sm:$0xff] (!%p1379_p10), %v1804_v32 }
  0x37   : > { %419 = vst [vmem:[#allocation2 + $0x50] sm:$0xff] %v1804_v32  ;;  %420 = vst [vmem:[#allocation2 + $0x58] sm:$0xff] %v1804_v32 }
  0x38   : > { %421 = vst [vmem:[#allocation2 + $0x60] sm:$0xff] %v1804_v32  ;;  %422 = vst [vmem:[#allocation2 + $0x68] sm:$0xff] %v1804_v32 }
  0x39   : > { %423 = vst [vmem:[#allocation2 + $0x70] sm:$0xff] %v1804_v32  ;;  %424 = vst [vmem:[#allocation2 + $0x78] sm:$0xff] %v1804_v32 }
  0x3a PF: > { %v1708_v33 = vld [vmem:[%s1948_s11 + $0x40] sm:$0xff]   ;;  %v1711_v36 = vld [vmem:[%s1948_s11 + $0x48] sm:$0xff]   ;;  %v1714_v39 = vld [vmem:[%s1948_s11 + $0x50] sm:$0xff]   ;;  %p1428_p11 = scmp.ne.s32.totalorder %s1794_s17, 2 }
  0x3b   : > { %v1709_v34 = vld [vmem:[%s1948_s11] sm:$0xff]   ;;  %1553 = vmatprep.subr.bf16.mxu0 %v1708_v33  ;;  %v1712_v37 = vld [vmem:[%s1948_s11 + $0x8] sm:$0xff]   ;;  %v1715_v40 = vld [vmem:[%s1948_s11 + $0x10] sm:$0xff]  }
  0x3c   : > { %v1710_v35 = vld [vmem:[%s1948_s11 + $0x80] sm:$0xff]   ;;  %1554 = vmatpush3.bf16.msra.mxu0 %v1709_v34  ;;  %v1713_v38 = vld [vmem:[%s1948_s11 + $0x88] sm:$0xff]   ;;  %v1716_v41 = vld [vmem:[%s1948_s11 + $0x90] sm:$0xff]  }
  0x3d   : > { %1633 = vmatprep.subr.bf16.mxu1 %v1710_v35  ;;  %1555 = vmatprep.subr.bf16.mxu0 %v1711_v36  ;;  %v1717_v42 = vld [vmem:[%s1948_s11 + $0x58] sm:$0xff]   ;;  %v1720_v45 = vld [vmem:[%s1948_s11 + $0x60] sm:$0xff]   ;;  %v1723_v48 = vld [vmem:[%s1948_s11 + $0x68] sm:$0xff]  }
  0x3e   : > { %1634 = vmatpush3.bf16.msra.mxu1 %v1710_v35  ;;  %v1718_v43 = vld [vmem:[%s1948_s11 + $0x18] sm:$0xff]   ;;  %v1722_v46 = vld [vmem:[%s1948_s11 + $0xa0] sm:$0xff]   ;;  %v1725_v49 = vld [vmem:[%s1948_s11 + $0xa8] sm:$0xff]  }
  0x3f   : > { %1635 = vmatprep.subr.bf16.mxu1 %v1713_v38  ;;  %v1719_v44 = vld [vmem:[%s1948_s11 + $0x98] sm:$0xff]   ;;  %v1721_v47 = vld [vmem:[%s1948_s11 + $0x20] sm:$0xff]   ;;  %v1724_v50 = vld [vmem:[%s1948_s11 + $0x28] sm:$0xff]  }
  0x40   : > { %1556 = vmatpush3.bf16.msra.mxu0 %v1712_v37  ;;  %v1726_v51 = vld [vmem:[%s1948_s11 + $0x70] sm:$0xff]   ;;  %v1729_v54 = vld [vmem:[%s1948_s11 + $0x78] sm:$0xff]   ;;  %v1732_v59 = vld [vmem:[%s1950_s12] ss:$12 sps:$4 sm:$0xff]  }
  0x41   : > { %1557 = vmatprep.subr.bf16.mxu0 %v1714_v39  ;;  %v1727_v52 = vld [vmem:[%s1948_s11 + $0x30] sm:$0xff]   ;;  %v1731_v55 = vld [vmem:[%s1948_s11 + $0xb8] sm:$0xff]   ;;  %v1736_v61 = vld [vmem:[%s1950_s12 + $0x20] ss:$12 sps:$4 sm:$0xff]  }
  0x42   : > { %1636 = vmatpush3.bf16.msra.mxu1 %v1713_v38  ;;  %v1728_v53 = vld [vmem:[%s1948_s11 + $0xb0] sm:$0xff]   ;;  %v1730_v58 = vld [vmem:[%s1948_s11 + $0x38] sm:$0xff]   ;;  %v1752_v5 = vld [vmem:[%s1950_s12 + $0x80] ss:$12 sps:$4 sm:$0xff]  }
  0x43   : > { %1637 = vmatprep.subr.bf16.mxu1 %v1716_v41  ;;  %v1734_v56 = vld [vmem:[%s1950_s12 + $0x4] ss:$12 sps:$4 sm:$0xff]   ;;  %v1735_v57 = vld [vmem:[%s1950_s12 + $0x8] ss:$12 sps:$4 sm:$0xff]   ;;  %v1745_v4 = vld [vmem:[%s1950_s12 + $0x4c] ss:$12 sps:$4 sm:$0xff]  }
  0x44   : > { %1558 = vmatpush3.bf16.msra.mxu0 %v1715_v40  ;;  %825 = vmatprep.mubr.bf16.mxu0 %v1734_v56  ;;  %v1737_v60 = vld [vmem:[%s1950_s12 + $0x1c] ss:$12 sps:$4 sm:$0xff]   ;;  %v1743_v62 = vld [vmem:[%s1950_s12 + $0x38] ss:$12 sps:$4 sm:$0xff]   ;;  %v1740_v0 = vld [vmem:[%s1950_s12 + $0x34] ss:$12 sps:$4 sm:$0xff]  }
  0x45   : > { %1559 = vmatprep.subr.bf16.mxu0 %v1717_v42  ;;  %1649 = vmatprep.mubr.bf16.mxu1 %v1735_v57  ;;  %v1739_v63 = vld [vmem:[%s1950_s12 + $0x18] ss:$12 sps:$4 sm:$0xff]   ;;  %v1744_v1 = vld [vmem:[%s1950_s12 + $0x50] ss:$12 sps:$4 sm:$0xff]   ;;  %v1751_v2 = vld [vmem:[%s1950_s12 + $0x68] ss:$12 sps:$4 sm:$0xff]  }
  0x46   : > { %1638 = vmatpush3.bf16.msra.mxu1 %v1716_v41  ;;  %v1742_v3 = vld [vmem:[%s1950_s12 + $0x30] ss:$12 sps:$4 sm:$0xff]   ;;  %v1759_v6 = vld [vmem:[%s1950_s12 + $0x98] ss:$12 sps:$4 sm:$0xff]   ;;  %v1747_v7 = vld [vmem:[%s1950_s12 + $0x48] ss:$12 sps:$4 sm:$0xff]  }
  0x47   : > { %1639 = vmatprep.subr.bf16.mxu1 %v1719_v44  ;;  %v1748_v8 = vld [vmem:[%s1950_s12 + $0x64] ss:$12 sps:$4 sm:$0xff]   ;;  %v1750_v10 = vld [vmem:[%s1950_s12 + $0x60] ss:$12 sps:$4 sm:$0xff]   ;;  %v1753_v11 = vld [vmem:[%s1950_s12 + $0x7c] ss:$12 sps:$4 sm:$0xff]  }
  0x48   : > { %1560 = vmatpush3.bf16.msra.mxu0 %v1718_v43  ;;  %v1760_v9 = vld [vmem:[%s1950_s12 + $0xb0] ss:$12 sps:$4 sm:$0xff]   ;;  %v1755_v12 = vld [vmem:[%s1950_s12 + $0x78] ss:$12 sps:$4 sm:$0xff]   ;;  %v1756_v13 = vld [vmem:[%s1950_s12 + $0x94] ss:$12 sps:$4 sm:$0xff]  }
  0x49   : > { %1561 = vmatprep.subr.bf16.mxu0 %v1720_v45  ;;  %v1758_v14 = vld [vmem:[%s1950_s12 + $0x90] ss:$12 sps:$4 sm:$0xff]   ;;  %v1761_v15 = vld [vmem:[%s1950_s12 + $0xac] ss:$12 sps:$4 sm:$0xff]   ;;  %v1763_v16 = vld [vmem:[%s1950_s12 + $0xa8] ss:$12 sps:$4 sm:$0xff]  }
  0x4a   : > { %1640 = vmatpush3.bf16.msra.mxu1 %v1719_v44  ;;  %v425_v23 = vld [vmem:[#allocation2] sm:$0xff]  ;;  %v426_v28 = vld [vmem:[#allocation2 + $0x8] sm:$0xff]  ;;  %v427_v38 = vld [vmem:[#allocation2 + $0x10] sm:$0xff] }
  0x4b   : > { %1641 = vmatprep.subr.bf16.mxu1 %v1722_v46  ;;  %v428_v44 = vld [vmem:[#allocation2 + $0x18] sm:$0xff] }
  0x4c   : > { %1562 = vmatpush3.bf16.msra.mxu0 %v1721_v47 }
  0x4d   : > { %1563 = vmatprep.subr.bf16.mxu0 %v1723_v48 }
  0x4e   : > { %1642 = vmatpush3.bf16.msra.mxu1 %v1722_v46 }
  0x4f   : > { %1643 = vmatprep.subr.bf16.mxu1 %v1725_v49 }
  0x50   : > { %1564 = vmatpush3.bf16.msra.mxu0 %v1724_v50 }
  0x51   : > { %1565 = vmatprep.subr.bf16.mxu0 %v1726_v51 }
  0x52   : > { %1644 = vmatpush3.bf16.msra.mxu1 %v1725_v49 }
  0x53   : > { %1645 = vmatprep.subr.bf16.mxu1 %v1728_v53 }
  0x54   : > { %1566 = vmatpush3.bf16.msra.mxu0 %v1727_v52 }
  0x55   : > { %1567 = vmatprep.subr.bf16.mxu0 %v1729_v54 }
  0x56   : > { %1646 = vmatpush3.bf16.msra.mxu1 %v1728_v53 }
  0x57   : > { %1647 = vmatprep.subr.bf16.mxu1 %v1731_v55 }
  0x58   : > { %1568 = vmatpush3.bf16.msra.mxu0 %v1730_v58 }
  0x5a   : > { %1648 = vmatpush3.bf16.msra.mxu1 %v1731_v55  ;;  %v429_v55 = vld [vmem:[#allocation2 + $0x20] sm:$0xff] }
  0x5b   : > { %826 = vmatmul.mubr.bf16.vlgmr.msra.gmra.mrb[0].mxu0 %v1732_v59 }
  0x5c   : > { %833 = vmatprep.mubr.bf16.mxu0 %v1737_v60  ;;  %v430_v60 = vld [vmem:[#allocation2 + $0x28] sm:$0xff] }
  0x5d   : > { %1650 = vmatmul.mubr.bf16.vlgmr.msra.gmra.mrb[0].mxu1 %v1736_v61 }
  0x5e   : > { %1653 = vmatprep.mubr.bf16.mxu1 %v1743_v62 }
  0x63   : > { %834 = vmatmul.mubr.bf16.gmra.mrb[4].mxu0 %v1739_v63 }
  0x64   : > { %841 = vmatprep.mubr.bf16.mxu0 %v1740_v0 }
  0x65   : > { %1654 = vmatmul.mubr.bf16.gmra.mrb[4].mxu1 %v1744_v1 }
  0x66   : > { %1657 = vmatprep.mubr.bf16.mxu1 %v1751_v2 }
  0x6b   : > { %842 = vmatmul.mubr.bf16.gmra.mrb[8].mxu0 %v1742_v3 }
  0x6c   : > { %849 = vmatprep.mubr.bf16.mxu0 %v1745_v4 }
  0x6d   : > { %1658 = vmatmul.mubr.bf16.gmra.mrb[8].mxu1 %v1752_v5 }
  0x6e   : > { %1661 = vmatprep.mubr.bf16.mxu1 %v1759_v6  ;;  %v431_v6 = vld [vmem:[#allocation2 + $0x30] sm:$0xff] }
  0x73   : > { %850 = vmatmul.mubr.bf16.gmra.mrb[12].mxu0 %v1747_v7 }
  0x74   : > { %857 = vmatprep.mubr.bf16.mxu0 %v1748_v8 }
  0x75   : > { %1662 = vmatmul.mubr.bf16.gmra.mrb[12].mxu1 %v1760_v9 }
  0x7b   : > { %858 = vmatmul.mubr.bf16.gmra.mrb[16].mxu0 %v1750_v10 }
  0x7c   : > { %865 = vmatprep.mubr.bf16.mxu0 %v1753_v11 }
  0x83   : > { %866 = vmatmul.mubr.bf16.gmra.mrb[20].mxu0 %v1755_v12  ;;  %v432_v12 = vld [vmem:[#allocation2 + $0x38] sm:$0xff] }
  0x84   : > { %873 = vmatprep.mubr.bf16.mxu0 %v1756_v13 }
  0x8b   : > { %874 = vmatmul.mubr.bf16.gmra.mrb[24].mxu0 %v1758_v14 }
  0x8c   : > { %881 = vmatprep.mubr.bf16.mxu0 %v1761_v15 }
  0x93   : > { %882 = vmatmul.mubr.bf16.gmra.mrb[28].mxu0 %v1763_v16 }
 0x12e   : > { %v1569_v17 = vpop.f32.mrb[0].mxu0 }
 0x12f   : > { %v1570_v18 = vpop.f32.mrb[1].mxu0 }
 0x130   : > { %v1571_v19 = vadd.f32 %v1570_v18, %v1569_v17  ;;  %v1572_v20 = vpop.f32.mrb[2].mxu0  ;;  %v1651_v21 = vpop.f32.mrb[0].mxu1 }
 0x131   : > { %v1573_v22 = vpop.f32.mrb[3].mxu0  ;;  %v924_v24 = vpop.f32.mrb[1].mxu1 }
 0x132   : > { %v1574_v25 = vadd.f32 %v1573_v22, %v1572_v20  ;;  %v925_v26 = vadd.f32 %v1571_v19, %v924_v24  ;;  %v1652_v27 = vpop.f32.mrb[2].mxu1  ;;  %v433_v22 = vld [vmem:[#allocation2 + $0x40] sm:$0xff] }
 0x133   : > { %v927_v29 = vpop.f32.mrb[3].mxu1 }
 0x134   : > { %v987_v30 = vadd.f32 %v925_v26, %v425_v23  ;;  %v928_v31 = vadd.f32 %v1574_v25, %v927_v29  ;;  %v434_v25 = vld [vmem:[#allocation2 + $0x48] sm:$0xff] }
 0x136   : > { %1003 = vst [vmem:[#allocation2] sm:$0xff] %v987_v30  ;;  %v988_v32 = vadd.f32 %v928_v31, %v426_v28  ;;  %v1575_v33 = vpop.f32.mrb[4].mxu0 }
 0x137   : > { %v1576_v34 = vpop.f32.mrb[5].mxu0 }
 0x138   : > { %1004 = vst [vmem:[#allocation2 + $0x8] sm:$0xff] %v988_v32  ;;  %v1577_v35 = vadd.f32 %v1576_v34, %v1575_v33  ;;  %v1578_v36 = vpop.f32.mrb[6].mxu0  ;;  %v1655_v37 = vpop.f32.mrb[4].mxu1  ;;  %v435_v33 = vld [vmem:[#allocation2 + $0x50] sm:$0xff] }
 0x139   : > { %v1579_v39 = vpop.f32.mrb[7].mxu0  ;;  %v940_v40 = vpop.f32.mrb[5].mxu1 }
 0x13a   : > { %v933_v41 = vadd.f32 %v1651_v21, %v1577_v35  ;;  %v1580_v42 = vadd.f32 %v1579_v39, %v1578_v36  ;;  %v1656_v43 = vpop.f32.mrb[6].mxu1 }
 0x13b   : > { %v943_v45 = vpop.f32.mrb[7].mxu1 }
 0x13c   : > { %v989_v46 = vadd.f32 %v933_v41, %v427_v38  ;;  %v936_v47 = vadd.f32 %v1652_v27, %v1580_v42 }
 0x13e   : > { %1005 = vst [vmem:[#allocation2 + $0x10] sm:$0xff] %v989_v46  ;;  %v990_v48 = vadd.f32 %v936_v47, %v428_v44  ;;  %v1581_v49 = vpop.f32.mrb[8].mxu0  ;;  %v437_v46 = vld [vmem:[#allocation2 + $0x60] sm:$0xff] }
 0x13f   : > { %v1582_v50 = vpop.f32.mrb[9].mxu0 }
 0x140   : > { %1006 = vst [vmem:[#allocation2 + $0x18] sm:$0xff] %v990_v48  ;;  %v1583_v51 = vadd.f32 %v1582_v50, %v1581_v49  ;;  %v1584_v52 = vpop.f32.mrb[10].mxu0  ;;  %v1659_v53 = vpop.f32.mrb[8].mxu1  ;;  %v438_v49 = vld [vmem:[#allocation2 + $0x68] sm:$0xff] }
 0x141   : > { %v1585_v54 = vpop.f32.mrb[11].mxu0  ;;  %v956_v56 = vpop.f32.mrb[9].mxu1 }
 0x142   : > { %v1586_v57 = vadd.f32 %v1585_v54, %v1584_v52  ;;  %v941_v58 = vadd.f32 %v1583_v51, %v940_v40  ;;  %v1660_v59 = vpop.f32.mrb[10].mxu1 }
 0x143   : > { %v959_v61 = vpop.f32.mrb[11].mxu1 }
 0x144   : > { %v991_v62 = vadd.f32 %v941_v58, %v429_v55  ;;  %v944_v63 = vadd.f32 %v1586_v57, %v943_v45  ;;  %v439_v57 = vld [vmem:[#allocation2 + $0x70] sm:$0xff] }
 0x146   : > { %1007 = vst [vmem:[#allocation2 + $0x20] sm:$0xff] %v991_v62  ;;  %v992_v0 = vadd.f32 %v944_v63, %v430_v60  ;;  %v1587_v1 = vpop.f32.mrb[12].mxu0 }
 0x147   : > { %v1588_v2 = vpop.f32.mrb[13].mxu0 }
 0x148   : > { %1008 = vst [vmem:[#allocation2 + $0x28] sm:$0xff] %v992_v0  ;;  %v1589_v3 = vadd.f32 %v1588_v2, %v1587_v1  ;;  %v1590_v4 = vpop.f32.mrb[14].mxu0  ;;  %v1663_v5 = vpop.f32.mrb[12].mxu1  ;;  %v1023_v1 = vld [vmem:[#allocation2] sm:$0xff] (!%p1428_p11)  ;;  %v1024_v2 = vld [vmem:[#allocation2 + $0x8] sm:$0xff] (!%p1428_p11) }
 0x149   : > { %v1591_v7 = vpop.f32.mrb[15].mxu0  ;;  %v972_v8 = vpop.f32.mrb[13].mxu1 }
 0x14a   : > { %v949_v9 = vadd.f32 %v1655_v37, %v1589_v3  ;;  %v1592_v10 = vadd.f32 %v1591_v7, %v1590_v4  ;;  %v1664_v11 = vpop.f32.mrb[14].mxu1  ;;  %v436_v37 = vld [vmem:[#allocation2 + $0x58] sm:$0xff]  ;;  %v2005_v3 = vld [vmem:[%s2088_s2] ss:$0 sm:$0xff] (!%p1428_p11)  ;;  %v1025_v7 = vld [vmem:[#allocation2 + $0x10] sm:$0xff] (!%p1428_p11) }
 0x14b   : > { %v975_v13 = vpop.f32.mrb[15].mxu1  ;;  %v1046_v4 = vadd.f32 (!%p1428_p11), %v2005_v3, %v1023_v1 }
 0x14c   : > { %v993_v14 = vadd.f32 %v949_v9, %v431_v6  ;;  %v952_v15 = vadd.f32 %v1656_v43, %v1592_v10  ;;  %v1468_v6 = vld [vmem:[%s2089_s3] sm:$0xff] (!%p1428_p11)  }
 0x14d   : > { %v1469_v9 = vunpack.c.l.bf16 (!%p1428_p11), %v1468_v6  ;;  %v1470_v10 = vunpack.c.h.bf16 (!%p1428_p11), %v1468_v6 }
 0x14e   : > { %1009 = vst [vmem:[#allocation2 + $0x30] sm:$0xff] %v993_v14  ;;  %v994_v16 = vadd.f32 %v952_v15, %v432_v12  ;;  %v1593_v17 = vpop.f32.mrb[16].mxu0  ;;  %v1027_v14 = vld [vmem:[#allocation2 + $0x20] sm:$0xff] (!%p1428_p11) }
 0x14f   : > { %v1594_v18 = vpop.f32.mrb[17].mxu0  ;;  %v1028_v15 = vld [vmem:[#allocation2 + $0x28] sm:$0xff] (!%p1428_p11) }
 0x150   : > { %1010 = vst [vmem:[#allocation2 + $0x38] sm:$0xff] %v994_v16  ;;  %v1595_v19 = vadd.f32 %v1594_v18, %v1593_v17  ;;  %v1596_v20 = vpop.f32.mrb[18].mxu0  ;;  %v1050_v18 = vadd.f32 (!%p1428_p11), %v2005_v3, %v1027_v14 }
 0x151   : > { %v1597_v21 = vpop.f32.mrb[19].mxu0 }
 0x152   : > { %v1598_v23 = vadd.f32 %v1597_v21, %v1596_v20  ;;  %v957_v24 = vadd.f32 %v1595_v19, %v956_v56  ;;  %v1051_v19 = vadd.f32 (!%p1428_p11), %v2005_v3, %v1028_v15  ;;  %v1540_v20 = vld [vmem:[%s2089_s3 + $0x10] sm:$0xff] (!%p1428_p11)  }
 0x154   : > { %v995_v26 = vadd.f32 %v957_v24, %v433_v22  ;;  %v960_v27 = vadd.f32 %v1598_v23, %v959_v61  ;;  %v440_v61 = vld [vmem:[#allocation2 + $0x78] sm:$0xff]  ;;  %v1094_v23 = vadd.f32 (!%p1428_p11), %v1469_v9, %v1046_v4 }
 0x155   : > { %v1029_v21 = vld [vmem:[#allocation2 + $0x30] sm:$0xff] (!%p1428_p11) }
 0x156   : > { %1011 = vst [vmem:[#allocation2 + $0x40] sm:$0xff] %v995_v26  ;;  %v996_v28 = vadd.f32 %v960_v27, %v434_v25  ;;  %v1599_v29 = vpop.f32.mrb[20].mxu0  ;;  %v1477_v25 = vunpack.c.l.bf16 (!%p1428_p11), %v1540_v20  ;;  %v1478_v26 = vunpack.c.h.bf16 (!%p1428_p11), %v1540_v20  ;;  %v1541_v27 = vld [vmem:[%s2089_s3 + $0x18] sm:$0xff] (!%p1428_p11)  }
 0x157   : > { %v1600_v30 = vpop.f32.mrb[21].mxu0  ;;  %v1030_v22 = vld [vmem:[#allocation2 + $0x38] sm:$0xff] (!%p1428_p11) }
 0x158   : > { %1012 = vst [vmem:[#allocation2 + $0x48] sm:$0xff] %v996_v28  ;;  %v1601_v31 = vadd.f32 %v1600_v30, %v1599_v29  ;;  %v1602_v32 = vpop.f32.mrb[22].mxu0  ;;  %v1052_v30 = vadd.f32 (!%p1428_p11), %v2005_v3, %v1029_v21 }
 0x159   : > { %v1603_v34 = vpop.f32.mrb[23].mxu0 }
 0x15a   : > { %v965_v35 = vadd.f32 %v1659_v53, %v1601_v31  ;;  %v1604_v36 = vadd.f32 %v1603_v34, %v1602_v32  ;;  %v1053_v31 = vadd.f32 (!%p1428_p11), %v2005_v3, %v1030_v22 }
 0x15c   : > { %v997_v38 = vadd.f32 %v965_v35, %v435_v33  ;;  %v968_v39 = vadd.f32 %v1660_v59, %v1604_v36  ;;  %v1110_v33 = vmax.f32 (!%p1428_p11), %v1094_v23, 0.0  ;;  %v1098_v35 = vadd.f32 (!%p1428_p11), %v1477_v25, %v1050_v18 }
 0x15d   : > { %v1031_v32 = vld [vmem:[#allocation2 + $0x40] sm:$0xff] (!%p1428_p11)  ;;  %v1099_v36 = vadd.f32 (!%p1428_p11), %v1478_v26, %v1051_v19 }
 0x15e   : > { %1013 = vst [vmem:[#allocation2 + $0x50] sm:$0xff] %v997_v38  ;;  %v998_v40 = vadd.f32 %v968_v39, %v436_v37  ;;  %v1605_v41 = vpop.f32.mrb[24].mxu0 }
 0x15f   : > { %v1606_v42 = vpop.f32.mrb[25].mxu0  ;;  %v1032_v37 = vld [vmem:[#allocation2 + $0x48] sm:$0xff] (!%p1428_p11) }
 0x160   : > { %1014 = vst [vmem:[#allocation2 + $0x58] sm:$0xff] %v998_v40  ;;  %v1607_v43 = vadd.f32 %v1606_v42, %v1605_v41  ;;  %v1608_v44 = vpop.f32.mrb[26].mxu0  ;;  %v1481_v40 = vunpack.c.l.bf16 (!%p1428_p11), %v1541_v27  ;;  %v1482_v41 = vunpack.c.h.bf16 (!%p1428_p11), %v1541_v27  ;;  %v1542_v42 = vld [vmem:[%s2089_s3 + $0x20] sm:$0xff] (!%p1428_p11)  }
 0x161   : > { %v1609_v45 = vpop.f32.mrb[27].mxu0 }
 0x162   : > { %v1610_v47 = vadd.f32 %v1609_v45, %v1608_v44  ;;  %v973_v48 = vadd.f32 %v1607_v43, %v972_v8  ;;  %v1026_v8 = vld [vmem:[#allocation2 + $0x18] sm:$0xff] (!%p1428_p11)  ;;  %v1114_v45 = vmax.f32 (!%p1428_p11), %v1098_v35, 0.0 }
 0x163   : > { %v1049_v12 = vadd.f32 (!%p1428_p11), %v2005_v3, %v1026_v8 }
 0x164   : > { %v999_v50 = vadd.f32 %v973_v48, %v437_v46  ;;  %v976_v51 = vadd.f32 %v1610_v47, %v975_v13  ;;  %v1539_v13 = vld [vmem:[%s2089_s3 + $0x8] sm:$0xff] (!%p1428_p11)   ;;  %v1115_v46 = vmax.f32 (!%p1428_p11), %v1099_v36, 0.0  ;;  %v1054_v47 = vadd.f32 (!%p1428_p11), %v2005_v3, %v1031_v32 }
 0x165   : > { %v1473_v16 = vunpack.c.l.bf16 (!%p1428_p11), %v1539_v13  ;;  %v1474_v17 = vunpack.c.h.bf16 (!%p1428_p11), %v1539_v13  ;;  %v1033_v43 = vld [vmem:[#allocation2 + $0x50] sm:$0xff] (!%p1428_p11) }
 0x166   : > { %1015 = vst [vmem:[#allocation2 + $0x60] sm:$0xff] %v999_v50  ;;  %v1000_v52 = vadd.f32 %v976_v51, %v438_v49  ;;  %v1611_v53 = vpop.f32.mrb[28].mxu0  ;;  %v1543_v49 = vld [vmem:[%s2089_s3 + $0x28] sm:$0xff] (!%p1428_p11)   ;;  %v1100_v51 = vadd.f32 (!%p1428_p11), %v1481_v40, %v1052_v30 }
 0x167   : > { %v1612_v54 = vpop.f32.mrb[29].mxu0  ;;  %v1097_v29 = vadd.f32 (!%p1428_p11), %v1474_v17, %v1049_v12  ;;  %v1034_v48 = vld [vmem:[#allocation2 + $0x58] sm:$0xff] (!%p1428_p11)  ;;  %v1490_v4 = vunpack.c.h.bf16 (!%p1428_p11), %v1543_v49 }
 0x168   : > { %1016 = vst [vmem:[#allocation2 + $0x68] sm:$0xff] %v1000_v52  ;;  %v1613_v55 = vadd.f32 %v1612_v54, %v1611_v53  ;;  %v1614_v56 = vpop.f32.mrb[30].mxu0  ;;  %v1101_v52 = vadd.f32 (!%p1428_p11), %v1482_v41, %v1053_v31  ;;  %v1055_v53 = vadd.f32 (!%p1428_p11), %v2005_v3, %v1032_v37  ;;  %v1545_v12 = vld [vmem:[%s2089_s3 + $0x38] sm:$0xff] (!%p1428_p11)  }
 0x169   : > { %v1615_v58 = vpop.f32.mrb[31].mxu0  ;;  %v1113_v39 = vmax.f32 (!%p1428_p11), %v1097_v29, 0.0  ;;  %v1498_v26 = vunpack.c.h.bf16 (!%p1428_p11), %v1545_v12 }
 0x16a   : > { %v981_v59 = vadd.f32 %v1663_v5, %v1613_v55  ;;  %v1616_v60 = vadd.f32 %v1615_v58, %v1614_v56  ;;  %1022 = sbr.rel (%p1428_p11) target bundleno = 385 (0x181), region = 70  ;;  %v1047_v5 = vadd.f32 (!%p1428_p11), %v2005_v3, %v1024_v2  ;;  %v1512_v55 = vpack.c.bf16 (!%p1428_p11), %v1115_v46, %v1114_v45 }
 0x16b   : > { %v1485_v56 = vunpack.c.l.bf16 (!%p1428_p11), %v1542_v42  ;;  %v1056_v58 = vadd.f32 (!%p1428_p11), %v2005_v3, %v1033_v43 }
 0x16c   : > { %v1001_v62 = vadd.f32 %v981_v59, %v439_v57  ;;  %v984_v63 = vadd.f32 %v1664_v11, %v1616_v60  ;;  %v1048_v11 = vadd.f32 (!%p1428_p11), %v2005_v3, %v1025_v7  ;;  %v1095_v24 = vadd.f32 (!%p1428_p11), %v1470_v10, %v1047_v5  ;;  %v1544_v60 = vld [vmem:[%s2089_s3 + $0x30] sm:$0xff] (!%p1428_p11)   ;;  %1547 = vst [vmem:[%s2090_s4 + $0x10] sm:$0xff] (!%p1428_p11), %v1512_v55  }
 0x16d   : > { %v1035_v54 = vld [vmem:[#allocation2 + $0x60] sm:$0xff] (!%p1428_p11)  ;;  %v1486_v57 = vunpack.c.h.bf16 (!%p1428_p11), %v1542_v42  ;;  %v1102_v1 = vadd.f32 (!%p1428_p11), %v1485_v56, %v1054_v47 }
 0x16e   : > { %1017 = vst [vmem:[#allocation2 + $0x70] sm:$0xff] %v1001_v62  ;;  %v1002_v0 = vadd.f32 %v984_v63, %v440_v61  ;;  %v1096_v28 = vadd.f32 (!%p1428_p11), %v1473_v16, %v1048_v11  ;;  %v1111_v34 = vmax.f32 (!%p1428_p11), %v1095_v24, 0.0  ;;  %v1116_v61 = vmax.f32 (!%p1428_p11), %v1100_v51, 0.0 }
 0x16f   : > { %v1036_v59 = vld [vmem:[#allocation2 + $0x68] sm:$0xff] (!%p1428_p11)  ;;  %v1117_v62 = vmax.f32 (!%p1428_p11), %v1101_v52, 0.0  ;;  %v1057_v63 = vadd.f32 (!%p1428_p11), %v2005_v3, %v1034_v48  ;;  %v1103_v2 = vadd.f32 (!%p1428_p11), %v1486_v57, %v1055_v53  ;;  %v1058_v5 = vadd.f32 (!%p1428_p11), %v2005_v3, %v1035_v54 }
 0x170   : > { %1018 = vst [vmem:[#allocation2 + $0x78] sm:$0xff] %v1002_v0  ;;  %v1112_v38 = vmax.f32 (!%p1428_p11), %v1096_v28, 0.0  ;;  %v1502_v44 = vpack.c.bf16 (!%p1428_p11), %v1111_v34, %v1110_v33  ;;  %v1489_v0 = vunpack.c.l.bf16 (!%p1428_p11), %v1543_v49  ;;  %v1059_v10 = vadd.f32 (!%p1428_p11), %v2005_v3, %v1036_v59 }
 0x171   : > { %v1517_v8 = vpack.c.bf16 %v1117_v62, %v1116_v61  ;;  %v1493_v11 = vunpack.c.l.bf16 %v1544_v60  ;;  %v1118_v13 = vmax.f32 %v1102_v1, 0.0  ;;  %v1119_v14 = vmax.f32 %v1103_v2, 0.0 }
 0x172   : > { %v1507_v50 = vpack.c.bf16 %v1113_v39, %v1112_v38  ;;  %1503 = vst [vmem:[%s2090_s4] sm:$0xff] %v1502_v44   ;;  %v1104_v9 = vadd.f32 %v1489_v0, %v1056_v58  ;;  %v1105_v15 = vadd.f32 %v1490_v4, %v1057_v63  ;;  %v1494_v16 = vunpack.c.h.bf16 %v1544_v60 }
 0x173   : > { %1548 = vst [vmem:[%s2090_s4 + $0x18] sm:$0xff] %v1517_v8   ;;  %v1106_v18 = vadd.f32 %v1493_v11, %v1058_v5  ;;  %v1522_v21 = vpack.c.bf16 %v1119_v14, %v1118_v13  ;;  %v1497_v24 = vunpack.c.l.bf16 %v1545_v12 }
 0x174   : > { %1546 = vst [vmem:[%s2090_s4 + $0x8] sm:$0xff] %v1507_v50   ;;  %v1120_v17 = vmax.f32 %v1104_v9, 0.0  ;;  %v1121_v22 = vmax.f32 %v1105_v15, 0.0  ;;  %v1107_v23 = vadd.f32 %v1494_v16, %v1059_v10 }
 0x175   : > { %v1037_v6 = vld [vmem:[#allocation2 + $0x70] sm:$0xff]  ;;  %v1122_v25 = vmax.f32 %v1106_v18, 0.0  ;;  %1549 = vst [vmem:[%s2090_s4 + $0x20] sm:$0xff] %v1522_v21  }
 0x176   : > { %v1060_v19 = vadd.f32 %v2005_v3, %v1037_v6  ;;  %v1527_v27 = vpack.c.bf16 %v1121_v22, %v1120_v17  ;;  %v1123_v28 = vmax.f32 %v1107_v23, 0.0 }
 0x177   : > { %v1038_v7 = vld [vmem:[#allocation2 + $0x78] sm:$0xff] }
 0x178   : > { %v1061_v20 = vadd.f32 %v2005_v3, %v1038_v7  ;;  %v1108_v29 = vadd.f32 %v1497_v24, %v1060_v19  ;;  %1550 = vst [vmem:[%s2090_s4 + $0x28] sm:$0xff] %v1527_v27   ;;  %v1532_v31 = vpack.c.bf16 %v1123_v28, %v1122_v25 }
 0x17a   : > { %v1109_v30 = vadd.f32 %v1498_v26, %v1061_v20  ;;  %v1124_v3 = vmax.f32 %v1108_v29, 0.0  ;;  %1551 = vst [vmem:[%s2090_s4 + $0x30] sm:$0xff] %v1532_v31  }
 0x17c   : > { %v1125_v32 = vmax.f32 %v1109_v30, 0.0 }
 0x17e   : > { %v1537_v33 = vpack.c.bf16 %v1125_v32, %v1124_v3 }
 0x180   : > { %1552 = vst [vmem:[%s2090_s4 + $0x38] sm:$0xff] %v1537_v33  }
 0x181 PF: > { %s14_s19 = sadd.s32 1, %s1802_s19   ;;  %s2091_s15 = smov %s1790_s16 }
 0x182   : > { %p11_p12 = scmp.ge.s32.totalorder %s14_s19, 5   ;;  %s2092_s16 = smov %s1865_s23 }
 0x183   : > { %s2093_s17 = smov %s1798_s18  ;;  %s2094_s18 = smov %s2096_s20 }
 0x184   :  { %13 = sbr.rel (!%p11_p12) target bundleno = 3 (0x3), region = 120 }

// kernel: resnet34_forward.40
= control target key start
LH: loop header
LB: loop body
LE: loop exit
PB: predicated region body
PF: predicated region fallthrough
CT: control target
= control target key end

     0   :  { %s1659_s12 = smov 0   ;;  %s1661_s13 = smov 0   ;;  %s1873_s0 = inlined_call_operand.vmem [shape: bf16[128,1152], index: 0, kind: input, shape index: {}]   ;;  %s1874_s1 = inlined_call_operand.vmem [shape: bf16[1152,128], index: 1, kind: input, shape index: {}]   ;;  %s1875_s2 = inlined_call_operand.vmem [shape: f32[1,128], index: 2, kind: input, shape index: {}]   ;;  %s1876_s3 = inlined_call_operand.vmem [shape: bf16[128,128], index: 3, kind: output, shape index: {}]  }
   0x1   :  { %s1663_s14 = smov 0   ;;  %s1665_s15 = smov 0  }
   0x2   :  { %s1667_s16 = smov 0  }
   0x3 LB: > { %s25_s17 = sadd.s32 1, %s1632_s15  ;;  %p48_p1 = scmp.ne.s32.totalorder %s1624_s13, %s1620_s12  ;;  %s1636_s16 = sphi %s1667_s16, %s13_s16   ;;  %s1632_s15 = sphi %s1665_s15, %s1880_s15   ;;  %s1628_s14 = sphi %s1663_s14, %s1879_s14   ;;  %s1624_s13 = sphi %s1661_s13, %s1878_s13   ;;  %s1620_s12 = sphi %s1659_s12, %s1877_s12  }
   0x4   : > { %p26_p0 = scmp.ge.s32.totalorder %s25_s17, 3  ;;  %p49_p2 = scmp.eq.s32.totalorder %s1636_s16, 0 }
   0x5   : > { %s41_s19 = sadd.s32 1, %s1624_s13  ;;  %p1216_p5 = scmp.ge.s32.totalorder %s1636_s16, 3 }
   0x6   : > { %s1882_s17 = smov (%p26_p0, %s25_s17), 0  ;;  %p50_p3 = por %p49_p2, %p48_p1 }
   0x7   : > { %s37_s18 = ssub.s32 %s1632_s15, %s1882_s17  ;;  %162 = sbr.rel (%p1216_p5) target bundleno = 37 (0x25), region = 20 }
   0x8   : > { %p39_p4 = scmp.eq.s32.totalorder %s37_s18, 0 }
   0xa   : > { %s1694_s20 = scalar_select %p39_p4, %s1624_s13, %s41_s19  }
   0xe   : > { %165 = sbr.rel (!%p50_p3) target bundleno = 37 (0x25), region = 24  ;;  %s167_s21 = sand.u32 (%p50_p3), 1, %s1624_s13  }
   0xf   : > { %s1323_s22 = smul.u32 (%p50_p3), 12, %s1632_s15 }
  0x10   : > { %s1499_s23 = smul.u32 (%p50_p3), 192, %s167_s21 }
  0x11   : > { %s1702_s26 = scalar_lea.vmem (%p50_p3), %s1873_s0, %s1323_s22 }
  0x12   : > { %v190_v0 = vld [vmem:[%s1702_s26] sm:$0xff] (%p50_p3)  ;;  %v194_v2 = vld [vmem:[%s1702_s26 + $0x48] sm:$0xff] (%p50_p3)  ;;  %s1707_s27 = scalar_lea.vmem (%p50_p3), [#allocation3], %s1499_s23  ;;  %v198_v4 = vld [vmem:[%s1702_s26 + $0x90] sm:$0xff] (%p50_p3) }
  0x13   : > { %v192_v1 = vld [vmem:[%s1702_s26 + $0x24] sm:$0xff] (%p50_p3)  ;;  %191 = vst [vmem:[%s1707_s27] sm:$0xff] (%p50_p3), %v190_v0  ;;  %195 = vst [vmem:[%s1707_s27 + $0x18] sm:$0xff] (%p50_p3), %v194_v2  ;;  %v196_v3 = vld [vmem:[%s1702_s26 + $0x6c] sm:$0xff] (%p50_p3) }
  0x14   : > { %193 = vst [vmem:[%s1707_s27 + $0xc] sm:$0xff] (%p50_p3), %v192_v1  ;;  %v200_v5 = vld [vmem:[%s1702_s26 + $0xb4] sm:$0xff] (%p50_p3)  ;;  %197 = vst [vmem:[%s1707_s27 + $0x24] sm:$0xff] (%p50_p3), %v196_v3  ;;  %v204_v7 = vld [vmem:[%s1702_s26 + $0xfc] sm:$0xff] (%p50_p3) }
  0x15   : > { %199 = vst [vmem:[%s1707_s27 + $0x30] sm:$0xff] %v198_v4  ;;  %201 = vst [vmem:[%s1707_s27 + $0x3c] sm:$0xff] %v200_v5  ;;  %v202_v6 = vld [vmem:[%s1702_s26 + $0xd8] sm:$0xff]  ;;  %v206_v8 = vld [vmem:[%s1702_s26 + $0x120] sm:$0xff] }
  0x16   : > { %203 = vst [vmem:[%s1707_s27 + $0x48] sm:$0xff] %v202_v6  ;;  %205 = vst [vmem:[%s1707_s27 + $0x54] sm:$0xff] %v204_v7  ;;  %v208_v9 = vld [vmem:[%s1702_s26 + $0x144] sm:$0xff]  ;;  %v212_v11 = vld [vmem:[%s1702_s26 + $0x18c] sm:$0xff] }
  0x17   : > { %207 = vst [vmem:[%s1707_s27 + $0x60] sm:$0xff] %v206_v8  ;;  %v210_v10 = vld [vmem:[%s1702_s26 + $0x168] sm:$0xff]  ;;  %209 = vst [vmem:[%s1707_s27 + $0x6c] sm:$0xff] %v208_v9  ;;  %v214_v12 = vld [vmem:[%s1702_s26 + $0x1b0] sm:$0xff] }
  0x18   : > { %211 = vst [vmem:[%s1707_s27 + $0x78] sm:$0xff] %v210_v10  ;;  %213 = vst [vmem:[%s1707_s27 + $0x84] sm:$0xff] %v212_v11  ;;  %v216_v13 = vld [vmem:[%s1702_s26 + $0x1d4] sm:$0xff]  ;;  %v220_v15 = vld [vmem:[%s1702_s26 + $0x21c] sm:$0xff] }
  0x19   : > { %v218_v14 = vld [vmem:[%s1702_s26 + $0x1f8] sm:$0xff]  ;;  %215 = vst [vmem:[%s1707_s27 + $0x90] sm:$0xff] %v214_v12  ;;  %217 = vst [vmem:[%s1707_s27 + $0x9c] sm:$0xff] %v216_v13  ;;  %v1218_v16 = vld [vmem:[%s1702_s26 + $0x8] sm:$0xf] }
  0x1a   : > { %219 = vst [vmem:[%s1707_s27 + $0xa8] sm:$0xff] %v218_v14  ;;  %v1220_v17 = vld [vmem:[%s1702_s26 + $0x2c] sm:$0xf]  ;;  %221 = vst [vmem:[%s1707_s27 + $0xb4] sm:$0xff] %v220_v15  ;;  %v1222_v18 = vld [vmem:[%s1702_s26 + $0x50] sm:$0xf] }
  0x1b   : > { %1219 = vst [vmem:[%s1707_s27 + $0x8] sm:$0xf] %v1218_v16  ;;  %1221 = vst [vmem:[%s1707_s27 + $0x14] sm:$0xf] %v1220_v17  ;;  %v1224_v19 = vld [vmem:[%s1702_s26 + $0x74] sm:$0xf] }
  0x1c   : > { %v1226_v20 = vld [vmem:[%s1702_s26 + $0x98] sm:$0xf]  ;;  %1223 = vst [vmem:[%s1707_s27 + $0x20] sm:$0xf] %v1222_v18  ;;  %1225 = vst [vmem:[%s1707_s27 + $0x2c] sm:$0xf] %v1224_v19 }
  0x1d   : > { %1227 = vst [vmem:[%s1707_s27 + $0x38] sm:$0xf] %v1226_v20  ;;  %v1228_v21 = vld [vmem:[%s1702_s26 + $0xbc] sm:$0xf]  ;;  %v1230_v22 = vld [vmem:[%s1702_s26 + $0xe0] sm:$0xf] }
  0x1e   : > { %v1232_v23 = vld [vmem:[%s1702_s26 + $0x104] sm:$0xf]  ;;  %1229 = vst [vmem:[%s1707_s27 + $0x44] sm:$0xf] %v1228_v21  ;;  %1231 = vst [vmem:[%s1707_s27 + $0x50] sm:$0xf] %v1230_v22 }
  0x1f   : > { %1233 = vst [vmem:[%s1707_s27 + $0x5c] sm:$0xf] %v1232_v23  ;;  %v1234_v24 = vld [vmem:[%s1702_s26 + $0x128] sm:$0xf]  ;;  %v1236_v25 = vld [vmem:[%s1702_s26 + $0x14c] sm:$0xf] }
  0x20   : > { %v1238_v26 = vld [vmem:[%s1702_s26 + $0x170] sm:$0xf]  ;;  %1235 = vst [vmem:[%s1707_s27 + $0x68] sm:$0xf] %v1234_v24  ;;  %1237 = vst [vmem:[%s1707_s27 + $0x74] sm:$0xf] %v1236_v25 }
  0x21   : > { %1239 = vst [vmem:[%s1707_s27 + $0x80] sm:$0xf] %v1238_v26  ;;  %v1240_v27 = vld [vmem:[%s1702_s26 + $0x194] sm:$0xf]  ;;  %v1242_v28 = vld [vmem:[%s1702_s26 + $0x1b8] sm:$0xf] }
  0x22   : > { %v1244_v29 = vld [vmem:[%s1702_s26 + $0x1dc] sm:$0xf]  ;;  %1241 = vst [vmem:[%s1707_s27 + $0x8c] sm:$0xf] %v1240_v27  ;;  %1243 = vst [vmem:[%s1707_s27 + $0x98] sm:$0xf] %v1242_v28 }
  0x23   : > { %1245 = vst [vmem:[%s1707_s27 + $0xa4] sm:$0xf] %v1244_v29  ;;  %v1246_v30 = vld [vmem:[%s1702_s26 + $0x200] sm:$0xf]  ;;  %v1248_v31 = vld [vmem:[%s1702_s26 + $0x224] sm:$0xf] }
  0x24   : > { %1247 = vst [vmem:[%s1707_s27 + $0xb0] sm:$0xf] %v1246_v30  ;;  %1249 = vst [vmem:[%s1707_s27 + $0xbc] sm:$0xf] %v1248_v31 }
  0x25 PF: > { %p1250_p6 = scmp.ge.s32.totalorder %s1636_s16, 1  ;;  %p277_p7 = scmp.lt.s32.totalorder %s1636_s16, 4 }
  0x27   : > { %p278_p8 = pnand %p1250_p6, %p277_p7 }
  0x28   : > { %s284_s28 = sand.u32 (!%p278_p8), 1, %s1620_s12   ;;  %s323_s29 = smul.u32 (!%p278_p8), 48, %s1628_s14 }
  0x29   : > { %281 = sbr.rel (%p278_p8) target bundleno = 383 (0x17f), region = 54  ;;  %p1252_p10 = scmp.ne.s32.totalorder (!%p278_p8), %s1628_s14, 0 }
  0x2a   : > { %s1500_s30 = smul.u32 (!%p278_p8), 192, %s284_s28  ;;  %p324_p9 = scmp.lt.s32.totalorder (!%p278_p8), %s323_s29, 143 }
  0x2c   : > { %s1779_s8 = scalar_lea.vmem (!%p278_p8), [#allocation3], %s1500_s30 }
  0x30   : > { %s1884_s29 = smov (!%p324_p9, %s323_s29), 143  ;;  %348 = sbr.rel (%p1252_p10) target bundleno = 58 (0x3a), region = 62 }
  0x31   : > { %s1251_s4 = sshll.u32 %s1884_s29, 2  ;;  %v1638_v32 = vmov (!%p1252_p10), 0.0  }
  0x32   : > { %s1777_s7 = scalar_lea.vmem %s1874_s1, %s1251_s4  ;;  %349 = vst [vmem:[#allocation2] sm:$0xff] (!%p1252_p10), %v1638_v32  ;;  %350 = vst [vmem:[#allocation2 + $0x8] sm:$0xff] (!%p1252_p10), %v1638_v32 }
  0x33   : > { %351 = vst [vmem:[#allocation2 + $0x10] sm:$0xff] (!%p1252_p10), %v1638_v32  ;;  %352 = vst [vmem:[#allocation2 + $0x18] sm:$0xff] (!%p1252_p10), %v1638_v32 }
  0x34   : > { %353 = vst [vmem:[#allocation2 + $0x20] sm:$0xff] (!%p1252_p10), %v1638_v32  ;;  %354 = vst [vmem:[#allocation2 + $0x28] sm:$0xff] (!%p1252_p10), %v1638_v32 }
  0x35   : > { %355 = vst [vmem:[#allocation2 + $0x30] sm:$0xff] (!%p1252_p10), %v1638_v32  ;;  %356 = vst [vmem:[#allocation2 + $0x38] sm:$0xff] (!%p1252_p10), %v1638_v32 }
  0x36   : > { %357 = vst [vmem:[#allocation2 + $0x40] sm:$0xff] (!%p1252_p10), %v1638_v32  ;;  %358 = vst [vmem:[#allocation2 + $0x48] sm:$0xff] (!%p1252_p10), %v1638_v32 }
  0x37   : > { %359 = vst [vmem:[#allocation2 + $0x50] sm:$0xff] %v1638_v32  ;;  %360 = vst [vmem:[#allocation2 + $0x58] sm:$0xff] %v1638_v32 }
  0x38   : > { %361 = vst [vmem:[#allocation2 + $0x60] sm:$0xff] %v1638_v32  ;;  %362 = vst [vmem:[#allocation2 + $0x68] sm:$0xff] %v1638_v32 }
  0x39   : > { %363 = vst [vmem:[#allocation2 + $0x70] sm:$0xff] %v1638_v32  ;;  %364 = vst [vmem:[#allocation2 + $0x78] sm:$0xff] %v1638_v32 }
  0x3a PF: > { %v1542_v33 = vld [vmem:[%s1777_s7 + $0x40] sm:$0xff]   ;;  %v1545_v36 = vld [vmem:[%s1777_s7 + $0x48] sm:$0xff]   ;;  %v1548_v39 = vld [vmem:[%s1777_s7 + $0x50] sm:$0xff]   ;;  %p1301_p11 = scmp.ne.s32.totalorder %s1628_s14, 2 }
  0x3b   : > { %v1543_v34 = vld [vmem:[%s1777_s7] sm:$0xff]   ;;  %1387 = vmatprep.subr.bf16.mxu0 %v1542_v33  ;;  %v1546_v37 = vld [vmem:[%s1777_s7 + $0x8] sm:$0xff]   ;;  %v1549_v40 = vld [vmem:[%s1777_s7 + $0x10] sm:$0xff]  }
  0x3c   : > { %v1544_v35 = vld [vmem:[%s1777_s7 + $0x80] sm:$0xff]   ;;  %1388 = vmatpush3.bf16.msra.mxu0 %v1543_v34  ;;  %v1547_v38 = vld [vmem:[%s1777_s7 + $0x88] sm:$0xff]   ;;  %v1550_v41 = vld [vmem:[%s1777_s7 + $0x90] sm:$0xff]  }
  0x3d   : > { %1467 = vmatprep.subr.bf16.mxu1 %v1544_v35  ;;  %1389 = vmatprep.subr.bf16.mxu0 %v1545_v36  ;;  %v1551_v42 = vld [vmem:[%s1777_s7 + $0x58] sm:$0xff]   ;;  %v1554_v45 = vld [vmem:[%s1777_s7 + $0x60] sm:$0xff]   ;;  %v1557_v48 = vld [vmem:[%s1777_s7 + $0x68] sm:$0xff]  }
  0x3e   : > { %1468 = vmatpush3.bf16.msra.mxu1 %v1544_v35  ;;  %v1552_v43 = vld [vmem:[%s1777_s7 + $0x18] sm:$0xff]   ;;  %v1556_v46 = vld [vmem:[%s1777_s7 + $0xa0] sm:$0xff]   ;;  %v1559_v49 = vld [vmem:[%s1777_s7 + $0xa8] sm:$0xff]  }
  0x3f   : > { %1469 = vmatprep.subr.bf16.mxu1 %v1547_v38  ;;  %v1553_v44 = vld [vmem:[%s1777_s7 + $0x98] sm:$0xff]   ;;  %v1555_v47 = vld [vmem:[%s1777_s7 + $0x20] sm:$0xff]   ;;  %v1558_v50 = vld [vmem:[%s1777_s7 + $0x28] sm:$0xff]  }
  0x40   : > { %1390 = vmatpush3.bf16.msra.mxu0 %v1546_v37  ;;  %v1560_v51 = vld [vmem:[%s1777_s7 + $0x70] sm:$0xff]   ;;  %v1563_v54 = vld [vmem:[%s1777_s7 + $0x78] sm:$0xff]   ;;  %v1566_v59 = vld [vmem:[%s1779_s8] ss:$12 sps:$4 sm:$0xff]  }
  0x41   : > { %1391 = vmatprep.subr.bf16.mxu0 %v1548_v39  ;;  %v1561_v52 = vld [vmem:[%s1777_s7 + $0x30] sm:$0xff]   ;;  %v1565_v55 = vld [vmem:[%s1777_s7 + $0xb8] sm:$0xff]   ;;  %v1570_v61 = vld [vmem:[%s1779_s8 + $0x20] ss:$12 sps:$4 sm:$0xff]  }
  0x42   : > { %1470 = vmatpush3.bf16.msra.mxu1 %v1547_v38  ;;  %v1562_v53 = vld [vmem:[%s1777_s7 + $0xb0] sm:$0xff]   ;;  %v1564_v58 = vld [vmem:[%s1777_s7 + $0x38] sm:$0xff]   ;;  %v1586_v5 = vld [vmem:[%s1779_s8 + $0x80] ss:$12 sps:$4 sm:$0xff]  }
  0x43   : > { %1471 = vmatprep.subr.bf16.mxu1 %v1550_v41  ;;  %v1568_v56 = vld [vmem:[%s1779_s8 + $0x4] ss:$12 sps:$4 sm:$0xff]   ;;  %v1569_v57 = vld [vmem:[%s1779_s8 + $0x8] ss:$12 sps:$4 sm:$0xff]   ;;  %v1579_v4 = vld [vmem:[%s1779_s8 + $0x4c] ss:$12 sps:$4 sm:$0xff]  }
  0x44   : > { %1392 = vmatpush3.bf16.msra.mxu0 %v1549_v40  ;;  %765 = vmatprep.mubr.bf16.mxu0 %v1568_v56  ;;  %v1571_v60 = vld [vmem:[%s1779_s8 + $0x1c] ss:$12 sps:$4 sm:$0xff]   ;;  %v1577_v62 = vld [vmem:[%s1779_s8 + $0x38] ss:$12 sps:$4 sm:$0xff]   ;;  %v1574_v0 = vld [vmem:[%s1779_s8 + $0x34] ss:$12 sps:$4 sm:$0xff]  }
  0x45   : > { %1393 = vmatprep.subr.bf16.mxu0 %v1551_v42  ;;  %1483 = vmatprep.mubr.bf16.mxu1 %v1569_v57  ;;  %v1573_v63 = vld [vmem:[%s1779_s8 + $0x18] ss:$12 sps:$4 sm:$0xff]   ;;  %v1578_v1 = vld [vmem:[%s1779_s8 + $0x50] ss:$12 sps:$4 sm:$0xff]   ;;  %v1585_v2 = vld [vmem:[%s1779_s8 + $0x68] ss:$12 sps:$4 sm:$0xff]  }
  0x46   : > { %1472 = vmatpush3.bf16.msra.mxu1 %v1550_v41  ;;  %v1576_v3 = vld [vmem:[%s1779_s8 + $0x30] ss:$12 sps:$4 sm:$0xff]   ;;  %v1593_v6 = vld [vmem:[%s1779_s8 + $0x98] ss:$12 sps:$4 sm:$0xff]   ;;  %v1581_v7 = vld [vmem:[%s1779_s8 + $0x48] ss:$12 sps:$4 sm:$0xff]  }
  0x47   : > { %1473 = vmatprep.subr.bf16.mxu1 %v1553_v44  ;;  %v1582_v8 = vld [vmem:[%s1779_s8 + $0x64] ss:$12 sps:$4 sm:$0xff]   ;;  %v1584_v10 = vld [vmem:[%s1779_s8 + $0x60] ss:$12 sps:$4 sm:$0xff]   ;;  %v1587_v11 = vld [vmem:[%s1779_s8 + $0x7c] ss:$12 sps:$4 sm:$0xff]  }
  0x48   : > { %1394 = vmatpush3.bf16.msra.mxu0 %v1552_v43  ;;  %v1594_v9 = vld [vmem:[%s1779_s8 + $0xb0] ss:$12 sps:$4 sm:$0xff]   ;;  %v1589_v12 = vld [vmem:[%s1779_s8 + $0x78] ss:$12 sps:$4 sm:$0xff]   ;;  %v1590_v13 = vld [vmem:[%s1779_s8 + $0x94] ss:$12 sps:$4 sm:$0xff]  }
  0x49   : > { %1395 = vmatprep.subr.bf16.mxu0 %v1554_v45  ;;  %v1592_v14 = vld [vmem:[%s1779_s8 + $0x90] ss:$12 sps:$4 sm:$0xff]   ;;  %v1595_v15 = vld [vmem:[%s1779_s8 + $0xac] ss:$12 sps:$4 sm:$0xff]   ;;  %v1597_v16 = vld [vmem:[%s1779_s8 + $0xa8] ss:$12 sps:$4 sm:$0xff]  }
  0x4a   : > { %1474 = vmatpush3.bf16.msra.mxu1 %v1553_v44  ;;  %v365_v23 = vld [vmem:[#allocation2] sm:$0xff]  ;;  %v366_v28 = vld [vmem:[#allocation2 + $0x8] sm:$0xff]  ;;  %v367_v38 = vld [vmem:[#allocation2 + $0x10] sm:$0xff] }
  0x4b   : > { %1475 = vmatprep.subr.bf16.mxu1 %v1556_v46  ;;  %v368_v44 = vld [vmem:[#allocation2 + $0x18] sm:$0xff] }
  0x4c   : > { %1396 = vmatpush3.bf16.msra.mxu0 %v1555_v47 }
  0x4d   : > { %1397 = vmatprep.subr.bf16.mxu0 %v1557_v48 }
  0x4e   : > { %1476 = vmatpush3.bf16.msra.mxu1 %v1556_v46 }
  0x4f   : > { %1477 = vmatprep.subr.bf16.mxu1 %v1559_v49 }
  0x50   : > { %1398 = vmatpush3.bf16.msra.mxu0 %v1558_v50 }
  0x51   : > { %1399 = vmatprep.subr.bf16.mxu0 %v1560_v51 }
  0x52   : > { %1478 = vmatpush3.bf16.msra.mxu1 %v1559_v49 }
  0x53   : > { %1479 = vmatprep.subr.bf16.mxu1 %v1562_v53 }
  0x54   : > { %1400 = vmatpush3.bf16.msra.mxu0 %v1561_v52 }
  0x55   : > { %1401 = vmatprep.subr.bf16.mxu0 %v1563_v54 }
  0x56   : > { %1480 = vmatpush3.bf16.msra.mxu1 %v1562_v53 }
  0x57   : > { %1481 = vmatprep.subr.bf16.mxu1 %v1565_v55 }
  0x58   : > { %1402 = vmatpush3.bf16.msra.mxu0 %v1564_v58 }
  0x5a   : > { %1482 = vmatpush3.bf16.msra.mxu1 %v1565_v55  ;;  %v369_v55 = vld [vmem:[#allocation2 + $0x20] sm:$0xff] }
  0x5b   : > { %766 = vmatmul.mubr.bf16.vlgmr.msra.gmra.mrb[0].mxu0 %v1566_v59 }
  0x5c   : > { %773 = vmatprep.mubr.bf16.mxu0 %v1571_v60  ;;  %v370_v60 = vld [vmem:[#allocation2 + $0x28] sm:$0xff] }
  0x5d   : > { %1484 = vmatmul.mubr.bf16.vlgmr.msra.gmra.mrb[0].mxu1 %v1570_v61 }
  0x5e   : > { %1487 = vmatprep.mubr.bf16.mxu1 %v1577_v62 }
  0x63   : > { %774 = vmatmul.mubr.bf16.gmra.mrb[4].mxu0 %v1573_v63 }
  0x64   : > { %781 = vmatprep.mubr.bf16.mxu0 %v1574_v0 }
  0x65   : > { %1488 = vmatmul.mubr.bf16.gmra.mrb[4].mxu1 %v1578_v1 }
  0x66   : > { %1491 = vmatprep.mubr.bf16.mxu1 %v1585_v2 }
  0x6b   : > { %782 = vmatmul.mubr.bf16.gmra.mrb[8].mxu0 %v1576_v3 }
  0x6c   : > { %789 = vmatprep.mubr.bf16.mxu0 %v1579_v4 }
  0x6d   : > { %1492 = vmatmul.mubr.bf16.gmra.mrb[8].mxu1 %v1586_v5 }
  0x6e   : > { %1495 = vmatprep.mubr.bf16.mxu1 %v1593_v6  ;;  %v371_v6 = vld [vmem:[#allocation2 + $0x30] sm:$0xff] }
  0x73   : > { %790 = vmatmul.mubr.bf16.gmra.mrb[12].mxu0 %v1581_v7 }
  0x74   : > { %797 = vmatprep.mubr.bf16.mxu0 %v1582_v8 }
  0x75   : > { %1496 = vmatmul.mubr.bf16.gmra.mrb[12].mxu1 %v1594_v9 }
  0x7b   : > { %798 = vmatmul.mubr.bf16.gmra.mrb[16].mxu0 %v1584_v10 }
  0x7c   : > { %805 = vmatprep.mubr.bf16.mxu0 %v1587_v11 }
  0x83   : > { %806 = vmatmul.mubr.bf16.gmra.mrb[20].mxu0 %v1589_v12  ;;  %v372_v12 = vld [vmem:[#allocation2 + $0x38] sm:$0xff] }
  0x84   : > { %813 = vmatprep.mubr.bf16.mxu0 %v1590_v13 }
  0x8b   : > { %814 = vmatmul.mubr.bf16.gmra.mrb[24].mxu0 %v1592_v14 }
  0x8c   : > { %821 = vmatprep.mubr.bf16.mxu0 %v1595_v15 }
  0x93   : > { %822 = vmatmul.mubr.bf16.gmra.mrb[28].mxu0 %v1597_v16 }
 0x12e   : > { %v1403_v17 = vpop.f32.mrb[0].mxu0 }
 0x12f   : > { %v1404_v18 = vpop.f32.mrb[1].mxu0 }
 0x130   : > { %v1405_v19 = vadd.f32 %v1404_v18, %v1403_v17  ;;  %v1406_v20 = vpop.f32.mrb[2].mxu0  ;;  %v1485_v21 = vpop.f32.mrb[0].mxu1 }
 0x131   : > { %v1407_v22 = vpop.f32.mrb[3].mxu0  ;;  %v864_v24 = vpop.f32.mrb[1].mxu1 }
 0x132   : > { %v1408_v25 = vadd.f32 %v1407_v22, %v1406_v20  ;;  %v865_v26 = vadd.f32 %v1405_v19, %v864_v24  ;;  %v1486_v27 = vpop.f32.mrb[2].mxu1  ;;  %v373_v22 = vld [vmem:[#allocation2 + $0x40] sm:$0xff] }
 0x133   : > { %v867_v29 = vpop.f32.mrb[3].mxu1 }
 0x134   : > { %v927_v30 = vadd.f32 %v865_v26, %v365_v23  ;;  %v868_v31 = vadd.f32 %v1408_v25, %v867_v29  ;;  %v374_v25 = vld [vmem:[#allocation2 + $0x48] sm:$0xff] }
 0x136   : > { %943 = vst [vmem:[#allocation2] sm:$0xff] %v927_v30  ;;  %v928_v32 = vadd.f32 %v868_v31, %v366_v28  ;;  %v1409_v33 = vpop.f32.mrb[4].mxu0 }
 0x137   : > { %v1410_v34 = vpop.f32.mrb[5].mxu0 }
 0x138   : > { %944 = vst [vmem:[#allocation2 + $0x8] sm:$0xff] %v928_v32  ;;  %v1411_v35 = vadd.f32 %v1410_v34, %v1409_v33  ;;  %v1412_v36 = vpop.f32.mrb[6].mxu0  ;;  %v1489_v37 = vpop.f32.mrb[4].mxu1  ;;  %v375_v33 = vld [vmem:[#allocation2 + $0x50] sm:$0xff] }
 0x139   : > { %v1413_v39 = vpop.f32.mrb[7].mxu0  ;;  %v880_v40 = vpop.f32.mrb[5].mxu1 }
 0x13a   : > { %v873_v41 = vadd.f32 %v1485_v21, %v1411_v35  ;;  %v1414_v42 = vadd.f32 %v1413_v39, %v1412_v36  ;;  %v1490_v43 = vpop.f32.mrb[6].mxu1 }
 0x13b   : > { %v883_v45 = vpop.f32.mrb[7].mxu1 }
 0x13c   : > { %v929_v46 = vadd.f32 %v873_v41, %v367_v38  ;;  %v876_v47 = vadd.f32 %v1486_v27, %v1414_v42 }
 0x13e   : > { %945 = vst [vmem:[#allocation2 + $0x10] sm:$0xff] %v929_v46  ;;  %v930_v48 = vadd.f32 %v876_v47, %v368_v44  ;;  %v1415_v49 = vpop.f32.mrb[8].mxu0  ;;  %v377_v46 = vld [vmem:[#allocation2 + $0x60] sm:$0xff] }
 0x13f   : > { %v1416_v50 = vpop.f32.mrb[9].mxu0 }
 0x140   : > { %946 = vst [vmem:[#allocation2 + $0x18] sm:$0xff] %v930_v48  ;;  %v1417_v51 = vadd.f32 %v1416_v50, %v1415_v49  ;;  %v1418_v52 = vpop.f32.mrb[10].mxu0  ;;  %v1493_v53 = vpop.f32.mrb[8].mxu1  ;;  %v378_v49 = vld [vmem:[#allocation2 + $0x68] sm:$0xff] }
 0x141   : > { %v1419_v54 = vpop.f32.mrb[11].mxu0  ;;  %v896_v56 = vpop.f32.mrb[9].mxu1 }
 0x142   : > { %v1420_v57 = vadd.f32 %v1419_v54, %v1418_v52  ;;  %v881_v58 = vadd.f32 %v1417_v51, %v880_v40  ;;  %v1494_v59 = vpop.f32.mrb[10].mxu1 }
 0x143   : > { %v899_v61 = vpop.f32.mrb[11].mxu1 }
 0x144   : > { %v931_v62 = vadd.f32 %v881_v58, %v369_v55  ;;  %v884_v63 = vadd.f32 %v1420_v57, %v883_v45  ;;  %v379_v57 = vld [vmem:[#allocation2 + $0x70] sm:$0xff] }
 0x146   : > { %947 = vst [vmem:[#allocation2 + $0x20] sm:$0xff] %v931_v62  ;;  %v932_v0 = vadd.f32 %v884_v63, %v370_v60  ;;  %v1421_v1 = vpop.f32.mrb[12].mxu0 }
 0x147   : > { %v1422_v2 = vpop.f32.mrb[13].mxu0 }
 0x148   : > { %948 = vst [vmem:[#allocation2 + $0x28] sm:$0xff] %v932_v0  ;;  %v1423_v3 = vadd.f32 %v1422_v2, %v1421_v1  ;;  %v1424_v4 = vpop.f32.mrb[14].mxu0  ;;  %v1497_v5 = vpop.f32.mrb[12].mxu1  ;;  %v963_v1 = vld [vmem:[#allocation2] sm:$0xff] (!%p1301_p11)  ;;  %v964_v2 = vld [vmem:[#allocation2 + $0x8] sm:$0xff] (!%p1301_p11) }
 0x149   : > { %v1425_v7 = vpop.f32.mrb[15].mxu0  ;;  %v912_v8 = vpop.f32.mrb[13].mxu1 }
 0x14a   : > { %v889_v9 = vadd.f32 %v1489_v37, %v1423_v3  ;;  %v1426_v10 = vadd.f32 %v1425_v7, %v1424_v4  ;;  %v1498_v11 = vpop.f32.mrb[14].mxu1  ;;  %v376_v37 = vld [vmem:[#allocation2 + $0x58] sm:$0xff]  ;;  %v1302_v3 = vld [vmem:[%s1875_s2] ss:$0 sm:$0xff] (!%p1301_p11)  ;;  %v965_v7 = vld [vmem:[#allocation2 + $0x10] sm:$0xff] (!%p1301_p11) }
 0x14b   : > { %v915_v13 = vpop.f32.mrb[15].mxu1  ;;  %v986_v4 = vadd.f32 (!%p1301_p11), %v1302_v3, %v963_v1 }
 0x14c   : > { %v933_v14 = vadd.f32 %v889_v9, %v371_v6  ;;  %v892_v15 = vadd.f32 %v1490_v43, %v1426_v10  ;;  %v987_v6 = vadd.f32 (!%p1301_p11), %v1302_v3, %v964_v2  ;;  %v988_v9 = vadd.f32 (!%p1301_p11), %v1302_v3, %v965_v7 }
 0x14e   : > { %949 = vst [vmem:[#allocation2 + $0x30] sm:$0xff] %v933_v14  ;;  %v934_v16 = vadd.f32 %v892_v15, %v372_v12  ;;  %v1427_v17 = vpop.f32.mrb[16].mxu0  ;;  %v1002_v15 = vmax.f32 (!%p1301_p11), %v986_v4, 0.0 }
 0x14f   : > { %v1428_v18 = vpop.f32.mrb[17].mxu0 }
 0x150   : > { %950 = vst [vmem:[#allocation2 + $0x38] sm:$0xff] %v934_v16  ;;  %v1429_v19 = vadd.f32 %v1428_v18, %v1427_v17  ;;  %v1430_v20 = vpop.f32.mrb[18].mxu0  ;;  %v1003_v16 = vmax.f32 (!%p1301_p11), %v987_v6, 0.0 }
 0x151   : > { %v1431_v21 = vpop.f32.mrb[19].mxu0 }
 0x152   : > { %v1432_v23 = vadd.f32 %v1431_v21, %v1430_v20  ;;  %v897_v24 = vadd.f32 %v1429_v19, %v896_v56 }
 0x154   : > { %v935_v26 = vadd.f32 %v897_v24, %v373_v22  ;;  %v900_v27 = vadd.f32 %v1432_v23, %v899_v61  ;;  %v380_v61 = vld [vmem:[#allocation2 + $0x78] sm:$0xff]  ;;  %v1004_v22 = vmax.f32 (!%p1301_p11), %v988_v9, 0.0 }
 0x156   : > { %951 = vst [vmem:[#allocation2 + $0x40] sm:$0xff] %v935_v26  ;;  %v936_v28 = vadd.f32 %v900_v27, %v374_v25  ;;  %v1433_v29 = vpop.f32.mrb[20].mxu0 }
 0x157   : > { %v1434_v30 = vpop.f32.mrb[21].mxu0  ;;  %v970_v14 = vld [vmem:[#allocation2 + $0x38] sm:$0xff] (!%p1301_p11) }
 0x158   : > { %952 = vst [vmem:[#allocation2 + $0x48] sm:$0xff] %v936_v28  ;;  %v1435_v31 = vadd.f32 %v1434_v30, %v1433_v29  ;;  %v1436_v32 = vpop.f32.mrb[22].mxu0  ;;  %v993_v25 = vadd.f32 (!%p1301_p11), %v1302_v3, %v970_v14  ;;  %v1343_v28 = vpack.c.bf16 (!%p1301_p11), %v1003_v16, %v1002_v15 }
 0x159   : > { %v1437_v34 = vpop.f32.mrb[23].mxu0 }
 0x15a   : > { %v905_v35 = vadd.f32 %v1493_v53, %v1435_v31  ;;  %v1438_v36 = vadd.f32 %v1437_v34, %v1436_v32  ;;  %v1009_v34 = vmax.f32 (!%p1301_p11), %v993_v25, 0.0  ;;  %1344 = vst [vmem:[%s1876_s3] sm:$0xff] (!%p1301_p11), %v1343_v28  }
 0x15c   : > { %v937_v38 = vadd.f32 %v905_v35, %v375_v33  ;;  %v908_v39 = vadd.f32 %v1494_v59, %v1438_v36 }
 0x15d   : > { %v971_v19 = vld [vmem:[#allocation2 + $0x40] sm:$0xff] (!%p1301_p11) }
 0x15e   : > { %953 = vst [vmem:[#allocation2 + $0x50] sm:$0xff] %v937_v38  ;;  %v938_v40 = vadd.f32 %v908_v39, %v376_v37  ;;  %v1439_v41 = vpop.f32.mrb[24].mxu0  ;;  %v994_v31 = vadd.f32 (!%p1301_p11), %v1302_v3, %v971_v19 }
 0x15f   : > { %v1440_v42 = vpop.f32.mrb[25].mxu0  ;;  %v972_v20 = vld [vmem:[#allocation2 + $0x48] sm:$0xff] (!%p1301_p11) }
 0x160   : > { %954 = vst [vmem:[#allocation2 + $0x58] sm:$0xff] %v938_v40  ;;  %v1441_v43 = vadd.f32 %v1440_v42, %v1439_v41  ;;  %v1442_v44 = vpop.f32.mrb[26].mxu0  ;;  %v995_v35 = vadd.f32 (!%p1301_p11), %v1302_v3, %v972_v20  ;;  %v1010_v40 = vmax.f32 (!%p1301_p11), %v994_v31, 0.0 }
 0x161   : > { %v1443_v45 = vpop.f32.mrb[27].mxu0 }
 0x162   : > { %v1444_v47 = vadd.f32 %v1443_v45, %v1442_v44  ;;  %v913_v48 = vadd.f32 %v1441_v43, %v912_v8  ;;  %v967_v8 = vld [vmem:[#allocation2 + $0x20] sm:$0xff] (!%p1301_p11)  ;;  %v1011_v44 = vmax.f32 (!%p1301_p11), %v995_v35, 0.0 }
 0x163   : > { %v990_v12 = vadd.f32 (!%p1301_p11), %v1302_v3, %v967_v8 }
 0x164   : > { %v939_v50 = vadd.f32 %v913_v48, %v377_v46  ;;  %v916_v51 = vadd.f32 %v1444_v47, %v915_v13  ;;  %v969_v13 = vld [vmem:[#allocation2 + $0x30] sm:$0xff] (!%p1301_p11) }
 0x165   : > { %v992_v18 = vadd.f32 (!%p1301_p11), %v1302_v3, %v969_v13  ;;  %v973_v21 = vld [vmem:[#allocation2 + $0x50] sm:$0xff] (!%p1301_p11)  ;;  %v1006_v24 = vmax.f32 (!%p1301_p11), %v990_v12, 0.0 }
 0x166   : > { %955 = vst [vmem:[#allocation2 + $0x60] sm:$0xff] %v939_v50  ;;  %v940_v52 = vadd.f32 %v916_v51, %v378_v49  ;;  %v1445_v53 = vpop.f32.mrb[28].mxu0  ;;  %v996_v36 = vadd.f32 (!%p1301_p11), %v1302_v3, %v973_v21  ;;  %v1363_v51 = vpack.c.bf16 (!%p1301_p11), %v1011_v44, %v1010_v40 }
 0x167   : > { %v1446_v54 = vpop.f32.mrb[29].mxu0  ;;  %v974_v26 = vld [vmem:[#allocation2 + $0x58] sm:$0xff] (!%p1301_p11)  ;;  %v1008_v30 = vmax.f32 (!%p1301_p11), %v992_v18, 0.0 }
 0x168   : > { %956 = vst [vmem:[#allocation2 + $0x68] sm:$0xff] %v940_v52  ;;  %v1447_v55 = vadd.f32 %v1446_v54, %v1445_v53  ;;  %v1448_v56 = vpop.f32.mrb[30].mxu0  ;;  %v997_v41 = vadd.f32 (!%p1301_p11), %v1302_v3, %v974_v26  ;;  %v1012_v45 = vmax.f32 (!%p1301_p11), %v996_v36, 0.0  ;;  %1383 = vst [vmem:[%s1876_s3 + $0x20] sm:$0xff] (!%p1301_p11), %v1363_v51  }
 0x169   : > { %v1449_v58 = vpop.f32.mrb[31].mxu0  ;;  %v1358_v43 = vpack.c.bf16 (!%p1301_p11), %v1009_v34, %v1008_v30 }
 0x16a   : > { %v921_v59 = vadd.f32 %v1497_v5, %v1447_v55  ;;  %v1450_v60 = vadd.f32 %v1449_v58, %v1448_v56  ;;  %962 = sbr.rel (%p1301_p11) target bundleno = 383 (0x17f), region = 66  ;;  %v966_v5 = vld [vmem:[#allocation2 + $0x18] sm:$0xff] (!%p1301_p11)  ;;  %v1013_v47 = vmax.f32 (!%p1301_p11), %v997_v41, 0.0 }
 0x16b   : > { %v989_v10 = vadd.f32 (!%p1301_p11), %v1302_v3, %v966_v5  ;;  %1382 = vst [vmem:[%s1876_s3 + $0x18] sm:$0xff] (!%p1301_p11), %v1358_v43  }
 0x16c   : > { %v941_v62 = vadd.f32 %v921_v59, %v379_v57  ;;  %v924_v63 = vadd.f32 %v1498_v11, %v1450_v60  ;;  %v968_v11 = vld [vmem:[#allocation2 + $0x28] sm:$0xff] (!%p1301_p11)  ;;  %v1368_v53 = vpack.c.bf16 (!%p1301_p11), %v1013_v47, %v1012_v45 }
 0x16d   : > { %v991_v17 = vadd.f32 (!%p1301_p11), %v1302_v3, %v968_v11  ;;  %v1005_v23 = vmax.f32 (!%p1301_p11), %v989_v10, 0.0  ;;  %v975_v27 = vld [vmem:[#allocation2 + $0x60] sm:$0xff] (!%p1301_p11) }
 0x16e   : > { %957 = vst [vmem:[#allocation2 + $0x70] sm:$0xff] %v941_v62  ;;  %v942_v0 = vadd.f32 %v924_v63, %v380_v61  ;;  %v998_v42 = vadd.f32 (!%p1301_p11), %v1302_v3, %v975_v27  ;;  %1384 = vst [vmem:[%s1876_s3 + $0x28] sm:$0xff] (!%p1301_p11), %v1368_v53  }
 0x16f   : > { %v1007_v29 = vmax.f32 (!%p1301_p11), %v991_v17, 0.0  ;;  %v976_v32 = vld [vmem:[#allocation2 + $0x68] sm:$0xff] (!%p1301_p11)  ;;  %v1348_v33 = vpack.c.bf16 (!%p1301_p11), %v1005_v23, %v1004_v22 }
 0x170   : > { %958 = vst [vmem:[#allocation2 + $0x78] sm:$0xff] %v942_v0  ;;  %v999_v46 = vadd.f32 (!%p1301_p11), %v1302_v3, %v976_v32  ;;  %v1014_v48 = vmax.f32 (!%p1301_p11), %v998_v42, 0.0 }
 0x171   : > { %v1353_v39 = vpack.c.bf16 %v1007_v29, %v1006_v24  ;;  %1380 = vst [vmem:[%s1876_s3 + $0x8] sm:$0xff] %v1348_v33  }
 0x172   : > { %v1015_v52 = vmax.f32 %v999_v46, 0.0 }
 0x173   : > { %1381 = vst [vmem:[%s1876_s3 + $0x10] sm:$0xff] %v1353_v39  }
 0x174   : > { %v1373_v56 = vpack.c.bf16 %v1015_v52, %v1014_v48 }
 0x175   : > { %v977_v37 = vld [vmem:[#allocation2 + $0x70] sm:$0xff] }
 0x176   : > { %v1000_v49 = vadd.f32 %v1302_v3, %v977_v37  ;;  %1385 = vst [vmem:[%s1876_s3 + $0x30] sm:$0xff] %v1373_v56  }
 0x177   : > { %v978_v38 = vld [vmem:[#allocation2 + $0x78] sm:$0xff] }
 0x178   : > { %v1001_v50 = vadd.f32 %v1302_v3, %v978_v38  ;;  %v1016_v54 = vmax.f32 %v1000_v49, 0.0 }
 0x17a   : > { %v1017_v55 = vmax.f32 %v1001_v50, 0.0 }
 0x17c   : > { %v1378_v57 = vpack.c.bf16 %v1017_v55, %v1016_v54 }
 0x17e   : > { %1386 = vst [vmem:[%s1876_s3 + $0x38] sm:$0xff] %v1378_v57  }
 0x17f PF: > { %s13_s16 = sadd.s32 1, %s1636_s16   ;;  %s1877_s12 = smov %s1624_s13 }
 0x180   : > { %p10_p12 = scmp.ge.s32.totalorder %s13_s16, 5   ;;  %s1878_s13 = smov %s1694_s20 }
 0x181   : > { %s1879_s14 = smov %s1632_s15  ;;  %s1880_s15 = smov %s1882_s17 }
 0x182   :  { %12 = sbr.rel (!%p10_p12) target bundleno = 3 (0x3), region = 113 }

// kernel: resnet34_forward.47
= control target key start
LH: loop header
LB: loop body
LE: loop exit
PB: predicated region body
PF: predicated region fallthrough
CT: control target
= control target key end

     0   :  { %s335_s1 = inlined_call_operand.vmem [shape: bf16[128,128], index: 1, kind: input, shape index: {}]   ;;  %s336_s0 = inlined_call_operand.vmem [shape: bf16[32,128], index: 0, kind: input, shape index: {}]   ;;  %s337_s2 = inlined_call_operand.vmem [shape: f32[1,128], index: 2, kind: input, shape index: {}]   ;;  %s338_s3 = inlined_call_operand.vmem [shape: bf16[32,128], index: 3, kind: output, shape index: {}]  }
   0x1   :  { %v266_v0 = vld [vmem:[%s335_s1] sm:$0xff]   ;;  %v267_v1 = vld [vmem:[%s335_s1 + $0x8] sm:$0xff]   ;;  %v268_v2 = vld [vmem:[%s335_s1 + $0x10] sm:$0xff]  }
   0x2   :  { %246 = vmatprep.subr.bf16.mxu0 %v266_v0  ;;  %v269_v3 = vld [vmem:[%s335_s1 + $0x18] sm:$0xff]   ;;  %v274_v4 = vld [vmem:[%s336_s0] sm:$0xff]   ;;  %v271_v6 = vld [vmem:[%s335_s1 + $0x28] sm:$0xff]  }
   0x3   :  { %247 = vmatpush3.bf16.msra.mxu0 %v266_v0  ;;  %262 = vmatprep.mubr.bf16.mxu0 %v274_v4  ;;  %v270_v5 = vld [vmem:[%s335_s1 + $0x20] sm:$0xff]   ;;  %v272_v7 = vld [vmem:[%s335_s1 + $0x30] sm:$0xff]   ;;  %v273_v8 = vld [vmem:[%s335_s1 + $0x38] sm:$0xff]  }
   0x4   :  { %248 = vmatprep.subr.bf16.mxu0 %v267_v1  ;;  %v275_v9 = vld [vmem:[%s336_s0 + $0x8] sm:$0xff]   ;;  %v216_v11 = vld [vmem:[%s337_s2] ss:$0 sm:$0xff] }
   0x7   :  { %249 = vmatpush3.bf16.msra.mxu0 %v267_v1 }
   0x8   :  { %250 = vmatprep.subr.bf16.mxu0 %v268_v2 }
   0xb   :  { %251 = vmatpush3.bf16.msra.mxu0 %v268_v2 }
   0xc   :  { %252 = vmatprep.subr.bf16.mxu0 %v269_v3 }
   0xf   :  { %253 = vmatpush3.bf16.msra.mxu0 %v269_v3 }
  0x10   :  { %254 = vmatprep.subr.bf16.mxu0 %v270_v5 }
  0x13   :  { %255 = vmatpush3.bf16.msra.mxu0 %v270_v5 }
  0x14   :  { %256 = vmatprep.subr.bf16.mxu0 %v271_v6 }
  0x17   :  { %257 = vmatpush3.bf16.msra.mxu0 %v271_v6 }
  0x18   :  { %258 = vmatprep.subr.bf16.mxu0 %v272_v7 }
  0x1b   :  { %259 = vmatpush3.bf16.msra.mxu0 %v272_v7 }
  0x1c   :  { %260 = vmatprep.subr.bf16.mxu0 %v273_v8 }
  0x1f   :  { %261 = vmatpush3.bf16.msra.mxu0 %v273_v8 }
  0x22   :  { %263 = vmatmul.mubr.bf16.vlgmr.msra.gmra.mrb[0].mxu0 %v275_v9 }
  0xf5   :  { %v264_v10 = vpop.f32.mrb[0].mxu0 }
  0xf6   :  { %v141_v12 = vpop.f32.mrb[1].mxu0  ;;  %v180_v14 = vadd.f32 %v264_v10, %v216_v11 }
  0xf7   :  { %v265_v13 = vpop.f32.mrb[2].mxu0  ;;  %v178_v17 = vadd.f32 %v216_v11, %v141_v12 }
  0xf8   :  { %v181_v15 = vadd.f32 %v265_v13, %v216_v11  ;;  %v144_v16 = vpop.f32.mrb[3].mxu0 }
  0xf9   :  { %v179_v18 = vadd.f32 %v216_v11, %v144_v16 }
  0xfa   :  { %v233_v19 = vpack.c.bf16 %v181_v15, %v180_v14 }
  0xfb   :  { %v228_v20 = vpack.c.bf16 %v179_v18, %v178_v17 }
  0xfc   :  { %235 = vst [vmem:[%s338_s3 + $0x8] sm:$0xff] %v233_v19  }
  0xfd   :  { %229 = vst [vmem:[%s338_s3] sm:$0xff] %v228_v20  }

// kernel: resnet34_forward.46
= control target key start
LH: loop header
LB: loop body
LE: loop exit
PB: predicated region body
PF: predicated region fallthrough
CT: control target
= control target key end

     0   :  { %s1071_s12 = smov 0   ;;  %s1073_s13 = smov 0   ;;  %s1181_s0 = inlined_call_operand.vmem [shape: bf16[32,1152], index: 0, kind: input, shape index: {}]   ;;  %s1182_s1 = inlined_call_operand.vmem [shape: bf16[1152,128], index: 1, kind: input, shape index: {}]   ;;  %s1183_s2 = inlined_call_operand.vmem [shape: f32[1,128], index: 2, kind: input, shape index: {}]   ;;  %s1184_s3 = inlined_call_operand.vmem [shape: bf16[32,128], index: 3, kind: output, shape index: {}]  }
   0x1   :  { %s1075_s14 = smov 0   ;;  %s1077_s15 = smov 0  }
   0x2   :  { %s1079_s16 = smov 0  }
   0x3 LB: > { %s25_s17 = sadd.s32 1, %s1044_s15  ;;  %p48_p1 = scmp.ne.s32.totalorder %s1036_s13, %s1032_s12  ;;  %s1048_s16 = sphi %s1079_s16, %s13_s16   ;;  %s1044_s15 = sphi %s1077_s15, %s1188_s15   ;;  %s1040_s14 = sphi %s1075_s14, %s1187_s14   ;;  %s1036_s13 = sphi %s1073_s13, %s1186_s13   ;;  %s1032_s12 = sphi %s1071_s12, %s1185_s12  }
   0x4   : > { %p26_p0 = scmp.ge.s32.totalorder %s25_s17, 3  ;;  %p49_p2 = scmp.eq.s32.totalorder %s1048_s16, 0 }
   0x5   : > { %s41_s19 = sadd.s32 1, %s1036_s13  ;;  %p808_p5 = scmp.ge.s32.totalorder %s1048_s16, 3 }
   0x6   : > { %s1190_s17 = smov (%p26_p0, %s25_s17), 0  ;;  %p50_p3 = por %p49_p2, %p48_p1 }
   0x7   : > { %s37_s18 = ssub.s32 %s1044_s15, %s1190_s17  ;;  %162 = sbr.rel (%p808_p5) target bundleno = 23 (0x17), region = 20 }
   0x8   : > { %p39_p4 = scmp.eq.s32.totalorder %s37_s18, 0 }
   0xa   : > { %s1106_s20 = scalar_select %p39_p4, %s1036_s13, %s41_s19  }
   0xe   : > { %165 = sbr.rel (!%p50_p3) target bundleno = 23 (0x17), region = 24  ;;  %s167_s21 = sand.u32 (%p50_p3), 1, %s1036_s13  }
   0xf   : > { %s861_s22 = smul.u32 (%p50_p3), 12, %s1044_s15 }
  0x10   : > { %s935_s23 = smul.u32 (%p50_p3), 48, %s167_s21 }
  0x11   : > { %s175_s26 = scalar_lea.vmem (%p50_p3), %s1181_s0, %s861_s22 }
  0x12   : > { %v190_v0 = vld [vmem:[%s175_s26] sm:$0xff] (%p50_p3)  ;;  %v194_v2 = vld [vmem:[%s175_s26 + $0x48] sm:$0xff] (%p50_p3)  ;;  %s169_s27 = scalar_lea.vmem (%p50_p3), [#allocation3], %s935_s23  ;;  %v814_v6 = vld [vmem:[%s175_s26 + $0x50] sm:$0xf] (%p50_p3) }
  0x13   : > { %v192_v1 = vld [vmem:[%s175_s26 + $0x24] sm:$0xff] (%p50_p3)  ;;  %191 = vst [vmem:[%s169_s27] sm:$0xff] (%p50_p3), %v190_v0  ;;  %195 = vst [vmem:[%s169_s27 + $0x18] sm:$0xff] (%p50_p3), %v194_v2  ;;  %v196_v3 = vld [vmem:[%s175_s26 + $0x6c] sm:$0xff] (%p50_p3) }
  0x14   : > { %193 = vst [vmem:[%s169_s27 + $0xc] sm:$0xff] (%p50_p3), %v192_v1  ;;  %v810_v4 = vld [vmem:[%s175_s26 + $0x8] sm:$0xf] (%p50_p3)  ;;  %v812_v5 = vld [vmem:[%s175_s26 + $0x2c] sm:$0xf] (%p50_p3)  ;;  %197 = vst [vmem:[%s169_s27 + $0x24] sm:$0xff] (%p50_p3), %v196_v3 }
  0x15   : > { %811 = vst [vmem:[%s169_s27 + $0x8] sm:$0xf] %v810_v4  ;;  %813 = vst [vmem:[%s169_s27 + $0x14] sm:$0xf] %v812_v5  ;;  %v816_v7 = vld [vmem:[%s175_s26 + $0x74] sm:$0xf] }
  0x16   : > { %815 = vst [vmem:[%s169_s27 + $0x20] sm:$0xf] %v814_v6  ;;  %817 = vst [vmem:[%s169_s27 + $0x2c] sm:$0xf] %v816_v7 }
  0x17 PF: > { %p818_p6 = scmp.ge.s32.totalorder %s1048_s16, 1  ;;  %p229_p7 = scmp.lt.s32.totalorder %s1048_s16, 4 }
  0x19   : > { %p230_p8 = pnand %p818_p6, %p229_p7 }
  0x1a   : > { %s236_s28 = sand.u32 (!%p230_p8), 1, %s1032_s12   ;;  %s275_s29 = smul.u32 (!%p230_p8), 48, %s1040_s14 }
  0x1b   : > { %233 = sbr.rel (%p230_p8) target bundleno = 318 (0x13e), region = 54  ;;  %p820_p10 = scmp.ne.s32.totalorder (!%p230_p8), %s1040_s14, 0 }
  0x1c   : > { %s936_s30 = smul.u32 (!%p230_p8), 48, %s236_s28  ;;  %p276_p9 = scmp.lt.s32.totalorder (!%p230_p8), %s275_s29, 143 }
  0x1e   : > { %s1123_s8 = scalar_lea.vmem (!%p230_p8), [#allocation3], %s936_s30 }
  0x22   : > { %s1192_s29 = smov (!%p276_p9, %s275_s29), 143  ;;  %300 = sbr.rel (%p820_p10) target bundleno = 41 (0x29), region = 62 }
  0x23   : > { %s819_s4 = sshll.u32 %s1192_s29, 2  ;;  %v1050_v8 = vmov (!%p820_p10), 0.0  }
  0x24   : > { %s1121_s7 = scalar_lea.vmem %s1182_s1, %s819_s4  ;;  %301 = vst [vmem:[#allocation2] sm:$0xff] (!%p820_p10), %v1050_v8  ;;  %302 = vst [vmem:[#allocation2 + $0x8] sm:$0xff] (!%p820_p10), %v1050_v8 }
  0x25   : > { %303 = vst [vmem:[#allocation2 + $0x10] sm:$0xff] (!%p820_p10), %v1050_v8  ;;  %304 = vst [vmem:[#allocation2 + $0x18] sm:$0xff] (!%p820_p10), %v1050_v8 }
  0x29 PF: > { %v978_v9 = vld [vmem:[%s1121_s7 + $0x40] sm:$0xff]   ;;  %v981_v12 = vld [vmem:[%s1121_s7 + $0x48] sm:$0xff]   ;;  %v984_v15 = vld [vmem:[%s1121_s7 + $0x50] sm:$0xff]   ;;  %p851_p11 = scmp.ne.s32.totalorder %s1040_s14, 2 }
  0x2a   : > { %v979_v10 = vld [vmem:[%s1121_s7] sm:$0xff]   ;;  %877 = vmatprep.subr.bf16.mxu0 %v978_v9  ;;  %v982_v13 = vld [vmem:[%s1121_s7 + $0x8] sm:$0xff]   ;;  %v985_v16 = vld [vmem:[%s1121_s7 + $0x10] sm:$0xff]  }
  0x2b   : > { %v980_v11 = vld [vmem:[%s1121_s7 + $0x80] sm:$0xff]   ;;  %878 = vmatpush3.bf16.msra.mxu0 %v979_v10  ;;  %v983_v14 = vld [vmem:[%s1121_s7 + $0x88] sm:$0xff]   ;;  %v986_v17 = vld [vmem:[%s1121_s7 + $0x90] sm:$0xff]  }
  0x2c   : > { %915 = vmatprep.subr.bf16.mxu1 %v980_v11  ;;  %879 = vmatprep.subr.bf16.mxu0 %v981_v12  ;;  %v987_v18 = vld [vmem:[%s1121_s7 + $0x58] sm:$0xff]   ;;  %v990_v21 = vld [vmem:[%s1121_s7 + $0x60] sm:$0xff]   ;;  %v993_v24 = vld [vmem:[%s1121_s7 + $0x68] sm:$0xff]  }
  0x2d   : > { %916 = vmatpush3.bf16.msra.mxu1 %v980_v11  ;;  %v988_v19 = vld [vmem:[%s1121_s7 + $0x18] sm:$0xff]   ;;  %v992_v22 = vld [vmem:[%s1121_s7 + $0xa0] sm:$0xff]   ;;  %v995_v25 = vld [vmem:[%s1121_s7 + $0xa8] sm:$0xff]  }
  0x2e   : > { %917 = vmatprep.subr.bf16.mxu1 %v983_v14  ;;  %v989_v20 = vld [vmem:[%s1121_s7 + $0x98] sm:$0xff]   ;;  %v991_v23 = vld [vmem:[%s1121_s7 + $0x20] sm:$0xff]   ;;  %v994_v26 = vld [vmem:[%s1121_s7 + $0x28] sm:$0xff]  }
  0x2f   : > { %880 = vmatpush3.bf16.msra.mxu0 %v982_v13  ;;  %v996_v27 = vld [vmem:[%s1121_s7 + $0x70] sm:$0xff]   ;;  %v999_v30 = vld [vmem:[%s1121_s7 + $0x78] sm:$0xff]   ;;  %v305_v45 = vld [vmem:[#allocation2] sm:$0xff] }
  0x30   : > { %881 = vmatprep.subr.bf16.mxu0 %v984_v15  ;;  %v997_v28 = vld [vmem:[%s1121_s7 + $0x30] sm:$0xff]   ;;  %v1001_v31 = vld [vmem:[%s1121_s7 + $0xb8] sm:$0xff]   ;;  %v306_v50 = vld [vmem:[#allocation2 + $0x8] sm:$0xff] }
  0x31   : > { %918 = vmatpush3.bf16.msra.mxu1 %v983_v14  ;;  %v998_v29 = vld [vmem:[%s1121_s7 + $0xb0] sm:$0xff]   ;;  %v1000_v34 = vld [vmem:[%s1121_s7 + $0x38] sm:$0xff]   ;;  %v852_v5 = vld [vmem:[%s1183_s2] ss:$0 sm:$0xff] (!%p851_p11) }
  0x32   : > { %919 = vmatprep.subr.bf16.mxu1 %v986_v17  ;;  %v1004_v32 = vld [vmem:[%s1123_s8 + $0x4] ss:$12 sps:$4 sm:$0xff]   ;;  %v1005_v33 = vld [vmem:[%s1123_s8 + $0x8] ss:$12 sps:$4 sm:$0xff]   ;;  %v1002_v35 = vld [vmem:[%s1123_s8] ss:$12 sps:$4 sm:$0xff]  }
  0x33   : > { %882 = vmatpush3.bf16.msra.mxu0 %v985_v16  ;;  %573 = vmatprep.mubr.bf16.mxu0 %v1004_v32  ;;  %v1007_v36 = vld [vmem:[%s1123_s8 + $0x1c] ss:$12 sps:$4 sm:$0xff]   ;;  %v1006_v37 = vld [vmem:[%s1123_s8 + $0x20] ss:$12 sps:$4 sm:$0xff]   ;;  %v1009_v38 = vld [vmem:[%s1123_s8 + $0x18] ss:$12 sps:$4 sm:$0xff]  }
  0x34   : > { %883 = vmatprep.subr.bf16.mxu0 %v987_v18  ;;  %931 = vmatprep.mubr.bf16.mxu1 %v1005_v33  ;;  %v307_v59 = vld [vmem:[#allocation2 + $0x10] sm:$0xff]  ;;  %v308_v63 = vld [vmem:[#allocation2 + $0x18] sm:$0xff] }
  0x35   : > { %920 = vmatpush3.bf16.msra.mxu1 %v986_v17 }
  0x36   : > { %921 = vmatprep.subr.bf16.mxu1 %v989_v20 }
  0x37   : > { %884 = vmatpush3.bf16.msra.mxu0 %v988_v19 }
  0x38   : > { %885 = vmatprep.subr.bf16.mxu0 %v990_v21 }
  0x39   : > { %922 = vmatpush3.bf16.msra.mxu1 %v989_v20 }
  0x3a   : > { %923 = vmatprep.subr.bf16.mxu1 %v992_v22 }
  0x3b   : > { %886 = vmatpush3.bf16.msra.mxu0 %v991_v23 }
  0x3c   : > { %887 = vmatprep.subr.bf16.mxu0 %v993_v24 }
  0x3d   : > { %924 = vmatpush3.bf16.msra.mxu1 %v992_v22 }
  0x3e   : > { %925 = vmatprep.subr.bf16.mxu1 %v995_v25 }
  0x3f   : > { %888 = vmatpush3.bf16.msra.mxu0 %v994_v26 }
  0x40   : > { %889 = vmatprep.subr.bf16.mxu0 %v996_v27 }
  0x41   : > { %926 = vmatpush3.bf16.msra.mxu1 %v995_v25 }
  0x42   : > { %927 = vmatprep.subr.bf16.mxu1 %v998_v29 }
  0x43   : > { %890 = vmatpush3.bf16.msra.mxu0 %v997_v28 }
  0x44   : > { %891 = vmatprep.subr.bf16.mxu0 %v999_v30 }
  0x45   : > { %928 = vmatpush3.bf16.msra.mxu1 %v998_v29 }
  0x46   : > { %929 = vmatprep.subr.bf16.mxu1 %v1001_v31 }
  0x47   : > { %892 = vmatpush3.bf16.msra.mxu0 %v1000_v34 }
  0x49   : > { %930 = vmatpush3.bf16.msra.mxu1 %v1001_v31 }
  0x4a   : > { %574 = vmatmul.mubr.bf16.vlgmr.msra.gmra.mrb[0].mxu0 %v1002_v35 }
  0x4b   : > { %581 = vmatprep.mubr.bf16.mxu0 %v1007_v36 }
  0x4c   : > { %932 = vmatmul.mubr.bf16.vlgmr.msra.gmra.mrb[0].mxu1 %v1006_v37 }
  0x52   : > { %582 = vmatmul.mubr.bf16.gmra.mrb[4].mxu0 %v1009_v38 }
 0x11d   : > { %v893_v39 = vpop.f32.mrb[0].mxu0 }
 0x11e   : > { %v894_v40 = vpop.f32.mrb[1].mxu0 }
 0x11f   : > { %v895_v41 = vadd.f32 %v894_v40, %v893_v39  ;;  %v896_v42 = vpop.f32.mrb[2].mxu0  ;;  %v933_v43 = vpop.f32.mrb[0].mxu1 }
 0x120   : > { %v897_v44 = vpop.f32.mrb[3].mxu0  ;;  %v624_v46 = vpop.f32.mrb[1].mxu1 }
 0x121   : > { %v898_v47 = vadd.f32 %v897_v44, %v896_v42  ;;  %v625_v48 = vadd.f32 %v895_v41, %v624_v46  ;;  %v934_v49 = vpop.f32.mrb[2].mxu1 }
 0x122   : > { %v627_v51 = vpop.f32.mrb[3].mxu1 }
 0x123   : > { %v639_v52 = vadd.f32 %v625_v48, %v305_v45  ;;  %v628_v53 = vadd.f32 %v898_v47, %v627_v51 }
 0x125   : > { %643 = vst [vmem:[#allocation2] sm:$0xff] %v639_v52  ;;  %v640_v54 = vadd.f32 %v628_v53, %v306_v50  ;;  %v899_v55 = vpop.f32.mrb[4].mxu0 }
 0x126   : > { %v900_v56 = vpop.f32.mrb[5].mxu0 }
 0x127   : > { %644 = vst [vmem:[#allocation2 + $0x8] sm:$0xff] %v640_v54  ;;  %v901_v57 = vadd.f32 %v900_v56, %v899_v55  ;;  %v902_v58 = vpop.f32.mrb[6].mxu0 }
 0x128   : > { %v903_v60 = vpop.f32.mrb[7].mxu0 }
 0x129   : > { %v633_v61 = vadd.f32 %v933_v43, %v901_v57  ;;  %v904_v62 = vadd.f32 %v903_v60, %v902_v58  ;;  %650 = sbr.rel (%p851_p11) target bundleno = 318 (0x13e), region = 66 }
 0x12b   : > { %v641_v0 = vadd.f32 %v633_v61, %v307_v59  ;;  %v636_v1 = vadd.f32 %v934_v49, %v904_v62 }
 0x12c   : > { %v651_v3 = vld [vmem:[#allocation2] sm:$0xff] (!%p851_p11) }
 0x12d   : > { %645 = vst [vmem:[#allocation2 + $0x10] sm:$0xff] %v641_v0  ;;  %v642_v2 = vadd.f32 %v636_v1, %v308_v63  ;;  %v662_v6 = vadd.f32 (!%p851_p11), %v852_v5, %v651_v3 }
 0x12e   : > { %v652_v4 = vld [vmem:[#allocation2 + $0x8] sm:$0xff] (!%p851_p11) }
 0x12f   : > { %646 = vst [vmem:[#allocation2 + $0x18] sm:$0xff] %v642_v2  ;;  %v663_v7 = vadd.f32 (!%p851_p11), %v852_v5, %v652_v4  ;;  %v666_v12 = vmax.f32 (!%p851_p11), %v662_v6, 0.0 }
 0x131   : > { %v667_v13 = vmax.f32 %v663_v7, 0.0 }
 0x133   : > { %v869_v16 = vpack.c.bf16 %v667_v13, %v666_v12 }
 0x134   : > { %v653_v8 = vld [vmem:[#allocation2 + $0x10] sm:$0xff] }
 0x135   : > { %v664_v10 = vadd.f32 %v852_v5, %v653_v8  ;;  %870 = vst [vmem:[%s1184_s3] sm:$0xff] %v869_v16  }
 0x136   : > { %v654_v9 = vld [vmem:[#allocation2 + $0x18] sm:$0xff] }
 0x137   : > { %v665_v11 = vadd.f32 %v852_v5, %v654_v9  ;;  %v668_v14 = vmax.f32 %v664_v10, 0.0 }
 0x139   : > { %v669_v15 = vmax.f32 %v665_v11, 0.0 }
 0x13b   : > { %v874_v17 = vpack.c.bf16 %v669_v15, %v668_v14 }
 0x13d   : > { %876 = vst [vmem:[%s1184_s3 + $0x8] sm:$0xff] %v874_v17  }
 0x13e PF: > { %s13_s16 = sadd.s32 1, %s1048_s16   ;;  %s1185_s12 = smov %s1036_s13 }
 0x13f   : > { %p10_p12 = scmp.ge.s32.totalorder %s13_s16, 5   ;;  %s1186_s13 = smov %s1106_s20 }
 0x140   : > { %s1187_s14 = smov %s1044_s15  ;;  %s1188_s15 = smov %s1190_s17 }
 0x141   :  { %12 = sbr.rel (!%p10_p12) target bundleno = 3 (0x3), region = 113 }

// kernel: resnet34_forward.48
= control target key start
LH: loop header
LB: loop body
LE: loop exit
PB: predicated region body
PF: predicated region fallthrough
CT: control target
= control target key end

     0   :  { %s1176_s15 = smov 0   ;;  %s1178_s16 = smov 0   ;;  %s1292_s0 = inlined_call_operand.vmem [shape: bf16[32,1152], index: 0, kind: input, shape index: {}]   ;;  %s1293_s1 = inlined_call_operand.vmem [shape: bf16[1152,128], index: 1, kind: input, shape index: {}]   ;;  %s1294_s2 = inlined_call_operand.vmem [shape: f32[1,128], index: 2, kind: input, shape index: {}]   ;;  %s1295_s3 = inlined_call_operand.vmem [shape: bf16[32,128], index: 3, kind: input, shape index: {}]   ;;  %s1296_s4 = inlined_call_operand.vmem [shape: bf16[32,128], index: 4, kind: output, shape index: {}]  }
   0x1   :  { %s1180_s17 = smov 0   ;;  %s1182_s18 = smov 0  }
   0x2   :  { %s1184_s19 = smov 0  }
   0x3 LB: > { %s26_s20 = sadd.s32 1, %s1144_s18  ;;  %p49_p1 = scmp.ne.s32.totalorder %s1136_s16, %s1132_s15  ;;  %s1148_s19 = sphi %s1184_s19, %s14_s19   ;;  %s1144_s18 = sphi %s1182_s18, %s1300_s18   ;;  %s1140_s17 = sphi %s1180_s17, %s1299_s17   ;;  %s1136_s16 = sphi %s1178_s16, %s1298_s16   ;;  %s1132_s15 = sphi %s1176_s15, %s1297_s15  }
   0x4   : > { %p27_p0 = scmp.ge.s32.totalorder %s26_s20, 3  ;;  %p50_p2 = scmp.eq.s32.totalorder %s1148_s19, 0 }
   0x5   : > { %s42_s22 = sadd.s32 1, %s1136_s16  ;;  %p899_p5 = scmp.ge.s32.totalorder %s1148_s19, 3 }
   0x6   : > { %s1302_s20 = smov (%p27_p0, %s26_s20), 0  ;;  %p51_p3 = por %p50_p2, %p49_p1 }
   0x7   : > { %s38_s21 = ssub.s32 %s1144_s18, %s1302_s20  ;;  %203 = sbr.rel (%p899_p5) target bundleno = 23 (0x17), region = 24 }
   0x8   : > { %p40_p4 = scmp.eq.s32.totalorder %s38_s21, 0 }
   0xa   : > { %s1211_s23 = scalar_select %p40_p4, %s1136_s16, %s42_s22  }
   0xe   : > { %206 = sbr.rel (!%p51_p3) target bundleno = 23 (0x17), region = 28  ;;  %s208_s24 = sand.u32 (%p51_p3), 1, %s1136_s16  }
   0xf   : > { %s952_s25 = smul.u32 (%p51_p3), 12, %s1144_s18 }
  0x10   : > { %s1035_s26 = smul.u32 (%p51_p3), 48, %s208_s24 }
  0x11   : > { %s216_s29 = scalar_lea.vmem (%p51_p3), %s1292_s0, %s952_s25 }
  0x12   : > { %v231_v0 = vld [vmem:[%s216_s29] sm:$0xff] (%p51_p3)  ;;  %v235_v2 = vld [vmem:[%s216_s29 + $0x48] sm:$0xff] (%p51_p3)  ;;  %s210_s30 = scalar_lea.vmem (%p51_p3), [#allocation3], %s1035_s26  ;;  %v905_v6 = vld [vmem:[%s216_s29 + $0x50] sm:$0xf] (%p51_p3) }
  0x13   : > { %v233_v1 = vld [vmem:[%s216_s29 + $0x24] sm:$0xff] (%p51_p3)  ;;  %232 = vst [vmem:[%s210_s30] sm:$0xff] (%p51_p3), %v231_v0  ;;  %236 = vst [vmem:[%s210_s30 + $0x18] sm:$0xff] (%p51_p3), %v235_v2  ;;  %v237_v3 = vld [vmem:[%s216_s29 + $0x6c] sm:$0xff] (%p51_p3) }
  0x14   : > { %234 = vst [vmem:[%s210_s30 + $0xc] sm:$0xff] (%p51_p3), %v233_v1  ;;  %v901_v4 = vld [vmem:[%s216_s29 + $0x8] sm:$0xf] (%p51_p3)  ;;  %v903_v5 = vld [vmem:[%s216_s29 + $0x2c] sm:$0xf] (%p51_p3)  ;;  %238 = vst [vmem:[%s210_s30 + $0x24] sm:$0xff] (%p51_p3), %v237_v3 }
  0x15   : > { %902 = vst [vmem:[%s210_s30 + $0x8] sm:$0xf] %v901_v4  ;;  %904 = vst [vmem:[%s210_s30 + $0x14] sm:$0xf] %v903_v5  ;;  %v907_v7 = vld [vmem:[%s216_s29 + $0x74] sm:$0xf] }
  0x16   : > { %906 = vst [vmem:[%s210_s30 + $0x20] sm:$0xf] %v905_v6  ;;  %908 = vst [vmem:[%s210_s30 + $0x2c] sm:$0xf] %v907_v7 }
  0x17 PF: > { %p909_p6 = scmp.ge.s32.totalorder %s1148_s19, 1  ;;  %p270_p7 = scmp.lt.s32.totalorder %s1148_s19, 4 }
  0x19   : > { %p271_p8 = pnand %p909_p6, %p270_p7 }
  0x1a   : > { %s277_s5 = sand.u32 (!%p271_p8), 1, %s1132_s15   ;;  %s326_s6 = smul.u32 (!%p271_p8), 48, %s1140_s17 }
  0x1b   : > { %274 = sbr.rel (%p271_p8) target bundleno = 320 (0x140), region = 58  ;;  %p911_p10 = scmp.ne.s32.totalorder (!%p271_p8), %s1140_s17, 0 }
  0x1c   : > { %s1036_s7 = smul.u32 (!%p271_p8), 48, %s277_s5  ;;  %p327_p9 = scmp.lt.s32.totalorder (!%p271_p8), %s326_s6, 143 }
  0x1e   : > { %s1228_s12 = scalar_lea.vmem (!%p271_p8), [#allocation3], %s1036_s7 }
  0x22   : > { %s1304_s6 = smov (!%p327_p9, %s326_s6), 143  ;;  %360 = sbr.rel (%p911_p10) target bundleno = 41 (0x29), region = 66 }
  0x23   : > { %s910_s8 = sshll.u32 %s1304_s6, 2  ;;  %v1150_v8 = vmov (!%p911_p10), 0.0  }
  0x24   : > { %s1226_s11 = scalar_lea.vmem %s1293_s1, %s910_s8  ;;  %361 = vst [vmem:[#allocation2] sm:$0xff] (!%p911_p10), %v1150_v8  ;;  %362 = vst [vmem:[#allocation2 + $0x8] sm:$0xff] (!%p911_p10), %v1150_v8 }
  0x25   : > { %363 = vst [vmem:[#allocation2 + $0x10] sm:$0xff] (!%p911_p10), %v1150_v8  ;;  %364 = vst [vmem:[#allocation2 + $0x18] sm:$0xff] (!%p911_p10), %v1150_v8 }
  0x29 PF: > { %v1078_v9 = vld [vmem:[%s1226_s11 + $0x40] sm:$0xff]   ;;  %v1081_v12 = vld [vmem:[%s1226_s11 + $0x48] sm:$0xff]   ;;  %v1084_v15 = vld [vmem:[%s1226_s11 + $0x50] sm:$0xff]   ;;  %p942_p11 = scmp.ne.s32.totalorder %s1140_s17, 2 }
  0x2a   : > { %v1079_v10 = vld [vmem:[%s1226_s11] sm:$0xff]   ;;  %977 = vmatprep.subr.bf16.mxu0 %v1078_v9  ;;  %v1082_v13 = vld [vmem:[%s1226_s11 + $0x8] sm:$0xff]   ;;  %v1085_v16 = vld [vmem:[%s1226_s11 + $0x10] sm:$0xff]  }
  0x2b   : > { %v1080_v11 = vld [vmem:[%s1226_s11 + $0x80] sm:$0xff]   ;;  %978 = vmatpush3.bf16.msra.mxu0 %v1079_v10  ;;  %v1083_v14 = vld [vmem:[%s1226_s11 + $0x88] sm:$0xff]   ;;  %v1086_v17 = vld [vmem:[%s1226_s11 + $0x90] sm:$0xff]  }
  0x2c   : > { %1015 = vmatprep.subr.bf16.mxu1 %v1080_v11  ;;  %979 = vmatprep.subr.bf16.mxu0 %v1081_v12  ;;  %v1087_v18 = vld [vmem:[%s1226_s11 + $0x58] sm:$0xff]   ;;  %v1090_v21 = vld [vmem:[%s1226_s11 + $0x60] sm:$0xff]   ;;  %v1093_v24 = vld [vmem:[%s1226_s11 + $0x68] sm:$0xff]  }
  0x2d   : > { %1016 = vmatpush3.bf16.msra.mxu1 %v1080_v11  ;;  %v1088_v19 = vld [vmem:[%s1226_s11 + $0x18] sm:$0xff]   ;;  %v1092_v22 = vld [vmem:[%s1226_s11 + $0xa0] sm:$0xff]   ;;  %v1095_v25 = vld [vmem:[%s1226_s11 + $0xa8] sm:$0xff]  }
  0x2e   : > { %1017 = vmatprep.subr.bf16.mxu1 %v1083_v14  ;;  %v1089_v20 = vld [vmem:[%s1226_s11 + $0x98] sm:$0xff]   ;;  %v1091_v23 = vld [vmem:[%s1226_s11 + $0x20] sm:$0xff]   ;;  %v1094_v26 = vld [vmem:[%s1226_s11 + $0x28] sm:$0xff]  }
  0x2f   : > { %980 = vmatpush3.bf16.msra.mxu0 %v1082_v13  ;;  %v1096_v27 = vld [vmem:[%s1226_s11 + $0x70] sm:$0xff]   ;;  %v1099_v30 = vld [vmem:[%s1226_s11 + $0x78] sm:$0xff]   ;;  %v365_v45 = vld [vmem:[#allocation2] sm:$0xff] }
  0x30   : > { %981 = vmatprep.subr.bf16.mxu0 %v1084_v15  ;;  %v1097_v28 = vld [vmem:[%s1226_s11 + $0x30] sm:$0xff]   ;;  %v1101_v31 = vld [vmem:[%s1226_s11 + $0xb8] sm:$0xff]   ;;  %v366_v50 = vld [vmem:[#allocation2 + $0x8] sm:$0xff] }
  0x31   : > { %1018 = vmatpush3.bf16.msra.mxu1 %v1083_v14  ;;  %v1098_v29 = vld [vmem:[%s1226_s11 + $0xb0] sm:$0xff]   ;;  %v1100_v34 = vld [vmem:[%s1226_s11 + $0x38] sm:$0xff]   ;;  %v943_v5 = vld [vmem:[%s1294_s2] ss:$0 sm:$0xff] (!%p942_p11) }
  0x32   : > { %1019 = vmatprep.subr.bf16.mxu1 %v1086_v17  ;;  %v1104_v32 = vld [vmem:[%s1228_s12 + $0x4] ss:$12 sps:$4 sm:$0xff]   ;;  %v1105_v33 = vld [vmem:[%s1228_s12 + $0x8] ss:$12 sps:$4 sm:$0xff]   ;;  %v1102_v35 = vld [vmem:[%s1228_s12] ss:$12 sps:$4 sm:$0xff]  }
  0x33   : > { %982 = vmatpush3.bf16.msra.mxu0 %v1085_v16  ;;  %633 = vmatprep.mubr.bf16.mxu0 %v1104_v32  ;;  %v1107_v36 = vld [vmem:[%s1228_s12 + $0x1c] ss:$12 sps:$4 sm:$0xff]   ;;  %v1106_v37 = vld [vmem:[%s1228_s12 + $0x20] ss:$12 sps:$4 sm:$0xff]   ;;  %v1109_v38 = vld [vmem:[%s1228_s12 + $0x18] ss:$12 sps:$4 sm:$0xff]  }
  0x34   : > { %983 = vmatprep.subr.bf16.mxu0 %v1087_v18  ;;  %1031 = vmatprep.mubr.bf16.mxu1 %v1105_v33  ;;  %v367_v59 = vld [vmem:[#allocation2 + $0x10] sm:$0xff]  ;;  %v368_v63 = vld [vmem:[#allocation2 + $0x18] sm:$0xff]  ;;  %v958_v8 = vld [vmem:[%s1295_s3] sm:$0xff] (!%p942_p11)  }
  0x35   : > { %1020 = vmatpush3.bf16.msra.mxu1 %v1086_v17  ;;  %v959_v11 = vunpack.c.l.bf16 (!%p942_p11), %v958_v8  ;;  %v960_v12 = vunpack.c.h.bf16 (!%p942_p11), %v958_v8  ;;  %v975_v15 = vld [vmem:[%s1295_s3 + $0x8] sm:$0xff] (!%p942_p11)  }
  0x36   : > { %1021 = vmatprep.subr.bf16.mxu1 %v1089_v20  ;;  %v963_v16 = vunpack.c.l.bf16 (!%p942_p11), %v975_v15  ;;  %v964_v17 = vunpack.c.h.bf16 (!%p942_p11), %v975_v15 }
  0x37   : > { %984 = vmatpush3.bf16.msra.mxu0 %v1088_v19 }
  0x38   : > { %985 = vmatprep.subr.bf16.mxu0 %v1090_v21 }
  0x39   : > { %1022 = vmatpush3.bf16.msra.mxu1 %v1089_v20 }
  0x3a   : > { %1023 = vmatprep.subr.bf16.mxu1 %v1092_v22 }
  0x3b   : > { %986 = vmatpush3.bf16.msra.mxu0 %v1091_v23 }
  0x3c   : > { %987 = vmatprep.subr.bf16.mxu0 %v1093_v24 }
  0x3d   : > { %1024 = vmatpush3.bf16.msra.mxu1 %v1092_v22 }
  0x3e   : > { %1025 = vmatprep.subr.bf16.mxu1 %v1095_v25 }
  0x3f   : > { %988 = vmatpush3.bf16.msra.mxu0 %v1094_v26 }
  0x40   : > { %989 = vmatprep.subr.bf16.mxu0 %v1096_v27 }
  0x41   : > { %1026 = vmatpush3.bf16.msra.mxu1 %v1095_v25 }
  0x42   : > { %1027 = vmatprep.subr.bf16.mxu1 %v1098_v29 }
  0x43   : > { %990 = vmatpush3.bf16.msra.mxu0 %v1097_v28 }
  0x44   : > { %991 = vmatprep.subr.bf16.mxu0 %v1099_v30 }
  0x45   : > { %1028 = vmatpush3.bf16.msra.mxu1 %v1098_v29 }
  0x46   : > { %1029 = vmatprep.subr.bf16.mxu1 %v1101_v31 }
  0x47   : > { %992 = vmatpush3.bf16.msra.mxu0 %v1100_v34 }
  0x49   : > { %1030 = vmatpush3.bf16.msra.mxu1 %v1101_v31 }
  0x4a   : > { %634 = vmatmul.mubr.bf16.vlgmr.msra.gmra.mrb[0].mxu0 %v1102_v35 }
  0x4b   : > { %641 = vmatprep.mubr.bf16.mxu0 %v1107_v36 }
  0x4c   : > { %1032 = vmatmul.mubr.bf16.vlgmr.msra.gmra.mrb[0].mxu1 %v1106_v37 }
  0x52   : > { %642 = vmatmul.mubr.bf16.gmra.mrb[4].mxu0 %v1109_v38 }
 0x11d   : > { %v993_v39 = vpop.f32.mrb[0].mxu0 }
 0x11e   : > { %v994_v40 = vpop.f32.mrb[1].mxu0 }
 0x11f   : > { %v995_v41 = vadd.f32 %v994_v40, %v993_v39  ;;  %v996_v42 = vpop.f32.mrb[2].mxu0  ;;  %v1033_v43 = vpop.f32.mrb[0].mxu1 }
 0x120   : > { %v997_v44 = vpop.f32.mrb[3].mxu0  ;;  %v684_v46 = vpop.f32.mrb[1].mxu1 }
 0x121   : > { %v998_v47 = vadd.f32 %v997_v44, %v996_v42  ;;  %v685_v48 = vadd.f32 %v995_v41, %v684_v46  ;;  %v1034_v49 = vpop.f32.mrb[2].mxu1 }
 0x122   : > { %v687_v51 = vpop.f32.mrb[3].mxu1 }
 0x123   : > { %v699_v52 = vadd.f32 %v685_v48, %v365_v45  ;;  %v688_v53 = vadd.f32 %v998_v47, %v687_v51 }
 0x125   : > { %703 = vst [vmem:[#allocation2] sm:$0xff] %v699_v52  ;;  %v700_v54 = vadd.f32 %v688_v53, %v366_v50  ;;  %v999_v55 = vpop.f32.mrb[4].mxu0 }
 0x126   : > { %v1000_v56 = vpop.f32.mrb[5].mxu0 }
 0x127   : > { %704 = vst [vmem:[#allocation2 + $0x8] sm:$0xff] %v700_v54  ;;  %v1001_v57 = vadd.f32 %v1000_v56, %v999_v55  ;;  %v1002_v58 = vpop.f32.mrb[6].mxu0 }
 0x128   : > { %v1003_v60 = vpop.f32.mrb[7].mxu0 }
 0x129   : > { %v693_v61 = vadd.f32 %v1033_v43, %v1001_v57  ;;  %v1004_v62 = vadd.f32 %v1003_v60, %v1002_v58  ;;  %710 = sbr.rel (%p942_p11) target bundleno = 320 (0x140), region = 70 }
 0x12b   : > { %v701_v0 = vadd.f32 %v693_v61, %v367_v59  ;;  %v696_v1 = vadd.f32 %v1034_v49, %v1004_v62 }
 0x12c   : > { %v711_v3 = vld [vmem:[#allocation2] sm:$0xff] (!%p942_p11) }
 0x12d   : > { %705 = vst [vmem:[#allocation2 + $0x10] sm:$0xff] %v701_v0  ;;  %v702_v2 = vadd.f32 %v696_v1, %v368_v63  ;;  %v722_v6 = vadd.f32 (!%p942_p11), %v943_v5, %v711_v3 }
 0x12e   : > { %v712_v4 = vld [vmem:[#allocation2 + $0x8] sm:$0xff] (!%p942_p11) }
 0x12f   : > { %706 = vst [vmem:[#allocation2 + $0x18] sm:$0xff] %v702_v2  ;;  %v723_v7 = vadd.f32 (!%p942_p11), %v943_v5, %v712_v4  ;;  %v734_v18 = vadd.f32 (!%p942_p11), %v959_v11, %v722_v6 }
 0x131   : > { %v735_v19 = vadd.f32 %v960_v12, %v723_v7  ;;  %v738_v22 = vmax.f32 %v734_v18, 0.0 }
 0x133   : > { %v739_v23 = vmax.f32 %v735_v19, 0.0 }
 0x134   : > { %v713_v9 = vld [vmem:[#allocation2 + $0x10] sm:$0xff] }
 0x135   : > { %v724_v13 = vadd.f32 %v943_v5, %v713_v9  ;;  %v968_v26 = vpack.c.bf16 %v739_v23, %v738_v22 }
 0x136   : > { %v714_v10 = vld [vmem:[#allocation2 + $0x18] sm:$0xff] }
 0x137   : > { %v725_v14 = vadd.f32 %v943_v5, %v714_v10  ;;  %v736_v20 = vadd.f32 %v963_v16, %v724_v13  ;;  %969 = vst [vmem:[%s1296_s4] sm:$0xff] %v968_v26  }
 0x139   : > { %v737_v21 = vadd.f32 %v964_v17, %v725_v14  ;;  %v740_v24 = vmax.f32 %v736_v20, 0.0 }
 0x13b   : > { %v741_v25 = vmax.f32 %v737_v21, 0.0 }
 0x13d   : > { %v973_v27 = vpack.c.bf16 %v741_v25, %v740_v24 }
 0x13f   : > { %976 = vst [vmem:[%s1296_s4 + $0x8] sm:$0xff] %v973_v27  }
 0x140 PF: > { %s14_s19 = sadd.s32 1, %s1148_s19   ;;  %s1297_s15 = smov %s1136_s16 }
 0x141   : > { %p11_p12 = scmp.ge.s32.totalorder %s14_s19, 5   ;;  %s1298_s16 = smov %s1211_s23 }
 0x142   : > { %s1299_s17 = smov %s1144_s18  ;;  %s1300_s18 = smov %s1302_s20 }
 0x143   :  { %13 = sbr.rel (!%p11_p12) target bundleno = 3 (0x3), region = 120 }

// kernel: resnet34_forward.55
= control target key start
LH: loop header
LB: loop body
LE: loop exit
PB: predicated region body
PF: predicated region fallthrough
CT: control target
= control target key end

     0   :  { %s1036_s12 = smov 0   ;;  %s1038_s13 = smov 0   ;;  %s1135_s0 = inlined_call_operand.vmem [shape: bf16[8,1152], index: 0, kind: input, shape index: {}]   ;;  %s1136_s1 = inlined_call_operand.vmem [shape: bf16[1152,256], index: 1, kind: input, shape index: {}]   ;;  %s1137_s2 = inlined_call_operand.vmem [shape: f32[1,256], index: 2, kind: input, shape index: {}]   ;;  %s1138_s3 = inlined_call_operand.vmem [shape: bf16[8,256], index: 3, kind: output, shape index: {}]  }
   0x1   :  { %s1040_s14 = smov 0  }
   0x2 LB: > { %s25_s15 = sadd.s32 1, %s1008_s13  ;;  %p825_p0 = scmp.ge.s32.totalorder %s1012_s14, 1  ;;  %s1012_s14 = sphi %s1040_s14, %s13_s14   ;;  %s1008_s13 = sphi %s1038_s13, %s1140_s13   ;;  %s1004_s12 = sphi %s1036_s12, %s1139_s12  }
   0x3   : > { %p26_p1 = scmp.ge.s32.totalorder %s25_s15, 3  ;;  %p194_p2 = scmp.lt.s32.totalorder %s1012_s14, 4 }
   0x5   : > { %s1142_s15 = smov (%p26_p1, %s25_s15), 0  ;;  %p195_p3 = pnand %p825_p0, %p194_p2 }
   0x6   : > { %s240_s16 = smul.u32 (!%p195_p3), 3, %s1004_s12  ;;  %p829_p6 = scmp.ne.s32.totalorder (!%p195_p3), %s1004_s12, 0 }
   0x7   : > { %198 = sbr.rel (%p195_p3) target bundleno = 321 (0x141), region = 32 }
   0x8   : > { %s250_s17 = smul.u32 (!%p195_p3), 48, %s1004_s12  ;;  %p243_p4 = scmp.lt.s32.totalorder (!%p195_p3), %s240_s16, 8 }
   0xa   : > { %p252_p5 = scmp.lt.s32.totalorder (!%p195_p3), %s250_s17, 143 }
   0xe   : > { %s1144_s16 = smov (!%p243_p4, %s240_s16), 8  ;;  %s1146_s17 = smov (!%p252_p5, %s250_s17), 143 }
   0xf   : > { %s826_s18 = sshll.u32 %s1144_s16, 2  ;;  %s887_s22 = sshll.u32 %s1146_s17, 3  ;;  %v1014_v0 = vmov (!%p829_p6), 0.0  }
  0x10   : > { %s1061_s21 = scalar_lea.vmem %s1135_s0, %s826_s18  ;;  %s1066_s25 = scalar_lea.vmem %s1136_s1, %s887_s22  ;;  %282 = vst [vmem:[#allocation2] sm:$0xff] (!%p829_p6), %v1014_v0  ;;  %283 = vst [vmem:[#allocation2 + $0x8] sm:$0xff] (!%p829_p6), %v1014_v0 }
  0x11   : > { %281 = sbr.rel (%p829_p6) target bundleno = 24 (0x18), region = 36 }
  0x18 PF: > { %v915_v1 = vld [vmem:[%s1066_s25 + $0x4] ss:$8 sps:$4 sm:$0xff]   ;;  %v917_v2 = vld [vmem:[%s1066_s25] ss:$8 sps:$4 sm:$0xff]   ;;  %v1015_v3 = vmov 0   ;;  %p881_p7 = scmp.ne.s32.totalorder %s1004_s12, 2 }
  0x19   : > { %660 = vmatprep.mubr.bf16.mxu1 %v1015_v3  ;;  %587 = vmatprep.subr.bf16.mxu0 %v915_v1  ;;  %v918_v4 = vld [vmem:[%s1066_s25 + $0x14] ss:$8 sps:$4 sm:$0xff]   ;;  %v920_v5 = vld [vmem:[%s1066_s25 + $0x10] ss:$8 sps:$4 sm:$0xff]   ;;  %v921_v6 = vld [vmem:[%s1066_s25 + $0x24] ss:$8 sps:$4 sm:$0xff]  }
  0x1a   : > { %588 = vmatpush1.bf16.msra.mxu0 %v917_v2  ;;  %v923_v7 = vld [vmem:[%s1066_s25 + $0x20] ss:$8 sps:$4 sm:$0xff]   ;;  %v924_v8 = vld [vmem:[%s1066_s25 + $0x34] ss:$8 sps:$4 sm:$0xff]   ;;  %v926_v9 = vld [vmem:[%s1066_s25 + $0x30] ss:$8 sps:$4 sm:$0xff]  }
  0x1b   : > { %589 = vmatprep.subr.bf16.mxu0 %v918_v4  ;;  %v939_v10 = vld [vmem:[%s1066_s25 + $0x104] ss:$8 sps:$4 sm:$0xff]   ;;  %v941_v11 = vld [vmem:[%s1066_s25 + $0x100] ss:$8 sps:$4 sm:$0xff]   ;;  %v945_v13 = vld [vmem:[%s1066_s25 + $0x114] ss:$8 sps:$4 sm:$0xff]   ;;  %v681_v4 = vlaneseq (!%p881_p7) }
  0x1c   : > { %v927_v12 = vld [vmem:[%s1066_s25 + $0x44] ss:$8 sps:$4 sm:$0xff]   ;;  %628 = vmatprep.subr.bf16.mxu1 %v939_v10  ;;  %v947_v14 = vld [vmem:[%s1066_s25 + $0x110] ss:$8 sps:$4 sm:$0xff]   ;;  %v929_v15 = vld [vmem:[%s1066_s25 + $0x40] ss:$8 sps:$4 sm:$0xff]  }
  0x1d   : > { %629 = vmatpush1.bf16.msra.mxu1 %v941_v11  ;;  %v930_v16 = vld [vmem:[%s1066_s25 + $0x54] ss:$8 sps:$4 sm:$0xff]   ;;  %v951_v17 = vld [vmem:[%s1066_s25 + $0x124] ss:$8 sps:$4 sm:$0xff]   ;;  %v953_v18 = vld [vmem:[%s1066_s25 + $0x120] ss:$8 sps:$4 sm:$0xff]  }
  0x1e   : > { %590 = vmatpush1.bf16.msra.mxu0 %v920_v5  ;;  %630 = vmatprep.subr.bf16.mxu1 %v945_v13  ;;  %v932_v19 = vld [vmem:[%s1066_s25 + $0x50] ss:$8 sps:$4 sm:$0xff]   ;;  %v957_v20 = vld [vmem:[%s1066_s25 + $0x134] ss:$8 sps:$4 sm:$0xff]   ;;  %v933_v21 = vld [vmem:[%s1066_s25 + $0x64] ss:$8 sps:$4 sm:$0xff]  }
  0x1f   : > { %591 = vmatprep.subr.bf16.mxu0 %v921_v6  ;;  %v959_v22 = vld [vmem:[%s1066_s25 + $0x130] ss:$8 sps:$4 sm:$0xff]   ;;  %v935_v23 = vld [vmem:[%s1066_s25 + $0x60] ss:$8 sps:$4 sm:$0xff]   ;;  %v963_v24 = vld [vmem:[%s1066_s25 + $0x144] ss:$8 sps:$4 sm:$0xff]  }
  0x20   : > { %v936_v25 = vld [vmem:[%s1066_s25 + $0x74] ss:$8 sps:$4 sm:$0xff]   ;;  %v965_v26 = vld [vmem:[%s1066_s25 + $0x140] ss:$8 sps:$4 sm:$0xff]   ;;  %v938_v27 = vld [vmem:[%s1066_s25 + $0x70] ss:$8 sps:$4 sm:$0xff]  }
  0x21   : > { %631 = vmatpush1.bf16.msra.mxu1 %v947_v14  ;;  %v969_v28 = vld [vmem:[%s1066_s25 + $0x154] ss:$8 sps:$4 sm:$0xff]   ;;  %v942_v29 = vld [vmem:[%s1066_s25 + $0x84] ss:$8 sps:$4 sm:$0xff]   ;;  %v971_v30 = vld [vmem:[%s1066_s25 + $0x150] ss:$8 sps:$4 sm:$0xff]  }
  0x22   : > { %592 = vmatpush1.bf16.msra.mxu0 %v923_v7  ;;  %632 = vmatprep.subr.bf16.mxu1 %v951_v17  ;;  %v944_v31 = vld [vmem:[%s1066_s25 + $0x80] ss:$8 sps:$4 sm:$0xff]   ;;  %v975_v32 = vld [vmem:[%s1066_s25 + $0x164] ss:$8 sps:$4 sm:$0xff]   ;;  %v948_v33 = vld [vmem:[%s1066_s25 + $0x94] ss:$8 sps:$4 sm:$0xff]  }
  0x23   : > { %593 = vmatprep.subr.bf16.mxu0 %v924_v8  ;;  %v286_v34 = vld [vmem:[%s1061_s21] sm:$0xff]  ;;  %v950_v37 = vld [vmem:[%s1066_s25 + $0x90] ss:$8 sps:$4 sm:$0xff]   ;;  %v981_v38 = vld [vmem:[%s1066_s25 + $0x174] ss:$8 sps:$4 sm:$0xff]   ;;  %v682_v5 = vshrl.u32 (!%p881_p7), %v681_v4, 7 }
  0x24   : > { %v831_v35 = vcombine.high %v286_v34, %v286_v34  ;;  %v977_v36 = vld [vmem:[%s1066_s25 + $0x160] ss:$8 sps:$4 sm:$0xff]   ;;  %v954_v39 = vld [vmem:[%s1066_s25 + $0xa4] ss:$8 sps:$4 sm:$0xff]   ;;  %v983_v40 = vld [vmem:[%s1066_s25 + $0x170] ss:$8 sps:$4 sm:$0xff]   ;;  %v830_v53 = vcombine.low %v286_v34, %v286_v34 }
  0x25   : > { %633 = vmatpush1.bf16.msra.mxu1 %v953_v18  ;;  %v956_v41 = vld [vmem:[%s1066_s25 + $0xa0] ss:$8 sps:$4 sm:$0xff]   ;;  %v960_v42 = vld [vmem:[%s1066_s25 + $0xb4] ss:$8 sps:$4 sm:$0xff]   ;;  %v962_v44 = vld [vmem:[%s1066_s25 + $0xb0] ss:$8 sps:$4 sm:$0xff]  }
  0x26   : > { %594 = vmatpush1.bf16.msra.mxu0 %v926_v9  ;;  %634 = vmatprep.subr.bf16.mxu1 %v957_v20  ;;  %v987_v43 = vld [vmem:[%s1061_s21 + $0x8] ss:$0 sps:$4 sm:$0xff]   ;;  %v966_v45 = vld [vmem:[%s1066_s25 + $0xc4] ss:$8 sps:$4 sm:$0xff]   ;;  %v972_v47 = vld [vmem:[%s1066_s25 + $0xd4] ss:$8 sps:$4 sm:$0xff]  }
  0x27   : > { %595 = vmatprep.subr.bf16.mxu0 %v927_v12  ;;  %619 = vmatprep.mubr.bf16.mxu0 %v831_v35  ;;  %v968_v46 = vld [vmem:[%s1066_s25 + $0xc0] ss:$8 sps:$4 sm:$0xff]   ;;  %v974_v48 = vld [vmem:[%s1066_s25 + $0xd0] ss:$8 sps:$4 sm:$0xff]   ;;  %v978_v49 = vld [vmem:[%s1066_s25 + $0xe4] ss:$8 sps:$4 sm:$0xff]  }
  0x28   : > { %v980_v50 = vld [vmem:[%s1066_s25 + $0xe0] ss:$8 sps:$4 sm:$0xff]   ;;  %v984_v51 = vld [vmem:[%s1066_s25 + $0xf4] ss:$8 sps:$4 sm:$0xff]   ;;  %v986_v52 = vld [vmem:[%s1066_s25 + $0xf0] ss:$8 sps:$4 sm:$0xff]  }
  0x29   : > { %635 = vmatpush1.bf16.msra.mxu1 %v959_v22  ;;  %v284_v58 = vld [vmem:[#allocation2] sm:$0xff]  ;;  %v285_v61 = vld [vmem:[#allocation2 + $0x8] sm:$0xff]  ;;  %v683_v7 = vsub.s32 (!%p881_p7), 0, %v682_v5  ;;  %v687_v8 = vsub.s32 (!%p881_p7), 1, %v682_v5 }
  0x2a   : > { %596 = vmatpush1.bf16.msra.mxu0 %v929_v15  ;;  %636 = vmatprep.subr.bf16.mxu1 %v963_v24  ;;  %v679_v6 = vld [vmem:[%s1137_s2] sm:$0x3] (!%p881_p7) }
  0x2b   : > { %597 = vmatprep.subr.bf16.mxu0 %v930_v16  ;;  %v684_v11 = vrot.slane (!%p881_p7), %v679_v6, %v683_v7  ;;  %v688_v12 = vrot.slane (!%p881_p7), %v679_v6, %v687_v8 }
  0x2d   : > { %637 = vmatpush1.bf16.msra.mxu1 %v965_v26 }
  0x2e   : > { %598 = vmatpush1.bf16.msra.mxu0 %v932_v19  ;;  %638 = vmatprep.subr.bf16.mxu1 %v969_v28 }
  0x2f   : > { %599 = vmatprep.subr.bf16.mxu0 %v933_v21 }
  0x31   : > { %639 = vmatpush1.bf16.msra.mxu1 %v971_v30 }
  0x32   : > { %600 = vmatpush1.bf16.msra.mxu0 %v935_v23  ;;  %640 = vmatprep.subr.bf16.mxu1 %v975_v32 }
  0x33   : > { %601 = vmatprep.subr.bf16.mxu0 %v936_v25 }
  0x35   : > { %641 = vmatpush1.bf16.msra.mxu1 %v977_v36 }
  0x36   : > { %602 = vmatpush1.bf16.msra.mxu0 %v938_v27  ;;  %642 = vmatprep.subr.bf16.mxu1 %v981_v38 }
  0x37   : > { %603 = vmatprep.subr.bf16.mxu0 %v942_v29 }
  0x39   : > { %643 = vmatpush1.bf16.msra.mxu1 %v983_v40 }
  0x3a   : > { %604 = vmatpush1.bf16.msra.mxu0 %v944_v31 }
  0x3b   : > { %605 = vmatprep.subr.bf16.mxu0 %v948_v33 }
  0x3c   : > { %661 = vmatmul.mubr.bf16.vlgmr.msra.gmra.mrb[0].mxu1 %v987_v43 }
  0x3e   : > { %606 = vmatpush1.bf16.msra.mxu0 %v950_v37 }
  0x3f   : > { %607 = vmatprep.subr.bf16.mxu0 %v954_v39 }
  0x42   : > { %608 = vmatpush1.bf16.msra.mxu0 %v956_v41 }
  0x43   : > { %609 = vmatprep.subr.bf16.mxu0 %v960_v42 }
  0x46   : > { %610 = vmatpush1.bf16.msra.mxu0 %v962_v44 }
  0x47   : > { %611 = vmatprep.subr.bf16.mxu0 %v966_v45 }
  0x4a   : > { %612 = vmatpush1.bf16.msra.mxu0 %v968_v46 }
  0x4b   : > { %613 = vmatprep.subr.bf16.mxu0 %v972_v47 }
  0x4e   : > { %614 = vmatpush1.bf16.msra.mxu0 %v974_v48 }
  0x4f   : > { %615 = vmatprep.subr.bf16.mxu0 %v978_v49 }
  0x52   : > { %616 = vmatpush1.bf16.msra.mxu0 %v980_v50 }
  0x53   : > { %617 = vmatprep.subr.bf16.mxu0 %v984_v51 }
  0x56   : > { %618 = vmatpush1.bf16.msra.mxu0 %v986_v52 }
  0x59   : > { %620 = vmatmul.mubr.bf16.vlgmr.msra.gmra.mrb[0].mxu0 %v830_v53 }
 0x10f   : > { %v662_v54 = vpop.f32.mrb[0].mxu1 }
 0x110   : > { %v664_v55 = vpop.f32.mrb[1].mxu1 }
 0x111   : > { %v666_v56 = vpop.f32.mrb[2].mxu1 }
 0x112   : > { %v667_v57 = vpop.f32.mrb[3].mxu1 }
 0x12c   : > { %v621_v59 = vpop.f32.mrb[0].mxu0  ;;  %676 = sbr.rel (%p881_p7) target bundleno = 321 (0x141), region = 40 }
 0x12d   : > { %v663_v60 = vadd.f32 %v662_v54, %v621_v59  ;;  %v623_v62 = vpop.f32.mrb[1].mxu0 }
 0x12e   : > { %v665_v63 = vadd.f32 %v664_v55, %v623_v62  ;;  %v625_v0 = vpop.f32.mrb[2].mxu0 }
 0x12f   : > { %v669_v1 = vadd.f32 %v663_v60, %v284_v58  ;;  %v626_v2 = vpop.f32.mrb[3].mxu0 }
 0x130   : > { %v670_v3 = vadd.f32 %v665_v63, %v285_v61 }
 0x131   : > { %671 = vst [vmem:[#allocation2] sm:$0xff] %v669_v1 }
 0x132   : > { %672 = vst [vmem:[#allocation2 + $0x8] sm:$0xff] %v670_v3 }
 0x138   : > { %v677_v9 = vld [vmem:[#allocation2] sm:$0xff] }
 0x139   : > { %v678_v10 = vld [vmem:[#allocation2 + $0x8] sm:$0xff]  ;;  %v691_v13 = vadd.f32 %v684_v11, %v677_v9 }
 0x13a   : > { %v692_v14 = vadd.f32 %v688_v12, %v678_v10 }
 0x13b   : > { %v693_v15 = vmax.f32 %v691_v13, 0.0 }
 0x13c   : > { %v694_v16 = vmax.f32 %v692_v14, 0.0 }
 0x13e   : > { %v888_v17 = vpack.c.bf16 %v694_v16, %v693_v15 }
 0x140   : > { %703 = vst [vmem:[%s1138_s3] sm:$0xff] %v888_v17 }
 0x141 PF: > { %s13_s14 = sadd.s32 1, %s1012_s14   ;;  %s1139_s12 = smov %s1008_s13 }
 0x142   : > { %p10_p8 = scmp.ge.s32.totalorder %s13_s14, 5   ;;  %s1140_s13 = smov %s1142_s15 }
 0x144   :  { %12 = sbr.rel (!%p10_p8) target bundleno = 2 (0x2), region = 76 }

// kernel: resnet34_forward.56
= control target key start
LH: loop header
LB: loop body
LE: loop exit
PB: predicated region body
PF: predicated region fallthrough
CT: control target
= control target key end

     0   :  { %v240_v1 = vmov 0   ;;  %v172_v18 = vlaneseq  ;;  %s318_s1 = inlined_call_operand.vmem [shape: bf16[128,256], index: 1, kind: input, shape index: {}]   ;;  %s319_s0 = inlined_call_operand.vmem [shape: bf16[8,128], index: 0, kind: input, shape index: {}]   ;;  %s320_s2 = inlined_call_operand.vmem [shape: f32[1,256], index: 2, kind: input, shape index: {}]   ;;  %s321_s3 = inlined_call_operand.vmem [shape: bf16[8,256], index: 3, kind: output, shape index: {}]  }
   0x1   :  { %v216_v0 = vld [vmem:[%s318_s1 + $0x4] ss:$8 sps:$4 sm:$0xff]   ;;  %152 = vmatprep.mubr.bf16.mxu0 %v240_v1  ;;  %v218_v2 = vld [vmem:[%s318_s1] ss:$8 sps:$4 sm:$0xff]   ;;  %v219_v3 = vld [vmem:[%s318_s1 + $0x14] ss:$8 sps:$4 sm:$0xff]  }
   0x2   :  { %120 = vmatprep.subr.bf16.mxu0 %v216_v0  ;;  %v221_v4 = vld [vmem:[%s318_s1 + $0x10] ss:$8 sps:$4 sm:$0xff]   ;;  %v222_v5 = vld [vmem:[%s318_s1 + $0x24] ss:$8 sps:$4 sm:$0xff]   ;;  %v224_v6 = vld [vmem:[%s318_s1 + $0x20] ss:$8 sps:$4 sm:$0xff]  }
   0x3   :  { %121 = vmatpush1.bf16.msra.mxu0 %v218_v2  ;;  %v225_v7 = vld [vmem:[%s318_s1 + $0x34] ss:$8 sps:$4 sm:$0xff]   ;;  %v227_v8 = vld [vmem:[%s318_s1 + $0x30] ss:$8 sps:$4 sm:$0xff]   ;;  %v228_v9 = vld [vmem:[%s318_s1 + $0x44] ss:$8 sps:$4 sm:$0xff]  }
   0x4   :  { %122 = vmatprep.subr.bf16.mxu0 %v219_v3  ;;  %v230_v10 = vld [vmem:[%s318_s1 + $0x40] ss:$8 sps:$4 sm:$0xff]   ;;  %v231_v11 = vld [vmem:[%s318_s1 + $0x54] ss:$8 sps:$4 sm:$0xff]   ;;  %v233_v12 = vld [vmem:[%s318_s1 + $0x50] ss:$8 sps:$4 sm:$0xff]  }
   0x5   :  { %v234_v13 = vld [vmem:[%s318_s1 + $0x64] ss:$8 sps:$4 sm:$0xff]   ;;  %v236_v14 = vld [vmem:[%s318_s1 + $0x60] ss:$8 sps:$4 sm:$0xff]   ;;  %v237_v15 = vld [vmem:[%s318_s1 + $0x74] ss:$8 sps:$4 sm:$0xff]  }
   0x6   :  { %v239_v16 = vld [vmem:[%s318_s1 + $0x70] ss:$8 sps:$4 sm:$0xff]   ;;  %v23_v17 = vld [vmem:[%s319_s0] sm:$0xf]  ;;  %v173_v19 = vshrl.u32 %v172_v18, 7 }
   0x7   :  { %123 = vmatpush1.bf16.msra.mxu0 %v221_v4  ;;  %v170_v21 = vld [vmem:[%s320_s2] sm:$0x3] }
   0x8   :  { %124 = vmatprep.subr.bf16.mxu0 %v222_v5  ;;  %v174_v20 = vsub.s32 0, %v173_v19  ;;  %v178_v22 = vsub.s32 1, %v173_v19 }
   0xa   :  { %v175_v23 = vrot.slane %v170_v21, %v174_v20  ;;  %v179_v24 = vrot.slane %v170_v21, %v178_v22 }
   0xb   :  { %125 = vmatpush1.bf16.msra.mxu0 %v224_v6 }
   0xc   :  { %126 = vmatprep.subr.bf16.mxu0 %v225_v7 }
   0xf   :  { %127 = vmatpush1.bf16.msra.mxu0 %v227_v8 }
  0x10   :  { %128 = vmatprep.subr.bf16.mxu0 %v228_v9 }
  0x13   :  { %129 = vmatpush1.bf16.msra.mxu0 %v230_v10 }
  0x14   :  { %130 = vmatprep.subr.bf16.mxu0 %v231_v11 }
  0x17   :  { %131 = vmatpush1.bf16.msra.mxu0 %v233_v12 }
  0x18   :  { %132 = vmatprep.subr.bf16.mxu0 %v234_v13 }
  0x1b   :  { %133 = vmatpush1.bf16.msra.mxu0 %v236_v14 }
  0x1c   :  { %134 = vmatprep.subr.bf16.mxu0 %v237_v15 }
  0x1f   :  { %135 = vmatpush1.bf16.msra.mxu0 %v239_v16 }
  0x22   :  { %153 = vmatmul.mubr.bf16.vlgmr.msra.gmra.mrb[0].mxu0 %v23_v17 }
  0xf5   :  { %v154_v25 = vpop.f32.mrb[0].mxu0 }
  0xf6   :  { %v182_v26 = vadd.f32 %v175_v23, %v154_v25  ;;  %v156_v27 = vpop.f32.mrb[1].mxu0 }
  0xf7   :  { %v183_v28 = vadd.f32 %v179_v24, %v156_v27  ;;  %v158_v29 = vpop.f32.mrb[2].mxu0 }
  0xf8   :  { %v159_v30 = vpop.f32.mrb[3].mxu0 }
  0xf9   :  { %v214_v31 = vpack.c.bf16 %v183_v28, %v182_v26 }
  0xfb   :  { %192 = vst [vmem:[%s321_s3] sm:$0xff] %v214_v31 }

// kernel: resnet34_forward.58
= control target key start
LH: loop header
LB: loop body
LE: loop exit
PB: predicated region body
PF: predicated region fallthrough
CT: control target
= control target key end

     0   :  { %s1499_s12 = smov 0   ;;  %s1501_s13 = smov 0   ;;  %s1653_s0 = inlined_call_operand.vmem [shape: bf16[8,2304], index: 0, kind: input, shape index: {}]   ;;  %s1654_s1 = inlined_call_operand.vmem [shape: bf16[2304,256], index: 1, kind: input, shape index: {}]   ;;  %s1655_s2 = inlined_call_operand.vmem [shape: f32[1,256], index: 2, kind: input, shape index: {}]   ;;  %s1656_s3 = inlined_call_operand.vmem [shape: bf16[8,256], index: 3, kind: output, shape index: {}]  }
   0x1   :  { %s1503_s14 = smov 0  }
   0x2 LB: > { %s25_s15 = sadd.s32 1, %s1472_s13  ;;  %p1164_p0 = scmp.ge.s32.totalorder %s1476_s14, 1  ;;  %s1476_s14 = sphi %s1503_s14, %s13_s14   ;;  %s1472_s13 = sphi %s1501_s13, %s1658_s13   ;;  %s1468_s12 = sphi %s1499_s12, %s1657_s12  }
   0x3   : > { %p26_p1 = scmp.ge.s32.totalorder %s25_s15, 3  ;;  %p194_p2 = scmp.lt.s32.totalorder %s1476_s14, 4 }
   0x5   : > { %s1660_s15 = smov (%p26_p1, %s25_s15), 0  ;;  %p195_p3 = pnand %p1164_p0, %p194_p2 }
   0x6   : > { %s240_s16 = smul.u32 (!%p195_p3), 6, %s1468_s12  ;;  %p1168_p6 = scmp.ne.s32.totalorder (!%p195_p3), %s1468_s12, 0 }
   0x7   : > { %198 = sbr.rel (%p195_p3) target bundleno = 385 (0x181), region = 32 }
   0x8   : > { %s250_s17 = smul.u32 (!%p195_p3), 96, %s1468_s12  ;;  %p243_p4 = scmp.lt.s32.totalorder (!%p195_p3), %s240_s16, 17 }
   0xa   : > { %p252_p5 = scmp.lt.s32.totalorder (!%p195_p3), %s250_s17, 287 }
   0xe   : > { %s1662_s16 = smov (!%p243_p4, %s240_s16), 17  ;;  %s1664_s17 = smov (!%p252_p5, %s250_s17), 287 }
   0xf   : > { %s1165_s18 = sshll.u32 %s1662_s16, 2  ;;  %s1277_s22 = sshll.u32 %s1664_s17, 3  ;;  %v1478_v0 = vmov (!%p1168_p6), 0.0  }
  0x10   : > { %s1524_s21 = scalar_lea.vmem %s1653_s0, %s1165_s18  ;;  %s1529_s25 = scalar_lea.vmem %s1654_s1, %s1277_s22  ;;  %281 = vst [vmem:[#allocation2] sm:$0xff] (!%p1168_p6), %v1478_v0  ;;  %282 = vst [vmem:[#allocation2 + $0x8] sm:$0xff] (!%p1168_p6), %v1478_v0 }
  0x11   : > { %280 = sbr.rel (%p1168_p6) target bundleno = 24 (0x18), region = 36 }
  0x18 PF: > { %v1304_v1 = vld [vmem:[%s1529_s25 + $0x4] ss:$8 sps:$4 sm:$0xff]   ;;  %v1308_v3 = vld [vmem:[%s1529_s25] ss:$8 sps:$4 sm:$0xff]   ;;  %v1310_v5 = vld [vmem:[%s1529_s25 + $0x14] ss:$8 sps:$4 sm:$0xff]  }
  0x19   : > { %v1306_v2 = vld [vmem:[%s1529_s25 + $0x104] ss:$8 sps:$4 sm:$0xff]   ;;  %885 = vmatprep.subr.bf16.mxu0 %v1304_v1  ;;  %v1309_v4 = vld [vmem:[%s1529_s25 + $0x100] ss:$8 sps:$4 sm:$0xff]   ;;  %v1312_v6 = vld [vmem:[%s1529_s25 + $0x114] ss:$8 sps:$4 sm:$0xff]  }
  0x1a   : > { %926 = vmatprep.subr.bf16.mxu1 %v1306_v2  ;;  %886 = vmatpush1.bf16.msra.mxu0 %v1308_v3  ;;  %v1314_v7 = vld [vmem:[%s1529_s25 + $0x10] ss:$8 sps:$4 sm:$0xff]   ;;  %v1316_v9 = vld [vmem:[%s1529_s25 + $0x24] ss:$8 sps:$4 sm:$0xff]   ;;  %v1320_v11 = vld [vmem:[%s1529_s25 + $0x20] ss:$8 sps:$4 sm:$0xff]  }
  0x1b   : > { %927 = vmatpush1.bf16.msra.mxu1 %v1309_v4  ;;  %887 = vmatprep.subr.bf16.mxu0 %v1310_v5  ;;  %v1315_v8 = vld [vmem:[%s1529_s25 + $0x110] ss:$8 sps:$4 sm:$0xff]   ;;  %v1318_v10 = vld [vmem:[%s1529_s25 + $0x124] ss:$8 sps:$4 sm:$0xff]   ;;  %v1321_v12 = vld [vmem:[%s1529_s25 + $0x120] ss:$8 sps:$4 sm:$0xff]  }
  0x1c   : > { %928 = vmatprep.subr.bf16.mxu1 %v1312_v6  ;;  %v1322_v13 = vld [vmem:[%s1529_s25 + $0x34] ss:$8 sps:$4 sm:$0xff]   ;;  %v1326_v15 = vld [vmem:[%s1529_s25 + $0x30] ss:$8 sps:$4 sm:$0xff]   ;;  %v1328_v17 = vld [vmem:[%s1529_s25 + $0x44] ss:$8 sps:$4 sm:$0xff]  }
  0x1d   : > { %v1324_v14 = vld [vmem:[%s1529_s25 + $0x134] ss:$8 sps:$4 sm:$0xff]   ;;  %v1327_v16 = vld [vmem:[%s1529_s25 + $0x130] ss:$8 sps:$4 sm:$0xff]   ;;  %v1330_v18 = vld [vmem:[%s1529_s25 + $0x144] ss:$8 sps:$4 sm:$0xff]  }
  0x1e   : > { %888 = vmatpush1.bf16.msra.mxu0 %v1314_v7  ;;  %v1332_v19 = vld [vmem:[%s1529_s25 + $0x40] ss:$8 sps:$4 sm:$0xff]   ;;  %v1334_v21 = vld [vmem:[%s1529_s25 + $0x54] ss:$8 sps:$4 sm:$0xff]   ;;  %v1338_v23 = vld [vmem:[%s1529_s25 + $0x50] ss:$8 sps:$4 sm:$0xff]  }
  0x1f   : > { %929 = vmatpush1.bf16.msra.mxu1 %v1315_v8  ;;  %889 = vmatprep.subr.bf16.mxu0 %v1316_v9  ;;  %v1333_v20 = vld [vmem:[%s1529_s25 + $0x140] ss:$8 sps:$4 sm:$0xff]   ;;  %v1336_v22 = vld [vmem:[%s1529_s25 + $0x154] ss:$8 sps:$4 sm:$0xff]   ;;  %v1339_v24 = vld [vmem:[%s1529_s25 + $0x150] ss:$8 sps:$4 sm:$0xff]  }
  0x20   : > { %930 = vmatprep.subr.bf16.mxu1 %v1318_v10  ;;  %v1340_v25 = vld [vmem:[%s1529_s25 + $0x64] ss:$8 sps:$4 sm:$0xff]   ;;  %v1344_v27 = vld [vmem:[%s1529_s25 + $0x60] ss:$8 sps:$4 sm:$0xff]   ;;  %v1346_v29 = vld [vmem:[%s1529_s25 + $0x74] ss:$8 sps:$4 sm:$0xff]  }
  0x21   : > { %v1342_v26 = vld [vmem:[%s1529_s25 + $0x164] ss:$8 sps:$4 sm:$0xff]   ;;  %v1345_v28 = vld [vmem:[%s1529_s25 + $0x160] ss:$8 sps:$4 sm:$0xff]   ;;  %v1348_v30 = vld [vmem:[%s1529_s25 + $0x174] ss:$8 sps:$4 sm:$0xff]  }
  0x22   : > { %890 = vmatpush1.bf16.msra.mxu0 %v1320_v11  ;;  %v1350_v31 = vld [vmem:[%s1529_s25 + $0x70] ss:$8 sps:$4 sm:$0xff]   ;;  %v1352_v33 = vld [vmem:[%s1529_s25 + $0x84] ss:$8 sps:$4 sm:$0xff]   ;;  %v1356_v35 = vld [vmem:[%s1529_s25 + $0x80] ss:$8 sps:$4 sm:$0xff]  }
  0x23   : > { %931 = vmatpush1.bf16.msra.mxu1 %v1321_v12  ;;  %891 = vmatprep.subr.bf16.mxu0 %v1322_v13  ;;  %v1351_v32 = vld [vmem:[%s1529_s25 + $0x170] ss:$8 sps:$4 sm:$0xff]   ;;  %v1354_v34 = vld [vmem:[%s1529_s25 + $0x184] ss:$8 sps:$4 sm:$0xff]   ;;  %v1357_v36 = vld [vmem:[%s1529_s25 + $0x180] ss:$8 sps:$4 sm:$0xff]  }
  0x24   : > { %932 = vmatprep.subr.bf16.mxu1 %v1324_v14  ;;  %v1358_v37 = vld [vmem:[%s1529_s25 + $0x94] ss:$8 sps:$4 sm:$0xff]   ;;  %v1362_v39 = vld [vmem:[%s1529_s25 + $0x90] ss:$8 sps:$4 sm:$0xff]   ;;  %v1364_v41 = vld [vmem:[%s1529_s25 + $0xa4] ss:$8 sps:$4 sm:$0xff]  }
  0x25   : > { %v1360_v38 = vld [vmem:[%s1529_s25 + $0x194] ss:$8 sps:$4 sm:$0xff]   ;;  %v1363_v40 = vld [vmem:[%s1529_s25 + $0x190] ss:$8 sps:$4 sm:$0xff]   ;;  %v1366_v42 = vld [vmem:[%s1529_s25 + $0x1a4] ss:$8 sps:$4 sm:$0xff]  }
  0x26   : > { %892 = vmatpush1.bf16.msra.mxu0 %v1326_v15  ;;  %v1368_v43 = vld [vmem:[%s1529_s25 + $0xa0] ss:$8 sps:$4 sm:$0xff]   ;;  %v1370_v45 = vld [vmem:[%s1529_s25 + $0xb4] ss:$8 sps:$4 sm:$0xff]   ;;  %v1374_v50 = vld [vmem:[%s1529_s25 + $0xb0] ss:$8 sps:$4 sm:$0xff]  }
  0x27   : > { %933 = vmatpush1.bf16.msra.mxu1 %v1327_v16  ;;  %893 = vmatprep.subr.bf16.mxu0 %v1328_v17  ;;  %v1369_v44 = vld [vmem:[%s1529_s25 + $0x1a0] ss:$8 sps:$4 sm:$0xff]   ;;  %v1372_v46 = vld [vmem:[%s1529_s25 + $0x1b4] ss:$8 sps:$4 sm:$0xff]   ;;  %v1375_v51 = vld [vmem:[%s1529_s25 + $0x1b0] ss:$8 sps:$4 sm:$0xff]  }
  0x28   : > { %934 = vmatprep.subr.bf16.mxu1 %v1330_v18  ;;  %v285_v47 = vld [vmem:[%s1524_s21] sm:$0xff]  ;;  %v286_v49 = vld [vmem:[%s1524_s21 + $0x8] sm:$0xff]  ;;  %v1382_v57 = vld [vmem:[%s1529_s25 + $0xd4] ss:$8 sps:$4 sm:$0xff]   ;;  %p1271_p7 = scmp.ne.s32.totalorder %s1468_s12, 2 }
  0x29   : > { %v1170_v48 = vcombine.high %v285_v47, %v285_v47  ;;  %v1172_v52 = vcombine.high %v286_v49, %v286_v49  ;;  %v1376_v53 = vld [vmem:[%s1529_s25 + $0xc4] ss:$8 sps:$4 sm:$0xff]   ;;  %v1380_v55 = vld [vmem:[%s1529_s25 + $0xc0] ss:$8 sps:$4 sm:$0xff]   ;;  %v1384_v58 = vld [vmem:[%s1529_s25 + $0x1d4] ss:$8 sps:$4 sm:$0xff]   ;;  %v1169_v6 = vcombine.low %v285_v47, %v285_v47  ;;  %v1171_v7 = vcombine.low %v286_v49, %v286_v49 }
  0x2a   : > { %894 = vmatpush1.bf16.msra.mxu0 %v1332_v19  ;;  %v1378_v54 = vld [vmem:[%s1529_s25 + $0x1c4] ss:$8 sps:$4 sm:$0xff]   ;;  %v1381_v56 = vld [vmem:[%s1529_s25 + $0x1c0] ss:$8 sps:$4 sm:$0xff]   ;;  %v1386_v59 = vld [vmem:[%s1529_s25 + $0xd0] ss:$8 sps:$4 sm:$0xff]  }
  0x2b   : > { %935 = vmatpush1.bf16.msra.mxu1 %v1333_v20  ;;  %895 = vmatprep.subr.bf16.mxu0 %v1334_v21  ;;  %v1387_v60 = vld [vmem:[%s1529_s25 + $0x1d0] ss:$8 sps:$4 sm:$0xff]   ;;  %v1388_v61 = vld [vmem:[%s1529_s25 + $0xe4] ss:$8 sps:$4 sm:$0xff]   ;;  %v1392_v63 = vld [vmem:[%s1529_s25 + $0xe0] ss:$8 sps:$4 sm:$0xff]  }
  0x2c   : > { %936 = vmatprep.subr.bf16.mxu1 %v1336_v22  ;;  %917 = vmatprep.mubr.bf16.mxu0 %v1170_v48  ;;  %v1390_v62 = vld [vmem:[%s1529_s25 + $0x1e4] ss:$8 sps:$4 sm:$0xff]   ;;  %v1393_v0 = vld [vmem:[%s1529_s25 + $0x1e0] ss:$8 sps:$4 sm:$0xff]   ;;  %v1394_v1 = vld [vmem:[%s1529_s25 + $0xf4] ss:$8 sps:$4 sm:$0xff]  }
  0x2d   : > { %958 = vmatprep.mubr.bf16.mxu1 %v1172_v52  ;;  %v1396_v2 = vld [vmem:[%s1529_s25 + $0x1f4] ss:$8 sps:$4 sm:$0xff]   ;;  %v1398_v3 = vld [vmem:[%s1529_s25 + $0xf0] ss:$8 sps:$4 sm:$0xff]   ;;  %v1406_v5 = vld [vmem:[%s1529_s25 + $0x204] ss:$8 sps:$4 sm:$0xff]  }
  0x2e   : > { %896 = vmatpush1.bf16.msra.mxu0 %v1338_v23  ;;  %v1399_v4 = vld [vmem:[%s1529_s25 + $0x1f0] ss:$8 sps:$4 sm:$0xff]   ;;  %v1404_v8 = vld [vmem:[%s1529_s25 + $0x200] ss:$8 sps:$4 sm:$0xff]   ;;  %v1409_v10 = vld [vmem:[%s1529_s25 + $0x214] ss:$8 sps:$4 sm:$0xff]  }
  0x2f   : > { %937 = vmatpush1.bf16.msra.mxu1 %v1339_v24  ;;  %897 = vmatprep.subr.bf16.mxu0 %v1340_v25  ;;  %v1601_v9 = vld [vmem:[%s1524_s21 + $0x10] sm:$0xff]  ;;  %v1412_v13 = vld [vmem:[%s1529_s25 + $0x224] ss:$8 sps:$4 sm:$0xff]   ;;  %v1410_v14 = vld [vmem:[%s1529_s25 + $0x220] ss:$8 sps:$4 sm:$0xff]  }
  0x30   : > { %938 = vmatprep.subr.bf16.mxu1 %v1342_v26  ;;  %v1174_v11 = vcombine.high %v1601_v9, %v1601_v9  ;;  %v1407_v12 = vld [vmem:[%s1529_s25 + $0x210] ss:$8 sps:$4 sm:$0xff]   ;;  %v1415_v15 = vld [vmem:[%s1529_s25 + $0x234] ss:$8 sps:$4 sm:$0xff]   ;;  %v1418_v17 = vld [vmem:[%s1529_s25 + $0x244] ss:$8 sps:$4 sm:$0xff]  }
  0x31   : > { %v1413_v16 = vld [vmem:[%s1529_s25 + $0x230] ss:$8 sps:$4 sm:$0xff]   ;;  %v1416_v18 = vld [vmem:[%s1529_s25 + $0x240] ss:$8 sps:$4 sm:$0xff]   ;;  %v1421_v19 = vld [vmem:[%s1529_s25 + $0x254] ss:$8 sps:$4 sm:$0xff]  }
  0x32   : > { %898 = vmatpush1.bf16.msra.mxu0 %v1344_v27  ;;  %v1419_v20 = vld [vmem:[%s1529_s25 + $0x250] ss:$8 sps:$4 sm:$0xff]   ;;  %v1424_v21 = vld [vmem:[%s1529_s25 + $0x264] ss:$8 sps:$4 sm:$0xff]   ;;  %v1422_v22 = vld [vmem:[%s1529_s25 + $0x260] ss:$8 sps:$4 sm:$0xff]  }
  0x33   : > { %939 = vmatpush1.bf16.msra.mxu1 %v1345_v28  ;;  %899 = vmatprep.subr.bf16.mxu0 %v1346_v29  ;;  %v1427_v23 = vld [vmem:[%s1529_s25 + $0x274] ss:$8 sps:$4 sm:$0xff]   ;;  %v1425_v24 = vld [vmem:[%s1529_s25 + $0x270] ss:$8 sps:$4 sm:$0xff]   ;;  %v1430_v25 = vld [vmem:[%s1529_s25 + $0x284] ss:$8 sps:$4 sm:$0xff]  }
  0x34   : > { %940 = vmatprep.subr.bf16.mxu1 %v1348_v30  ;;  %v1428_v26 = vld [vmem:[%s1529_s25 + $0x280] ss:$8 sps:$4 sm:$0xff]   ;;  %v1433_v27 = vld [vmem:[%s1529_s25 + $0x294] ss:$8 sps:$4 sm:$0xff]   ;;  %v1431_v28 = vld [vmem:[%s1529_s25 + $0x290] ss:$8 sps:$4 sm:$0xff]  }
  0x35   : > { %v1436_v29 = vld [vmem:[%s1529_s25 + $0x2a4] ss:$8 sps:$4 sm:$0xff]   ;;  %v1434_v30 = vld [vmem:[%s1529_s25 + $0x2a0] ss:$8 sps:$4 sm:$0xff]  }
  0x36   : > { %900 = vmatpush1.bf16.msra.mxu0 %v1350_v31  ;;  %v1439_v31 = vld [vmem:[%s1529_s25 + $0x2b4] ss:$8 sps:$4 sm:$0xff]   ;;  %v283_v52 = vld [vmem:[#allocation2] sm:$0xff] }
  0x37   : > { %941 = vmatpush1.bf16.msra.mxu1 %v1351_v32  ;;  %901 = vmatprep.subr.bf16.mxu0 %v1352_v33  ;;  %v1437_v32 = vld [vmem:[%s1529_s25 + $0x2b0] ss:$8 sps:$4 sm:$0xff]   ;;  %v1442_v33 = vld [vmem:[%s1529_s25 + $0x2c4] ss:$8 sps:$4 sm:$0xff]  }
  0x38   : > { %942 = vmatprep.subr.bf16.mxu1 %v1354_v34  ;;  %v1440_v34 = vld [vmem:[%s1529_s25 + $0x2c0] ss:$8 sps:$4 sm:$0xff]  }
  0x3a   : > { %902 = vmatpush1.bf16.msra.mxu0 %v1356_v35  ;;  %v1445_v35 = vld [vmem:[%s1529_s25 + $0x2d4] ss:$8 sps:$4 sm:$0xff]  }
  0x3b   : > { %943 = vmatpush1.bf16.msra.mxu1 %v1357_v36  ;;  %903 = vmatprep.subr.bf16.mxu0 %v1358_v37  ;;  %v1443_v36 = vld [vmem:[%s1529_s25 + $0x2d0] ss:$8 sps:$4 sm:$0xff]   ;;  %v1448_v37 = vld [vmem:[%s1529_s25 + $0x2e4] ss:$8 sps:$4 sm:$0xff]  }
  0x3c   : > { %944 = vmatprep.subr.bf16.mxu1 %v1360_v38  ;;  %v1446_v38 = vld [vmem:[%s1529_s25 + $0x2e0] ss:$8 sps:$4 sm:$0xff]  }
  0x3e   : > { %904 = vmatpush1.bf16.msra.mxu0 %v1362_v39  ;;  %v1451_v39 = vld [vmem:[%s1529_s25 + $0x2f4] ss:$8 sps:$4 sm:$0xff]  }
  0x3f   : > { %945 = vmatpush1.bf16.msra.mxu1 %v1363_v40  ;;  %905 = vmatprep.subr.bf16.mxu0 %v1364_v41  ;;  %v1449_v40 = vld [vmem:[%s1529_s25 + $0x2f0] ss:$8 sps:$4 sm:$0xff]   ;;  %v1173_v41 = vcombine.low %v1601_v9, %v1601_v9 }
  0x40   : > { %946 = vmatprep.subr.bf16.mxu1 %v1366_v42 }
  0x42   : > { %906 = vmatpush1.bf16.msra.mxu0 %v1368_v43 }
  0x43   : > { %947 = vmatpush1.bf16.msra.mxu1 %v1369_v44  ;;  %907 = vmatprep.subr.bf16.mxu0 %v1370_v45 }
  0x44   : > { %948 = vmatprep.subr.bf16.mxu1 %v1372_v46 }
  0x46   : > { %908 = vmatpush1.bf16.msra.mxu0 %v1374_v50 }
  0x47   : > { %949 = vmatpush1.bf16.msra.mxu1 %v1375_v51  ;;  %909 = vmatprep.subr.bf16.mxu0 %v1376_v53 }
  0x48   : > { %950 = vmatprep.subr.bf16.mxu1 %v1378_v54 }
  0x4a   : > { %910 = vmatpush1.bf16.msra.mxu0 %v1380_v55  ;;  %v284_v55 = vld [vmem:[#allocation2 + $0x8] sm:$0xff] }
  0x4b   : > { %951 = vmatpush1.bf16.msra.mxu1 %v1381_v56  ;;  %911 = vmatprep.subr.bf16.mxu0 %v1382_v57 }
  0x4c   : > { %952 = vmatprep.subr.bf16.mxu1 %v1384_v58 }
  0x4e   : > { %912 = vmatpush1.bf16.msra.mxu0 %v1386_v59 }
  0x4f   : > { %953 = vmatpush1.bf16.msra.mxu1 %v1387_v60  ;;  %913 = vmatprep.subr.bf16.mxu0 %v1388_v61 }
  0x50   : > { %954 = vmatprep.subr.bf16.mxu1 %v1390_v62  ;;  %v1020_v62 = vlaneseq (!%p1271_p7) }
  0x52   : > { %914 = vmatpush1.bf16.msra.mxu0 %v1392_v63  ;;  %v1021_v63 = vshrl.u32 (!%p1271_p7), %v1020_v62, 7 }
  0x53   : > { %955 = vmatpush1.bf16.msra.mxu1 %v1393_v0  ;;  %915 = vmatprep.subr.bf16.mxu0 %v1394_v1  ;;  %v1018_v0 = vld [vmem:[%s1655_s2] sm:$0x3] (!%p1271_p7) }
  0x54   : > { %956 = vmatprep.subr.bf16.mxu1 %v1396_v2  ;;  %v1022_v1 = vsub.s32 (!%p1271_p7), 0, %v1021_v63  ;;  %v1026_v2 = vsub.s32 (!%p1271_p7), 1, %v1021_v63 }
  0x56   : > { %916 = vmatpush1.bf16.msra.mxu0 %v1398_v3 }
  0x57   : > { %957 = vmatpush1.bf16.msra.mxu1 %v1399_v4  ;;  %967 = vmatprep.subr.bf16.mxu0 %v1406_v5  ;;  %v1023_v5 = vrot.slane (!%p1271_p7), %v1018_v0, %v1022_v1 }
  0x59   : > { %918 = vmatmul.mubr.bf16.vlgmr.msra.gmra.mrb[0].mxu0 %v1169_v6  ;;  %v1027_v6 = vrot.slane (!%p1271_p7), %v1018_v0, %v1026_v2 }
  0x5a   : > { %959 = vmatmul.mubr.bf16.vlgmr.msra.gmra.mrb[0].mxu1 %v1171_v7  ;;  %968 = vmatpush1.bf16.msra.mxu0 %v1404_v8 }
  0x5b   : > { %999 = vmatprep.mubr.bf16.mxu0 %v1174_v11  ;;  %969 = vmatprep.subr.bf16.mxu0 %v1409_v10 }
  0x5e   : > { %970 = vmatpush1.bf16.msra.mxu0 %v1407_v12 }
  0x5f   : > { %971 = vmatprep.subr.bf16.mxu0 %v1412_v13 }
  0x62   : > { %972 = vmatpush1.bf16.msra.mxu0 %v1410_v14 }
  0x63   : > { %973 = vmatprep.subr.bf16.mxu0 %v1415_v15 }
  0x66   : > { %974 = vmatpush1.bf16.msra.mxu0 %v1413_v16 }
  0x67   : > { %975 = vmatprep.subr.bf16.mxu0 %v1418_v17 }
  0x6a   : > { %976 = vmatpush1.bf16.msra.mxu0 %v1416_v18 }
  0x6b   : > { %977 = vmatprep.subr.bf16.mxu0 %v1421_v19 }
  0x6e   : > { %978 = vmatpush1.bf16.msra.mxu0 %v1419_v20 }
  0x6f   : > { %979 = vmatprep.subr.bf16.mxu0 %v1424_v21 }
  0x72   : > { %980 = vmatpush1.bf16.msra.mxu0 %v1422_v22 }
  0x73   : > { %981 = vmatprep.subr.bf16.mxu0 %v1427_v23 }
  0x76   : > { %982 = vmatpush1.bf16.msra.mxu0 %v1425_v24 }
  0x77   : > { %983 = vmatprep.subr.bf16.mxu0 %v1430_v25 }
  0x7a   : > { %984 = vmatpush1.bf16.msra.mxu0 %v1428_v26 }
  0x7b   : > { %985 = vmatprep.subr.bf16.mxu0 %v1433_v27 }
  0x7e   : > { %986 = vmatpush1.bf16.msra.mxu0 %v1431_v28 }
  0x7f   : > { %987 = vmatprep.subr.bf16.mxu0 %v1436_v29 }
  0x82   : > { %988 = vmatpush1.bf16.msra.mxu0 %v1434_v30 }
  0x83   : > { %989 = vmatprep.subr.bf16.mxu0 %v1439_v31 }
  0x86   : > { %990 = vmatpush1.bf16.msra.mxu0 %v1437_v32 }
  0x87   : > { %991 = vmatprep.subr.bf16.mxu0 %v1442_v33 }
  0x8a   : > { %992 = vmatpush1.bf16.msra.mxu0 %v1440_v34 }
  0x8b   : > { %993 = vmatprep.subr.bf16.mxu0 %v1445_v35 }
  0x8e   : > { %994 = vmatpush1.bf16.msra.mxu0 %v1443_v36 }
  0x8f   : > { %995 = vmatprep.subr.bf16.mxu0 %v1448_v37 }
  0x92   : > { %996 = vmatpush1.bf16.msra.mxu0 %v1446_v38 }
  0x93   : > { %997 = vmatprep.subr.bf16.mxu0 %v1451_v39 }
  0x96   : > { %998 = vmatpush1.bf16.msra.mxu0 %v1449_v40 }
  0x99   : > { %1000 = vmatmul.mubr.bf16.vlgmr.msra.gmra.mrb[4].mxu0 %v1173_v41 }
 0x12c   : > { %v919_v42 = vpop.f32.mrb[0].mxu0 }
 0x12d   : > { %v960_v43 = vpop.f32.mrb[0].mxu1  ;;  %v921_v45 = vpop.f32.mrb[1].mxu0 }
 0x12e   : > { %v961_v44 = vadd.f32 %v960_v43, %v919_v42  ;;  %v962_v46 = vpop.f32.mrb[1].mxu1  ;;  %v923_v48 = vpop.f32.mrb[2].mxu0 }
 0x12f   : > { %v963_v47 = vadd.f32 %v962_v46, %v921_v45  ;;  %v964_v49 = vpop.f32.mrb[2].mxu1  ;;  %v924_v50 = vpop.f32.mrb[3].mxu0 }
 0x130   : > { %v965_v51 = vpop.f32.mrb[3].mxu1 }
 0x16c   : > { %v1001_v53 = vpop.f32.mrb[4].mxu0  ;;  %1015 = sbr.rel (%p1271_p7) target bundleno = 385 (0x181), region = 40 }
 0x16d   : > { %v1002_v54 = vadd.f32 %v1001_v53, %v961_v44  ;;  %v1003_v56 = vpop.f32.mrb[5].mxu0 }
 0x16e   : > { %v1004_v57 = vadd.f32 %v1003_v56, %v963_v47  ;;  %v1005_v58 = vpop.f32.mrb[6].mxu0 }
 0x16f   : > { %v1008_v59 = vadd.f32 %v1002_v54, %v283_v52  ;;  %v1006_v60 = vpop.f32.mrb[7].mxu0 }
 0x170   : > { %v1009_v61 = vadd.f32 %v1004_v57, %v284_v55 }
 0x171   : > { %1010 = vst [vmem:[#allocation2] sm:$0xff] %v1008_v59 }
 0x172   : > { %1011 = vst [vmem:[#allocation2 + $0x8] sm:$0xff] %v1009_v61 }
 0x178   : > { %v1016_v3 = vld [vmem:[#allocation2] sm:$0xff] }
 0x179   : > { %v1017_v4 = vld [vmem:[#allocation2 + $0x8] sm:$0xff]  ;;  %v1030_v7 = vadd.f32 %v1023_v5, %v1016_v3 }
 0x17a   : > { %v1031_v8 = vadd.f32 %v1027_v6, %v1017_v4 }
 0x17b   : > { %v1032_v9 = vmax.f32 %v1030_v7, 0.0 }
 0x17c   : > { %v1033_v10 = vmax.f32 %v1031_v8, 0.0 }
 0x17e   : > { %v1278_v11 = vpack.c.bf16 %v1033_v10, %v1032_v9 }
 0x180   : > { %1042 = vst [vmem:[%s1656_s3] sm:$0xff] %v1278_v11 }
 0x181 PF: > { %s13_s14 = sadd.s32 1, %s1476_s14   ;;  %s1657_s12 = smov %s1472_s13 }
 0x182   : > { %p10_p8 = scmp.ge.s32.totalorder %s13_s14, 5   ;;  %s1658_s13 = smov %s1660_s15 }
 0x184   :  { %12 = sbr.rel (!%p10_p8) target bundleno = 2 (0x2), region = 76 }

// kernel: resnet34_forward.57
= control target key start
LH: loop header
LB: loop body
LE: loop exit
PB: predicated region body
PF: predicated region fallthrough
CT: control target
= control target key end

     0   :  { %s1594_s15 = smov 0   ;;  %s1596_s16 = smov 0   ;;  %s1751_s0 = inlined_call_operand.vmem [shape: bf16[8,2304], index: 0, kind: input, shape index: {}]   ;;  %s1752_s1 = inlined_call_operand.vmem [shape: bf16[2304,256], index: 1, kind: input, shape index: {}]   ;;  %s1753_s2 = inlined_call_operand.vmem [shape: f32[1,256], index: 2, kind: input, shape index: {}]   ;;  %s1754_s3 = inlined_call_operand.vmem [shape: bf16[8,256], index: 3, kind: input, shape index: {}]   ;;  %s1755_s4 = inlined_call_operand.vmem [shape: bf16[8,256], index: 4, kind: output, shape index: {}]  }
   0x1   :  { %s1598_s17 = smov 0  }
   0x2 LB: > { %s26_s18 = sadd.s32 1, %s1562_s16  ;;  %p1254_p0 = scmp.ge.s32.totalorder %s1566_s17, 1  ;;  %s1566_s17 = sphi %s1598_s17, %s14_s17   ;;  %s1562_s16 = sphi %s1596_s16, %s1757_s16   ;;  %s1558_s15 = sphi %s1594_s15, %s1756_s15  }
   0x3   : > { %p27_p1 = scmp.ge.s32.totalorder %s26_s18, 3  ;;  %p236_p2 = scmp.lt.s32.totalorder %s1566_s17, 4 }
   0x5   : > { %s1759_s18 = smov (%p27_p1, %s26_s18), 0  ;;  %p237_p3 = pnand %p1254_p0, %p236_p2 }
   0x6   : > { %s293_s19 = smul.u32 (!%p237_p3), 6, %s1558_s15  ;;  %p1258_p6 = scmp.ne.s32.totalorder (!%p237_p3), %s1558_s15, 0 }
   0x7   : > { %240 = sbr.rel (%p237_p3) target bundleno = 387 (0x183), region = 36 }
   0x8   : > { %s303_s20 = smul.u32 (!%p237_p3), 96, %s1558_s15  ;;  %p296_p4 = scmp.lt.s32.totalorder (!%p237_p3), %s293_s19, 17 }
   0xa   : > { %p305_p5 = scmp.lt.s32.totalorder (!%p237_p3), %s303_s20, 287 }
   0xe   : > { %s1761_s19 = smov (!%p296_p4, %s293_s19), 17  ;;  %s1763_s20 = smov (!%p305_p5, %s303_s20), 287 }
   0xf   : > { %s1255_s21 = sshll.u32 %s1761_s19, 2  ;;  %s1367_s25 = sshll.u32 %s1763_s20, 3  ;;  %v1568_v0 = vmov (!%p1258_p6), 0.0  }
  0x10   : > { %s1619_s24 = scalar_lea.vmem %s1751_s0, %s1255_s21  ;;  %s1624_s28 = scalar_lea.vmem %s1752_s1, %s1367_s25  ;;  %344 = vst [vmem:[#allocation2] sm:$0xff] (!%p1258_p6), %v1568_v0  ;;  %345 = vst [vmem:[#allocation2 + $0x8] sm:$0xff] (!%p1258_p6), %v1568_v0 }
  0x11   : > { %343 = sbr.rel (%p1258_p6) target bundleno = 24 (0x18), region = 40 }
  0x18 PF: > { %v1394_v1 = vld [vmem:[%s1624_s28 + $0x4] ss:$8 sps:$4 sm:$0xff]   ;;  %v1398_v3 = vld [vmem:[%s1624_s28] ss:$8 sps:$4 sm:$0xff]   ;;  %v1400_v5 = vld [vmem:[%s1624_s28 + $0x14] ss:$8 sps:$4 sm:$0xff]  }
  0x19   : > { %v1396_v2 = vld [vmem:[%s1624_s28 + $0x104] ss:$8 sps:$4 sm:$0xff]   ;;  %948 = vmatprep.subr.bf16.mxu0 %v1394_v1  ;;  %v1399_v4 = vld [vmem:[%s1624_s28 + $0x100] ss:$8 sps:$4 sm:$0xff]   ;;  %v1402_v6 = vld [vmem:[%s1624_s28 + $0x114] ss:$8 sps:$4 sm:$0xff]  }
  0x1a   : > { %989 = vmatprep.subr.bf16.mxu1 %v1396_v2  ;;  %949 = vmatpush1.bf16.msra.mxu0 %v1398_v3  ;;  %v1404_v7 = vld [vmem:[%s1624_s28 + $0x10] ss:$8 sps:$4 sm:$0xff]   ;;  %v1406_v9 = vld [vmem:[%s1624_s28 + $0x24] ss:$8 sps:$4 sm:$0xff]   ;;  %v1410_v11 = vld [vmem:[%s1624_s28 + $0x20] ss:$8 sps:$4 sm:$0xff]  }
  0x1b   : > { %990 = vmatpush1.bf16.msra.mxu1 %v1399_v4  ;;  %950 = vmatprep.subr.bf16.mxu0 %v1400_v5  ;;  %v1405_v8 = vld [vmem:[%s1624_s28 + $0x110] ss:$8 sps:$4 sm:$0xff]   ;;  %v1408_v10 = vld [vmem:[%s1624_s28 + $0x124] ss:$8 sps:$4 sm:$0xff]   ;;  %v1411_v12 = vld [vmem:[%s1624_s28 + $0x120] ss:$8 sps:$4 sm:$0xff]  }
  0x1c   : > { %991 = vmatprep.subr.bf16.mxu1 %v1402_v6  ;;  %v1412_v13 = vld [vmem:[%s1624_s28 + $0x34] ss:$8 sps:$4 sm:$0xff]   ;;  %v1416_v15 = vld [vmem:[%s1624_s28 + $0x30] ss:$8 sps:$4 sm:$0xff]   ;;  %v1418_v17 = vld [vmem:[%s1624_s28 + $0x44] ss:$8 sps:$4 sm:$0xff]  }
  0x1d   : > { %v1414_v14 = vld [vmem:[%s1624_s28 + $0x134] ss:$8 sps:$4 sm:$0xff]   ;;  %v1417_v16 = vld [vmem:[%s1624_s28 + $0x130] ss:$8 sps:$4 sm:$0xff]   ;;  %v1420_v18 = vld [vmem:[%s1624_s28 + $0x144] ss:$8 sps:$4 sm:$0xff]  }
  0x1e   : > { %951 = vmatpush1.bf16.msra.mxu0 %v1404_v7  ;;  %v1422_v19 = vld [vmem:[%s1624_s28 + $0x40] ss:$8 sps:$4 sm:$0xff]   ;;  %v1424_v21 = vld [vmem:[%s1624_s28 + $0x54] ss:$8 sps:$4 sm:$0xff]   ;;  %v1428_v23 = vld [vmem:[%s1624_s28 + $0x50] ss:$8 sps:$4 sm:$0xff]  }
  0x1f   : > { %992 = vmatpush1.bf16.msra.mxu1 %v1405_v8  ;;  %952 = vmatprep.subr.bf16.mxu0 %v1406_v9  ;;  %v1423_v20 = vld [vmem:[%s1624_s28 + $0x140] ss:$8 sps:$4 sm:$0xff]   ;;  %v1426_v22 = vld [vmem:[%s1624_s28 + $0x154] ss:$8 sps:$4 sm:$0xff]   ;;  %v1429_v24 = vld [vmem:[%s1624_s28 + $0x150] ss:$8 sps:$4 sm:$0xff]  }
  0x20   : > { %993 = vmatprep.subr.bf16.mxu1 %v1408_v10  ;;  %v1430_v25 = vld [vmem:[%s1624_s28 + $0x64] ss:$8 sps:$4 sm:$0xff]   ;;  %v1434_v27 = vld [vmem:[%s1624_s28 + $0x60] ss:$8 sps:$4 sm:$0xff]   ;;  %v1436_v29 = vld [vmem:[%s1624_s28 + $0x74] ss:$8 sps:$4 sm:$0xff]  }
  0x21   : > { %v1432_v26 = vld [vmem:[%s1624_s28 + $0x164] ss:$8 sps:$4 sm:$0xff]   ;;  %v1435_v28 = vld [vmem:[%s1624_s28 + $0x160] ss:$8 sps:$4 sm:$0xff]   ;;  %v1438_v30 = vld [vmem:[%s1624_s28 + $0x174] ss:$8 sps:$4 sm:$0xff]  }
  0x22   : > { %953 = vmatpush1.bf16.msra.mxu0 %v1410_v11  ;;  %v1440_v31 = vld [vmem:[%s1624_s28 + $0x70] ss:$8 sps:$4 sm:$0xff]   ;;  %v1442_v33 = vld [vmem:[%s1624_s28 + $0x84] ss:$8 sps:$4 sm:$0xff]   ;;  %v1446_v35 = vld [vmem:[%s1624_s28 + $0x80] ss:$8 sps:$4 sm:$0xff]  }
  0x23   : > { %994 = vmatpush1.bf16.msra.mxu1 %v1411_v12  ;;  %954 = vmatprep.subr.bf16.mxu0 %v1412_v13  ;;  %v1441_v32 = vld [vmem:[%s1624_s28 + $0x170] ss:$8 sps:$4 sm:$0xff]   ;;  %v1444_v34 = vld [vmem:[%s1624_s28 + $0x184] ss:$8 sps:$4 sm:$0xff]   ;;  %v1447_v36 = vld [vmem:[%s1624_s28 + $0x180] ss:$8 sps:$4 sm:$0xff]  }
  0x24   : > { %995 = vmatprep.subr.bf16.mxu1 %v1414_v14  ;;  %v1448_v37 = vld [vmem:[%s1624_s28 + $0x94] ss:$8 sps:$4 sm:$0xff]   ;;  %v1452_v39 = vld [vmem:[%s1624_s28 + $0x90] ss:$8 sps:$4 sm:$0xff]   ;;  %v1454_v41 = vld [vmem:[%s1624_s28 + $0xa4] ss:$8 sps:$4 sm:$0xff]  }
  0x25   : > { %v1450_v38 = vld [vmem:[%s1624_s28 + $0x194] ss:$8 sps:$4 sm:$0xff]   ;;  %v1453_v40 = vld [vmem:[%s1624_s28 + $0x190] ss:$8 sps:$4 sm:$0xff]   ;;  %v1456_v42 = vld [vmem:[%s1624_s28 + $0x1a4] ss:$8 sps:$4 sm:$0xff]  }
  0x26   : > { %955 = vmatpush1.bf16.msra.mxu0 %v1416_v15  ;;  %v1458_v43 = vld [vmem:[%s1624_s28 + $0xa0] ss:$8 sps:$4 sm:$0xff]   ;;  %v1460_v45 = vld [vmem:[%s1624_s28 + $0xb4] ss:$8 sps:$4 sm:$0xff]   ;;  %v1464_v50 = vld [vmem:[%s1624_s28 + $0xb0] ss:$8 sps:$4 sm:$0xff]  }
  0x27   : > { %996 = vmatpush1.bf16.msra.mxu1 %v1417_v16  ;;  %956 = vmatprep.subr.bf16.mxu0 %v1418_v17  ;;  %v1459_v44 = vld [vmem:[%s1624_s28 + $0x1a0] ss:$8 sps:$4 sm:$0xff]   ;;  %v1462_v46 = vld [vmem:[%s1624_s28 + $0x1b4] ss:$8 sps:$4 sm:$0xff]   ;;  %v1465_v51 = vld [vmem:[%s1624_s28 + $0x1b0] ss:$8 sps:$4 sm:$0xff]  }
  0x28   : > { %997 = vmatprep.subr.bf16.mxu1 %v1420_v18  ;;  %v348_v47 = vld [vmem:[%s1619_s24] sm:$0xff]  ;;  %v349_v49 = vld [vmem:[%s1619_s24 + $0x8] sm:$0xff]  ;;  %v1472_v57 = vld [vmem:[%s1624_s28 + $0xd4] ss:$8 sps:$4 sm:$0xff]   ;;  %p1361_p7 = scmp.ne.s32.totalorder %s1558_s15, 2 }
  0x29   : > { %v1260_v48 = vcombine.high %v348_v47, %v348_v47  ;;  %v1262_v52 = vcombine.high %v349_v49, %v349_v49  ;;  %v1466_v53 = vld [vmem:[%s1624_s28 + $0xc4] ss:$8 sps:$4 sm:$0xff]   ;;  %v1470_v55 = vld [vmem:[%s1624_s28 + $0xc0] ss:$8 sps:$4 sm:$0xff]   ;;  %v1474_v58 = vld [vmem:[%s1624_s28 + $0x1d4] ss:$8 sps:$4 sm:$0xff]   ;;  %v1259_v6 = vcombine.low %v348_v47, %v348_v47  ;;  %v1261_v7 = vcombine.low %v349_v49, %v349_v49 }
  0x2a   : > { %957 = vmatpush1.bf16.msra.mxu0 %v1422_v19  ;;  %v1468_v54 = vld [vmem:[%s1624_s28 + $0x1c4] ss:$8 sps:$4 sm:$0xff]   ;;  %v1471_v56 = vld [vmem:[%s1624_s28 + $0x1c0] ss:$8 sps:$4 sm:$0xff]   ;;  %v1476_v59 = vld [vmem:[%s1624_s28 + $0xd0] ss:$8 sps:$4 sm:$0xff]  }
  0x2b   : > { %998 = vmatpush1.bf16.msra.mxu1 %v1423_v20  ;;  %958 = vmatprep.subr.bf16.mxu0 %v1424_v21  ;;  %v1477_v60 = vld [vmem:[%s1624_s28 + $0x1d0] ss:$8 sps:$4 sm:$0xff]   ;;  %v1478_v61 = vld [vmem:[%s1624_s28 + $0xe4] ss:$8 sps:$4 sm:$0xff]   ;;  %v1482_v63 = vld [vmem:[%s1624_s28 + $0xe0] ss:$8 sps:$4 sm:$0xff]  }
  0x2c   : > { %999 = vmatprep.subr.bf16.mxu1 %v1426_v22  ;;  %980 = vmatprep.mubr.bf16.mxu0 %v1260_v48  ;;  %v1480_v62 = vld [vmem:[%s1624_s28 + $0x1e4] ss:$8 sps:$4 sm:$0xff]   ;;  %v1483_v0 = vld [vmem:[%s1624_s28 + $0x1e0] ss:$8 sps:$4 sm:$0xff]   ;;  %v1484_v1 = vld [vmem:[%s1624_s28 + $0xf4] ss:$8 sps:$4 sm:$0xff]  }
  0x2d   : > { %1021 = vmatprep.mubr.bf16.mxu1 %v1262_v52  ;;  %v1486_v2 = vld [vmem:[%s1624_s28 + $0x1f4] ss:$8 sps:$4 sm:$0xff]   ;;  %v1488_v3 = vld [vmem:[%s1624_s28 + $0xf0] ss:$8 sps:$4 sm:$0xff]   ;;  %v1496_v5 = vld [vmem:[%s1624_s28 + $0x204] ss:$8 sps:$4 sm:$0xff]  }
  0x2e   : > { %959 = vmatpush1.bf16.msra.mxu0 %v1428_v23  ;;  %v1489_v4 = vld [vmem:[%s1624_s28 + $0x1f0] ss:$8 sps:$4 sm:$0xff]   ;;  %v1494_v8 = vld [vmem:[%s1624_s28 + $0x200] ss:$8 sps:$4 sm:$0xff]   ;;  %v1499_v10 = vld [vmem:[%s1624_s28 + $0x214] ss:$8 sps:$4 sm:$0xff]  }
  0x2f   : > { %1000 = vmatpush1.bf16.msra.mxu1 %v1429_v24  ;;  %960 = vmatprep.subr.bf16.mxu0 %v1430_v25  ;;  %v1696_v9 = vld [vmem:[%s1619_s24 + $0x10] sm:$0xff]  ;;  %v1502_v13 = vld [vmem:[%s1624_s28 + $0x224] ss:$8 sps:$4 sm:$0xff]   ;;  %v1500_v14 = vld [vmem:[%s1624_s28 + $0x220] ss:$8 sps:$4 sm:$0xff]  }
  0x30   : > { %1001 = vmatprep.subr.bf16.mxu1 %v1432_v26  ;;  %v1264_v11 = vcombine.high %v1696_v9, %v1696_v9  ;;  %v1497_v12 = vld [vmem:[%s1624_s28 + $0x210] ss:$8 sps:$4 sm:$0xff]   ;;  %v1505_v15 = vld [vmem:[%s1624_s28 + $0x234] ss:$8 sps:$4 sm:$0xff]   ;;  %v1508_v17 = vld [vmem:[%s1624_s28 + $0x244] ss:$8 sps:$4 sm:$0xff]  }
  0x31   : > { %v1503_v16 = vld [vmem:[%s1624_s28 + $0x230] ss:$8 sps:$4 sm:$0xff]   ;;  %v1506_v18 = vld [vmem:[%s1624_s28 + $0x240] ss:$8 sps:$4 sm:$0xff]   ;;  %v1511_v19 = vld [vmem:[%s1624_s28 + $0x254] ss:$8 sps:$4 sm:$0xff]  }
  0x32   : > { %961 = vmatpush1.bf16.msra.mxu0 %v1434_v27  ;;  %v1509_v20 = vld [vmem:[%s1624_s28 + $0x250] ss:$8 sps:$4 sm:$0xff]   ;;  %v1514_v21 = vld [vmem:[%s1624_s28 + $0x264] ss:$8 sps:$4 sm:$0xff]   ;;  %v1512_v22 = vld [vmem:[%s1624_s28 + $0x260] ss:$8 sps:$4 sm:$0xff]  }
  0x33   : > { %1002 = vmatpush1.bf16.msra.mxu1 %v1435_v28  ;;  %962 = vmatprep.subr.bf16.mxu0 %v1436_v29  ;;  %v1517_v23 = vld [vmem:[%s1624_s28 + $0x274] ss:$8 sps:$4 sm:$0xff]   ;;  %v1515_v24 = vld [vmem:[%s1624_s28 + $0x270] ss:$8 sps:$4 sm:$0xff]   ;;  %v1520_v25 = vld [vmem:[%s1624_s28 + $0x284] ss:$8 sps:$4 sm:$0xff]  }
  0x34   : > { %1003 = vmatprep.subr.bf16.mxu1 %v1438_v30  ;;  %v1518_v26 = vld [vmem:[%s1624_s28 + $0x280] ss:$8 sps:$4 sm:$0xff]   ;;  %v1523_v27 = vld [vmem:[%s1624_s28 + $0x294] ss:$8 sps:$4 sm:$0xff]   ;;  %v1521_v28 = vld [vmem:[%s1624_s28 + $0x290] ss:$8 sps:$4 sm:$0xff]  }
  0x35   : > { %v1526_v29 = vld [vmem:[%s1624_s28 + $0x2a4] ss:$8 sps:$4 sm:$0xff]   ;;  %v1524_v30 = vld [vmem:[%s1624_s28 + $0x2a0] ss:$8 sps:$4 sm:$0xff]  }
  0x36   : > { %963 = vmatpush1.bf16.msra.mxu0 %v1440_v31  ;;  %v1529_v31 = vld [vmem:[%s1624_s28 + $0x2b4] ss:$8 sps:$4 sm:$0xff]   ;;  %v346_v52 = vld [vmem:[#allocation2] sm:$0xff] }
  0x37   : > { %1004 = vmatpush1.bf16.msra.mxu1 %v1441_v32  ;;  %964 = vmatprep.subr.bf16.mxu0 %v1442_v33  ;;  %v1527_v32 = vld [vmem:[%s1624_s28 + $0x2b0] ss:$8 sps:$4 sm:$0xff]   ;;  %v1532_v33 = vld [vmem:[%s1624_s28 + $0x2c4] ss:$8 sps:$4 sm:$0xff]  }
  0x38   : > { %1005 = vmatprep.subr.bf16.mxu1 %v1444_v34  ;;  %v1530_v34 = vld [vmem:[%s1624_s28 + $0x2c0] ss:$8 sps:$4 sm:$0xff]  }
  0x3a   : > { %965 = vmatpush1.bf16.msra.mxu0 %v1446_v35  ;;  %v1535_v35 = vld [vmem:[%s1624_s28 + $0x2d4] ss:$8 sps:$4 sm:$0xff]  }
  0x3b   : > { %1006 = vmatpush1.bf16.msra.mxu1 %v1447_v36  ;;  %966 = vmatprep.subr.bf16.mxu0 %v1448_v37  ;;  %v1533_v36 = vld [vmem:[%s1624_s28 + $0x2d0] ss:$8 sps:$4 sm:$0xff]   ;;  %v1538_v37 = vld [vmem:[%s1624_s28 + $0x2e4] ss:$8 sps:$4 sm:$0xff]  }
  0x3c   : > { %1007 = vmatprep.subr.bf16.mxu1 %v1450_v38  ;;  %v1536_v38 = vld [vmem:[%s1624_s28 + $0x2e0] ss:$8 sps:$4 sm:$0xff]  }
  0x3e   : > { %967 = vmatpush1.bf16.msra.mxu0 %v1452_v39  ;;  %v1541_v39 = vld [vmem:[%s1624_s28 + $0x2f4] ss:$8 sps:$4 sm:$0xff]  }
  0x3f   : > { %1008 = vmatpush1.bf16.msra.mxu1 %v1453_v40  ;;  %968 = vmatprep.subr.bf16.mxu0 %v1454_v41  ;;  %v1539_v40 = vld [vmem:[%s1624_s28 + $0x2f0] ss:$8 sps:$4 sm:$0xff]   ;;  %v1263_v41 = vcombine.low %v1696_v9, %v1696_v9 }
  0x40   : > { %1009 = vmatprep.subr.bf16.mxu1 %v1456_v42 }
  0x42   : > { %969 = vmatpush1.bf16.msra.mxu0 %v1458_v43 }
  0x43   : > { %1010 = vmatpush1.bf16.msra.mxu1 %v1459_v44  ;;  %970 = vmatprep.subr.bf16.mxu0 %v1460_v45 }
  0x44   : > { %1011 = vmatprep.subr.bf16.mxu1 %v1462_v46 }
  0x46   : > { %971 = vmatpush1.bf16.msra.mxu0 %v1464_v50 }
  0x47   : > { %1012 = vmatpush1.bf16.msra.mxu1 %v1465_v51  ;;  %972 = vmatprep.subr.bf16.mxu0 %v1466_v53 }
  0x48   : > { %1013 = vmatprep.subr.bf16.mxu1 %v1468_v54 }
  0x4a   : > { %973 = vmatpush1.bf16.msra.mxu0 %v1470_v55  ;;  %v347_v55 = vld [vmem:[#allocation2 + $0x8] sm:$0xff] }
  0x4b   : > { %1014 = vmatpush1.bf16.msra.mxu1 %v1471_v56  ;;  %974 = vmatprep.subr.bf16.mxu0 %v1472_v57 }
  0x4c   : > { %1015 = vmatprep.subr.bf16.mxu1 %v1474_v58 }
  0x4e   : > { %975 = vmatpush1.bf16.msra.mxu0 %v1476_v59 }
  0x4f   : > { %1016 = vmatpush1.bf16.msra.mxu1 %v1477_v60  ;;  %976 = vmatprep.subr.bf16.mxu0 %v1478_v61 }
  0x50   : > { %1017 = vmatprep.subr.bf16.mxu1 %v1480_v62  ;;  %v1083_v62 = vlaneseq (!%p1361_p7) }
  0x52   : > { %977 = vmatpush1.bf16.msra.mxu0 %v1482_v63  ;;  %v1084_v63 = vshrl.u32 (!%p1361_p7), %v1083_v62, 7 }
  0x53   : > { %1018 = vmatpush1.bf16.msra.mxu1 %v1483_v0  ;;  %978 = vmatprep.subr.bf16.mxu0 %v1484_v1  ;;  %v1081_v0 = vld [vmem:[%s1753_s2] sm:$0x3] (!%p1361_p7) }
  0x54   : > { %1019 = vmatprep.subr.bf16.mxu1 %v1486_v2  ;;  %v1095_v1 = vld [vmem:[%s1754_s3] sm:$0xff] (!%p1361_p7)  ;;  %v1085_v2 = vsub.s32 (!%p1361_p7), 0, %v1084_v63 }
  0x55   : > { %v1097_v9 = vunpack.c.h.bf16 (!%p1361_p7), %v1095_v1 }
  0x56   : > { %979 = vmatpush1.bf16.msra.mxu0 %v1488_v3  ;;  %v1089_v3 = vsub.s32 (!%p1361_p7), 1, %v1084_v63 }
  0x57   : > { %1020 = vmatpush1.bf16.msra.mxu1 %v1489_v4  ;;  %1030 = vmatprep.subr.bf16.mxu0 %v1496_v5 }
  0x59   : > { %981 = vmatmul.mubr.bf16.vlgmr.msra.gmra.mrb[0].mxu0 %v1259_v6  ;;  %v1086_v6 = vrot.slane (!%p1361_p7), %v1081_v0, %v1085_v2 }
  0x5a   : > { %1022 = vmatmul.mubr.bf16.vlgmr.msra.gmra.mrb[0].mxu1 %v1261_v7  ;;  %1031 = vmatpush1.bf16.msra.mxu0 %v1494_v8  ;;  %v1090_v7 = vrot.slane (!%p1361_p7), %v1081_v0, %v1089_v3  ;;  %v1096_v8 = vunpack.c.l.bf16 (!%p1361_p7), %v1095_v1 }
  0x5b   : > { %1062 = vmatprep.mubr.bf16.mxu0 %v1264_v11  ;;  %1032 = vmatprep.subr.bf16.mxu0 %v1499_v10 }
  0x5e   : > { %1033 = vmatpush1.bf16.msra.mxu0 %v1497_v12 }
  0x5f   : > { %1034 = vmatprep.subr.bf16.mxu0 %v1502_v13 }
  0x62   : > { %1035 = vmatpush1.bf16.msra.mxu0 %v1500_v14 }
  0x63   : > { %1036 = vmatprep.subr.bf16.mxu0 %v1505_v15 }
  0x66   : > { %1037 = vmatpush1.bf16.msra.mxu0 %v1503_v16 }
  0x67   : > { %1038 = vmatprep.subr.bf16.mxu0 %v1508_v17 }
  0x6a   : > { %1039 = vmatpush1.bf16.msra.mxu0 %v1506_v18 }
  0x6b   : > { %1040 = vmatprep.subr.bf16.mxu0 %v1511_v19 }
  0x6e   : > { %1041 = vmatpush1.bf16.msra.mxu0 %v1509_v20 }
  0x6f   : > { %1042 = vmatprep.subr.bf16.mxu0 %v1514_v21 }
  0x72   : > { %1043 = vmatpush1.bf16.msra.mxu0 %v1512_v22 }
  0x73   : > { %1044 = vmatprep.subr.bf16.mxu0 %v1517_v23 }
  0x76   : > { %1045 = vmatpush1.bf16.msra.mxu0 %v1515_v24 }
  0x77   : > { %1046 = vmatprep.subr.bf16.mxu0 %v1520_v25 }
  0x7a   : > { %1047 = vmatpush1.bf16.msra.mxu0 %v1518_v26 }
  0x7b   : > { %1048 = vmatprep.subr.bf16.mxu0 %v1523_v27 }
  0x7e   : > { %1049 = vmatpush1.bf16.msra.mxu0 %v1521_v28 }
  0x7f   : > { %1050 = vmatprep.subr.bf16.mxu0 %v1526_v29 }
  0x82   : > { %1051 = vmatpush1.bf16.msra.mxu0 %v1524_v30 }
  0x83   : > { %1052 = vmatprep.subr.bf16.mxu0 %v1529_v31 }
  0x86   : > { %1053 = vmatpush1.bf16.msra.mxu0 %v1527_v32 }
  0x87   : > { %1054 = vmatprep.subr.bf16.mxu0 %v1532_v33 }
  0x8a   : > { %1055 = vmatpush1.bf16.msra.mxu0 %v1530_v34 }
  0x8b   : > { %1056 = vmatprep.subr.bf16.mxu0 %v1535_v35 }
  0x8e   : > { %1057 = vmatpush1.bf16.msra.mxu0 %v1533_v36 }
  0x8f   : > { %1058 = vmatprep.subr.bf16.mxu0 %v1538_v37 }
  0x92   : > { %1059 = vmatpush1.bf16.msra.mxu0 %v1536_v38 }
  0x93   : > { %1060 = vmatprep.subr.bf16.mxu0 %v1541_v39 }
  0x96   : > { %1061 = vmatpush1.bf16.msra.mxu0 %v1539_v40 }
  0x99   : > { %1063 = vmatmul.mubr.bf16.vlgmr.msra.gmra.mrb[4].mxu0 %v1263_v41 }
 0x12c   : > { %v982_v42 = vpop.f32.mrb[0].mxu0 }
 0x12d   : > { %v1023_v43 = vpop.f32.mrb[0].mxu1  ;;  %v984_v45 = vpop.f32.mrb[1].mxu0 }
 0x12e   : > { %v1024_v44 = vadd.f32 %v1023_v43, %v982_v42  ;;  %v1025_v46 = vpop.f32.mrb[1].mxu1  ;;  %v986_v48 = vpop.f32.mrb[2].mxu0 }
 0x12f   : > { %v1026_v47 = vadd.f32 %v1025_v46, %v984_v45  ;;  %v1027_v49 = vpop.f32.mrb[2].mxu1  ;;  %v987_v50 = vpop.f32.mrb[3].mxu0 }
 0x130   : > { %v1028_v51 = vpop.f32.mrb[3].mxu1 }
 0x16c   : > { %v1064_v53 = vpop.f32.mrb[4].mxu0  ;;  %1078 = sbr.rel (%p1361_p7) target bundleno = 387 (0x183), region = 44 }
 0x16d   : > { %v1065_v54 = vadd.f32 %v1064_v53, %v1024_v44  ;;  %v1066_v56 = vpop.f32.mrb[5].mxu0 }
 0x16e   : > { %v1067_v57 = vadd.f32 %v1066_v56, %v1026_v47  ;;  %v1068_v58 = vpop.f32.mrb[6].mxu0 }
 0x16f   : > { %v1071_v59 = vadd.f32 %v1065_v54, %v346_v52  ;;  %v1069_v60 = vpop.f32.mrb[7].mxu0 }
 0x170   : > { %v1072_v61 = vadd.f32 %v1067_v57, %v347_v55 }
 0x171   : > { %1073 = vst [vmem:[#allocation2] sm:$0xff] %v1071_v59 }
 0x172   : > { %1074 = vst [vmem:[#allocation2 + $0x8] sm:$0xff] %v1072_v61 }
 0x178   : > { %v1079_v4 = vld [vmem:[#allocation2] sm:$0xff] }
 0x179   : > { %v1080_v5 = vld [vmem:[#allocation2 + $0x8] sm:$0xff]  ;;  %v1093_v10 = vadd.f32 %v1086_v6, %v1079_v4 }
 0x17a   : > { %v1094_v11 = vadd.f32 %v1090_v7, %v1080_v5 }
 0x17b   : > { %v1098_v12 = vadd.f32 %v1096_v8, %v1093_v10 }
 0x17c   : > { %v1099_v13 = vadd.f32 %v1097_v9, %v1094_v11 }
 0x17d   : > { %v1100_v14 = vmax.f32 %v1098_v12, 0.0 }
 0x17e   : > { %v1101_v15 = vmax.f32 %v1099_v13, 0.0 }
 0x180   : > { %v1368_v16 = vpack.c.bf16 %v1101_v15, %v1100_v14 }
 0x182   : > { %1110 = vst [vmem:[%s1755_s4] sm:$0xff] %v1368_v16 }
 0x183 PF: > { %s14_s17 = sadd.s32 1, %s1566_s17   ;;  %s1756_s15 = smov %s1562_s16 }
 0x184   : > { %p11_p8 = scmp.ge.s32.totalorder %s14_s17, 5   ;;  %s1757_s16 = smov %s1759_s18 }
 0x186   :  { %13 = sbr.rel (!%p11_p8) target bundleno = 2 (0x2), region = 83 }

// kernel: resnet34_forward.68
= control target key start
LH: loop header
LB: loop body
LE: loop exit
PB: predicated region body
PF: predicated region fallthrough
CT: control target
= control target key end

     0   :  { %s1974_s12 = smov 0   ;;  %s1976_s13 = smov 0   ;;  %s2388_s0 = inlined_call_operand.vmem [shape: bf16[8,2304], index: 0, kind: input, shape index: {}]   ;;  %s2389_s1 = inlined_call_operand.vmem [shape: bf16[2304,512], index: 1, kind: input, shape index: {}]   ;;  %s2390_s2 = inlined_call_operand.vmem [shape: f32[1,512], index: 2, kind: input, shape index: {}]   ;;  %s2391_s3 = inlined_call_operand.vmem [shape: bf16[8,512], index: 3, kind: output, shape index: {}]  }
   0x1   :  { %s1978_s14 = smov 0   ;;  %s1980_s15 = smov 0  }
   0x2   :  { %s1982_s16 = smov 0   ;;  %s1984_s17 = smov 0  }
   0x3   :  { %s1986_s18 = smov 0  }
   0x4 LB: > { %s25_s19 = sadd.s32 1, %s1943_s16  ;;  %s28_s20 = sadd.s32 1, %s1947_s17  ;;  %s1951_s18 = sphi %s1986_s18, %s13_s18   ;;  %s1947_s17 = sphi %s1984_s17, %s2397_s17   ;;  %s1943_s16 = sphi %s1982_s16, %s2396_s16   ;;  %s1939_s15 = sphi %s1980_s15, %s2395_s15   ;;  %s1935_s14 = sphi %s1978_s14, %s2394_s14   ;;  %s1931_s13 = sphi %s1976_s13, %s2393_s13   ;;  %s1927_s12 = sphi %s1974_s12, %s2392_s12  }
   0x5   : > { %p26_p0 = scmp.ge.s32.totalorder %s25_s19, 3  ;;  %p76_p1 = scmp.ne.s32.totalorder %s1931_s13, %s1927_s12 }
   0x6   : > { %p77_p2 = scmp.eq.s32.totalorder %s1951_s18, 0  ;;  %s69_s24 = sadd.s32 1, %s1931_s13 }
   0x7   : > { %s2399_s19 = smov (%p26_p0, %s25_s19), 0  ;;  %s2401_s20 = smov (!%p26_p0, %s28_s20), %s1947_s17 }
   0x8   : > { %p78_p3 = por %p77_p2, %p76_p1  ;;  %p30_p4 = scmp.ge.s32.totalorder %s2401_s20, 2 }
   0x9   : > { %s64_s21 = ssub.s32 %s1943_s16, %s2399_s19  ;;  %p1570_p6 = scmp.ge.s32.totalorder %s1951_s18, 6 }
   0xa   : > { %s2403_s20 = smov (%p30_p4, %s2401_s20), 0 }
   0xb   : > { %s65_s22 = ssub.s32 %s1947_s17, %s2403_s20  ;;  %156 = sbr.rel (%p1570_p6) target bundleno = 74 (0x4a), region = 16 }
   0xc   : > { %s66_s23 = sor.u32 %s65_s22, %s64_s21 }
   0xd   : > { %p67_p5 = scmp.eq.s32.totalorder %s66_s23, 0 }
   0xf   : > { %s2025_s25 = scalar_select %p67_p5, %s1931_s13, %s69_s24  }
  0x12   : > { %172 = sbr.rel (!%p78_p3) target bundleno = 74 (0x4a), region = 24  ;;  %s174_s26 = sand.u32 (%p78_p3), 1, %s1931_s13  }
  0x13   : > { %s1688_s27 = smul.u32 (%p78_p3), 768, %s174_s26  ;;  %s1571_s28 = sshll.u32 (%p78_p3), %s1947_s17, 1 }
  0x14   : > { %s1686_s29 = smul.u32 (%p78_p3), 384, %s1943_s16 }
  0x15   : > { %s2039_s8 = scalar_lea.vmem (%p78_p3), [#allocation3], %s1688_s27 }
  0x16   : > { %s180_s30 = sadd.s32 (%p78_p3), %s1686_s29, %s1571_s28 }
  0x17   : > { %s1573_s4 = sshll.u32 (%p78_p3), %s180_s30, 2 }
  0x18   : > { %s2034_s7 = scalar_lea.vmem (%p78_p3), %s2389_s1, %s1573_s4 }
  0x19   : > { %v400_v0 = vld [vmem:[%s2034_s7] sm:$0xff]  ;;  %v402_v1 = vld [vmem:[%s2034_s7 + $0x10] sm:$0xff] }
  0x1a   : > { %v404_v2 = vld [vmem:[%s2034_s7 + $0x20] sm:$0xff]  ;;  %401 = vst [vmem:[%s2039_s8] sm:$0xff] %v400_v0  ;;  %403 = vst [vmem:[%s2039_s8 + $0x8] sm:$0xff] %v402_v1  ;;  %v406_v3 = vld [vmem:[%s2034_s7 + $0x30] sm:$0xff] }
  0x1b   : > { %405 = vst [vmem:[%s2039_s8 + $0x10] sm:$0xff] %v404_v2  ;;  %v408_v4 = vld [vmem:[%s2034_s7 + $0x40] sm:$0xff]  ;;  %v410_v5 = vld [vmem:[%s2034_s7 + $0x50] sm:$0xff]  ;;  %407 = vst [vmem:[%s2039_s8 + $0x18] sm:$0xff] %v406_v3 }
  0x1c   : > { %409 = vst [vmem:[%s2039_s8 + $0x20] sm:$0xff] %v408_v4  ;;  %411 = vst [vmem:[%s2039_s8 + $0x28] sm:$0xff] %v410_v5  ;;  %v412_v6 = vld [vmem:[%s2034_s7 + $0x60] sm:$0xff]  ;;  %v414_v7 = vld [vmem:[%s2034_s7 + $0x70] sm:$0xff] }
  0x1d   : > { %v416_v8 = vld [vmem:[%s2034_s7 + $0x80] sm:$0xff]  ;;  %413 = vst [vmem:[%s2039_s8 + $0x30] sm:$0xff] %v412_v6  ;;  %415 = vst [vmem:[%s2039_s8 + $0x38] sm:$0xff] %v414_v7  ;;  %v418_v9 = vld [vmem:[%s2034_s7 + $0x90] sm:$0xff] }
  0x1e   : > { %417 = vst [vmem:[%s2039_s8 + $0x40] sm:$0xff] %v416_v8  ;;  %v420_v10 = vld [vmem:[%s2034_s7 + $0xa0] sm:$0xff]  ;;  %v422_v11 = vld [vmem:[%s2034_s7 + $0xb0] sm:$0xff]  ;;  %419 = vst [vmem:[%s2039_s8 + $0x48] sm:$0xff] %v418_v9 }
  0x1f   : > { %421 = vst [vmem:[%s2039_s8 + $0x50] sm:$0xff] %v420_v10  ;;  %423 = vst [vmem:[%s2039_s8 + $0x58] sm:$0xff] %v422_v11  ;;  %v424_v12 = vld [vmem:[%s2034_s7 + $0xc0] sm:$0xff]  ;;  %v426_v13 = vld [vmem:[%s2034_s7 + $0xd0] sm:$0xff] }
  0x20   : > { %v428_v14 = vld [vmem:[%s2034_s7 + $0xe0] sm:$0xff]  ;;  %425 = vst [vmem:[%s2039_s8 + $0x60] sm:$0xff] %v424_v12  ;;  %427 = vst [vmem:[%s2039_s8 + $0x68] sm:$0xff] %v426_v13  ;;  %v430_v15 = vld [vmem:[%s2034_s7 + $0xf0] sm:$0xff] }
  0x21   : > { %429 = vst [vmem:[%s2039_s8 + $0x70] sm:$0xff] %v428_v14  ;;  %v432_v16 = vld [vmem:[%s2034_s7 + $0x100] sm:$0xff]  ;;  %v434_v17 = vld [vmem:[%s2034_s7 + $0x110] sm:$0xff]  ;;  %431 = vst [vmem:[%s2039_s8 + $0x78] sm:$0xff] %v430_v15 }
  0x22   : > { %433 = vst [vmem:[%s2039_s8 + $0x80] sm:$0xff] %v432_v16  ;;  %435 = vst [vmem:[%s2039_s8 + $0x88] sm:$0xff] %v434_v17  ;;  %v436_v18 = vld [vmem:[%s2034_s7 + $0x120] sm:$0xff]  ;;  %v438_v19 = vld [vmem:[%s2034_s7 + $0x130] sm:$0xff] }
  0x23   : > { %v440_v20 = vld [vmem:[%s2034_s7 + $0x140] sm:$0xff]  ;;  %437 = vst [vmem:[%s2039_s8 + $0x90] sm:$0xff] %v436_v18  ;;  %439 = vst [vmem:[%s2039_s8 + $0x98] sm:$0xff] %v438_v19  ;;  %v442_v21 = vld [vmem:[%s2034_s7 + $0x150] sm:$0xff] }
  0x24   : > { %441 = vst [vmem:[%s2039_s8 + $0xa0] sm:$0xff] %v440_v20  ;;  %v444_v22 = vld [vmem:[%s2034_s7 + $0x160] sm:$0xff]  ;;  %v446_v23 = vld [vmem:[%s2034_s7 + $0x170] sm:$0xff]  ;;  %443 = vst [vmem:[%s2039_s8 + $0xa8] sm:$0xff] %v442_v21 }
  0x25   : > { %445 = vst [vmem:[%s2039_s8 + $0xb0] sm:$0xff] %v444_v22  ;;  %447 = vst [vmem:[%s2039_s8 + $0xb8] sm:$0xff] %v446_v23  ;;  %v448_v24 = vld [vmem:[%s2034_s7 + $0x180] sm:$0xff]  ;;  %v450_v25 = vld [vmem:[%s2034_s7 + $0x190] sm:$0xff] }
  0x26   : > { %v452_v26 = vld [vmem:[%s2034_s7 + $0x1a0] sm:$0xff]  ;;  %449 = vst [vmem:[%s2039_s8 + $0xc0] sm:$0xff] %v448_v24  ;;  %451 = vst [vmem:[%s2039_s8 + $0xc8] sm:$0xff] %v450_v25  ;;  %v454_v27 = vld [vmem:[%s2034_s7 + $0x1b0] sm:$0xff] }
  0x27   : > { %453 = vst [vmem:[%s2039_s8 + $0xd0] sm:$0xff] %v452_v26  ;;  %v456_v28 = vld [vmem:[%s2034_s7 + $0x1c0] sm:$0xff]  ;;  %v458_v29 = vld [vmem:[%s2034_s7 + $0x1d0] sm:$0xff]  ;;  %455 = vst [vmem:[%s2039_s8 + $0xd8] sm:$0xff] %v454_v27 }
  0x28   : > { %457 = vst [vmem:[%s2039_s8 + $0xe0] sm:$0xff] %v456_v28  ;;  %459 = vst [vmem:[%s2039_s8 + $0xe8] sm:$0xff] %v458_v29  ;;  %v460_v30 = vld [vmem:[%s2034_s7 + $0x1e0] sm:$0xff]  ;;  %v462_v31 = vld [vmem:[%s2034_s7 + $0x1f0] sm:$0xff] }
  0x29   : > { %v464_v32 = vld [vmem:[%s2034_s7 + $0x200] sm:$0xff]  ;;  %461 = vst [vmem:[%s2039_s8 + $0xf0] sm:$0xff] %v460_v30  ;;  %463 = vst [vmem:[%s2039_s8 + $0xf8] sm:$0xff] %v462_v31  ;;  %v466_v33 = vld [vmem:[%s2034_s7 + $0x210] sm:$0xff] }
  0x2a   : > { %465 = vst [vmem:[%s2039_s8 + $0x100] sm:$0xff] %v464_v32  ;;  %v468_v34 = vld [vmem:[%s2034_s7 + $0x220] sm:$0xff]  ;;  %v470_v35 = vld [vmem:[%s2034_s7 + $0x230] sm:$0xff]  ;;  %467 = vst [vmem:[%s2039_s8 + $0x108] sm:$0xff] %v466_v33 }
  0x2b   : > { %469 = vst [vmem:[%s2039_s8 + $0x110] sm:$0xff] %v468_v34  ;;  %471 = vst [vmem:[%s2039_s8 + $0x118] sm:$0xff] %v470_v35  ;;  %v472_v36 = vld [vmem:[%s2034_s7 + $0x240] sm:$0xff]  ;;  %v474_v37 = vld [vmem:[%s2034_s7 + $0x250] sm:$0xff] }
  0x2c   : > { %v476_v38 = vld [vmem:[%s2034_s7 + $0x260] sm:$0xff]  ;;  %473 = vst [vmem:[%s2039_s8 + $0x120] sm:$0xff] %v472_v36  ;;  %475 = vst [vmem:[%s2039_s8 + $0x128] sm:$0xff] %v474_v37  ;;  %v478_v39 = vld [vmem:[%s2034_s7 + $0x270] sm:$0xff] }
  0x2d   : > { %477 = vst [vmem:[%s2039_s8 + $0x130] sm:$0xff] %v476_v38  ;;  %v480_v40 = vld [vmem:[%s2034_s7 + $0x280] sm:$0xff]  ;;  %v482_v41 = vld [vmem:[%s2034_s7 + $0x290] sm:$0xff]  ;;  %479 = vst [vmem:[%s2039_s8 + $0x138] sm:$0xff] %v478_v39 }
  0x2e   : > { %481 = vst [vmem:[%s2039_s8 + $0x140] sm:$0xff] %v480_v40  ;;  %483 = vst [vmem:[%s2039_s8 + $0x148] sm:$0xff] %v482_v41  ;;  %v484_v42 = vld [vmem:[%s2034_s7 + $0x2a0] sm:$0xff]  ;;  %v486_v43 = vld [vmem:[%s2034_s7 + $0x2b0] sm:$0xff] }
  0x2f   : > { %v488_v44 = vld [vmem:[%s2034_s7 + $0x2c0] sm:$0xff]  ;;  %485 = vst [vmem:[%s2039_s8 + $0x150] sm:$0xff] %v484_v42  ;;  %487 = vst [vmem:[%s2039_s8 + $0x158] sm:$0xff] %v486_v43  ;;  %v490_v45 = vld [vmem:[%s2034_s7 + $0x2d0] sm:$0xff] }
  0x30   : > { %489 = vst [vmem:[%s2039_s8 + $0x160] sm:$0xff] %v488_v44  ;;  %v492_v46 = vld [vmem:[%s2034_s7 + $0x2e0] sm:$0xff]  ;;  %v494_v47 = vld [vmem:[%s2034_s7 + $0x2f0] sm:$0xff]  ;;  %491 = vst [vmem:[%s2039_s8 + $0x168] sm:$0xff] %v490_v45 }
  0x31   : > { %493 = vst [vmem:[%s2039_s8 + $0x170] sm:$0xff] %v492_v46  ;;  %495 = vst [vmem:[%s2039_s8 + $0x178] sm:$0xff] %v494_v47  ;;  %v496_v48 = vld [vmem:[%s2034_s7 + $0x300] sm:$0xff]  ;;  %v498_v49 = vld [vmem:[%s2034_s7 + $0x310] sm:$0xff] }
  0x32   : > { %v500_v50 = vld [vmem:[%s2034_s7 + $0x320] sm:$0xff]  ;;  %497 = vst [vmem:[%s2039_s8 + $0x180] sm:$0xff] %v496_v48  ;;  %499 = vst [vmem:[%s2039_s8 + $0x188] sm:$0xff] %v498_v49  ;;  %v502_v51 = vld [vmem:[%s2034_s7 + $0x330] sm:$0xff] }
  0x33   : > { %501 = vst [vmem:[%s2039_s8 + $0x190] sm:$0xff] %v500_v50  ;;  %v504_v52 = vld [vmem:[%s2034_s7 + $0x340] sm:$0xff]  ;;  %v506_v53 = vld [vmem:[%s2034_s7 + $0x350] sm:$0xff]  ;;  %503 = vst [vmem:[%s2039_s8 + $0x198] sm:$0xff] %v502_v51 }
  0x34   : > { %505 = vst [vmem:[%s2039_s8 + $0x1a0] sm:$0xff] %v504_v52  ;;  %507 = vst [vmem:[%s2039_s8 + $0x1a8] sm:$0xff] %v506_v53  ;;  %v508_v54 = vld [vmem:[%s2034_s7 + $0x360] sm:$0xff]  ;;  %v510_v55 = vld [vmem:[%s2034_s7 + $0x370] sm:$0xff] }
  0x35   : > { %v512_v56 = vld [vmem:[%s2034_s7 + $0x380] sm:$0xff]  ;;  %509 = vst [vmem:[%s2039_s8 + $0x1b0] sm:$0xff] %v508_v54  ;;  %511 = vst [vmem:[%s2039_s8 + $0x1b8] sm:$0xff] %v510_v55  ;;  %v514_v57 = vld [vmem:[%s2034_s7 + $0x390] sm:$0xff] }
  0x36   : > { %513 = vst [vmem:[%s2039_s8 + $0x1c0] sm:$0xff] %v512_v56  ;;  %v516_v58 = vld [vmem:[%s2034_s7 + $0x3a0] sm:$0xff]  ;;  %v518_v59 = vld [vmem:[%s2034_s7 + $0x3b0] sm:$0xff]  ;;  %515 = vst [vmem:[%s2039_s8 + $0x1c8] sm:$0xff] %v514_v57 }
  0x37   : > { %517 = vst [vmem:[%s2039_s8 + $0x1d0] sm:$0xff] %v516_v58  ;;  %519 = vst [vmem:[%s2039_s8 + $0x1d8] sm:$0xff] %v518_v59  ;;  %v520_v60 = vld [vmem:[%s2034_s7 + $0x3c0] sm:$0xff]  ;;  %v522_v61 = vld [vmem:[%s2034_s7 + $0x3d0] sm:$0xff] }
  0x38   : > { %v524_v62 = vld [vmem:[%s2034_s7 + $0x3e0] sm:$0xff]  ;;  %521 = vst [vmem:[%s2039_s8 + $0x1e0] sm:$0xff] %v520_v60  ;;  %523 = vst [vmem:[%s2039_s8 + $0x1e8] sm:$0xff] %v522_v61  ;;  %v526_v63 = vld [vmem:[%s2034_s7 + $0x3f0] sm:$0xff] }
  0x39   : > { %525 = vst [vmem:[%s2039_s8 + $0x1f0] sm:$0xff] %v524_v62  ;;  %v528_v0 = vld [vmem:[%s2034_s7 + $0x400] sm:$0xff]  ;;  %v530_v1 = vld [vmem:[%s2034_s7 + $0x410] sm:$0xff]  ;;  %527 = vst [vmem:[%s2039_s8 + $0x1f8] sm:$0xff] %v526_v63 }
  0x3a   : > { %529 = vst [vmem:[%s2039_s8 + $0x200] sm:$0xff] %v528_v0  ;;  %531 = vst [vmem:[%s2039_s8 + $0x208] sm:$0xff] %v530_v1  ;;  %v532_v2 = vld [vmem:[%s2034_s7 + $0x420] sm:$0xff]  ;;  %v534_v3 = vld [vmem:[%s2034_s7 + $0x430] sm:$0xff] }
  0x3b   : > { %v536_v4 = vld [vmem:[%s2034_s7 + $0x440] sm:$0xff]  ;;  %533 = vst [vmem:[%s2039_s8 + $0x210] sm:$0xff] %v532_v2  ;;  %535 = vst [vmem:[%s2039_s8 + $0x218] sm:$0xff] %v534_v3  ;;  %v538_v5 = vld [vmem:[%s2034_s7 + $0x450] sm:$0xff] }
  0x3c   : > { %537 = vst [vmem:[%s2039_s8 + $0x220] sm:$0xff] %v536_v4  ;;  %v540_v6 = vld [vmem:[%s2034_s7 + $0x460] sm:$0xff]  ;;  %v542_v7 = vld [vmem:[%s2034_s7 + $0x470] sm:$0xff]  ;;  %539 = vst [vmem:[%s2039_s8 + $0x228] sm:$0xff] %v538_v5 }
  0x3d   : > { %541 = vst [vmem:[%s2039_s8 + $0x230] sm:$0xff] %v540_v6  ;;  %543 = vst [vmem:[%s2039_s8 + $0x238] sm:$0xff] %v542_v7  ;;  %v544_v8 = vld [vmem:[%s2034_s7 + $0x480] sm:$0xff]  ;;  %v546_v9 = vld [vmem:[%s2034_s7 + $0x490] sm:$0xff] }
  0x3e   : > { %v548_v10 = vld [vmem:[%s2034_s7 + $0x4a0] sm:$0xff]  ;;  %545 = vst [vmem:[%s2039_s8 + $0x240] sm:$0xff] %v544_v8  ;;  %547 = vst [vmem:[%s2039_s8 + $0x248] sm:$0xff] %v546_v9  ;;  %v550_v11 = vld [vmem:[%s2034_s7 + $0x4b0] sm:$0xff] }
  0x3f   : > { %549 = vst [vmem:[%s2039_s8 + $0x250] sm:$0xff] %v548_v10  ;;  %v552_v12 = vld [vmem:[%s2034_s7 + $0x4c0] sm:$0xff]  ;;  %v554_v13 = vld [vmem:[%s2034_s7 + $0x4d0] sm:$0xff]  ;;  %551 = vst [vmem:[%s2039_s8 + $0x258] sm:$0xff] %v550_v11 }
  0x40   : > { %553 = vst [vmem:[%s2039_s8 + $0x260] sm:$0xff] %v552_v12  ;;  %555 = vst [vmem:[%s2039_s8 + $0x268] sm:$0xff] %v554_v13  ;;  %v556_v14 = vld [vmem:[%s2034_s7 + $0x4e0] sm:$0xff]  ;;  %v558_v15 = vld [vmem:[%s2034_s7 + $0x4f0] sm:$0xff] }
  0x41   : > { %v560_v16 = vld [vmem:[%s2034_s7 + $0x500] sm:$0xff]  ;;  %557 = vst [vmem:[%s2039_s8 + $0x270] sm:$0xff] %v556_v14  ;;  %559 = vst [vmem:[%s2039_s8 + $0x278] sm:$0xff] %v558_v15  ;;  %v562_v17 = vld [vmem:[%s2034_s7 + $0x510] sm:$0xff] }
  0x42   : > { %561 = vst [vmem:[%s2039_s8 + $0x280] sm:$0xff] %v560_v16  ;;  %v564_v18 = vld [vmem:[%s2034_s7 + $0x520] sm:$0xff]  ;;  %v566_v19 = vld [vmem:[%s2034_s7 + $0x530] sm:$0xff]  ;;  %563 = vst [vmem:[%s2039_s8 + $0x288] sm:$0xff] %v562_v17 }
  0x43   : > { %565 = vst [vmem:[%s2039_s8 + $0x290] sm:$0xff] %v564_v18  ;;  %567 = vst [vmem:[%s2039_s8 + $0x298] sm:$0xff] %v566_v19  ;;  %v568_v20 = vld [vmem:[%s2034_s7 + $0x540] sm:$0xff]  ;;  %v570_v21 = vld [vmem:[%s2034_s7 + $0x550] sm:$0xff] }
  0x44   : > { %v572_v22 = vld [vmem:[%s2034_s7 + $0x560] sm:$0xff]  ;;  %569 = vst [vmem:[%s2039_s8 + $0x2a0] sm:$0xff] %v568_v20  ;;  %571 = vst [vmem:[%s2039_s8 + $0x2a8] sm:$0xff] %v570_v21  ;;  %v574_v23 = vld [vmem:[%s2034_s7 + $0x570] sm:$0xff] }
  0x45   : > { %573 = vst [vmem:[%s2039_s8 + $0x2b0] sm:$0xff] %v572_v22  ;;  %v576_v24 = vld [vmem:[%s2034_s7 + $0x580] sm:$0xff]  ;;  %v578_v25 = vld [vmem:[%s2034_s7 + $0x590] sm:$0xff]  ;;  %575 = vst [vmem:[%s2039_s8 + $0x2b8] sm:$0xff] %v574_v23 }
  0x46   : > { %577 = vst [vmem:[%s2039_s8 + $0x2c0] sm:$0xff] %v576_v24  ;;  %579 = vst [vmem:[%s2039_s8 + $0x2c8] sm:$0xff] %v578_v25  ;;  %v580_v26 = vld [vmem:[%s2034_s7 + $0x5a0] sm:$0xff]  ;;  %v582_v27 = vld [vmem:[%s2034_s7 + $0x5b0] sm:$0xff] }
  0x47   : > { %v584_v28 = vld [vmem:[%s2034_s7 + $0x5c0] sm:$0xff]  ;;  %581 = vst [vmem:[%s2039_s8 + $0x2d0] sm:$0xff] %v580_v26  ;;  %583 = vst [vmem:[%s2039_s8 + $0x2d8] sm:$0xff] %v582_v27  ;;  %v586_v29 = vld [vmem:[%s2034_s7 + $0x5d0] sm:$0xff] }
  0x48   : > { %585 = vst [vmem:[%s2039_s8 + $0x2e0] sm:$0xff] %v584_v28  ;;  %v588_v30 = vld [vmem:[%s2034_s7 + $0x5e0] sm:$0xff]  ;;  %v590_v31 = vld [vmem:[%s2034_s7 + $0x5f0] sm:$0xff]  ;;  %587 = vst [vmem:[%s2039_s8 + $0x2e8] sm:$0xff] %v586_v29 }
  0x49   : > { %589 = vst [vmem:[%s2039_s8 + $0x2f0] sm:$0xff] %v588_v30  ;;  %591 = vst [vmem:[%s2039_s8 + $0x2f8] sm:$0xff] %v590_v31 }
  0x4a PF: > { %p1574_p7 = scmp.ge.s32.totalorder %s1951_s18, 1  ;;  %p604_p8 = scmp.lt.s32.totalorder %s1951_s18, 7 }
  0x4c   : > { %p605_p9 = pnand %p1574_p7, %p604_p8 }
  0x4d   : > { %s611_s9 = sand.u32 (!%p605_p9), 1, %s1927_s12   ;;  %s651_s10 = smul.u32 (!%p605_p9), 6, %s1935_s14 }
  0x4e   : > { %608 = sbr.rel (%p605_p9) target bundleno = 456 (0x1c8), region = 66  ;;  %s1576_s21 = sshll.u32 (!%p605_p9), %s1939_s15, 1 }
  0x4f   : > { %s1689_s11 = smul.u32 (!%p605_p9), 768, %s611_s9  ;;  %p654_p10 = scmp.lt.s32.totalorder (!%p605_p9), %s651_s10, 17 }
  0x50   : > { %p664_p11 = scmp.lt.s32.totalorder (!%p605_p9), %s1576_s21, 3  ;;  %p1579_p12 = scmp.ne.s32.totalorder (!%p605_p9), %s1935_s14, 0 }
  0x51   : > { %s2252_s5 = scalar_lea.vmem (!%p605_p9), [#allocation3], %s1689_s11 }
  0x55   : > { %s2405_s10 = smov (!%p654_p10, %s651_s10), 17  ;;  %s2407_s21 = smov (!%p664_p11, %s1576_s21), 3 }
  0x56   : > { %s1575_s22 = sshll.u32 %s2405_s10, 2  ;;  %s666_s12 = scalar_lea.vmem %s2390_s2, %s2407_s21  ;;  %v1953_v32 = vmov (!%p1579_p12), 0.0  }
  0x57   : > { %s2240_s26 = scalar_lea.vmem %s2388_s0, %s1575_s22  ;;  %s1578_s29 = sshll.u32 %s2407_s21, 2  ;;  %682 = vst [vmem:[#allocation2] sm:$0xff] (!%p1579_p12), %v1953_v32  ;;  %683 = vst [vmem:[#allocation2 + $0x8] sm:$0xff] (!%p1579_p12), %v1953_v32 }
  0x58   : > { %s2250_s4 = scalar_lea.vmem %s2391_s3, %s1578_s29  ;;  %681 = sbr.rel (%p1579_p12) target bundleno = 95 (0x5f), region = 74 }
  0x5f PF: > { %v1747_v33 = vld [vmem:[%s2252_s5 + $0x4] ss:$8 sps:$4 sm:$0xff]   ;;  %v1751_v35 = vld [vmem:[%s2252_s5] ss:$8 sps:$4 sm:$0xff]   ;;  %v1753_v37 = vld [vmem:[%s2252_s5 + $0x14] ss:$8 sps:$4 sm:$0xff]  }
  0x60   : > { %v1749_v34 = vld [vmem:[%s2252_s5 + $0x104] ss:$8 sps:$4 sm:$0xff]   ;;  %1286 = vmatprep.subr.bf16.mxu0 %v1747_v33  ;;  %v1752_v36 = vld [vmem:[%s2252_s5 + $0x100] ss:$8 sps:$4 sm:$0xff]   ;;  %v1755_v38 = vld [vmem:[%s2252_s5 + $0x114] ss:$8 sps:$4 sm:$0xff]  }
  0x61   : > { %1327 = vmatprep.subr.bf16.mxu1 %v1749_v34  ;;  %1287 = vmatpush1.bf16.msra.mxu0 %v1751_v35  ;;  %v1757_v39 = vld [vmem:[%s2252_s5 + $0x10] ss:$8 sps:$4 sm:$0xff]   ;;  %v1759_v41 = vld [vmem:[%s2252_s5 + $0x24] ss:$8 sps:$4 sm:$0xff]   ;;  %v1763_v43 = vld [vmem:[%s2252_s5 + $0x20] ss:$8 sps:$4 sm:$0xff]  }
  0x62   : > { %1328 = vmatpush1.bf16.msra.mxu1 %v1752_v36  ;;  %1288 = vmatprep.subr.bf16.mxu0 %v1753_v37  ;;  %v1758_v40 = vld [vmem:[%s2252_s5 + $0x110] ss:$8 sps:$4 sm:$0xff]   ;;  %v1761_v42 = vld [vmem:[%s2252_s5 + $0x124] ss:$8 sps:$4 sm:$0xff]   ;;  %v1764_v44 = vld [vmem:[%s2252_s5 + $0x120] ss:$8 sps:$4 sm:$0xff]  }
  0x63   : > { %1329 = vmatprep.subr.bf16.mxu1 %v1755_v38  ;;  %v1765_v45 = vld [vmem:[%s2252_s5 + $0x34] ss:$8 sps:$4 sm:$0xff]   ;;  %v1769_v47 = vld [vmem:[%s2252_s5 + $0x30] ss:$8 sps:$4 sm:$0xff]   ;;  %v1771_v49 = vld [vmem:[%s2252_s5 + $0x44] ss:$8 sps:$4 sm:$0xff]  }
  0x64   : > { %v1767_v46 = vld [vmem:[%s2252_s5 + $0x134] ss:$8 sps:$4 sm:$0xff]   ;;  %v1770_v48 = vld [vmem:[%s2252_s5 + $0x130] ss:$8 sps:$4 sm:$0xff]   ;;  %v1773_v50 = vld [vmem:[%s2252_s5 + $0x144] ss:$8 sps:$4 sm:$0xff]  }
  0x65   : > { %1289 = vmatpush1.bf16.msra.mxu0 %v1757_v39  ;;  %v1775_v51 = vld [vmem:[%s2252_s5 + $0x40] ss:$8 sps:$4 sm:$0xff]   ;;  %v1777_v53 = vld [vmem:[%s2252_s5 + $0x54] ss:$8 sps:$4 sm:$0xff]   ;;  %v1781_v55 = vld [vmem:[%s2252_s5 + $0x50] ss:$8 sps:$4 sm:$0xff]  }
  0x66   : > { %1330 = vmatpush1.bf16.msra.mxu1 %v1758_v40  ;;  %1290 = vmatprep.subr.bf16.mxu0 %v1759_v41  ;;  %v1776_v52 = vld [vmem:[%s2252_s5 + $0x140] ss:$8 sps:$4 sm:$0xff]   ;;  %v1779_v54 = vld [vmem:[%s2252_s5 + $0x154] ss:$8 sps:$4 sm:$0xff]   ;;  %v1782_v56 = vld [vmem:[%s2252_s5 + $0x150] ss:$8 sps:$4 sm:$0xff]  }
  0x67   : > { %1331 = vmatprep.subr.bf16.mxu1 %v1761_v42  ;;  %v1783_v57 = vld [vmem:[%s2252_s5 + $0x64] ss:$8 sps:$4 sm:$0xff]   ;;  %v1787_v59 = vld [vmem:[%s2252_s5 + $0x60] ss:$8 sps:$4 sm:$0xff]   ;;  %v1789_v61 = vld [vmem:[%s2252_s5 + $0x74] ss:$8 sps:$4 sm:$0xff]  }
  0x68   : > { %v1785_v58 = vld [vmem:[%s2252_s5 + $0x164] ss:$8 sps:$4 sm:$0xff]   ;;  %v1788_v60 = vld [vmem:[%s2252_s5 + $0x160] ss:$8 sps:$4 sm:$0xff]   ;;  %v1791_v62 = vld [vmem:[%s2252_s5 + $0x174] ss:$8 sps:$4 sm:$0xff]  }
  0x69   : > { %1291 = vmatpush1.bf16.msra.mxu0 %v1763_v43  ;;  %v1793_v63 = vld [vmem:[%s2252_s5 + $0x70] ss:$8 sps:$4 sm:$0xff]   ;;  %v1795_v1 = vld [vmem:[%s2252_s5 + $0x84] ss:$8 sps:$4 sm:$0xff]   ;;  %v1799_v3 = vld [vmem:[%s2252_s5 + $0x80] ss:$8 sps:$4 sm:$0xff]  }
  0x6a   : > { %1332 = vmatpush1.bf16.msra.mxu1 %v1764_v44  ;;  %1292 = vmatprep.subr.bf16.mxu0 %v1765_v45  ;;  %v1794_v0 = vld [vmem:[%s2252_s5 + $0x170] ss:$8 sps:$4 sm:$0xff]   ;;  %v1797_v2 = vld [vmem:[%s2252_s5 + $0x184] ss:$8 sps:$4 sm:$0xff]   ;;  %v1800_v4 = vld [vmem:[%s2252_s5 + $0x180] ss:$8 sps:$4 sm:$0xff]  }
  0x6b   : > { %1333 = vmatprep.subr.bf16.mxu1 %v1767_v46  ;;  %v1801_v5 = vld [vmem:[%s2252_s5 + $0x94] ss:$8 sps:$4 sm:$0xff]   ;;  %v1805_v7 = vld [vmem:[%s2252_s5 + $0x90] ss:$8 sps:$4 sm:$0xff]   ;;  %v1807_v9 = vld [vmem:[%s2252_s5 + $0xa4] ss:$8 sps:$4 sm:$0xff]  }
  0x6c   : > { %v1803_v6 = vld [vmem:[%s2252_s5 + $0x194] ss:$8 sps:$4 sm:$0xff]   ;;  %v1806_v8 = vld [vmem:[%s2252_s5 + $0x190] ss:$8 sps:$4 sm:$0xff]   ;;  %v1809_v10 = vld [vmem:[%s2252_s5 + $0x1a4] ss:$8 sps:$4 sm:$0xff]  }
  0x6d   : > { %1293 = vmatpush1.bf16.msra.mxu0 %v1769_v47  ;;  %v1811_v11 = vld [vmem:[%s2252_s5 + $0xa0] ss:$8 sps:$4 sm:$0xff]   ;;  %v1813_v13 = vld [vmem:[%s2252_s5 + $0xb4] ss:$8 sps:$4 sm:$0xff]   ;;  %v1817_v18 = vld [vmem:[%s2252_s5 + $0xb0] ss:$8 sps:$4 sm:$0xff]  }
  0x6e   : > { %1334 = vmatpush1.bf16.msra.mxu1 %v1770_v48  ;;  %1294 = vmatprep.subr.bf16.mxu0 %v1771_v49  ;;  %v1812_v12 = vld [vmem:[%s2252_s5 + $0x1a0] ss:$8 sps:$4 sm:$0xff]   ;;  %v1815_v14 = vld [vmem:[%s2252_s5 + $0x1b4] ss:$8 sps:$4 sm:$0xff]   ;;  %v1818_v19 = vld [vmem:[%s2252_s5 + $0x1b0] ss:$8 sps:$4 sm:$0xff]  }
  0x6f   : > { %1335 = vmatprep.subr.bf16.mxu1 %v1773_v50  ;;  %v686_v15 = vld [vmem:[%s2240_s26] sm:$0xff]  ;;  %v687_v17 = vld [vmem:[%s2240_s26 + $0x8] sm:$0xff]  ;;  %v1819_v21 = vld [vmem:[%s2252_s5 + $0xc4] ss:$8 sps:$4 sm:$0xff]   ;;  %p1682_p13 = scmp.ne.s32.totalorder %s1935_s14, 2 }
  0x70   : > { %v1581_v16 = vcombine.high %v686_v15, %v686_v15  ;;  %v1583_v20 = vcombine.high %v687_v17, %v687_v17  ;;  %v1821_v22 = vld [vmem:[%s2252_s5 + $0x1c4] ss:$8 sps:$4 sm:$0xff]   ;;  %v1823_v23 = vld [vmem:[%s2252_s5 + $0xc0] ss:$8 sps:$4 sm:$0xff]   ;;  %v1825_v25 = vld [vmem:[%s2252_s5 + $0xd4] ss:$8 sps:$4 sm:$0xff]   ;;  %v1580_v38 = vcombine.low %v686_v15, %v686_v15  ;;  %v1582_v39 = vcombine.low %v687_v17, %v687_v17 }
  0x71   : > { %1295 = vmatpush1.bf16.msra.mxu0 %v1775_v51  ;;  %v1824_v24 = vld [vmem:[%s2252_s5 + $0x1c0] ss:$8 sps:$4 sm:$0xff]   ;;  %v1827_v26 = vld [vmem:[%s2252_s5 + $0x1d4] ss:$8 sps:$4 sm:$0xff]   ;;  %v1829_v27 = vld [vmem:[%s2252_s5 + $0xd0] ss:$8 sps:$4 sm:$0xff]  }
  0x72   : > { %1336 = vmatpush1.bf16.msra.mxu1 %v1776_v52  ;;  %1296 = vmatprep.subr.bf16.mxu0 %v1777_v53  ;;  %v1830_v28 = vld [vmem:[%s2252_s5 + $0x1d0] ss:$8 sps:$4 sm:$0xff]   ;;  %v1831_v29 = vld [vmem:[%s2252_s5 + $0xe4] ss:$8 sps:$4 sm:$0xff]   ;;  %v1835_v31 = vld [vmem:[%s2252_s5 + $0xe0] ss:$8 sps:$4 sm:$0xff]  }
  0x73   : > { %1337 = vmatprep.subr.bf16.mxu1 %v1779_v54  ;;  %1318 = vmatprep.mubr.bf16.mxu0 %v1581_v16  ;;  %v1833_v30 = vld [vmem:[%s2252_s5 + $0x1e4] ss:$8 sps:$4 sm:$0xff]   ;;  %v1836_v32 = vld [vmem:[%s2252_s5 + $0x1e0] ss:$8 sps:$4 sm:$0xff]   ;;  %v1837_v33 = vld [vmem:[%s2252_s5 + $0xf4] ss:$8 sps:$4 sm:$0xff]  }
  0x74   : > { %1359 = vmatprep.mubr.bf16.mxu1 %v1583_v20  ;;  %v1839_v34 = vld [vmem:[%s2252_s5 + $0x1f4] ss:$8 sps:$4 sm:$0xff]   ;;  %v1841_v35 = vld [vmem:[%s2252_s5 + $0xf0] ss:$8 sps:$4 sm:$0xff]   ;;  %v1849_v37 = vld [vmem:[%s2252_s5 + $0x204] ss:$8 sps:$4 sm:$0xff]  }
  0x75   : > { %1297 = vmatpush1.bf16.msra.mxu0 %v1781_v55  ;;  %v1842_v36 = vld [vmem:[%s2252_s5 + $0x1f0] ss:$8 sps:$4 sm:$0xff]   ;;  %v1847_v40 = vld [vmem:[%s2252_s5 + $0x200] ss:$8 sps:$4 sm:$0xff]   ;;  %v1852_v42 = vld [vmem:[%s2252_s5 + $0x214] ss:$8 sps:$4 sm:$0xff]  }
  0x76   : > { %1338 = vmatpush1.bf16.msra.mxu1 %v1782_v56  ;;  %1298 = vmatprep.subr.bf16.mxu0 %v1783_v57  ;;  %v2324_v41 = vld [vmem:[%s2240_s26 + $0x10] sm:$0xff]  ;;  %v1850_v44 = vld [vmem:[%s2252_s5 + $0x210] ss:$8 sps:$4 sm:$0xff]   ;;  %v1858_v47 = vld [vmem:[%s2252_s5 + $0x234] ss:$8 sps:$4 sm:$0xff]  }
  0x77   : > { %1339 = vmatprep.subr.bf16.mxu1 %v1785_v58  ;;  %v1585_v43 = vcombine.high %v2324_v41, %v2324_v41  ;;  %v1855_v45 = vld [vmem:[%s2252_s5 + $0x224] ss:$8 sps:$4 sm:$0xff]   ;;  %v1853_v46 = vld [vmem:[%s2252_s5 + $0x220] ss:$8 sps:$4 sm:$0xff]   ;;  %v1856_v48 = vld [vmem:[%s2252_s5 + $0x230] ss:$8 sps:$4 sm:$0xff]  }
  0x78   : > { %v1861_v49 = vld [vmem:[%s2252_s5 + $0x244] ss:$8 sps:$4 sm:$0xff]   ;;  %v1859_v50 = vld [vmem:[%s2252_s5 + $0x240] ss:$8 sps:$4 sm:$0xff]   ;;  %v1864_v51 = vld [vmem:[%s2252_s5 + $0x254] ss:$8 sps:$4 sm:$0xff]  }
  0x79   : > { %1299 = vmatpush1.bf16.msra.mxu0 %v1787_v59  ;;  %v1862_v52 = vld [vmem:[%s2252_s5 + $0x250] ss:$8 sps:$4 sm:$0xff]   ;;  %v1867_v53 = vld [vmem:[%s2252_s5 + $0x264] ss:$8 sps:$4 sm:$0xff]   ;;  %v1865_v54 = vld [vmem:[%s2252_s5 + $0x260] ss:$8 sps:$4 sm:$0xff]  }
  0x7a   : > { %1340 = vmatpush1.bf16.msra.mxu1 %v1788_v60  ;;  %1300 = vmatprep.subr.bf16.mxu0 %v1789_v61  ;;  %v1870_v55 = vld [vmem:[%s2252_s5 + $0x274] ss:$8 sps:$4 sm:$0xff]   ;;  %v1868_v56 = vld [vmem:[%s2252_s5 + $0x270] ss:$8 sps:$4 sm:$0xff]   ;;  %v1873_v57 = vld [vmem:[%s2252_s5 + $0x284] ss:$8 sps:$4 sm:$0xff]  }
  0x7b   : > { %1341 = vmatprep.subr.bf16.mxu1 %v1791_v62  ;;  %v1871_v58 = vld [vmem:[%s2252_s5 + $0x280] ss:$8 sps:$4 sm:$0xff]   ;;  %v1876_v59 = vld [vmem:[%s2252_s5 + $0x294] ss:$8 sps:$4 sm:$0xff]   ;;  %v1874_v60 = vld [vmem:[%s2252_s5 + $0x290] ss:$8 sps:$4 sm:$0xff]  }
  0x7c   : > { %v1879_v61 = vld [vmem:[%s2252_s5 + $0x2a4] ss:$8 sps:$4 sm:$0xff]   ;;  %v1877_v62 = vld [vmem:[%s2252_s5 + $0x2a0] ss:$8 sps:$4 sm:$0xff]   ;;  %v684_v20 = vld [vmem:[#allocation2] sm:$0xff] }
  0x7d   : > { %1301 = vmatpush1.bf16.msra.mxu0 %v1793_v63  ;;  %v1882_v63 = vld [vmem:[%s2252_s5 + $0x2b4] ss:$8 sps:$4 sm:$0xff]  }
  0x7e   : > { %1342 = vmatpush1.bf16.msra.mxu1 %v1794_v0  ;;  %1302 = vmatprep.subr.bf16.mxu0 %v1795_v1  ;;  %v1880_v0 = vld [vmem:[%s2252_s5 + $0x2b0] ss:$8 sps:$4 sm:$0xff]   ;;  %v1885_v1 = vld [vmem:[%s2252_s5 + $0x2c4] ss:$8 sps:$4 sm:$0xff]  }
  0x7f   : > { %1343 = vmatprep.subr.bf16.mxu1 %v1797_v2  ;;  %v1883_v2 = vld [vmem:[%s2252_s5 + $0x2c0] ss:$8 sps:$4 sm:$0xff]  }
  0x81   : > { %1303 = vmatpush1.bf16.msra.mxu0 %v1799_v3  ;;  %v1888_v3 = vld [vmem:[%s2252_s5 + $0x2d4] ss:$8 sps:$4 sm:$0xff]  }
  0x82   : > { %1344 = vmatpush1.bf16.msra.mxu1 %v1800_v4  ;;  %1304 = vmatprep.subr.bf16.mxu0 %v1801_v5  ;;  %v1886_v4 = vld [vmem:[%s2252_s5 + $0x2d0] ss:$8 sps:$4 sm:$0xff]   ;;  %v1891_v5 = vld [vmem:[%s2252_s5 + $0x2e4] ss:$8 sps:$4 sm:$0xff]  }
  0x83   : > { %1345 = vmatprep.subr.bf16.mxu1 %v1803_v6  ;;  %v1889_v6 = vld [vmem:[%s2252_s5 + $0x2e0] ss:$8 sps:$4 sm:$0xff]  }
  0x85   : > { %1305 = vmatpush1.bf16.msra.mxu0 %v1805_v7  ;;  %v1894_v7 = vld [vmem:[%s2252_s5 + $0x2f4] ss:$8 sps:$4 sm:$0xff]  }
  0x86   : > { %1346 = vmatpush1.bf16.msra.mxu1 %v1806_v8  ;;  %1306 = vmatprep.subr.bf16.mxu0 %v1807_v9  ;;  %v1892_v8 = vld [vmem:[%s2252_s5 + $0x2f0] ss:$8 sps:$4 sm:$0xff]   ;;  %v1584_v9 = vcombine.low %v2324_v41, %v2324_v41 }
  0x87   : > { %1347 = vmatprep.subr.bf16.mxu1 %v1809_v10 }
  0x89   : > { %1307 = vmatpush1.bf16.msra.mxu0 %v1811_v11 }
  0x8a   : > { %1348 = vmatpush1.bf16.msra.mxu1 %v1812_v12  ;;  %1308 = vmatprep.subr.bf16.mxu0 %v1813_v13 }
  0x8b   : > { %1349 = vmatprep.subr.bf16.mxu1 %v1815_v14 }
  0x8d   : > { %1309 = vmatpush1.bf16.msra.mxu0 %v1817_v18 }
  0x8e   : > { %1350 = vmatpush1.bf16.msra.mxu1 %v1818_v19  ;;  %1310 = vmatprep.subr.bf16.mxu0 %v1819_v21 }
  0x8f   : > { %1351 = vmatprep.subr.bf16.mxu1 %v1821_v22 }
  0x91   : > { %1311 = vmatpush1.bf16.msra.mxu0 %v1823_v23  ;;  %v685_v23 = vld [vmem:[#allocation2 + $0x8] sm:$0xff] }
  0x92   : > { %1352 = vmatpush1.bf16.msra.mxu1 %v1824_v24  ;;  %1312 = vmatprep.subr.bf16.mxu0 %v1825_v25 }
  0x93   : > { %1353 = vmatprep.subr.bf16.mxu1 %v1827_v26 }
  0x95   : > { %1313 = vmatpush1.bf16.msra.mxu0 %v1829_v27 }
  0x96   : > { %1354 = vmatpush1.bf16.msra.mxu1 %v1830_v28  ;;  %1314 = vmatprep.subr.bf16.mxu0 %v1831_v29 }
  0x97   : > { %1355 = vmatprep.subr.bf16.mxu1 %v1833_v30  ;;  %v1421_v30 = vlaneseq (!%p1682_p13) }
  0x99   : > { %1315 = vmatpush1.bf16.msra.mxu0 %v1835_v31  ;;  %v1422_v31 = vshrl.u32 (!%p1682_p13), %v1421_v30, 7 }
  0x9a   : > { %1356 = vmatpush1.bf16.msra.mxu1 %v1836_v32  ;;  %1316 = vmatprep.subr.bf16.mxu0 %v1837_v33  ;;  %v1419_v32 = vld [vmem:[%s666_s12] sm:$0x3] (!%p1682_p13) }
  0x9b   : > { %1357 = vmatprep.subr.bf16.mxu1 %v1839_v34  ;;  %v1423_v33 = vsub.s32 (!%p1682_p13), 0, %v1422_v31  ;;  %v1427_v34 = vsub.s32 (!%p1682_p13), 1, %v1422_v31 }
  0x9d   : > { %1317 = vmatpush1.bf16.msra.mxu0 %v1841_v35 }
  0x9e   : > { %1358 = vmatpush1.bf16.msra.mxu1 %v1842_v36  ;;  %1368 = vmatprep.subr.bf16.mxu0 %v1849_v37  ;;  %v1424_v37 = vrot.slane (!%p1682_p13), %v1419_v32, %v1423_v33 }
  0xa0   : > { %1319 = vmatmul.mubr.bf16.vlgmr.msra.gmra.mrb[0].mxu0 %v1580_v38  ;;  %v1428_v38 = vrot.slane (!%p1682_p13), %v1419_v32, %v1427_v34 }
  0xa1   : > { %1360 = vmatmul.mubr.bf16.vlgmr.msra.gmra.mrb[0].mxu1 %v1582_v39  ;;  %1369 = vmatpush1.bf16.msra.mxu0 %v1847_v40 }
  0xa2   : > { %1400 = vmatprep.mubr.bf16.mxu0 %v1585_v43  ;;  %1370 = vmatprep.subr.bf16.mxu0 %v1852_v42 }
  0xa5   : > { %1371 = vmatpush1.bf16.msra.mxu0 %v1850_v44 }
  0xa6   : > { %1372 = vmatprep.subr.bf16.mxu0 %v1855_v45 }
  0xa9   : > { %1373 = vmatpush1.bf16.msra.mxu0 %v1853_v46 }
  0xaa   : > { %1374 = vmatprep.subr.bf16.mxu0 %v1858_v47 }
  0xad   : > { %1375 = vmatpush1.bf16.msra.mxu0 %v1856_v48 }
  0xae   : > { %1376 = vmatprep.subr.bf16.mxu0 %v1861_v49 }
  0xb1   : > { %1377 = vmatpush1.bf16.msra.mxu0 %v1859_v50 }
  0xb2   : > { %1378 = vmatprep.subr.bf16.mxu0 %v1864_v51 }
  0xb5   : > { %1379 = vmatpush1.bf16.msra.mxu0 %v1862_v52 }
  0xb6   : > { %1380 = vmatprep.subr.bf16.mxu0 %v1867_v53 }
  0xb9   : > { %1381 = vmatpush1.bf16.msra.mxu0 %v1865_v54 }
  0xba   : > { %1382 = vmatprep.subr.bf16.mxu0 %v1870_v55 }
  0xbd   : > { %1383 = vmatpush1.bf16.msra.mxu0 %v1868_v56 }
  0xbe   : > { %1384 = vmatprep.subr.bf16.mxu0 %v1873_v57 }
  0xc1   : > { %1385 = vmatpush1.bf16.msra.mxu0 %v1871_v58 }
  0xc2   : > { %1386 = vmatprep.subr.bf16.mxu0 %v1876_v59 }
  0xc5   : > { %1387 = vmatpush1.bf16.msra.mxu0 %v1874_v60 }
  0xc6   : > { %1388 = vmatprep.subr.bf16.mxu0 %v1879_v61 }
  0xc9   : > { %1389 = vmatpush1.bf16.msra.mxu0 %v1877_v62 }
  0xca   : > { %1390 = vmatprep.subr.bf16.mxu0 %v1882_v63 }
  0xcd   : > { %1391 = vmatpush1.bf16.msra.mxu0 %v1880_v0 }
  0xce   : > { %1392 = vmatprep.subr.bf16.mxu0 %v1885_v1 }
  0xd1   : > { %1393 = vmatpush1.bf16.msra.mxu0 %v1883_v2 }
  0xd2   : > { %1394 = vmatprep.subr.bf16.mxu0 %v1888_v3 }
  0xd5   : > { %1395 = vmatpush1.bf16.msra.mxu0 %v1886_v4 }
  0xd6   : > { %1396 = vmatprep.subr.bf16.mxu0 %v1891_v5 }
  0xd9   : > { %1397 = vmatpush1.bf16.msra.mxu0 %v1889_v6 }
  0xda   : > { %1398 = vmatprep.subr.bf16.mxu0 %v1894_v7 }
  0xdd   : > { %1399 = vmatpush1.bf16.msra.mxu0 %v1892_v8 }
  0xe0   : > { %1401 = vmatmul.mubr.bf16.vlgmr.msra.gmra.mrb[4].mxu0 %v1584_v9 }
 0x173   : > { %v1320_v10 = vpop.f32.mrb[0].mxu0 }
 0x174   : > { %v1361_v11 = vpop.f32.mrb[0].mxu1  ;;  %v1322_v13 = vpop.f32.mrb[1].mxu0 }
 0x175   : > { %v1362_v12 = vadd.f32 %v1361_v11, %v1320_v10  ;;  %v1363_v14 = vpop.f32.mrb[1].mxu1  ;;  %v1324_v16 = vpop.f32.mrb[2].mxu0 }
 0x176   : > { %v1364_v15 = vadd.f32 %v1363_v14, %v1322_v13  ;;  %v1365_v17 = vpop.f32.mrb[2].mxu1  ;;  %v1325_v18 = vpop.f32.mrb[3].mxu0 }
 0x177   : > { %v1366_v19 = vpop.f32.mrb[3].mxu1 }
 0x1b3   : > { %v1402_v21 = vpop.f32.mrb[4].mxu0  ;;  %1416 = sbr.rel (%p1682_p13) target bundleno = 456 (0x1c8), region = 78 }
 0x1b4   : > { %v1403_v22 = vadd.f32 %v1402_v21, %v1362_v12  ;;  %v1404_v24 = vpop.f32.mrb[5].mxu0 }
 0x1b5   : > { %v1405_v25 = vadd.f32 %v1404_v24, %v1364_v15  ;;  %v1406_v26 = vpop.f32.mrb[6].mxu0 }
 0x1b6   : > { %v1409_v27 = vadd.f32 %v1403_v22, %v684_v20  ;;  %v1407_v28 = vpop.f32.mrb[7].mxu0 }
 0x1b7   : > { %v1410_v29 = vadd.f32 %v1405_v25, %v685_v23 }
 0x1b8   : > { %1411 = vst [vmem:[#allocation2] sm:$0xff] %v1409_v27 }
 0x1b9   : > { %1412 = vst [vmem:[#allocation2 + $0x8] sm:$0xff] %v1410_v29 }
 0x1bf   : > { %v1417_v35 = vld [vmem:[#allocation2] sm:$0xff] }
 0x1c0   : > { %v1418_v36 = vld [vmem:[#allocation2 + $0x8] sm:$0xff]  ;;  %v1431_v39 = vadd.f32 %v1424_v37, %v1417_v35 }
 0x1c1   : > { %v1432_v40 = vadd.f32 %v1428_v38, %v1418_v36 }
 0x1c2   : > { %v1433_v41 = vmax.f32 %v1431_v39, 0.0 }
 0x1c3   : > { %v1434_v42 = vmax.f32 %v1432_v40, 0.0 }
 0x1c5   : > { %v1687_v43 = vpack.c.bf16 %v1434_v42, %v1433_v41 }
 0x1c7   : > { %1443 = vst [vmem:[%s2250_s4] sm:$0xff] %v1687_v43 }
 0x1c8 PF: > { %s13_s18 = sadd.s32 1, %s1951_s18   ;;  %s2392_s12 = smov %s1931_s13 }
 0x1c9   : > { %p10_p0 = scmp.ge.s32.totalorder %s13_s18, 8   ;;  %s2393_s13 = smov %s2025_s25 }
 0x1ca   : > { %s2394_s14 = smov %s1943_s16  ;;  %s2395_s15 = smov %s1947_s17 }
 0x1cb   : > { %s2396_s16 = smov %s2399_s19  ;;  %s2397_s17 = smov %s2403_s20 }
 0x1cc   :  { %12 = sbr.rel (!%p10_p0) target bundleno = 4 (0x4), region = 119 }

// kernel: resnet34_forward.69
= control target key start
LH: loop header
LB: loop body
LE: loop exit
PB: predicated region body
PF: predicated region fallthrough
CT: control target
= control target key end

     0   :  { %s1028_s12 = smov 0   ;;  %s1030_s13 = smov 0   ;;  %s1207_s0 = inlined_call_operand.vmem [shape: bf16[8,256], index: 0, kind: input, shape index: {}]   ;;  %s1208_s1 = inlined_call_operand.vmem [shape: bf16[256,512], index: 1, kind: input, shape index: {}]   ;;  %s1209_s2 = inlined_call_operand.vmem [shape: f32[1,512], index: 2, kind: input, shape index: {}]   ;;  %s1210_s3 = inlined_call_operand.vmem [shape: bf16[8,512], index: 3, kind: output, shape index: {}]  }
   0x1   :  { %s1032_s14 = smov 0   ;;  %s1034_s15 = smov 0  }
   0x2   :  { %s1036_s16 = smov 0  }
   0x3 LB: > { %s28_s17 = sadd.s32 1, %s1002_s15  ;;  %p76_p1 = scmp.ne.s32.totalorder %s994_s13, %s990_s12  ;;  %s1006_s16 = sphi %s1036_s16, %s13_s16   ;;  %s1002_s15 = sphi %s1034_s15, %s1214_s15   ;;  %s998_s14 = sphi %s1032_s14, %s1213_s14   ;;  %s994_s13 = sphi %s1030_s13, %s1212_s13   ;;  %s990_s12 = sphi %s1028_s12, %s1211_s12  }
   0x4   : > { %p30_p0 = scmp.ge.s32.totalorder %s28_s17, 2  ;;  %p77_p2 = scmp.eq.s32.totalorder %s1006_s16, 0 }
   0x5   : > { %s69_s19 = sadd.s32 1, %s994_s13  ;;  %p830_p5 = scmp.ge.s32.totalorder %s1006_s16, 2 }
   0x6   : > { %s1216_s17 = smov (%p30_p0, %s28_s17), 0  ;;  %p78_p3 = por %p77_p2, %p76_p1 }
   0x7   : > { %s65_s18 = ssub.s32 %s1002_s15, %s1216_s17  ;;  %169 = sbr.rel (%p830_p5) target bundleno = 34 (0x22), region = 20 }
   0x8   : > { %p67_p4 = scmp.eq.s32.totalorder %s65_s18, 0 }
   0xa   : > { %s1063_s20 = scalar_select %p67_p4, %s994_s13, %s69_s19  }
   0xe   : > { %172 = sbr.rel (!%p78_p3) target bundleno = 34 (0x22), region = 24  ;;  %s174_s21 = sand.u32 (%p78_p3), 1, %s994_s13  }
   0xf   : > { %s876_s22 = sshll.u32 (%p78_p3), %s1002_s15, 3  ;;  %s831_s23 = sshll.u32 (%p78_p3), %s174_s21, 8 }
  0x10   : > { %s1071_s26 = scalar_lea.vmem (%p78_p3), %s1208_s1, %s876_s22  ;;  %s1076_s27 = scalar_lea.vmem (%p78_p3), [#allocation3], %s831_s23 }
  0x11   : > { %v272_v0 = vld [vmem:[%s1071_s26] sm:$0xff] (%p78_p3)  ;;  %v274_v1 = vld [vmem:[%s1071_s26 + $0x10] sm:$0xff] (%p78_p3) }
  0x12   : > { %v276_v2 = vld [vmem:[%s1071_s26 + $0x20] sm:$0xff] (%p78_p3)  ;;  %273 = vst [vmem:[%s1076_s27] sm:$0xff] (%p78_p3), %v272_v0  ;;  %275 = vst [vmem:[%s1076_s27 + $0x8] sm:$0xff] (%p78_p3), %v274_v1  ;;  %v278_v3 = vld [vmem:[%s1071_s26 + $0x30] sm:$0xff] (%p78_p3) }
  0x13   : > { %277 = vst [vmem:[%s1076_s27 + $0x10] sm:$0xff] (%p78_p3), %v276_v2  ;;  %v280_v4 = vld [vmem:[%s1071_s26 + $0x40] sm:$0xff] (%p78_p3)  ;;  %v282_v5 = vld [vmem:[%s1071_s26 + $0x50] sm:$0xff] (%p78_p3)  ;;  %279 = vst [vmem:[%s1076_s27 + $0x18] sm:$0xff] (%p78_p3), %v278_v3 }
  0x14   : > { %281 = vst [vmem:[%s1076_s27 + $0x20] sm:$0xff] (%p78_p3), %v280_v4  ;;  %283 = vst [vmem:[%s1076_s27 + $0x28] sm:$0xff] (%p78_p3), %v282_v5  ;;  %v284_v6 = vld [vmem:[%s1071_s26 + $0x60] sm:$0xff] (%p78_p3)  ;;  %v286_v7 = vld [vmem:[%s1071_s26 + $0x70] sm:$0xff] (%p78_p3) }
  0x15   : > { %v288_v8 = vld [vmem:[%s1071_s26 + $0x80] sm:$0xff]  ;;  %285 = vst [vmem:[%s1076_s27 + $0x30] sm:$0xff] %v284_v6  ;;  %287 = vst [vmem:[%s1076_s27 + $0x38] sm:$0xff] %v286_v7  ;;  %v290_v9 = vld [vmem:[%s1071_s26 + $0x90] sm:$0xff] }
  0x16   : > { %289 = vst [vmem:[%s1076_s27 + $0x40] sm:$0xff] %v288_v8  ;;  %v292_v10 = vld [vmem:[%s1071_s26 + $0xa0] sm:$0xff]  ;;  %v294_v11 = vld [vmem:[%s1071_s26 + $0xb0] sm:$0xff]  ;;  %291 = vst [vmem:[%s1076_s27 + $0x48] sm:$0xff] %v290_v9 }
  0x17   : > { %293 = vst [vmem:[%s1076_s27 + $0x50] sm:$0xff] %v292_v10  ;;  %295 = vst [vmem:[%s1076_s27 + $0x58] sm:$0xff] %v294_v11  ;;  %v296_v12 = vld [vmem:[%s1071_s26 + $0xc0] sm:$0xff]  ;;  %v298_v13 = vld [vmem:[%s1071_s26 + $0xd0] sm:$0xff] }
  0x18   : > { %v300_v14 = vld [vmem:[%s1071_s26 + $0xe0] sm:$0xff]  ;;  %297 = vst [vmem:[%s1076_s27 + $0x60] sm:$0xff] %v296_v12  ;;  %299 = vst [vmem:[%s1076_s27 + $0x68] sm:$0xff] %v298_v13  ;;  %v302_v15 = vld [vmem:[%s1071_s26 + $0xf0] sm:$0xff] }
  0x19   : > { %301 = vst [vmem:[%s1076_s27 + $0x70] sm:$0xff] %v300_v14  ;;  %v304_v16 = vld [vmem:[%s1071_s26 + $0x100] sm:$0xff]  ;;  %v306_v17 = vld [vmem:[%s1071_s26 + $0x110] sm:$0xff]  ;;  %303 = vst [vmem:[%s1076_s27 + $0x78] sm:$0xff] %v302_v15 }
  0x1a   : > { %305 = vst [vmem:[%s1076_s27 + $0x80] sm:$0xff] %v304_v16  ;;  %307 = vst [vmem:[%s1076_s27 + $0x88] sm:$0xff] %v306_v17  ;;  %v308_v18 = vld [vmem:[%s1071_s26 + $0x120] sm:$0xff]  ;;  %v310_v19 = vld [vmem:[%s1071_s26 + $0x130] sm:$0xff] }
  0x1b   : > { %v312_v20 = vld [vmem:[%s1071_s26 + $0x140] sm:$0xff]  ;;  %309 = vst [vmem:[%s1076_s27 + $0x90] sm:$0xff] %v308_v18  ;;  %311 = vst [vmem:[%s1076_s27 + $0x98] sm:$0xff] %v310_v19  ;;  %v314_v21 = vld [vmem:[%s1071_s26 + $0x150] sm:$0xff] }
  0x1c   : > { %313 = vst [vmem:[%s1076_s27 + $0xa0] sm:$0xff] %v312_v20  ;;  %v316_v22 = vld [vmem:[%s1071_s26 + $0x160] sm:$0xff]  ;;  %v318_v23 = vld [vmem:[%s1071_s26 + $0x170] sm:$0xff]  ;;  %315 = vst [vmem:[%s1076_s27 + $0xa8] sm:$0xff] %v314_v21 }
  0x1d   : > { %317 = vst [vmem:[%s1076_s27 + $0xb0] sm:$0xff] %v316_v22  ;;  %319 = vst [vmem:[%s1076_s27 + $0xb8] sm:$0xff] %v318_v23  ;;  %v320_v24 = vld [vmem:[%s1071_s26 + $0x180] sm:$0xff]  ;;  %v322_v25 = vld [vmem:[%s1071_s26 + $0x190] sm:$0xff] }
  0x1e   : > { %v324_v26 = vld [vmem:[%s1071_s26 + $0x1a0] sm:$0xff]  ;;  %321 = vst [vmem:[%s1076_s27 + $0xc0] sm:$0xff] %v320_v24  ;;  %323 = vst [vmem:[%s1076_s27 + $0xc8] sm:$0xff] %v322_v25  ;;  %v326_v27 = vld [vmem:[%s1071_s26 + $0x1b0] sm:$0xff] }
  0x1f   : > { %325 = vst [vmem:[%s1076_s27 + $0xd0] sm:$0xff] %v324_v26  ;;  %v328_v28 = vld [vmem:[%s1071_s26 + $0x1c0] sm:$0xff]  ;;  %v330_v29 = vld [vmem:[%s1071_s26 + $0x1d0] sm:$0xff]  ;;  %327 = vst [vmem:[%s1076_s27 + $0xd8] sm:$0xff] %v326_v27 }
  0x20   : > { %329 = vst [vmem:[%s1076_s27 + $0xe0] sm:$0xff] %v328_v28  ;;  %331 = vst [vmem:[%s1076_s27 + $0xe8] sm:$0xff] %v330_v29  ;;  %v332_v30 = vld [vmem:[%s1071_s26 + $0x1e0] sm:$0xff]  ;;  %v334_v31 = vld [vmem:[%s1071_s26 + $0x1f0] sm:$0xff] }
  0x21   : > { %333 = vst [vmem:[%s1076_s27 + $0xf0] sm:$0xff] %v332_v30  ;;  %335 = vst [vmem:[%s1076_s27 + $0xf8] sm:$0xff] %v334_v31 }
  0x22 PF: > { %p834_p6 = scmp.ge.s32.totalorder %s1006_s16, 1  ;;  %p348_p7 = scmp.lt.s32.totalorder %s1006_s16, 3 }
  0x24   : > { %p349_p8 = pnand %p834_p6, %p348_p7 }
  0x25   : > { %s355_s28 = sand.u32 (!%p349_p8), 1, %s990_s12   ;;  %v1145_v32 = vld [vmem:[%s1207_s0] sm:$0xff] (!%p349_p8)  ;;  %s836_s6 = sshll.u32 (!%p349_p8), %s998_s14, 1  ;;  %v682_v3 = vlaneseq (!%p349_p8) }
  0x26   : > { %352 = sbr.rel (%p349_p8) target bundleno = 323 (0x143), region = 66  ;;  %s835_s4 = sshll.u32 (!%p349_p8), %s355_s28, 8  ;;  %v840_v33 = vcombine.high (!%p349_p8), %v1145_v32, %v1145_v32  ;;  %v839_v2 = vcombine.low (!%p349_p8), %v1145_v32, %v1145_v32 }
  0x27   : > { %s1149_s5 = scalar_lea.vmem (!%p349_p8), [#allocation3], %s835_s4  ;;  %p408_p9 = scmp.lt.s32.totalorder (!%p349_p8), %s836_s6, 3  ;;  %v683_v4 = vshrl.u32 (!%p349_p8), %v682_v3, 7 }
  0x28   : > { %v918_v34 = vld [vmem:[%s1149_s5 + $0x4] ss:$8 sps:$4 sm:$0xff] (!%p349_p8)   ;;  %662 = vmatprep.mubr.bf16.mxu0 (!%p349_p8), %v840_v33  ;;  %v920_v35 = vld [vmem:[%s1149_s5] ss:$8 sps:$4 sm:$0xff] (!%p349_p8)   ;;  %v921_v36 = vld [vmem:[%s1149_s5 + $0x14] ss:$8 sps:$4 sm:$0xff] (!%p349_p8)  }
  0x29   : > { %630 = vmatprep.subr.bf16.mxu0 (!%p349_p8), %v918_v34  ;;  %v923_v37 = vld [vmem:[%s1149_s5 + $0x10] ss:$8 sps:$4 sm:$0xff] (!%p349_p8)   ;;  %v924_v38 = vld [vmem:[%s1149_s5 + $0x24] ss:$8 sps:$4 sm:$0xff] (!%p349_p8)   ;;  %v926_v39 = vld [vmem:[%s1149_s5 + $0x20] ss:$8 sps:$4 sm:$0xff] (!%p349_p8)  }
  0x2a   : > { %631 = vmatpush1.bf16.msra.mxu0 (!%p349_p8), %v920_v35  ;;  %v927_v40 = vld [vmem:[%s1149_s5 + $0x34] ss:$8 sps:$4 sm:$0xff] (!%p349_p8)   ;;  %v929_v41 = vld [vmem:[%s1149_s5 + $0x30] ss:$8 sps:$4 sm:$0xff] (!%p349_p8)   ;;  %v930_v42 = vld [vmem:[%s1149_s5 + $0x44] ss:$8 sps:$4 sm:$0xff] (!%p349_p8)  }
  0x2b   : > { %632 = vmatprep.subr.bf16.mxu0 (!%p349_p8), %v921_v36  ;;  %v932_v43 = vld [vmem:[%s1149_s5 + $0x40] ss:$8 sps:$4 sm:$0xff] (!%p349_p8)   ;;  %v933_v44 = vld [vmem:[%s1149_s5 + $0x54] ss:$8 sps:$4 sm:$0xff] (!%p349_p8)   ;;  %v935_v45 = vld [vmem:[%s1149_s5 + $0x50] ss:$8 sps:$4 sm:$0xff] (!%p349_p8)  }
  0x2c   : > { %v936_v46 = vld [vmem:[%s1149_s5 + $0x64] ss:$8 sps:$4 sm:$0xff] (!%p349_p8)   ;;  %v938_v47 = vld [vmem:[%s1149_s5 + $0x60] ss:$8 sps:$4 sm:$0xff] (!%p349_p8)   ;;  %v939_v48 = vld [vmem:[%s1149_s5 + $0x74] ss:$8 sps:$4 sm:$0xff] (!%p349_p8)  }
  0x2d   : > { %v941_v49 = vld [vmem:[%s1149_s5 + $0x70] ss:$8 sps:$4 sm:$0xff]   ;;  %v942_v50 = vld [vmem:[%s1149_s5 + $0x84] ss:$8 sps:$4 sm:$0xff]   ;;  %v944_v51 = vld [vmem:[%s1149_s5 + $0x80] ss:$8 sps:$4 sm:$0xff]  }
  0x2e   : > { %633 = vmatpush1.bf16.msra.mxu0 %v923_v37  ;;  %v945_v52 = vld [vmem:[%s1149_s5 + $0x94] ss:$8 sps:$4 sm:$0xff]   ;;  %v947_v53 = vld [vmem:[%s1149_s5 + $0x90] ss:$8 sps:$4 sm:$0xff]   ;;  %v948_v54 = vld [vmem:[%s1149_s5 + $0xa4] ss:$8 sps:$4 sm:$0xff]  }
  0x2f   : > { %634 = vmatprep.subr.bf16.mxu0 %v924_v38  ;;  %v950_v55 = vld [vmem:[%s1149_s5 + $0xa0] ss:$8 sps:$4 sm:$0xff]   ;;  %v951_v56 = vld [vmem:[%s1149_s5 + $0xb4] ss:$8 sps:$4 sm:$0xff]   ;;  %v953_v57 = vld [vmem:[%s1149_s5 + $0xb0] ss:$8 sps:$4 sm:$0xff]  }
  0x30   : > { %v954_v58 = vld [vmem:[%s1149_s5 + $0xc4] ss:$8 sps:$4 sm:$0xff]   ;;  %v956_v59 = vld [vmem:[%s1149_s5 + $0xc0] ss:$8 sps:$4 sm:$0xff]   ;;  %v957_v60 = vld [vmem:[%s1149_s5 + $0xd4] ss:$8 sps:$4 sm:$0xff]  }
  0x31   : > { %v959_v61 = vld [vmem:[%s1149_s5 + $0xd0] ss:$8 sps:$4 sm:$0xff]   ;;  %v960_v62 = vld [vmem:[%s1149_s5 + $0xe4] ss:$8 sps:$4 sm:$0xff]   ;;  %v962_v63 = vld [vmem:[%s1149_s5 + $0xe0] ss:$8 sps:$4 sm:$0xff]  }
  0x32   : > { %635 = vmatpush1.bf16.msra.mxu0 %v926_v39  ;;  %v963_v0 = vld [vmem:[%s1149_s5 + $0xf4] ss:$8 sps:$4 sm:$0xff]   ;;  %v965_v1 = vld [vmem:[%s1149_s5 + $0xf0] ss:$8 sps:$4 sm:$0xff]   ;;  %s1218_s6 = smov (!%p408_p9, %s836_s6), 3  ;;  %v684_v5 = vsub.s32 0, %v683_v4 }
  0x33   : > { %636 = vmatprep.subr.bf16.mxu0 %v927_v40  ;;  %s410_s9 = scalar_lea.vmem %s1209_s2, %s1218_s6  ;;  %v688_v7 = vsub.s32 1, %v683_v4  ;;  %s838_s10 = sshll.u32 %s1218_s6, 2 }
  0x34   : > { %v680_v6 = vld [vmem:[%s410_s9] sm:$0x3]  ;;  %s420_s14 = scalar_lea.vmem %s1210_s3, %s838_s10 }
  0x35   : > { %v685_v8 = vrot.slane %v680_v6, %v684_v5  ;;  %v689_v9 = vrot.slane %v680_v6, %v688_v7 }
  0x36   : > { %637 = vmatpush1.bf16.msra.mxu0 %v929_v41 }
  0x37   : > { %638 = vmatprep.subr.bf16.mxu0 %v930_v42 }
  0x3a   : > { %639 = vmatpush1.bf16.msra.mxu0 %v932_v43 }
  0x3b   : > { %640 = vmatprep.subr.bf16.mxu0 %v933_v44 }
  0x3e   : > { %641 = vmatpush1.bf16.msra.mxu0 %v935_v45 }
  0x3f   : > { %642 = vmatprep.subr.bf16.mxu0 %v936_v46 }
  0x42   : > { %643 = vmatpush1.bf16.msra.mxu0 %v938_v47 }
  0x43   : > { %644 = vmatprep.subr.bf16.mxu0 %v939_v48 }
  0x46   : > { %645 = vmatpush1.bf16.msra.mxu0 %v941_v49 }
  0x47   : > { %646 = vmatprep.subr.bf16.mxu0 %v942_v50 }
  0x4a   : > { %647 = vmatpush1.bf16.msra.mxu0 %v944_v51 }
  0x4b   : > { %648 = vmatprep.subr.bf16.mxu0 %v945_v52 }
  0x4e   : > { %649 = vmatpush1.bf16.msra.mxu0 %v947_v53 }
  0x4f   : > { %650 = vmatprep.subr.bf16.mxu0 %v948_v54 }
  0x52   : > { %651 = vmatpush1.bf16.msra.mxu0 %v950_v55 }
  0x53   : > { %652 = vmatprep.subr.bf16.mxu0 %v951_v56 }
  0x56   : > { %653 = vmatpush1.bf16.msra.mxu0 %v953_v57 }
  0x57   : > { %654 = vmatprep.subr.bf16.mxu0 %v954_v58 }
  0x5a   : > { %655 = vmatpush1.bf16.msra.mxu0 %v956_v59 }
  0x5b   : > { %656 = vmatprep.subr.bf16.mxu0 %v957_v60 }
  0x5e   : > { %657 = vmatpush1.bf16.msra.mxu0 %v959_v61 }
  0x5f   : > { %658 = vmatprep.subr.bf16.mxu0 %v960_v62 }
  0x62   : > { %659 = vmatpush1.bf16.msra.mxu0 %v962_v63 }
  0x63   : > { %660 = vmatprep.subr.bf16.mxu0 %v963_v0 }
  0x66   : > { %661 = vmatpush1.bf16.msra.mxu0 %v965_v1 }
  0x69   : > { %663 = vmatmul.mubr.bf16.vlgmr.msra.gmra.mrb[0].mxu0 %v839_v2 }
 0x13c   : > { %v664_v10 = vpop.f32.mrb[0].mxu0 }
 0x13d   : > { %v692_v11 = vadd.f32 %v685_v8, %v664_v10  ;;  %v666_v12 = vpop.f32.mrb[1].mxu0 }
 0x13e   : > { %v693_v13 = vadd.f32 %v689_v9, %v666_v12  ;;  %v668_v14 = vpop.f32.mrb[2].mxu0 }
 0x13f   : > { %v669_v15 = vpop.f32.mrb[3].mxu0 }
 0x140   : > { %v877_v16 = vpack.c.bf16 %v693_v13, %v692_v11 }
 0x142   : > { %702 = vst [vmem:[%s420_s14] sm:$0xff] %v877_v16 }
 0x143 PF: > { %s13_s16 = sadd.s32 1, %s1006_s16   ;;  %s1211_s12 = smov %s994_s13 }
 0x144   : > { %p10_p10 = scmp.ge.s32.totalorder %s13_s16, 4   ;;  %s1212_s13 = smov %s1063_s20 }
 0x145   : > { %s1213_s14 = smov %s1002_s15  ;;  %s1214_s15 = smov %s1216_s17 }
 0x146   :  { %12 = sbr.rel (!%p10_p10) target bundleno = 3 (0x3), region = 119 }

// kernel: resnet34_forward.70
= control target key start
LH: loop header
LB: loop body
LE: loop exit
PB: predicated region body
PF: predicated region fallthrough
CT: control target
= control target key end

     0   :  { %s2067_s15 = smov 0   ;;  %s2069_s16 = smov 0   ;;  %s2487_s0 = inlined_call_operand.vmem [shape: bf16[8,4608], index: 0, kind: input, shape index: {}]   ;;  %s2488_s1 = inlined_call_operand.vmem [shape: bf16[4608,512], index: 1, kind: input, shape index: {}]   ;;  %s2489_s2 = inlined_call_operand.vmem [shape: f32[1,512], index: 2, kind: input, shape index: {}]   ;;  %s2490_s3 = inlined_call_operand.vmem [shape: bf16[8,512], index: 3, kind: input, shape index: {}]   ;;  %s2491_s4 = inlined_call_operand.vmem [shape: bf16[8,512], index: 4, kind: output, shape index: {}]  }
   0x1   :  { %s2071_s17 = smov 0   ;;  %s2073_s18 = smov 0  }
   0x2   :  { %s2075_s19 = smov 0   ;;  %s2077_s20 = smov 0  }
   0x3   :  { %s2079_s21 = smov 0  }
   0x4 LB: > { %s26_s22 = sadd.s32 1, %s2031_s19  ;;  %s29_s23 = sadd.s32 1, %s2035_s20  ;;  %s2039_s21 = sphi %s2079_s21, %s14_s21   ;;  %s2035_s20 = sphi %s2077_s20, %s2497_s20   ;;  %s2031_s19 = sphi %s2075_s19, %s2496_s19   ;;  %s2027_s18 = sphi %s2073_s18, %s2495_s18   ;;  %s2023_s17 = sphi %s2071_s17, %s2494_s17   ;;  %s2019_s16 = sphi %s2069_s16, %s2493_s16   ;;  %s2015_s15 = sphi %s2067_s15, %s2492_s15  }
   0x5   : > { %p27_p0 = scmp.ge.s32.totalorder %s26_s22, 6  ;;  %p77_p1 = scmp.ne.s32.totalorder %s2019_s16, %s2015_s15 }
   0x6   : > { %p78_p2 = scmp.eq.s32.totalorder %s2039_s21, 0  ;;  %s70_s27 = sadd.s32 1, %s2019_s16 }
   0x7   : > { %s2499_s22 = smov (%p27_p0, %s26_s22), 0  ;;  %s2501_s23 = smov (!%p27_p0, %s29_s23), %s2035_s20 }
   0x8   : > { %p79_p3 = por %p78_p2, %p77_p1  ;;  %p31_p4 = scmp.ge.s32.totalorder %s2501_s23, 2 }
   0x9   : > { %s65_s24 = ssub.s32 %s2031_s19, %s2499_s22  ;;  %p1656_p6 = scmp.ge.s32.totalorder %s2039_s21, 12 }
   0xa   : > { %s2503_s23 = smov (%p31_p4, %s2501_s23), 0 }
   0xb   : > { %s66_s25 = ssub.s32 %s2035_s20, %s2503_s23  ;;  %185 = sbr.rel (%p1656_p6) target bundleno = 74 (0x4a), region = 16 }
   0xc   : > { %s67_s26 = sor.u32 %s66_s25, %s65_s24 }
   0xd   : > { %p68_p5 = scmp.eq.s32.totalorder %s67_s26, 0 }
   0xf   : > { %s2118_s28 = scalar_select %p68_p5, %s2019_s16, %s70_s27  }
  0x12   : > { %201 = sbr.rel (!%p79_p3) target bundleno = 74 (0x4a), region = 24  ;;  %s203_s29 = sand.u32 (%p79_p3), 1, %s2019_s16  }
  0x13   : > { %s1776_s30 = smul.u32 (%p79_p3), 768, %s203_s29  ;;  %s1657_s5 = sshll.u32 (%p79_p3), %s2035_s20, 1 }
  0x14   : > { %s1774_s6 = smul.u32 (%p79_p3), 384, %s2031_s19 }
  0x15   : > { %s2132_s12 = scalar_lea.vmem (%p79_p3), [#allocation3], %s1776_s30 }
  0x16   : > { %s209_s7 = sadd.s32 (%p79_p3), %s1774_s6, %s1657_s5 }
  0x17   : > { %s1659_s8 = sshll.u32 (%p79_p3), %s209_s7, 2 }
  0x18   : > { %s2127_s11 = scalar_lea.vmem (%p79_p3), %s2488_s1, %s1659_s8 }
  0x19   : > { %v429_v0 = vld [vmem:[%s2127_s11] sm:$0xff]  ;;  %v431_v1 = vld [vmem:[%s2127_s11 + $0x10] sm:$0xff] }
  0x1a   : > { %v433_v2 = vld [vmem:[%s2127_s11 + $0x20] sm:$0xff]  ;;  %430 = vst [vmem:[%s2132_s12] sm:$0xff] %v429_v0  ;;  %432 = vst [vmem:[%s2132_s12 + $0x8] sm:$0xff] %v431_v1  ;;  %v435_v3 = vld [vmem:[%s2127_s11 + $0x30] sm:$0xff] }
  0x1b   : > { %434 = vst [vmem:[%s2132_s12 + $0x10] sm:$0xff] %v433_v2  ;;  %v437_v4 = vld [vmem:[%s2127_s11 + $0x40] sm:$0xff]  ;;  %v439_v5 = vld [vmem:[%s2127_s11 + $0x50] sm:$0xff]  ;;  %436 = vst [vmem:[%s2132_s12 + $0x18] sm:$0xff] %v435_v3 }
  0x1c   : > { %438 = vst [vmem:[%s2132_s12 + $0x20] sm:$0xff] %v437_v4  ;;  %440 = vst [vmem:[%s2132_s12 + $0x28] sm:$0xff] %v439_v5  ;;  %v441_v6 = vld [vmem:[%s2127_s11 + $0x60] sm:$0xff]  ;;  %v443_v7 = vld [vmem:[%s2127_s11 + $0x70] sm:$0xff] }
  0x1d   : > { %v445_v8 = vld [vmem:[%s2127_s11 + $0x80] sm:$0xff]  ;;  %442 = vst [vmem:[%s2132_s12 + $0x30] sm:$0xff] %v441_v6  ;;  %444 = vst [vmem:[%s2132_s12 + $0x38] sm:$0xff] %v443_v7  ;;  %v447_v9 = vld [vmem:[%s2127_s11 + $0x90] sm:$0xff] }
  0x1e   : > { %446 = vst [vmem:[%s2132_s12 + $0x40] sm:$0xff] %v445_v8  ;;  %v449_v10 = vld [vmem:[%s2127_s11 + $0xa0] sm:$0xff]  ;;  %v451_v11 = vld [vmem:[%s2127_s11 + $0xb0] sm:$0xff]  ;;  %448 = vst [vmem:[%s2132_s12 + $0x48] sm:$0xff] %v447_v9 }
  0x1f   : > { %450 = vst [vmem:[%s2132_s12 + $0x50] sm:$0xff] %v449_v10  ;;  %452 = vst [vmem:[%s2132_s12 + $0x58] sm:$0xff] %v451_v11  ;;  %v453_v12 = vld [vmem:[%s2127_s11 + $0xc0] sm:$0xff]  ;;  %v455_v13 = vld [vmem:[%s2127_s11 + $0xd0] sm:$0xff] }
  0x20   : > { %v457_v14 = vld [vmem:[%s2127_s11 + $0xe0] sm:$0xff]  ;;  %454 = vst [vmem:[%s2132_s12 + $0x60] sm:$0xff] %v453_v12  ;;  %456 = vst [vmem:[%s2132_s12 + $0x68] sm:$0xff] %v455_v13  ;;  %v459_v15 = vld [vmem:[%s2127_s11 + $0xf0] sm:$0xff] }
  0x21   : > { %458 = vst [vmem:[%s2132_s12 + $0x70] sm:$0xff] %v457_v14  ;;  %v461_v16 = vld [vmem:[%s2127_s11 + $0x100] sm:$0xff]  ;;  %v463_v17 = vld [vmem:[%s2127_s11 + $0x110] sm:$0xff]  ;;  %460 = vst [vmem:[%s2132_s12 + $0x78] sm:$0xff] %v459_v15 }
  0x22   : > { %462 = vst [vmem:[%s2132_s12 + $0x80] sm:$0xff] %v461_v16  ;;  %464 = vst [vmem:[%s2132_s12 + $0x88] sm:$0xff] %v463_v17  ;;  %v465_v18 = vld [vmem:[%s2127_s11 + $0x120] sm:$0xff]  ;;  %v467_v19 = vld [vmem:[%s2127_s11 + $0x130] sm:$0xff] }
  0x23   : > { %v469_v20 = vld [vmem:[%s2127_s11 + $0x140] sm:$0xff]  ;;  %466 = vst [vmem:[%s2132_s12 + $0x90] sm:$0xff] %v465_v18  ;;  %468 = vst [vmem:[%s2132_s12 + $0x98] sm:$0xff] %v467_v19  ;;  %v471_v21 = vld [vmem:[%s2127_s11 + $0x150] sm:$0xff] }
  0x24   : > { %470 = vst [vmem:[%s2132_s12 + $0xa0] sm:$0xff] %v469_v20  ;;  %v473_v22 = vld [vmem:[%s2127_s11 + $0x160] sm:$0xff]  ;;  %v475_v23 = vld [vmem:[%s2127_s11 + $0x170] sm:$0xff]  ;;  %472 = vst [vmem:[%s2132_s12 + $0xa8] sm:$0xff] %v471_v21 }
  0x25   : > { %474 = vst [vmem:[%s2132_s12 + $0xb0] sm:$0xff] %v473_v22  ;;  %476 = vst [vmem:[%s2132_s12 + $0xb8] sm:$0xff] %v475_v23  ;;  %v477_v24 = vld [vmem:[%s2127_s11 + $0x180] sm:$0xff]  ;;  %v479_v25 = vld [vmem:[%s2127_s11 + $0x190] sm:$0xff] }
  0x26   : > { %v481_v26 = vld [vmem:[%s2127_s11 + $0x1a0] sm:$0xff]  ;;  %478 = vst [vmem:[%s2132_s12 + $0xc0] sm:$0xff] %v477_v24  ;;  %480 = vst [vmem:[%s2132_s12 + $0xc8] sm:$0xff] %v479_v25  ;;  %v483_v27 = vld [vmem:[%s2127_s11 + $0x1b0] sm:$0xff] }
  0x27   : > { %482 = vst [vmem:[%s2132_s12 + $0xd0] sm:$0xff] %v481_v26  ;;  %v485_v28 = vld [vmem:[%s2127_s11 + $0x1c0] sm:$0xff]  ;;  %v487_v29 = vld [vmem:[%s2127_s11 + $0x1d0] sm:$0xff]  ;;  %484 = vst [vmem:[%s2132_s12 + $0xd8] sm:$0xff] %v483_v27 }
  0x28   : > { %486 = vst [vmem:[%s2132_s12 + $0xe0] sm:$0xff] %v485_v28  ;;  %488 = vst [vmem:[%s2132_s12 + $0xe8] sm:$0xff] %v487_v29  ;;  %v489_v30 = vld [vmem:[%s2127_s11 + $0x1e0] sm:$0xff]  ;;  %v491_v31 = vld [vmem:[%s2127_s11 + $0x1f0] sm:$0xff] }
  0x29   : > { %v493_v32 = vld [vmem:[%s2127_s11 + $0x200] sm:$0xff]  ;;  %490 = vst [vmem:[%s2132_s12 + $0xf0] sm:$0xff] %v489_v30  ;;  %492 = vst [vmem:[%s2132_s12 + $0xf8] sm:$0xff] %v491_v31  ;;  %v495_v33 = vld [vmem:[%s2127_s11 + $0x210] sm:$0xff] }
  0x2a   : > { %494 = vst [vmem:[%s2132_s12 + $0x100] sm:$0xff] %v493_v32  ;;  %v497_v34 = vld [vmem:[%s2127_s11 + $0x220] sm:$0xff]  ;;  %v499_v35 = vld [vmem:[%s2127_s11 + $0x230] sm:$0xff]  ;;  %496 = vst [vmem:[%s2132_s12 + $0x108] sm:$0xff] %v495_v33 }
  0x2b   : > { %498 = vst [vmem:[%s2132_s12 + $0x110] sm:$0xff] %v497_v34  ;;  %500 = vst [vmem:[%s2132_s12 + $0x118] sm:$0xff] %v499_v35  ;;  %v501_v36 = vld [vmem:[%s2127_s11 + $0x240] sm:$0xff]  ;;  %v503_v37 = vld [vmem:[%s2127_s11 + $0x250] sm:$0xff] }
  0x2c   : > { %v505_v38 = vld [vmem:[%s2127_s11 + $0x260] sm:$0xff]  ;;  %502 = vst [vmem:[%s2132_s12 + $0x120] sm:$0xff] %v501_v36  ;;  %504 = vst [vmem:[%s2132_s12 + $0x128] sm:$0xff] %v503_v37  ;;  %v507_v39 = vld [vmem:[%s2127_s11 + $0x270] sm:$0xff] }
  0x2d   : > { %506 = vst [vmem:[%s2132_s12 + $0x130] sm:$0xff] %v505_v38  ;;  %v509_v40 = vld [vmem:[%s2127_s11 + $0x280] sm:$0xff]  ;;  %v511_v41 = vld [vmem:[%s2127_s11 + $0x290] sm:$0xff]  ;;  %508 = vst [vmem:[%s2132_s12 + $0x138] sm:$0xff] %v507_v39 }
  0x2e   : > { %510 = vst [vmem:[%s2132_s12 + $0x140] sm:$0xff] %v509_v40  ;;  %512 = vst [vmem:[%s2132_s12 + $0x148] sm:$0xff] %v511_v41  ;;  %v513_v42 = vld [vmem:[%s2127_s11 + $0x2a0] sm:$0xff]  ;;  %v515_v43 = vld [vmem:[%s2127_s11 + $0x2b0] sm:$0xff] }
  0x2f   : > { %v517_v44 = vld [vmem:[%s2127_s11 + $0x2c0] sm:$0xff]  ;;  %514 = vst [vmem:[%s2132_s12 + $0x150] sm:$0xff] %v513_v42  ;;  %516 = vst [vmem:[%s2132_s12 + $0x158] sm:$0xff] %v515_v43  ;;  %v519_v45 = vld [vmem:[%s2127_s11 + $0x2d0] sm:$0xff] }
  0x30   : > { %518 = vst [vmem:[%s2132_s12 + $0x160] sm:$0xff] %v517_v44  ;;  %v521_v46 = vld [vmem:[%s2127_s11 + $0x2e0] sm:$0xff]  ;;  %v523_v47 = vld [vmem:[%s2127_s11 + $0x2f0] sm:$0xff]  ;;  %520 = vst [vmem:[%s2132_s12 + $0x168] sm:$0xff] %v519_v45 }
  0x31   : > { %522 = vst [vmem:[%s2132_s12 + $0x170] sm:$0xff] %v521_v46  ;;  %524 = vst [vmem:[%s2132_s12 + $0x178] sm:$0xff] %v523_v47  ;;  %v525_v48 = vld [vmem:[%s2127_s11 + $0x300] sm:$0xff]  ;;  %v527_v49 = vld [vmem:[%s2127_s11 + $0x310] sm:$0xff] }
  0x32   : > { %v529_v50 = vld [vmem:[%s2127_s11 + $0x320] sm:$0xff]  ;;  %526 = vst [vmem:[%s2132_s12 + $0x180] sm:$0xff] %v525_v48  ;;  %528 = vst [vmem:[%s2132_s12 + $0x188] sm:$0xff] %v527_v49  ;;  %v531_v51 = vld [vmem:[%s2127_s11 + $0x330] sm:$0xff] }
  0x33   : > { %530 = vst [vmem:[%s2132_s12 + $0x190] sm:$0xff] %v529_v50  ;;  %v533_v52 = vld [vmem:[%s2127_s11 + $0x340] sm:$0xff]  ;;  %v535_v53 = vld [vmem:[%s2127_s11 + $0x350] sm:$0xff]  ;;  %532 = vst [vmem:[%s2132_s12 + $0x198] sm:$0xff] %v531_v51 }
  0x34   : > { %534 = vst [vmem:[%s2132_s12 + $0x1a0] sm:$0xff] %v533_v52  ;;  %536 = vst [vmem:[%s2132_s12 + $0x1a8] sm:$0xff] %v535_v53  ;;  %v537_v54 = vld [vmem:[%s2127_s11 + $0x360] sm:$0xff]  ;;  %v539_v55 = vld [vmem:[%s2127_s11 + $0x370] sm:$0xff] }
  0x35   : > { %v541_v56 = vld [vmem:[%s2127_s11 + $0x380] sm:$0xff]  ;;  %538 = vst [vmem:[%s2132_s12 + $0x1b0] sm:$0xff] %v537_v54  ;;  %540 = vst [vmem:[%s2132_s12 + $0x1b8] sm:$0xff] %v539_v55  ;;  %v543_v57 = vld [vmem:[%s2127_s11 + $0x390] sm:$0xff] }
  0x36   : > { %542 = vst [vmem:[%s2132_s12 + $0x1c0] sm:$0xff] %v541_v56  ;;  %v545_v58 = vld [vmem:[%s2127_s11 + $0x3a0] sm:$0xff]  ;;  %v547_v59 = vld [vmem:[%s2127_s11 + $0x3b0] sm:$0xff]  ;;  %544 = vst [vmem:[%s2132_s12 + $0x1c8] sm:$0xff] %v543_v57 }
  0x37   : > { %546 = vst [vmem:[%s2132_s12 + $0x1d0] sm:$0xff] %v545_v58  ;;  %548 = vst [vmem:[%s2132_s12 + $0x1d8] sm:$0xff] %v547_v59  ;;  %v549_v60 = vld [vmem:[%s2127_s11 + $0x3c0] sm:$0xff]  ;;  %v551_v61 = vld [vmem:[%s2127_s11 + $0x3d0] sm:$0xff] }
  0x38   : > { %v553_v62 = vld [vmem:[%s2127_s11 + $0x3e0] sm:$0xff]  ;;  %550 = vst [vmem:[%s2132_s12 + $0x1e0] sm:$0xff] %v549_v60  ;;  %552 = vst [vmem:[%s2132_s12 + $0x1e8] sm:$0xff] %v551_v61  ;;  %v555_v63 = vld [vmem:[%s2127_s11 + $0x3f0] sm:$0xff] }
  0x39   : > { %554 = vst [vmem:[%s2132_s12 + $0x1f0] sm:$0xff] %v553_v62  ;;  %v557_v0 = vld [vmem:[%s2127_s11 + $0x400] sm:$0xff]  ;;  %v559_v1 = vld [vmem:[%s2127_s11 + $0x410] sm:$0xff]  ;;  %556 = vst [vmem:[%s2132_s12 + $0x1f8] sm:$0xff] %v555_v63 }
  0x3a   : > { %558 = vst [vmem:[%s2132_s12 + $0x200] sm:$0xff] %v557_v0  ;;  %560 = vst [vmem:[%s2132_s12 + $0x208] sm:$0xff] %v559_v1  ;;  %v561_v2 = vld [vmem:[%s2127_s11 + $0x420] sm:$0xff]  ;;  %v563_v3 = vld [vmem:[%s2127_s11 + $0x430] sm:$0xff] }
  0x3b   : > { %v565_v4 = vld [vmem:[%s2127_s11 + $0x440] sm:$0xff]  ;;  %562 = vst [vmem:[%s2132_s12 + $0x210] sm:$0xff] %v561_v2  ;;  %564 = vst [vmem:[%s2132_s12 + $0x218] sm:$0xff] %v563_v3  ;;  %v567_v5 = vld [vmem:[%s2127_s11 + $0x450] sm:$0xff] }
  0x3c   : > { %566 = vst [vmem:[%s2132_s12 + $0x220] sm:$0xff] %v565_v4  ;;  %v569_v6 = vld [vmem:[%s2127_s11 + $0x460] sm:$0xff]  ;;  %v571_v7 = vld [vmem:[%s2127_s11 + $0x470] sm:$0xff]  ;;  %568 = vst [vmem:[%s2132_s12 + $0x228] sm:$0xff] %v567_v5 }
  0x3d   : > { %570 = vst [vmem:[%s2132_s12 + $0x230] sm:$0xff] %v569_v6  ;;  %572 = vst [vmem:[%s2132_s12 + $0x238] sm:$0xff] %v571_v7  ;;  %v573_v8 = vld [vmem:[%s2127_s11 + $0x480] sm:$0xff]  ;;  %v575_v9 = vld [vmem:[%s2127_s11 + $0x490] sm:$0xff] }
  0x3e   : > { %v577_v10 = vld [vmem:[%s2127_s11 + $0x4a0] sm:$0xff]  ;;  %574 = vst [vmem:[%s2132_s12 + $0x240] sm:$0xff] %v573_v8  ;;  %576 = vst [vmem:[%s2132_s12 + $0x248] sm:$0xff] %v575_v9  ;;  %v579_v11 = vld [vmem:[%s2127_s11 + $0x4b0] sm:$0xff] }
  0x3f   : > { %578 = vst [vmem:[%s2132_s12 + $0x250] sm:$0xff] %v577_v10  ;;  %v581_v12 = vld [vmem:[%s2127_s11 + $0x4c0] sm:$0xff]  ;;  %v583_v13 = vld [vmem:[%s2127_s11 + $0x4d0] sm:$0xff]  ;;  %580 = vst [vmem:[%s2132_s12 + $0x258] sm:$0xff] %v579_v11 }
  0x40   : > { %582 = vst [vmem:[%s2132_s12 + $0x260] sm:$0xff] %v581_v12  ;;  %584 = vst [vmem:[%s2132_s12 + $0x268] sm:$0xff] %v583_v13  ;;  %v585_v14 = vld [vmem:[%s2127_s11 + $0x4e0] sm:$0xff]  ;;  %v587_v15 = vld [vmem:[%s2127_s11 + $0x4f0] sm:$0xff] }
  0x41   : > { %v589_v16 = vld [vmem:[%s2127_s11 + $0x500] sm:$0xff]  ;;  %586 = vst [vmem:[%s2132_s12 + $0x270] sm:$0xff] %v585_v14  ;;  %588 = vst [vmem:[%s2132_s12 + $0x278] sm:$0xff] %v587_v15  ;;  %v591_v17 = vld [vmem:[%s2127_s11 + $0x510] sm:$0xff] }
  0x42   : > { %590 = vst [vmem:[%s2132_s12 + $0x280] sm:$0xff] %v589_v16  ;;  %v593_v18 = vld [vmem:[%s2127_s11 + $0x520] sm:$0xff]  ;;  %v595_v19 = vld [vmem:[%s2127_s11 + $0x530] sm:$0xff]  ;;  %592 = vst [vmem:[%s2132_s12 + $0x288] sm:$0xff] %v591_v17 }
  0x43   : > { %594 = vst [vmem:[%s2132_s12 + $0x290] sm:$0xff] %v593_v18  ;;  %596 = vst [vmem:[%s2132_s12 + $0x298] sm:$0xff] %v595_v19  ;;  %v597_v20 = vld [vmem:[%s2127_s11 + $0x540] sm:$0xff]  ;;  %v599_v21 = vld [vmem:[%s2127_s11 + $0x550] sm:$0xff] }
  0x44   : > { %v601_v22 = vld [vmem:[%s2127_s11 + $0x560] sm:$0xff]  ;;  %598 = vst [vmem:[%s2132_s12 + $0x2a0] sm:$0xff] %v597_v20  ;;  %600 = vst [vmem:[%s2132_s12 + $0x2a8] sm:$0xff] %v599_v21  ;;  %v603_v23 = vld [vmem:[%s2127_s11 + $0x570] sm:$0xff] }
  0x45   : > { %602 = vst [vmem:[%s2132_s12 + $0x2b0] sm:$0xff] %v601_v22  ;;  %v605_v24 = vld [vmem:[%s2127_s11 + $0x580] sm:$0xff]  ;;  %v607_v25 = vld [vmem:[%s2127_s11 + $0x590] sm:$0xff]  ;;  %604 = vst [vmem:[%s2132_s12 + $0x2b8] sm:$0xff] %v603_v23 }
  0x46   : > { %606 = vst [vmem:[%s2132_s12 + $0x2c0] sm:$0xff] %v605_v24  ;;  %608 = vst [vmem:[%s2132_s12 + $0x2c8] sm:$0xff] %v607_v25  ;;  %v609_v26 = vld [vmem:[%s2127_s11 + $0x5a0] sm:$0xff]  ;;  %v611_v27 = vld [vmem:[%s2127_s11 + $0x5b0] sm:$0xff] }
  0x47   : > { %v613_v28 = vld [vmem:[%s2127_s11 + $0x5c0] sm:$0xff]  ;;  %610 = vst [vmem:[%s2132_s12 + $0x2d0] sm:$0xff] %v609_v26  ;;  %612 = vst [vmem:[%s2132_s12 + $0x2d8] sm:$0xff] %v611_v27  ;;  %v615_v29 = vld [vmem:[%s2127_s11 + $0x5d0] sm:$0xff] }
  0x48   : > { %614 = vst [vmem:[%s2132_s12 + $0x2e0] sm:$0xff] %v613_v28  ;;  %v617_v30 = vld [vmem:[%s2127_s11 + $0x5e0] sm:$0xff]  ;;  %v619_v31 = vld [vmem:[%s2127_s11 + $0x5f0] sm:$0xff]  ;;  %616 = vst [vmem:[%s2132_s12 + $0x2e8] sm:$0xff] %v615_v29 }
  0x49   : > { %618 = vst [vmem:[%s2132_s12 + $0x2f0] sm:$0xff] %v617_v30  ;;  %620 = vst [vmem:[%s2132_s12 + $0x2f8] sm:$0xff] %v619_v31 }
  0x4a PF: > { %p1660_p7 = scmp.ge.s32.totalorder %s2039_s21, 1  ;;  %p646_p8 = scmp.lt.s32.totalorder %s2039_s21, 13 }
  0x4c   : > { %p647_p9 = pnand %p1660_p7, %p646_p8 }
  0x4d   : > { %s653_s13 = sand.u32 (!%p647_p9), 1, %s2015_s15   ;;  %s704_s14 = smul.u32 (!%p647_p9), 6, %s2023_s17 }
  0x4e   : > { %650 = sbr.rel (%p647_p9) target bundleno = 459 (0x1cb), region = 70  ;;  %s1662_s25 = sshll.u32 (!%p647_p9), %s2027_s18, 1 }
  0x4f   : > { %s1777_s24 = smul.u32 (!%p647_p9), 768, %s653_s13  ;;  %p707_p10 = scmp.lt.s32.totalorder (!%p647_p9), %s704_s14, 35 }
  0x50   : > { %p717_p11 = scmp.lt.s32.totalorder (!%p647_p9), %s1662_s25, 3  ;;  %p1667_p12 = scmp.ne.s32.totalorder (!%p647_p9), %s2023_s17, 0 }
  0x51   : > { %s2350_s13 = scalar_lea.vmem (!%p647_p9), [#allocation3], %s1777_s24 }
  0x55   : > { %s2505_s14 = smov (!%p707_p10, %s704_s14), 35  ;;  %s2507_s25 = smov (!%p717_p11, %s1662_s25), 3 }
  0x56   : > { %s1661_s26 = sshll.u32 %s2505_s14, 2  ;;  %s719_s15 = scalar_lea.vmem %s2489_s2, %s2507_s25  ;;  %v2041_v32 = vmov (!%p1667_p12), 0.0  }
  0x57   : > { %s2333_s30 = scalar_lea.vmem %s2487_s0, %s1661_s26  ;;  %s1664_s7 = sshll.u32 %s2507_s25, 2  ;;  %745 = vst [vmem:[#allocation2] sm:$0xff] (!%p1667_p12), %v2041_v32  ;;  %746 = vst [vmem:[#allocation2 + $0x8] sm:$0xff] (!%p1667_p12), %v2041_v32 }
  0x58   : > { %s2343_s9 = scalar_lea.vmem %s2490_s3, %s1664_s7  ;;  %s2348_s12 = scalar_lea.vmem %s2491_s4, %s1664_s7 }
  0x59   : > { %744 = sbr.rel (%p1667_p12) target bundleno = 96 (0x60), region = 78 }
  0x60 PF: > { %v1835_v33 = vld [vmem:[%s2350_s13 + $0x4] ss:$8 sps:$4 sm:$0xff]   ;;  %v1839_v35 = vld [vmem:[%s2350_s13] ss:$8 sps:$4 sm:$0xff]   ;;  %v1841_v37 = vld [vmem:[%s2350_s13 + $0x14] ss:$8 sps:$4 sm:$0xff]  }
  0x61   : > { %v1837_v34 = vld [vmem:[%s2350_s13 + $0x104] ss:$8 sps:$4 sm:$0xff]   ;;  %1349 = vmatprep.subr.bf16.mxu0 %v1835_v33  ;;  %v1840_v36 = vld [vmem:[%s2350_s13 + $0x100] ss:$8 sps:$4 sm:$0xff]   ;;  %v1843_v38 = vld [vmem:[%s2350_s13 + $0x114] ss:$8 sps:$4 sm:$0xff]  }
  0x62   : > { %1390 = vmatprep.subr.bf16.mxu1 %v1837_v34  ;;  %1350 = vmatpush1.bf16.msra.mxu0 %v1839_v35  ;;  %v1845_v39 = vld [vmem:[%s2350_s13 + $0x10] ss:$8 sps:$4 sm:$0xff]   ;;  %v1847_v41 = vld [vmem:[%s2350_s13 + $0x24] ss:$8 sps:$4 sm:$0xff]   ;;  %v1851_v43 = vld [vmem:[%s2350_s13 + $0x20] ss:$8 sps:$4 sm:$0xff]  }
  0x63   : > { %1391 = vmatpush1.bf16.msra.mxu1 %v1840_v36  ;;  %1351 = vmatprep.subr.bf16.mxu0 %v1841_v37  ;;  %v1846_v40 = vld [vmem:[%s2350_s13 + $0x110] ss:$8 sps:$4 sm:$0xff]   ;;  %v1849_v42 = vld [vmem:[%s2350_s13 + $0x124] ss:$8 sps:$4 sm:$0xff]   ;;  %v1852_v44 = vld [vmem:[%s2350_s13 + $0x120] ss:$8 sps:$4 sm:$0xff]  }
  0x64   : > { %1392 = vmatprep.subr.bf16.mxu1 %v1843_v38  ;;  %v1853_v45 = vld [vmem:[%s2350_s13 + $0x34] ss:$8 sps:$4 sm:$0xff]   ;;  %v1857_v47 = vld [vmem:[%s2350_s13 + $0x30] ss:$8 sps:$4 sm:$0xff]   ;;  %v1859_v49 = vld [vmem:[%s2350_s13 + $0x44] ss:$8 sps:$4 sm:$0xff]  }
  0x65   : > { %v1855_v46 = vld [vmem:[%s2350_s13 + $0x134] ss:$8 sps:$4 sm:$0xff]   ;;  %v1858_v48 = vld [vmem:[%s2350_s13 + $0x130] ss:$8 sps:$4 sm:$0xff]   ;;  %v1861_v50 = vld [vmem:[%s2350_s13 + $0x144] ss:$8 sps:$4 sm:$0xff]  }
  0x66   : > { %1352 = vmatpush1.bf16.msra.mxu0 %v1845_v39  ;;  %v1863_v51 = vld [vmem:[%s2350_s13 + $0x40] ss:$8 sps:$4 sm:$0xff]   ;;  %v1865_v53 = vld [vmem:[%s2350_s13 + $0x54] ss:$8 sps:$4 sm:$0xff]   ;;  %v1869_v55 = vld [vmem:[%s2350_s13 + $0x50] ss:$8 sps:$4 sm:$0xff]  }
  0x67   : > { %1393 = vmatpush1.bf16.msra.mxu1 %v1846_v40  ;;  %1353 = vmatprep.subr.bf16.mxu0 %v1847_v41  ;;  %v1864_v52 = vld [vmem:[%s2350_s13 + $0x140] ss:$8 sps:$4 sm:$0xff]   ;;  %v1867_v54 = vld [vmem:[%s2350_s13 + $0x154] ss:$8 sps:$4 sm:$0xff]   ;;  %v1870_v56 = vld [vmem:[%s2350_s13 + $0x150] ss:$8 sps:$4 sm:$0xff]  }
  0x68   : > { %1394 = vmatprep.subr.bf16.mxu1 %v1849_v42  ;;  %v1871_v57 = vld [vmem:[%s2350_s13 + $0x64] ss:$8 sps:$4 sm:$0xff]   ;;  %v1875_v59 = vld [vmem:[%s2350_s13 + $0x60] ss:$8 sps:$4 sm:$0xff]   ;;  %v1877_v61 = vld [vmem:[%s2350_s13 + $0x74] ss:$8 sps:$4 sm:$0xff]  }
  0x69   : > { %v1873_v58 = vld [vmem:[%s2350_s13 + $0x164] ss:$8 sps:$4 sm:$0xff]   ;;  %v1876_v60 = vld [vmem:[%s2350_s13 + $0x160] ss:$8 sps:$4 sm:$0xff]   ;;  %v1879_v62 = vld [vmem:[%s2350_s13 + $0x174] ss:$8 sps:$4 sm:$0xff]  }
  0x6a   : > { %1354 = vmatpush1.bf16.msra.mxu0 %v1851_v43  ;;  %v1881_v63 = vld [vmem:[%s2350_s13 + $0x70] ss:$8 sps:$4 sm:$0xff]   ;;  %v1883_v1 = vld [vmem:[%s2350_s13 + $0x84] ss:$8 sps:$4 sm:$0xff]   ;;  %v1887_v3 = vld [vmem:[%s2350_s13 + $0x80] ss:$8 sps:$4 sm:$0xff]  }
  0x6b   : > { %1395 = vmatpush1.bf16.msra.mxu1 %v1852_v44  ;;  %1355 = vmatprep.subr.bf16.mxu0 %v1853_v45  ;;  %v1882_v0 = vld [vmem:[%s2350_s13 + $0x170] ss:$8 sps:$4 sm:$0xff]   ;;  %v1885_v2 = vld [vmem:[%s2350_s13 + $0x184] ss:$8 sps:$4 sm:$0xff]   ;;  %v1888_v4 = vld [vmem:[%s2350_s13 + $0x180] ss:$8 sps:$4 sm:$0xff]  }
  0x6c   : > { %1396 = vmatprep.subr.bf16.mxu1 %v1855_v46  ;;  %v1889_v5 = vld [vmem:[%s2350_s13 + $0x94] ss:$8 sps:$4 sm:$0xff]   ;;  %v1893_v7 = vld [vmem:[%s2350_s13 + $0x90] ss:$8 sps:$4 sm:$0xff]   ;;  %v1895_v9 = vld [vmem:[%s2350_s13 + $0xa4] ss:$8 sps:$4 sm:$0xff]  }
  0x6d   : > { %v1891_v6 = vld [vmem:[%s2350_s13 + $0x194] ss:$8 sps:$4 sm:$0xff]   ;;  %v1894_v8 = vld [vmem:[%s2350_s13 + $0x190] ss:$8 sps:$4 sm:$0xff]   ;;  %v1897_v10 = vld [vmem:[%s2350_s13 + $0x1a4] ss:$8 sps:$4 sm:$0xff]  }
  0x6e   : > { %1356 = vmatpush1.bf16.msra.mxu0 %v1857_v47  ;;  %v1899_v11 = vld [vmem:[%s2350_s13 + $0xa0] ss:$8 sps:$4 sm:$0xff]   ;;  %v1901_v13 = vld [vmem:[%s2350_s13 + $0xb4] ss:$8 sps:$4 sm:$0xff]   ;;  %v1905_v18 = vld [vmem:[%s2350_s13 + $0xb0] ss:$8 sps:$4 sm:$0xff]  }
  0x6f   : > { %1397 = vmatpush1.bf16.msra.mxu1 %v1858_v48  ;;  %1357 = vmatprep.subr.bf16.mxu0 %v1859_v49  ;;  %v1900_v12 = vld [vmem:[%s2350_s13 + $0x1a0] ss:$8 sps:$4 sm:$0xff]   ;;  %v1903_v14 = vld [vmem:[%s2350_s13 + $0x1b4] ss:$8 sps:$4 sm:$0xff]   ;;  %v1906_v19 = vld [vmem:[%s2350_s13 + $0x1b0] ss:$8 sps:$4 sm:$0xff]  }
  0x70   : > { %1398 = vmatprep.subr.bf16.mxu1 %v1861_v50  ;;  %v749_v15 = vld [vmem:[%s2333_s30] sm:$0xff]  ;;  %v750_v17 = vld [vmem:[%s2333_s30 + $0x8] sm:$0xff]  ;;  %v1907_v21 = vld [vmem:[%s2350_s13 + $0xc4] ss:$8 sps:$4 sm:$0xff]   ;;  %p1770_p13 = scmp.ne.s32.totalorder %s2023_s17, 5 }
  0x71   : > { %v1669_v16 = vcombine.high %v749_v15, %v749_v15  ;;  %v1671_v20 = vcombine.high %v750_v17, %v750_v17  ;;  %v1909_v22 = vld [vmem:[%s2350_s13 + $0x1c4] ss:$8 sps:$4 sm:$0xff]   ;;  %v1911_v23 = vld [vmem:[%s2350_s13 + $0xc0] ss:$8 sps:$4 sm:$0xff]   ;;  %v1913_v25 = vld [vmem:[%s2350_s13 + $0xd4] ss:$8 sps:$4 sm:$0xff]   ;;  %v1668_v38 = vcombine.low %v749_v15, %v749_v15  ;;  %v1670_v39 = vcombine.low %v750_v17, %v750_v17 }
  0x72   : > { %1358 = vmatpush1.bf16.msra.mxu0 %v1863_v51  ;;  %v1912_v24 = vld [vmem:[%s2350_s13 + $0x1c0] ss:$8 sps:$4 sm:$0xff]   ;;  %v1915_v26 = vld [vmem:[%s2350_s13 + $0x1d4] ss:$8 sps:$4 sm:$0xff]   ;;  %v1917_v27 = vld [vmem:[%s2350_s13 + $0xd0] ss:$8 sps:$4 sm:$0xff]  }
  0x73   : > { %1399 = vmatpush1.bf16.msra.mxu1 %v1864_v52  ;;  %1359 = vmatprep.subr.bf16.mxu0 %v1865_v53  ;;  %v1918_v28 = vld [vmem:[%s2350_s13 + $0x1d0] ss:$8 sps:$4 sm:$0xff]   ;;  %v1919_v29 = vld [vmem:[%s2350_s13 + $0xe4] ss:$8 sps:$4 sm:$0xff]   ;;  %v1923_v31 = vld [vmem:[%s2350_s13 + $0xe0] ss:$8 sps:$4 sm:$0xff]  }
  0x74   : > { %1400 = vmatprep.subr.bf16.mxu1 %v1867_v54  ;;  %1381 = vmatprep.mubr.bf16.mxu0 %v1669_v16  ;;  %v1921_v30 = vld [vmem:[%s2350_s13 + $0x1e4] ss:$8 sps:$4 sm:$0xff]   ;;  %v1924_v32 = vld [vmem:[%s2350_s13 + $0x1e0] ss:$8 sps:$4 sm:$0xff]   ;;  %v1925_v33 = vld [vmem:[%s2350_s13 + $0xf4] ss:$8 sps:$4 sm:$0xff]  }
  0x75   : > { %1422 = vmatprep.mubr.bf16.mxu1 %v1671_v20  ;;  %v1927_v34 = vld [vmem:[%s2350_s13 + $0x1f4] ss:$8 sps:$4 sm:$0xff]   ;;  %v1929_v35 = vld [vmem:[%s2350_s13 + $0xf0] ss:$8 sps:$4 sm:$0xff]   ;;  %v1937_v37 = vld [vmem:[%s2350_s13 + $0x204] ss:$8 sps:$4 sm:$0xff]  }
  0x76   : > { %1360 = vmatpush1.bf16.msra.mxu0 %v1869_v55  ;;  %v1930_v36 = vld [vmem:[%s2350_s13 + $0x1f0] ss:$8 sps:$4 sm:$0xff]   ;;  %v1935_v40 = vld [vmem:[%s2350_s13 + $0x200] ss:$8 sps:$4 sm:$0xff]   ;;  %v1940_v42 = vld [vmem:[%s2350_s13 + $0x214] ss:$8 sps:$4 sm:$0xff]  }
  0x77   : > { %1401 = vmatpush1.bf16.msra.mxu1 %v1870_v56  ;;  %1361 = vmatprep.subr.bf16.mxu0 %v1871_v57  ;;  %v2422_v41 = vld [vmem:[%s2333_s30 + $0x10] sm:$0xff]  ;;  %v1938_v44 = vld [vmem:[%s2350_s13 + $0x210] ss:$8 sps:$4 sm:$0xff]   ;;  %v1946_v47 = vld [vmem:[%s2350_s13 + $0x234] ss:$8 sps:$4 sm:$0xff]  }
  0x78   : > { %1402 = vmatprep.subr.bf16.mxu1 %v1873_v58  ;;  %v1673_v43 = vcombine.high %v2422_v41, %v2422_v41  ;;  %v1943_v45 = vld [vmem:[%s2350_s13 + $0x224] ss:$8 sps:$4 sm:$0xff]   ;;  %v1941_v46 = vld [vmem:[%s2350_s13 + $0x220] ss:$8 sps:$4 sm:$0xff]   ;;  %v1944_v48 = vld [vmem:[%s2350_s13 + $0x230] ss:$8 sps:$4 sm:$0xff]  }
  0x79   : > { %v1949_v49 = vld [vmem:[%s2350_s13 + $0x244] ss:$8 sps:$4 sm:$0xff]   ;;  %v1947_v50 = vld [vmem:[%s2350_s13 + $0x240] ss:$8 sps:$4 sm:$0xff]   ;;  %v1952_v51 = vld [vmem:[%s2350_s13 + $0x254] ss:$8 sps:$4 sm:$0xff]  }
  0x7a   : > { %1362 = vmatpush1.bf16.msra.mxu0 %v1875_v59  ;;  %v1950_v52 = vld [vmem:[%s2350_s13 + $0x250] ss:$8 sps:$4 sm:$0xff]   ;;  %v1955_v53 = vld [vmem:[%s2350_s13 + $0x264] ss:$8 sps:$4 sm:$0xff]   ;;  %v1953_v54 = vld [vmem:[%s2350_s13 + $0x260] ss:$8 sps:$4 sm:$0xff]  }
  0x7b   : > { %1403 = vmatpush1.bf16.msra.mxu1 %v1876_v60  ;;  %1363 = vmatprep.subr.bf16.mxu0 %v1877_v61  ;;  %v1958_v55 = vld [vmem:[%s2350_s13 + $0x274] ss:$8 sps:$4 sm:$0xff]   ;;  %v1956_v56 = vld [vmem:[%s2350_s13 + $0x270] ss:$8 sps:$4 sm:$0xff]   ;;  %v1961_v57 = vld [vmem:[%s2350_s13 + $0x284] ss:$8 sps:$4 sm:$0xff]  }
  0x7c   : > { %1404 = vmatprep.subr.bf16.mxu1 %v1879_v62  ;;  %v1959_v58 = vld [vmem:[%s2350_s13 + $0x280] ss:$8 sps:$4 sm:$0xff]   ;;  %v1964_v59 = vld [vmem:[%s2350_s13 + $0x294] ss:$8 sps:$4 sm:$0xff]   ;;  %v1962_v60 = vld [vmem:[%s2350_s13 + $0x290] ss:$8 sps:$4 sm:$0xff]  }
  0x7d   : > { %v1967_v61 = vld [vmem:[%s2350_s13 + $0x2a4] ss:$8 sps:$4 sm:$0xff]   ;;  %v1965_v62 = vld [vmem:[%s2350_s13 + $0x2a0] ss:$8 sps:$4 sm:$0xff]   ;;  %v747_v20 = vld [vmem:[#allocation2] sm:$0xff] }
  0x7e   : > { %1364 = vmatpush1.bf16.msra.mxu0 %v1881_v63  ;;  %v1970_v63 = vld [vmem:[%s2350_s13 + $0x2b4] ss:$8 sps:$4 sm:$0xff]  }
  0x7f   : > { %1405 = vmatpush1.bf16.msra.mxu1 %v1882_v0  ;;  %1365 = vmatprep.subr.bf16.mxu0 %v1883_v1  ;;  %v1968_v0 = vld [vmem:[%s2350_s13 + $0x2b0] ss:$8 sps:$4 sm:$0xff]   ;;  %v1973_v1 = vld [vmem:[%s2350_s13 + $0x2c4] ss:$8 sps:$4 sm:$0xff]  }
  0x80   : > { %1406 = vmatprep.subr.bf16.mxu1 %v1885_v2  ;;  %v1971_v2 = vld [vmem:[%s2350_s13 + $0x2c0] ss:$8 sps:$4 sm:$0xff]  }
  0x82   : > { %1366 = vmatpush1.bf16.msra.mxu0 %v1887_v3  ;;  %v1976_v3 = vld [vmem:[%s2350_s13 + $0x2d4] ss:$8 sps:$4 sm:$0xff]  }
  0x83   : > { %1407 = vmatpush1.bf16.msra.mxu1 %v1888_v4  ;;  %1367 = vmatprep.subr.bf16.mxu0 %v1889_v5  ;;  %v1974_v4 = vld [vmem:[%s2350_s13 + $0x2d0] ss:$8 sps:$4 sm:$0xff]   ;;  %v1979_v5 = vld [vmem:[%s2350_s13 + $0x2e4] ss:$8 sps:$4 sm:$0xff]  }
  0x84   : > { %1408 = vmatprep.subr.bf16.mxu1 %v1891_v6  ;;  %v1977_v6 = vld [vmem:[%s2350_s13 + $0x2e0] ss:$8 sps:$4 sm:$0xff]  }
  0x86   : > { %1368 = vmatpush1.bf16.msra.mxu0 %v1893_v7  ;;  %v1982_v7 = vld [vmem:[%s2350_s13 + $0x2f4] ss:$8 sps:$4 sm:$0xff]  }
  0x87   : > { %1409 = vmatpush1.bf16.msra.mxu1 %v1894_v8  ;;  %1369 = vmatprep.subr.bf16.mxu0 %v1895_v9  ;;  %v1980_v8 = vld [vmem:[%s2350_s13 + $0x2f0] ss:$8 sps:$4 sm:$0xff]   ;;  %v1672_v9 = vcombine.low %v2422_v41, %v2422_v41 }
  0x88   : > { %1410 = vmatprep.subr.bf16.mxu1 %v1897_v10 }
  0x8a   : > { %1370 = vmatpush1.bf16.msra.mxu0 %v1899_v11 }
  0x8b   : > { %1411 = vmatpush1.bf16.msra.mxu1 %v1900_v12  ;;  %1371 = vmatprep.subr.bf16.mxu0 %v1901_v13 }
  0x8c   : > { %1412 = vmatprep.subr.bf16.mxu1 %v1903_v14 }
  0x8e   : > { %1372 = vmatpush1.bf16.msra.mxu0 %v1905_v18 }
  0x8f   : > { %1413 = vmatpush1.bf16.msra.mxu1 %v1906_v19  ;;  %1373 = vmatprep.subr.bf16.mxu0 %v1907_v21 }
  0x90   : > { %1414 = vmatprep.subr.bf16.mxu1 %v1909_v22 }
  0x92   : > { %1374 = vmatpush1.bf16.msra.mxu0 %v1911_v23  ;;  %v748_v23 = vld [vmem:[#allocation2 + $0x8] sm:$0xff] }
  0x93   : > { %1415 = vmatpush1.bf16.msra.mxu1 %v1912_v24  ;;  %1375 = vmatprep.subr.bf16.mxu0 %v1913_v25 }
  0x94   : > { %1416 = vmatprep.subr.bf16.mxu1 %v1915_v26 }
  0x96   : > { %1376 = vmatpush1.bf16.msra.mxu0 %v1917_v27 }
  0x97   : > { %1417 = vmatpush1.bf16.msra.mxu1 %v1918_v28  ;;  %1377 = vmatprep.subr.bf16.mxu0 %v1919_v29 }
  0x98   : > { %1418 = vmatprep.subr.bf16.mxu1 %v1921_v30  ;;  %v1484_v30 = vlaneseq (!%p1770_p13) }
  0x9a   : > { %1378 = vmatpush1.bf16.msra.mxu0 %v1923_v31  ;;  %v1485_v31 = vshrl.u32 (!%p1770_p13), %v1484_v30, 7 }
  0x9b   : > { %1419 = vmatpush1.bf16.msra.mxu1 %v1924_v32  ;;  %1379 = vmatprep.subr.bf16.mxu0 %v1925_v33  ;;  %v1482_v32 = vld [vmem:[%s719_s15] sm:$0x3] (!%p1770_p13) }
  0x9c   : > { %1420 = vmatprep.subr.bf16.mxu1 %v1927_v34  ;;  %v1496_v33 = vld [vmem:[%s2343_s9] sm:$0xff] (!%p1770_p13)  ;;  %v1486_v34 = vsub.s32 (!%p1770_p13), 0, %v1485_v31 }
  0x9d   : > { %v1498_v41 = vunpack.c.h.bf16 (!%p1770_p13), %v1496_v33 }
  0x9e   : > { %1380 = vmatpush1.bf16.msra.mxu0 %v1929_v35  ;;  %v1490_v35 = vsub.s32 (!%p1770_p13), 1, %v1485_v31 }
  0x9f   : > { %1421 = vmatpush1.bf16.msra.mxu1 %v1930_v36  ;;  %1431 = vmatprep.subr.bf16.mxu0 %v1937_v37 }
  0xa1   : > { %1382 = vmatmul.mubr.bf16.vlgmr.msra.gmra.mrb[0].mxu0 %v1668_v38  ;;  %v1487_v38 = vrot.slane (!%p1770_p13), %v1482_v32, %v1486_v34 }
  0xa2   : > { %1423 = vmatmul.mubr.bf16.vlgmr.msra.gmra.mrb[0].mxu1 %v1670_v39  ;;  %1432 = vmatpush1.bf16.msra.mxu0 %v1935_v40  ;;  %v1491_v39 = vrot.slane (!%p1770_p13), %v1482_v32, %v1490_v35  ;;  %v1497_v40 = vunpack.c.l.bf16 (!%p1770_p13), %v1496_v33 }
  0xa3   : > { %1463 = vmatprep.mubr.bf16.mxu0 %v1673_v43  ;;  %1433 = vmatprep.subr.bf16.mxu0 %v1940_v42 }
  0xa6   : > { %1434 = vmatpush1.bf16.msra.mxu0 %v1938_v44 }
  0xa7   : > { %1435 = vmatprep.subr.bf16.mxu0 %v1943_v45 }
  0xaa   : > { %1436 = vmatpush1.bf16.msra.mxu0 %v1941_v46 }
  0xab   : > { %1437 = vmatprep.subr.bf16.mxu0 %v1946_v47 }
  0xae   : > { %1438 = vmatpush1.bf16.msra.mxu0 %v1944_v48 }
  0xaf   : > { %1439 = vmatprep.subr.bf16.mxu0 %v1949_v49 }
  0xb2   : > { %1440 = vmatpush1.bf16.msra.mxu0 %v1947_v50 }
  0xb3   : > { %1441 = vmatprep.subr.bf16.mxu0 %v1952_v51 }
  0xb6   : > { %1442 = vmatpush1.bf16.msra.mxu0 %v1950_v52 }
  0xb7   : > { %1443 = vmatprep.subr.bf16.mxu0 %v1955_v53 }
  0xba   : > { %1444 = vmatpush1.bf16.msra.mxu0 %v1953_v54 }
  0xbb   : > { %1445 = vmatprep.subr.bf16.mxu0 %v1958_v55 }
  0xbe   : > { %1446 = vmatpush1.bf16.msra.mxu0 %v1956_v56 }
  0xbf   : > { %1447 = vmatprep.subr.bf16.mxu0 %v1961_v57 }
  0xc2   : > { %1448 = vmatpush1.bf16.msra.mxu0 %v1959_v58 }
  0xc3   : > { %1449 = vmatprep.subr.bf16.mxu0 %v1964_v59 }
  0xc6   : > { %1450 = vmatpush1.bf16.msra.mxu0 %v1962_v60 }
  0xc7   : > { %1451 = vmatprep.subr.bf16.mxu0 %v1967_v61 }
  0xca   : > { %1452 = vmatpush1.bf16.msra.mxu0 %v1965_v62 }
  0xcb   : > { %1453 = vmatprep.subr.bf16.mxu0 %v1970_v63 }
  0xce   : > { %1454 = vmatpush1.bf16.msra.mxu0 %v1968_v0 }
  0xcf   : > { %1455 = vmatprep.subr.bf16.mxu0 %v1973_v1 }
  0xd2   : > { %1456 = vmatpush1.bf16.msra.mxu0 %v1971_v2 }
  0xd3   : > { %1457 = vmatprep.subr.bf16.mxu0 %v1976_v3 }
  0xd6   : > { %1458 = vmatpush1.bf16.msra.mxu0 %v1974_v4 }
  0xd7   : > { %1459 = vmatprep.subr.bf16.mxu0 %v1979_v5 }
  0xda   : > { %1460 = vmatpush1.bf16.msra.mxu0 %v1977_v6 }
  0xdb   : > { %1461 = vmatprep.subr.bf16.mxu0 %v1982_v7 }
  0xde   : > { %1462 = vmatpush1.bf16.msra.mxu0 %v1980_v8 }
  0xe1   : > { %1464 = vmatmul.mubr.bf16.vlgmr.msra.gmra.mrb[4].mxu0 %v1672_v9 }
 0x174   : > { %v1383_v10 = vpop.f32.mrb[0].mxu0 }
 0x175   : > { %v1424_v11 = vpop.f32.mrb[0].mxu1  ;;  %v1385_v13 = vpop.f32.mrb[1].mxu0 }
 0x176   : > { %v1425_v12 = vadd.f32 %v1424_v11, %v1383_v10  ;;  %v1426_v14 = vpop.f32.mrb[1].mxu1  ;;  %v1387_v16 = vpop.f32.mrb[2].mxu0 }
 0x177   : > { %v1427_v15 = vadd.f32 %v1426_v14, %v1385_v13  ;;  %v1428_v17 = vpop.f32.mrb[2].mxu1  ;;  %v1388_v18 = vpop.f32.mrb[3].mxu0 }
 0x178   : > { %v1429_v19 = vpop.f32.mrb[3].mxu1 }
 0x1b4   : > { %v1465_v21 = vpop.f32.mrb[4].mxu0  ;;  %1479 = sbr.rel (%p1770_p13) target bundleno = 459 (0x1cb), region = 82 }
 0x1b5   : > { %v1466_v22 = vadd.f32 %v1465_v21, %v1425_v12  ;;  %v1467_v24 = vpop.f32.mrb[5].mxu0 }
 0x1b6   : > { %v1468_v25 = vadd.f32 %v1467_v24, %v1427_v15  ;;  %v1469_v26 = vpop.f32.mrb[6].mxu0 }
 0x1b7   : > { %v1472_v27 = vadd.f32 %v1466_v22, %v747_v20  ;;  %v1470_v28 = vpop.f32.mrb[7].mxu0 }
 0x1b8   : > { %v1473_v29 = vadd.f32 %v1468_v25, %v748_v23 }
 0x1b9   : > { %1474 = vst [vmem:[#allocation2] sm:$0xff] %v1472_v27 }
 0x1ba   : > { %1475 = vst [vmem:[#allocation2 + $0x8] sm:$0xff] %v1473_v29 }
 0x1c0   : > { %v1480_v36 = vld [vmem:[#allocation2] sm:$0xff] }
 0x1c1   : > { %v1481_v37 = vld [vmem:[#allocation2 + $0x8] sm:$0xff]  ;;  %v1494_v42 = vadd.f32 %v1487_v38, %v1480_v36 }
 0x1c2   : > { %v1495_v43 = vadd.f32 %v1491_v39, %v1481_v37 }
 0x1c3   : > { %v1499_v44 = vadd.f32 %v1497_v40, %v1494_v42 }
 0x1c4   : > { %v1500_v45 = vadd.f32 %v1498_v41, %v1495_v43 }
 0x1c5   : > { %v1501_v46 = vmax.f32 %v1499_v44, 0.0 }
 0x1c6   : > { %v1502_v47 = vmax.f32 %v1500_v45, 0.0 }
 0x1c8   : > { %v1775_v48 = vpack.c.bf16 %v1502_v47, %v1501_v46 }
 0x1ca   : > { %1511 = vst [vmem:[%s2348_s12] sm:$0xff] %v1775_v48 }
 0x1cb PF: > { %s14_s21 = sadd.s32 1, %s2039_s21   ;;  %s2492_s15 = smov %s2019_s16 }
 0x1cc   : > { %p11_p0 = scmp.ge.s32.totalorder %s14_s21, 14   ;;  %s2493_s16 = smov %s2118_s28 }
 0x1cd   : > { %s2494_s17 = smov %s2031_s19  ;;  %s2495_s18 = smov %s2035_s20 }
 0x1ce   : > { %s2496_s19 = smov %s2499_s22  ;;  %s2497_s20 = smov %s2503_s23 }
 0x1cf   :  { %13 = sbr.rel (!%p11_p0) target bundleno = 4 (0x4), region = 126 }

// kernel: resnet34_forward.71
= control target key start
LH: loop header
LB: loop body
LE: loop exit
PB: predicated region body
PF: predicated region fallthrough
CT: control target
= control target key end

     0   :  { %s1974_s12 = smov 0   ;;  %s1976_s13 = smov 0   ;;  %s2388_s0 = inlined_call_operand.vmem [shape: bf16[8,4608], index: 0, kind: input, shape index: {}]   ;;  %s2389_s1 = inlined_call_operand.vmem [shape: bf16[4608,512], index: 1, kind: input, shape index: {}]   ;;  %s2390_s2 = inlined_call_operand.vmem [shape: f32[1,512], index: 2, kind: input, shape index: {}]   ;;  %s2391_s3 = inlined_call_operand.vmem [shape: bf16[8,512], index: 3, kind: output, shape index: {}]  }
   0x1   :  { %s1978_s14 = smov 0   ;;  %s1980_s15 = smov 0  }
   0x2   :  { %s1982_s16 = smov 0   ;;  %s1984_s17 = smov 0  }
   0x3   :  { %s1986_s18 = smov 0  }
   0x4 LB: > { %s25_s19 = sadd.s32 1, %s1943_s16  ;;  %s28_s20 = sadd.s32 1, %s1947_s17  ;;  %s1951_s18 = sphi %s1986_s18, %s13_s18   ;;  %s1947_s17 = sphi %s1984_s17, %s2397_s17   ;;  %s1943_s16 = sphi %s1982_s16, %s2396_s16   ;;  %s1939_s15 = sphi %s1980_s15, %s2395_s15   ;;  %s1935_s14 = sphi %s1978_s14, %s2394_s14   ;;  %s1931_s13 = sphi %s1976_s13, %s2393_s13   ;;  %s1927_s12 = sphi %s1974_s12, %s2392_s12  }
   0x5   : > { %p26_p0 = scmp.ge.s32.totalorder %s25_s19, 6  ;;  %p76_p1 = scmp.ne.s32.totalorder %s1931_s13, %s1927_s12 }
   0x6   : > { %p77_p2 = scmp.eq.s32.totalorder %s1951_s18, 0  ;;  %s69_s24 = sadd.s32 1, %s1931_s13 }
   0x7   : > { %s2399_s19 = smov (%p26_p0, %s25_s19), 0  ;;  %s2401_s20 = smov (!%p26_p0, %s28_s20), %s1947_s17 }
   0x8   : > { %p78_p3 = por %p77_p2, %p76_p1  ;;  %p30_p4 = scmp.ge.s32.totalorder %s2401_s20, 2 }
   0x9   : > { %s64_s21 = ssub.s32 %s1943_s16, %s2399_s19  ;;  %p1570_p6 = scmp.ge.s32.totalorder %s1951_s18, 12 }
   0xa   : > { %s2403_s20 = smov (%p30_p4, %s2401_s20), 0 }
   0xb   : > { %s65_s22 = ssub.s32 %s1947_s17, %s2403_s20  ;;  %156 = sbr.rel (%p1570_p6) target bundleno = 74 (0x4a), region = 16 }
   0xc   : > { %s66_s23 = sor.u32 %s65_s22, %s64_s21 }
   0xd   : > { %p67_p5 = scmp.eq.s32.totalorder %s66_s23, 0 }
   0xf   : > { %s2025_s25 = scalar_select %p67_p5, %s1931_s13, %s69_s24  }
  0x12   : > { %172 = sbr.rel (!%p78_p3) target bundleno = 74 (0x4a), region = 24  ;;  %s174_s26 = sand.u32 (%p78_p3), 1, %s1931_s13  }
  0x13   : > { %s1688_s27 = smul.u32 (%p78_p3), 768, %s174_s26  ;;  %s1571_s28 = sshll.u32 (%p78_p3), %s1947_s17, 1 }
  0x14   : > { %s1686_s29 = smul.u32 (%p78_p3), 384, %s1943_s16 }
  0x15   : > { %s2039_s8 = scalar_lea.vmem (%p78_p3), [#allocation3], %s1688_s27 }
  0x16   : > { %s180_s30 = sadd.s32 (%p78_p3), %s1686_s29, %s1571_s28 }
  0x17   : > { %s1573_s4 = sshll.u32 (%p78_p3), %s180_s30, 2 }
  0x18   : > { %s2034_s7 = scalar_lea.vmem (%p78_p3), %s2389_s1, %s1573_s4 }
  0x19   : > { %v400_v0 = vld [vmem:[%s2034_s7] sm:$0xff]  ;;  %v402_v1 = vld [vmem:[%s2034_s7 + $0x10] sm:$0xff] }
  0x1a   : > { %v404_v2 = vld [vmem:[%s2034_s7 + $0x20] sm:$0xff]  ;;  %401 = vst [vmem:[%s2039_s8] sm:$0xff] %v400_v0  ;;  %403 = vst [vmem:[%s2039_s8 + $0x8] sm:$0xff] %v402_v1  ;;  %v406_v3 = vld [vmem:[%s2034_s7 + $0x30] sm:$0xff] }
  0x1b   : > { %405 = vst [vmem:[%s2039_s8 + $0x10] sm:$0xff] %v404_v2  ;;  %v408_v4 = vld [vmem:[%s2034_s7 + $0x40] sm:$0xff]  ;;  %v410_v5 = vld [vmem:[%s2034_s7 + $0x50] sm:$0xff]  ;;  %407 = vst [vmem:[%s2039_s8 + $0x18] sm:$0xff] %v406_v3 }
  0x1c   : > { %409 = vst [vmem:[%s2039_s8 + $0x20] sm:$0xff] %v408_v4  ;;  %411 = vst [vmem:[%s2039_s8 + $0x28] sm:$0xff] %v410_v5  ;;  %v412_v6 = vld [vmem:[%s2034_s7 + $0x60] sm:$0xff]  ;;  %v414_v7 = vld [vmem:[%s2034_s7 + $0x70] sm:$0xff] }
  0x1d   : > { %v416_v8 = vld [vmem:[%s2034_s7 + $0x80] sm:$0xff]  ;;  %413 = vst [vmem:[%s2039_s8 + $0x30] sm:$0xff] %v412_v6  ;;  %415 = vst [vmem:[%s2039_s8 + $0x38] sm:$0xff] %v414_v7  ;;  %v418_v9 = vld [vmem:[%s2034_s7 + $0x90] sm:$0xff] }
  0x1e   : > { %417 = vst [vmem:[%s2039_s8 + $0x40] sm:$0xff] %v416_v8  ;;  %v420_v10 = vld [vmem:[%s2034_s7 + $0xa0] sm:$0xff]  ;;  %v422_v11 = vld [vmem:[%s2034_s7 + $0xb0] sm:$0xff]  ;;  %419 = vst [vmem:[%s2039_s8 + $0x48] sm:$0xff] %v418_v9 }
  0x1f   : > { %421 = vst [vmem:[%s2039_s8 + $0x50] sm:$0xff] %v420_v10  ;;  %423 = vst [vmem:[%s2039_s8 + $0x58] sm:$0xff] %v422_v11  ;;  %v424_v12 = vld [vmem:[%s2034_s7 + $0xc0] sm:$0xff]  ;;  %v426_v13 = vld [vmem:[%s2034_s7 + $0xd0] sm:$0xff] }
  0x20   : > { %v428_v14 = vld [vmem:[%s2034_s7 + $0xe0] sm:$0xff]  ;;  %425 = vst [vmem:[%s2039_s8 + $0x60] sm:$0xff] %v424_v12  ;;  %427 = vst [vmem:[%s2039_s8 + $0x68] sm:$0xff] %v426_v13  ;;  %v430_v15 = vld [vmem:[%s2034_s7 + $0xf0] sm:$0xff] }
  0x21   : > { %429 = vst [vmem:[%s2039_s8 + $0x70] sm:$0xff] %v428_v14  ;;  %v432_v16 = vld [vmem:[%s2034_s7 + $0x100] sm:$0xff]  ;;  %v434_v17 = vld [vmem:[%s2034_s7 + $0x110] sm:$0xff]  ;;  %431 = vst [vmem:[%s2039_s8 + $0x78] sm:$0xff] %v430_v15 }
  0x22   : > { %433 = vst [vmem:[%s2039_s8 + $0x80] sm:$0xff] %v432_v16  ;;  %435 = vst [vmem:[%s2039_s8 + $0x88] sm:$0xff] %v434_v17  ;;  %v436_v18 = vld [vmem:[%s2034_s7 + $0x120] sm:$0xff]  ;;  %v438_v19 = vld [vmem:[%s2034_s7 + $0x130] sm:$0xff] }
  0x23   : > { %v440_v20 = vld [vmem:[%s2034_s7 + $0x140] sm:$0xff]  ;;  %437 = vst [vmem:[%s2039_s8 + $0x90] sm:$0xff] %v436_v18  ;;  %439 = vst [vmem:[%s2039_s8 + $0x98] sm:$0xff] %v438_v19  ;;  %v442_v21 = vld [vmem:[%s2034_s7 + $0x150] sm:$0xff] }
  0x24   : > { %441 = vst [vmem:[%s2039_s8 + $0xa0] sm:$0xff] %v440_v20  ;;  %v444_v22 = vld [vmem:[%s2034_s7 + $0x160] sm:$0xff]  ;;  %v446_v23 = vld [vmem:[%s2034_s7 + $0x170] sm:$0xff]  ;;  %443 = vst [vmem:[%s2039_s8 + $0xa8] sm:$0xff] %v442_v21 }
  0x25   : > { %445 = vst [vmem:[%s2039_s8 + $0xb0] sm:$0xff] %v444_v22  ;;  %447 = vst [vmem:[%s2039_s8 + $0xb8] sm:$0xff] %v446_v23  ;;  %v448_v24 = vld [vmem:[%s2034_s7 + $0x180] sm:$0xff]  ;;  %v450_v25 = vld [vmem:[%s2034_s7 + $0x190] sm:$0xff] }
  0x26   : > { %v452_v26 = vld [vmem:[%s2034_s7 + $0x1a0] sm:$0xff]  ;;  %449 = vst [vmem:[%s2039_s8 + $0xc0] sm:$0xff] %v448_v24  ;;  %451 = vst [vmem:[%s2039_s8 + $0xc8] sm:$0xff] %v450_v25  ;;  %v454_v27 = vld [vmem:[%s2034_s7 + $0x1b0] sm:$0xff] }
  0x27   : > { %453 = vst [vmem:[%s2039_s8 + $0xd0] sm:$0xff] %v452_v26  ;;  %v456_v28 = vld [vmem:[%s2034_s7 + $0x1c0] sm:$0xff]  ;;  %v458_v29 = vld [vmem:[%s2034_s7 + $0x1d0] sm:$0xff]  ;;  %455 = vst [vmem:[%s2039_s8 + $0xd8] sm:$0xff] %v454_v27 }
  0x28   : > { %457 = vst [vmem:[%s2039_s8 + $0xe0] sm:$0xff] %v456_v28  ;;  %459 = vst [vmem:[%s2039_s8 + $0xe8] sm:$0xff] %v458_v29  ;;  %v460_v30 = vld [vmem:[%s2034_s7 + $0x1e0] sm:$0xff]  ;;  %v462_v31 = vld [vmem:[%s2034_s7 + $0x1f0] sm:$0xff] }
  0x29   : > { %v464_v32 = vld [vmem:[%s2034_s7 + $0x200] sm:$0xff]  ;;  %461 = vst [vmem:[%s2039_s8 + $0xf0] sm:$0xff] %v460_v30  ;;  %463 = vst [vmem:[%s2039_s8 + $0xf8] sm:$0xff] %v462_v31  ;;  %v466_v33 = vld [vmem:[%s2034_s7 + $0x210] sm:$0xff] }
  0x2a   : > { %465 = vst [vmem:[%s2039_s8 + $0x100] sm:$0xff] %v464_v32  ;;  %v468_v34 = vld [vmem:[%s2034_s7 + $0x220] sm:$0xff]  ;;  %v470_v35 = vld [vmem:[%s2034_s7 + $0x230] sm:$0xff]  ;;  %467 = vst [vmem:[%s2039_s8 + $0x108] sm:$0xff] %v466_v33 }
  0x2b   : > { %469 = vst [vmem:[%s2039_s8 + $0x110] sm:$0xff] %v468_v34  ;;  %471 = vst [vmem:[%s2039_s8 + $0x118] sm:$0xff] %v470_v35  ;;  %v472_v36 = vld [vmem:[%s2034_s7 + $0x240] sm:$0xff]  ;;  %v474_v37 = vld [vmem:[%s2034_s7 + $0x250] sm:$0xff] }
  0x2c   : > { %v476_v38 = vld [vmem:[%s2034_s7 + $0x260] sm:$0xff]  ;;  %473 = vst [vmem:[%s2039_s8 + $0x120] sm:$0xff] %v472_v36  ;;  %475 = vst [vmem:[%s2039_s8 + $0x128] sm:$0xff] %v474_v37  ;;  %v478_v39 = vld [vmem:[%s2034_s7 + $0x270] sm:$0xff] }
  0x2d   : > { %477 = vst [vmem:[%s2039_s8 + $0x130] sm:$0xff] %v476_v38  ;;  %v480_v40 = vld [vmem:[%s2034_s7 + $0x280] sm:$0xff]  ;;  %v482_v41 = vld [vmem:[%s2034_s7 + $0x290] sm:$0xff]  ;;  %479 = vst [vmem:[%s2039_s8 + $0x138] sm:$0xff] %v478_v39 }
  0x2e   : > { %481 = vst [vmem:[%s2039_s8 + $0x140] sm:$0xff] %v480_v40  ;;  %483 = vst [vmem:[%s2039_s8 + $0x148] sm:$0xff] %v482_v41  ;;  %v484_v42 = vld [vmem:[%s2034_s7 + $0x2a0] sm:$0xff]  ;;  %v486_v43 = vld [vmem:[%s2034_s7 + $0x2b0] sm:$0xff] }
  0x2f   : > { %v488_v44 = vld [vmem:[%s2034_s7 + $0x2c0] sm:$0xff]  ;;  %485 = vst [vmem:[%s2039_s8 + $0x150] sm:$0xff] %v484_v42  ;;  %487 = vst [vmem:[%s2039_s8 + $0x158] sm:$0xff] %v486_v43  ;;  %v490_v45 = vld [vmem:[%s2034_s7 + $0x2d0] sm:$0xff] }
  0x30   : > { %489 = vst [vmem:[%s2039_s8 + $0x160] sm:$0xff] %v488_v44  ;;  %v492_v46 = vld [vmem:[%s2034_s7 + $0x2e0] sm:$0xff]  ;;  %v494_v47 = vld [vmem:[%s2034_s7 + $0x2f0] sm:$0xff]  ;;  %491 = vst [vmem:[%s2039_s8 + $0x168] sm:$0xff] %v490_v45 }
  0x31   : > { %493 = vst [vmem:[%s2039_s8 + $0x170] sm:$0xff] %v492_v46  ;;  %495 = vst [vmem:[%s2039_s8 + $0x178] sm:$0xff] %v494_v47  ;;  %v496_v48 = vld [vmem:[%s2034_s7 + $0x300] sm:$0xff]  ;;  %v498_v49 = vld [vmem:[%s2034_s7 + $0x310] sm:$0xff] }
  0x32   : > { %v500_v50 = vld [vmem:[%s2034_s7 + $0x320] sm:$0xff]  ;;  %497 = vst [vmem:[%s2039_s8 + $0x180] sm:$0xff] %v496_v48  ;;  %499 = vst [vmem:[%s2039_s8 + $0x188] sm:$0xff] %v498_v49  ;;  %v502_v51 = vld [vmem:[%s2034_s7 + $0x330] sm:$0xff] }
  0x33   : > { %501 = vst [vmem:[%s2039_s8 + $0x190] sm:$0xff] %v500_v50  ;;  %v504_v52 = vld [vmem:[%s2034_s7 + $0x340] sm:$0xff]  ;;  %v506_v53 = vld [vmem:[%s2034_s7 + $0x350] sm:$0xff]  ;;  %503 = vst [vmem:[%s2039_s8 + $0x198] sm:$0xff] %v502_v51 }
  0x34   : > { %505 = vst [vmem:[%s2039_s8 + $0x1a0] sm:$0xff] %v504_v52  ;;  %507 = vst [vmem:[%s2039_s8 + $0x1a8] sm:$0xff] %v506_v53  ;;  %v508_v54 = vld [vmem:[%s2034_s7 + $0x360] sm:$0xff]  ;;  %v510_v55 = vld [vmem:[%s2034_s7 + $0x370] sm:$0xff] }
  0x35   : > { %v512_v56 = vld [vmem:[%s2034_s7 + $0x380] sm:$0xff]  ;;  %509 = vst [vmem:[%s2039_s8 + $0x1b0] sm:$0xff] %v508_v54  ;;  %511 = vst [vmem:[%s2039_s8 + $0x1b8] sm:$0xff] %v510_v55  ;;  %v514_v57 = vld [vmem:[%s2034_s7 + $0x390] sm:$0xff] }
  0x36   : > { %513 = vst [vmem:[%s2039_s8 + $0x1c0] sm:$0xff] %v512_v56  ;;  %v516_v58 = vld [vmem:[%s2034_s7 + $0x3a0] sm:$0xff]  ;;  %v518_v59 = vld [vmem:[%s2034_s7 + $0x3b0] sm:$0xff]  ;;  %515 = vst [vmem:[%s2039_s8 + $0x1c8] sm:$0xff] %v514_v57 }
  0x37   : > { %517 = vst [vmem:[%s2039_s8 + $0x1d0] sm:$0xff] %v516_v58  ;;  %519 = vst [vmem:[%s2039_s8 + $0x1d8] sm:$0xff] %v518_v59  ;;  %v520_v60 = vld [vmem:[%s2034_s7 + $0x3c0] sm:$0xff]  ;;  %v522_v61 = vld [vmem:[%s2034_s7 + $0x3d0] sm:$0xff] }
  0x38   : > { %v524_v62 = vld [vmem:[%s2034_s7 + $0x3e0] sm:$0xff]  ;;  %521 = vst [vmem:[%s2039_s8 + $0x1e0] sm:$0xff] %v520_v60  ;;  %523 = vst [vmem:[%s2039_s8 + $0x1e8] sm:$0xff] %v522_v61  ;;  %v526_v63 = vld [vmem:[%s2034_s7 + $0x3f0] sm:$0xff] }
  0x39   : > { %525 = vst [vmem:[%s2039_s8 + $0x1f0] sm:$0xff] %v524_v62  ;;  %v528_v0 = vld [vmem:[%s2034_s7 + $0x400] sm:$0xff]  ;;  %v530_v1 = vld [vmem:[%s2034_s7 + $0x410] sm:$0xff]  ;;  %527 = vst [vmem:[%s2039_s8 + $0x1f8] sm:$0xff] %v526_v63 }
  0x3a   : > { %529 = vst [vmem:[%s2039_s8 + $0x200] sm:$0xff] %v528_v0  ;;  %531 = vst [vmem:[%s2039_s8 + $0x208] sm:$0xff] %v530_v1  ;;  %v532_v2 = vld [vmem:[%s2034_s7 + $0x420] sm:$0xff]  ;;  %v534_v3 = vld [vmem:[%s2034_s7 + $0x430] sm:$0xff] }
  0x3b   : > { %v536_v4 = vld [vmem:[%s2034_s7 + $0x440] sm:$0xff]  ;;  %533 = vst [vmem:[%s2039_s8 + $0x210] sm:$0xff] %v532_v2  ;;  %535 = vst [vmem:[%s2039_s8 + $0x218] sm:$0xff] %v534_v3  ;;  %v538_v5 = vld [vmem:[%s2034_s7 + $0x450] sm:$0xff] }
  0x3c   : > { %537 = vst [vmem:[%s2039_s8 + $0x220] sm:$0xff] %v536_v4  ;;  %v540_v6 = vld [vmem:[%s2034_s7 + $0x460] sm:$0xff]  ;;  %v542_v7 = vld [vmem:[%s2034_s7 + $0x470] sm:$0xff]  ;;  %539 = vst [vmem:[%s2039_s8 + $0x228] sm:$0xff] %v538_v5 }
  0x3d   : > { %541 = vst [vmem:[%s2039_s8 + $0x230] sm:$0xff] %v540_v6  ;;  %543 = vst [vmem:[%s2039_s8 + $0x238] sm:$0xff] %v542_v7  ;;  %v544_v8 = vld [vmem:[%s2034_s7 + $0x480] sm:$0xff]  ;;  %v546_v9 = vld [vmem:[%s2034_s7 + $0x490] sm:$0xff] }
  0x3e   : > { %v548_v10 = vld [vmem:[%s2034_s7 + $0x4a0] sm:$0xff]  ;;  %545 = vst [vmem:[%s2039_s8 + $0x240] sm:$0xff] %v544_v8  ;;  %547 = vst [vmem:[%s2039_s8 + $0x248] sm:$0xff] %v546_v9  ;;  %v550_v11 = vld [vmem:[%s2034_s7 + $0x4b0] sm:$0xff] }
  0x3f   : > { %549 = vst [vmem:[%s2039_s8 + $0x250] sm:$0xff] %v548_v10  ;;  %v552_v12 = vld [vmem:[%s2034_s7 + $0x4c0] sm:$0xff]  ;;  %v554_v13 = vld [vmem:[%s2034_s7 + $0x4d0] sm:$0xff]  ;;  %551 = vst [vmem:[%s2039_s8 + $0x258] sm:$0xff] %v550_v11 }
  0x40   : > { %553 = vst [vmem:[%s2039_s8 + $0x260] sm:$0xff] %v552_v12  ;;  %555 = vst [vmem:[%s2039_s8 + $0x268] sm:$0xff] %v554_v13  ;;  %v556_v14 = vld [vmem:[%s2034_s7 + $0x4e0] sm:$0xff]  ;;  %v558_v15 = vld [vmem:[%s2034_s7 + $0x4f0] sm:$0xff] }
  0x41   : > { %v560_v16 = vld [vmem:[%s2034_s7 + $0x500] sm:$0xff]  ;;  %557 = vst [vmem:[%s2039_s8 + $0x270] sm:$0xff] %v556_v14  ;;  %559 = vst [vmem:[%s2039_s8 + $0x278] sm:$0xff] %v558_v15  ;;  %v562_v17 = vld [vmem:[%s2034_s7 + $0x510] sm:$0xff] }
  0x42   : > { %561 = vst [vmem:[%s2039_s8 + $0x280] sm:$0xff] %v560_v16  ;;  %v564_v18 = vld [vmem:[%s2034_s7 + $0x520] sm:$0xff]  ;;  %v566_v19 = vld [vmem:[%s2034_s7 + $0x530] sm:$0xff]  ;;  %563 = vst [vmem:[%s2039_s8 + $0x288] sm:$0xff] %v562_v17 }
  0x43   : > { %565 = vst [vmem:[%s2039_s8 + $0x290] sm:$0xff] %v564_v18  ;;  %567 = vst [vmem:[%s2039_s8 + $0x298] sm:$0xff] %v566_v19  ;;  %v568_v20 = vld [vmem:[%s2034_s7 + $0x540] sm:$0xff]  ;;  %v570_v21 = vld [vmem:[%s2034_s7 + $0x550] sm:$0xff] }
  0x44   : > { %v572_v22 = vld [vmem:[%s2034_s7 + $0x560] sm:$0xff]  ;;  %569 = vst [vmem:[%s2039_s8 + $0x2a0] sm:$0xff] %v568_v20  ;;  %571 = vst [vmem:[%s2039_s8 + $0x2a8] sm:$0xff] %v570_v21  ;;  %v574_v23 = vld [vmem:[%s2034_s7 + $0x570] sm:$0xff] }
  0x45   : > { %573 = vst [vmem:[%s2039_s8 + $0x2b0] sm:$0xff] %v572_v22  ;;  %v576_v24 = vld [vmem:[%s2034_s7 + $0x580] sm:$0xff]  ;;  %v578_v25 = vld [vmem:[%s2034_s7 + $0x590] sm:$0xff]  ;;  %575 = vst [vmem:[%s2039_s8 + $0x2b8] sm:$0xff] %v574_v23 }
  0x46   : > { %577 = vst [vmem:[%s2039_s8 + $0x2c0] sm:$0xff] %v576_v24  ;;  %579 = vst [vmem:[%s2039_s8 + $0x2c8] sm:$0xff] %v578_v25  ;;  %v580_v26 = vld [vmem:[%s2034_s7 + $0x5a0] sm:$0xff]  ;;  %v582_v27 = vld [vmem:[%s2034_s7 + $0x5b0] sm:$0xff] }
  0x47   : > { %v584_v28 = vld [vmem:[%s2034_s7 + $0x5c0] sm:$0xff]  ;;  %581 = vst [vmem:[%s2039_s8 + $0x2d0] sm:$0xff] %v580_v26  ;;  %583 = vst [vmem:[%s2039_s8 + $0x2d8] sm:$0xff] %v582_v27  ;;  %v586_v29 = vld [vmem:[%s2034_s7 + $0x5d0] sm:$0xff] }
  0x48   : > { %585 = vst [vmem:[%s2039_s8 + $0x2e0] sm:$0xff] %v584_v28  ;;  %v588_v30 = vld [vmem:[%s2034_s7 + $0x5e0] sm:$0xff]  ;;  %v590_v31 = vld [vmem:[%s2034_s7 + $0x5f0] sm:$0xff]  ;;  %587 = vst [vmem:[%s2039_s8 + $0x2e8] sm:$0xff] %v586_v29 }
  0x49   : > { %589 = vst [vmem:[%s2039_s8 + $0x2f0] sm:$0xff] %v588_v30  ;;  %591 = vst [vmem:[%s2039_s8 + $0x2f8] sm:$0xff] %v590_v31 }
  0x4a PF: > { %p1574_p7 = scmp.ge.s32.totalorder %s1951_s18, 1  ;;  %p604_p8 = scmp.lt.s32.totalorder %s1951_s18, 13 }
  0x4c   : > { %p605_p9 = pnand %p1574_p7, %p604_p8 }
  0x4d   : > { %s611_s9 = sand.u32 (!%p605_p9), 1, %s1927_s12   ;;  %s651_s10 = smul.u32 (!%p605_p9), 6, %s1935_s14 }
  0x4e   : > { %608 = sbr.rel (%p605_p9) target bundleno = 456 (0x1c8), region = 66  ;;  %s1576_s21 = sshll.u32 (!%p605_p9), %s1939_s15, 1 }
  0x4f   : > { %s1689_s11 = smul.u32 (!%p605_p9), 768, %s611_s9  ;;  %p654_p10 = scmp.lt.s32.totalorder (!%p605_p9), %s651_s10, 35 }
  0x50   : > { %p664_p11 = scmp.lt.s32.totalorder (!%p605_p9), %s1576_s21, 3  ;;  %p1579_p12 = scmp.ne.s32.totalorder (!%p605_p9), %s1935_s14, 0 }
  0x51   : > { %s2252_s5 = scalar_lea.vmem (!%p605_p9), [#allocation3], %s1689_s11 }
  0x55   : > { %s2405_s10 = smov (!%p654_p10, %s651_s10), 35  ;;  %s2407_s21 = smov (!%p664_p11, %s1576_s21), 3 }
  0x56   : > { %s1575_s22 = sshll.u32 %s2405_s10, 2  ;;  %s666_s12 = scalar_lea.vmem %s2390_s2, %s2407_s21  ;;  %v1953_v32 = vmov (!%p1579_p12), 0.0  }
  0x57   : > { %s2240_s26 = scalar_lea.vmem %s2388_s0, %s1575_s22  ;;  %s1578_s29 = sshll.u32 %s2407_s21, 2  ;;  %682 = vst [vmem:[#allocation2] sm:$0xff] (!%p1579_p12), %v1953_v32  ;;  %683 = vst [vmem:[#allocation2 + $0x8] sm:$0xff] (!%p1579_p12), %v1953_v32 }
  0x58   : > { %s2250_s4 = scalar_lea.vmem %s2391_s3, %s1578_s29  ;;  %681 = sbr.rel (%p1579_p12) target bundleno = 95 (0x5f), region = 74 }
  0x5f PF: > { %v1747_v33 = vld [vmem:[%s2252_s5 + $0x4] ss:$8 sps:$4 sm:$0xff]   ;;  %v1751_v35 = vld [vmem:[%s2252_s5] ss:$8 sps:$4 sm:$0xff]   ;;  %v1753_v37 = vld [vmem:[%s2252_s5 + $0x14] ss:$8 sps:$4 sm:$0xff]  }
  0x60   : > { %v1749_v34 = vld [vmem:[%s2252_s5 + $0x104] ss:$8 sps:$4 sm:$0xff]   ;;  %1286 = vmatprep.subr.bf16.mxu0 %v1747_v33  ;;  %v1752_v36 = vld [vmem:[%s2252_s5 + $0x100] ss:$8 sps:$4 sm:$0xff]   ;;  %v1755_v38 = vld [vmem:[%s2252_s5 + $0x114] ss:$8 sps:$4 sm:$0xff]  }
  0x61   : > { %1327 = vmatprep.subr.bf16.mxu1 %v1749_v34  ;;  %1287 = vmatpush1.bf16.msra.mxu0 %v1751_v35  ;;  %v1757_v39 = vld [vmem:[%s2252_s5 + $0x10] ss:$8 sps:$4 sm:$0xff]   ;;  %v1759_v41 = vld [vmem:[%s2252_s5 + $0x24] ss:$8 sps:$4 sm:$0xff]   ;;  %v1763_v43 = vld [vmem:[%s2252_s5 + $0x20] ss:$8 sps:$4 sm:$0xff]  }
  0x62   : > { %1328 = vmatpush1.bf16.msra.mxu1 %v1752_v36  ;;  %1288 = vmatprep.subr.bf16.mxu0 %v1753_v37  ;;  %v1758_v40 = vld [vmem:[%s2252_s5 + $0x110] ss:$8 sps:$4 sm:$0xff]   ;;  %v1761_v42 = vld [vmem:[%s2252_s5 + $0x124] ss:$8 sps:$4 sm:$0xff]   ;;  %v1764_v44 = vld [vmem:[%s2252_s5 + $0x120] ss:$8 sps:$4 sm:$0xff]  }
  0x63   : > { %1329 = vmatprep.subr.bf16.mxu1 %v1755_v38  ;;  %v1765_v45 = vld [vmem:[%s2252_s5 + $0x34] ss:$8 sps:$4 sm:$0xff]   ;;  %v1769_v47 = vld [vmem:[%s2252_s5 + $0x30] ss:$8 sps:$4 sm:$0xff]   ;;  %v1771_v49 = vld [vmem:[%s2252_s5 + $0x44] ss:$8 sps:$4 sm:$0xff]  }
  0x64   : > { %v1767_v46 = vld [vmem:[%s2252_s5 + $0x134] ss:$8 sps:$4 sm:$0xff]   ;;  %v1770_v48 = vld [vmem:[%s2252_s5 + $0x130] ss:$8 sps:$4 sm:$0xff]   ;;  %v1773_v50 = vld [vmem:[%s2252_s5 + $0x144] ss:$8 sps:$4 sm:$0xff]  }
  0x65   : > { %1289 = vmatpush1.bf16.msra.mxu0 %v1757_v39  ;;  %v1775_v51 = vld [vmem:[%s2252_s5 + $0x40] ss:$8 sps:$4 sm:$0xff]   ;;  %v1777_v53 = vld [vmem:[%s2252_s5 + $0x54] ss:$8 sps:$4 sm:$0xff]   ;;  %v1781_v55 = vld [vmem:[%s2252_s5 + $0x50] ss:$8 sps:$4 sm:$0xff]  }
  0x66   : > { %1330 = vmatpush1.bf16.msra.mxu1 %v1758_v40  ;;  %1290 = vmatprep.subr.bf16.mxu0 %v1759_v41  ;;  %v1776_v52 = vld [vmem:[%s2252_s5 + $0x140] ss:$8 sps:$4 sm:$0xff]   ;;  %v1779_v54 = vld [vmem:[%s2252_s5 + $0x154] ss:$8 sps:$4 sm:$0xff]   ;;  %v1782_v56 = vld [vmem:[%s2252_s5 + $0x150] ss:$8 sps:$4 sm:$0xff]  }
  0x67   : > { %1331 = vmatprep.subr.bf16.mxu1 %v1761_v42  ;;  %v1783_v57 = vld [vmem:[%s2252_s5 + $0x64] ss:$8 sps:$4 sm:$0xff]   ;;  %v1787_v59 = vld [vmem:[%s2252_s5 + $0x60] ss:$8 sps:$4 sm:$0xff]   ;;  %v1789_v61 = vld [vmem:[%s2252_s5 + $0x74] ss:$8 sps:$4 sm:$0xff]  }
  0x68   : > { %v1785_v58 = vld [vmem:[%s2252_s5 + $0x164] ss:$8 sps:$4 sm:$0xff]   ;;  %v1788_v60 = vld [vmem:[%s2252_s5 + $0x160] ss:$8 sps:$4 sm:$0xff]   ;;  %v1791_v62 = vld [vmem:[%s2252_s5 + $0x174] ss:$8 sps:$4 sm:$0xff]  }
  0x69   : > { %1291 = vmatpush1.bf16.msra.mxu0 %v1763_v43  ;;  %v1793_v63 = vld [vmem:[%s2252_s5 + $0x70] ss:$8 sps:$4 sm:$0xff]   ;;  %v1795_v1 = vld [vmem:[%s2252_s5 + $0x84] ss:$8 sps:$4 sm:$0xff]   ;;  %v1799_v3 = vld [vmem:[%s2252_s5 + $0x80] ss:$8 sps:$4 sm:$0xff]  }
  0x6a   : > { %1332 = vmatpush1.bf16.msra.mxu1 %v1764_v44  ;;  %1292 = vmatprep.subr.bf16.mxu0 %v1765_v45  ;;  %v1794_v0 = vld [vmem:[%s2252_s5 + $0x170] ss:$8 sps:$4 sm:$0xff]   ;;  %v1797_v2 = vld [vmem:[%s2252_s5 + $0x184] ss:$8 sps:$4 sm:$0xff]   ;;  %v1800_v4 = vld [vmem:[%s2252_s5 + $0x180] ss:$8 sps:$4 sm:$0xff]  }
  0x6b   : > { %1333 = vmatprep.subr.bf16.mxu1 %v1767_v46  ;;  %v1801_v5 = vld [vmem:[%s2252_s5 + $0x94] ss:$8 sps:$4 sm:$0xff]   ;;  %v1805_v7 = vld [vmem:[%s2252_s5 + $0x90] ss:$8 sps:$4 sm:$0xff]   ;;  %v1807_v9 = vld [vmem:[%s2252_s5 + $0xa4] ss:$8 sps:$4 sm:$0xff]  }
  0x6c   : > { %v1803_v6 = vld [vmem:[%s2252_s5 + $0x194] ss:$8 sps:$4 sm:$0xff]   ;;  %v1806_v8 = vld [vmem:[%s2252_s5 + $0x190] ss:$8 sps:$4 sm:$0xff]   ;;  %v1809_v10 = vld [vmem:[%s2252_s5 + $0x1a4] ss:$8 sps:$4 sm:$0xff]  }
  0x6d   : > { %1293 = vmatpush1.bf16.msra.mxu0 %v1769_v47  ;;  %v1811_v11 = vld [vmem:[%s2252_s5 + $0xa0] ss:$8 sps:$4 sm:$0xff]   ;;  %v1813_v13 = vld [vmem:[%s2252_s5 + $0xb4] ss:$8 sps:$4 sm:$0xff]   ;;  %v1817_v18 = vld [vmem:[%s2252_s5 + $0xb0] ss:$8 sps:$4 sm:$0xff]  }
  0x6e   : > { %1334 = vmatpush1.bf16.msra.mxu1 %v1770_v48  ;;  %1294 = vmatprep.subr.bf16.mxu0 %v1771_v49  ;;  %v1812_v12 = vld [vmem:[%s2252_s5 + $0x1a0] ss:$8 sps:$4 sm:$0xff]   ;;  %v1815_v14 = vld [vmem:[%s2252_s5 + $0x1b4] ss:$8 sps:$4 sm:$0xff]   ;;  %v1818_v19 = vld [vmem:[%s2252_s5 + $0x1b0] ss:$8 sps:$4 sm:$0xff]  }
  0x6f   : > { %1335 = vmatprep.subr.bf16.mxu1 %v1773_v50  ;;  %v686_v15 = vld [vmem:[%s2240_s26] sm:$0xff]  ;;  %v687_v17 = vld [vmem:[%s2240_s26 + $0x8] sm:$0xff]  ;;  %v1819_v21 = vld [vmem:[%s2252_s5 + $0xc4] ss:$8 sps:$4 sm:$0xff]   ;;  %p1682_p13 = scmp.ne.s32.totalorder %s1935_s14, 5 }
  0x70   : > { %v1581_v16 = vcombine.high %v686_v15, %v686_v15  ;;  %v1583_v20 = vcombine.high %v687_v17, %v687_v17  ;;  %v1821_v22 = vld [vmem:[%s2252_s5 + $0x1c4] ss:$8 sps:$4 sm:$0xff]   ;;  %v1823_v23 = vld [vmem:[%s2252_s5 + $0xc0] ss:$8 sps:$4 sm:$0xff]   ;;  %v1825_v25 = vld [vmem:[%s2252_s5 + $0xd4] ss:$8 sps:$4 sm:$0xff]   ;;  %v1580_v38 = vcombine.low %v686_v15, %v686_v15  ;;  %v1582_v39 = vcombine.low %v687_v17, %v687_v17 }
  0x71   : > { %1295 = vmatpush1.bf16.msra.mxu0 %v1775_v51  ;;  %v1824_v24 = vld [vmem:[%s2252_s5 + $0x1c0] ss:$8 sps:$4 sm:$0xff]   ;;  %v1827_v26 = vld [vmem:[%s2252_s5 + $0x1d4] ss:$8 sps:$4 sm:$0xff]   ;;  %v1829_v27 = vld [vmem:[%s2252_s5 + $0xd0] ss:$8 sps:$4 sm:$0xff]  }
  0x72   : > { %1336 = vmatpush1.bf16.msra.mxu1 %v1776_v52  ;;  %1296 = vmatprep.subr.bf16.mxu0 %v1777_v53  ;;  %v1830_v28 = vld [vmem:[%s2252_s5 + $0x1d0] ss:$8 sps:$4 sm:$0xff]   ;;  %v1831_v29 = vld [vmem:[%s2252_s5 + $0xe4] ss:$8 sps:$4 sm:$0xff]   ;;  %v1835_v31 = vld [vmem:[%s2252_s5 + $0xe0] ss:$8 sps:$4 sm:$0xff]  }
  0x73   : > { %1337 = vmatprep.subr.bf16.mxu1 %v1779_v54  ;;  %1318 = vmatprep.mubr.bf16.mxu0 %v1581_v16  ;;  %v1833_v30 = vld [vmem:[%s2252_s5 + $0x1e4] ss:$8 sps:$4 sm:$0xff]   ;;  %v1836_v32 = vld [vmem:[%s2252_s5 + $0x1e0] ss:$8 sps:$4 sm:$0xff]   ;;  %v1837_v33 = vld [vmem:[%s2252_s5 + $0xf4] ss:$8 sps:$4 sm:$0xff]  }
  0x74   : > { %1359 = vmatprep.mubr.bf16.mxu1 %v1583_v20  ;;  %v1839_v34 = vld [vmem:[%s2252_s5 + $0x1f4] ss:$8 sps:$4 sm:$0xff]   ;;  %v1841_v35 = vld [vmem:[%s2252_s5 + $0xf0] ss:$8 sps:$4 sm:$0xff]   ;;  %v1849_v37 = vld [vmem:[%s2252_s5 + $0x204] ss:$8 sps:$4 sm:$0xff]  }
  0x75   : > { %1297 = vmatpush1.bf16.msra.mxu0 %v1781_v55  ;;  %v1842_v36 = vld [vmem:[%s2252_s5 + $0x1f0] ss:$8 sps:$4 sm:$0xff]   ;;  %v1847_v40 = vld [vmem:[%s2252_s5 + $0x200] ss:$8 sps:$4 sm:$0xff]   ;;  %v1852_v42 = vld [vmem:[%s2252_s5 + $0x214] ss:$8 sps:$4 sm:$0xff]  }
  0x76   : > { %1338 = vmatpush1.bf16.msra.mxu1 %v1782_v56  ;;  %1298 = vmatprep.subr.bf16.mxu0 %v1783_v57  ;;  %v2324_v41 = vld [vmem:[%s2240_s26 + $0x10] sm:$0xff]  ;;  %v1850_v44 = vld [vmem:[%s2252_s5 + $0x210] ss:$8 sps:$4 sm:$0xff]   ;;  %v1858_v47 = vld [vmem:[%s2252_s5 + $0x234] ss:$8 sps:$4 sm:$0xff]  }
  0x77   : > { %1339 = vmatprep.subr.bf16.mxu1 %v1785_v58  ;;  %v1585_v43 = vcombine.high %v2324_v41, %v2324_v41  ;;  %v1855_v45 = vld [vmem:[%s2252_s5 + $0x224] ss:$8 sps:$4 sm:$0xff]   ;;  %v1853_v46 = vld [vmem:[%s2252_s5 + $0x220] ss:$8 sps:$4 sm:$0xff]   ;;  %v1856_v48 = vld [vmem:[%s2252_s5 + $0x230] ss:$8 sps:$4 sm:$0xff]  }
  0x78   : > { %v1861_v49 = vld [vmem:[%s2252_s5 + $0x244] ss:$8 sps:$4 sm:$0xff]   ;;  %v1859_v50 = vld [vmem:[%s2252_s5 + $0x240] ss:$8 sps:$4 sm:$0xff]   ;;  %v1864_v51 = vld [vmem:[%s2252_s5 + $0x254] ss:$8 sps:$4 sm:$0xff]  }
  0x79   : > { %1299 = vmatpush1.bf16.msra.mxu0 %v1787_v59  ;;  %v1862_v52 = vld [vmem:[%s2252_s5 + $0x250] ss:$8 sps:$4 sm:$0xff]   ;;  %v1867_v53 = vld [vmem:[%s2252_s5 + $0x264] ss:$8 sps:$4 sm:$0xff]   ;;  %v1865_v54 = vld [vmem:[%s2252_s5 + $0x260] ss:$8 sps:$4 sm:$0xff]  }
  0x7a   : > { %1340 = vmatpush1.bf16.msra.mxu1 %v1788_v60  ;;  %1300 = vmatprep.subr.bf16.mxu0 %v1789_v61  ;;  %v1870_v55 = vld [vmem:[%s2252_s5 + $0x274] ss:$8 sps:$4 sm:$0xff]   ;;  %v1868_v56 = vld [vmem:[%s2252_s5 + $0x270] ss:$8 sps:$4 sm:$0xff]   ;;  %v1873_v57 = vld [vmem:[%s2252_s5 + $0x284] ss:$8 sps:$4 sm:$0xff]  }
  0x7b   : > { %1341 = vmatprep.subr.bf16.mxu1 %v1791_v62  ;;  %v1871_v58 = vld [vmem:[%s2252_s5 + $0x280] ss:$8 sps:$4 sm:$0xff]   ;;  %v1876_v59 = vld [vmem:[%s2252_s5 + $0x294] ss:$8 sps:$4 sm:$0xff]   ;;  %v1874_v60 = vld [vmem:[%s2252_s5 + $0x290] ss:$8 sps:$4 sm:$0xff]  }
  0x7c   : > { %v1879_v61 = vld [vmem:[%s2252_s5 + $0x2a4] ss:$8 sps:$4 sm:$0xff]   ;;  %v1877_v62 = vld [vmem:[%s2252_s5 + $0x2a0] ss:$8 sps:$4 sm:$0xff]   ;;  %v684_v20 = vld [vmem:[#allocation2] sm:$0xff] }
  0x7d   : > { %1301 = vmatpush1.bf16.msra.mxu0 %v1793_v63  ;;  %v1882_v63 = vld [vmem:[%s2252_s5 + $0x2b4] ss:$8 sps:$4 sm:$0xff]  }
  0x7e   : > { %1342 = vmatpush1.bf16.msra.mxu1 %v1794_v0  ;;  %1302 = vmatprep.subr.bf16.mxu0 %v1795_v1  ;;  %v1880_v0 = vld [vmem:[%s2252_s5 + $0x2b0] ss:$8 sps:$4 sm:$0xff]   ;;  %v1885_v1 = vld [vmem:[%s2252_s5 + $0x2c4] ss:$8 sps:$4 sm:$0xff]  }
  0x7f   : > { %1343 = vmatprep.subr.bf16.mxu1 %v1797_v2  ;;  %v1883_v2 = vld [vmem:[%s2252_s5 + $0x2c0] ss:$8 sps:$4 sm:$0xff]  }
  0x81   : > { %1303 = vmatpush1.bf16.msra.mxu0 %v1799_v3  ;;  %v1888_v3 = vld [vmem:[%s2252_s5 + $0x2d4] ss:$8 sps:$4 sm:$0xff]  }
  0x82   : > { %1344 = vmatpush1.bf16.msra.mxu1 %v1800_v4  ;;  %1304 = vmatprep.subr.bf16.mxu0 %v1801_v5  ;;  %v1886_v4 = vld [vmem:[%s2252_s5 + $0x2d0] ss:$8 sps:$4 sm:$0xff]   ;;  %v1891_v5 = vld [vmem:[%s2252_s5 + $0x2e4] ss:$8 sps:$4 sm:$0xff]  }
  0x83   : > { %1345 = vmatprep.subr.bf16.mxu1 %v1803_v6  ;;  %v1889_v6 = vld [vmem:[%s2252_s5 + $0x2e0] ss:$8 sps:$4 sm:$0xff]  }
  0x85   : > { %1305 = vmatpush1.bf16.msra.mxu0 %v1805_v7  ;;  %v1894_v7 = vld [vmem:[%s2252_s5 + $0x2f4] ss:$8 sps:$4 sm:$0xff]  }
  0x86   : > { %1346 = vmatpush1.bf16.msra.mxu1 %v1806_v8  ;;  %1306 = vmatprep.subr.bf16.mxu0 %v1807_v9  ;;  %v1892_v8 = vld [vmem:[%s2252_s5 + $0x2f0] ss:$8 sps:$4 sm:$0xff]   ;;  %v1584_v9 = vcombine.low %v2324_v41, %v2324_v41 }
  0x87   : > { %1347 = vmatprep.subr.bf16.mxu1 %v1809_v10 }
  0x89   : > { %1307 = vmatpush1.bf16.msra.mxu0 %v1811_v11 }
  0x8a   : > { %1348 = vmatpush1.bf16.msra.mxu1 %v1812_v12  ;;  %1308 = vmatprep.subr.bf16.mxu0 %v1813_v13 }
  0x8b   : > { %1349 = vmatprep.subr.bf16.mxu1 %v1815_v14 }
  0x8d   : > { %1309 = vmatpush1.bf16.msra.mxu0 %v1817_v18 }
  0x8e   : > { %1350 = vmatpush1.bf16.msra.mxu1 %v1818_v19  ;;  %1310 = vmatprep.subr.bf16.mxu0 %v1819_v21 }
  0x8f   : > { %1351 = vmatprep.subr.bf16.mxu1 %v1821_v22 }
  0x91   : > { %1311 = vmatpush1.bf16.msra.mxu0 %v1823_v23  ;;  %v685_v23 = vld [vmem:[#allocation2 + $0x8] sm:$0xff] }
  0x92   : > { %1352 = vmatpush1.bf16.msra.mxu1 %v1824_v24  ;;  %1312 = vmatprep.subr.bf16.mxu0 %v1825_v25 }
  0x93   : > { %1353 = vmatprep.subr.bf16.mxu1 %v1827_v26 }
  0x95   : > { %1313 = vmatpush1.bf16.msra.mxu0 %v1829_v27 }
  0x96   : > { %1354 = vmatpush1.bf16.msra.mxu1 %v1830_v28  ;;  %1314 = vmatprep.subr.bf16.mxu0 %v1831_v29 }
  0x97   : > { %1355 = vmatprep.subr.bf16.mxu1 %v1833_v30  ;;  %v1421_v30 = vlaneseq (!%p1682_p13) }
  0x99   : > { %1315 = vmatpush1.bf16.msra.mxu0 %v1835_v31  ;;  %v1422_v31 = vshrl.u32 (!%p1682_p13), %v1421_v30, 7 }
  0x9a   : > { %1356 = vmatpush1.bf16.msra.mxu1 %v1836_v32  ;;  %1316 = vmatprep.subr.bf16.mxu0 %v1837_v33  ;;  %v1419_v32 = vld [vmem:[%s666_s12] sm:$0x3] (!%p1682_p13) }
  0x9b   : > { %1357 = vmatprep.subr.bf16.mxu1 %v1839_v34  ;;  %v1423_v33 = vsub.s32 (!%p1682_p13), 0, %v1422_v31  ;;  %v1427_v34 = vsub.s32 (!%p1682_p13), 1, %v1422_v31 }
  0x9d   : > { %1317 = vmatpush1.bf16.msra.mxu0 %v1841_v35 }
  0x9e   : > { %1358 = vmatpush1.bf16.msra.mxu1 %v1842_v36  ;;  %1368 = vmatprep.subr.bf16.mxu0 %v1849_v37  ;;  %v1424_v37 = vrot.slane (!%p1682_p13), %v1419_v32, %v1423_v33 }
  0xa0   : > { %1319 = vmatmul.mubr.bf16.vlgmr.msra.gmra.mrb[0].mxu0 %v1580_v38  ;;  %v1428_v38 = vrot.slane (!%p1682_p13), %v1419_v32, %v1427_v34 }
  0xa1   : > { %1360 = vmatmul.mubr.bf16.vlgmr.msra.gmra.mrb[0].mxu1 %v1582_v39  ;;  %1369 = vmatpush1.bf16.msra.mxu0 %v1847_v40 }
  0xa2   : > { %1400 = vmatprep.mubr.bf16.mxu0 %v1585_v43  ;;  %1370 = vmatprep.subr.bf16.mxu0 %v1852_v42 }
  0xa5   : > { %1371 = vmatpush1.bf16.msra.mxu0 %v1850_v44 }
  0xa6   : > { %1372 = vmatprep.subr.bf16.mxu0 %v1855_v45 }
  0xa9   : > { %1373 = vmatpush1.bf16.msra.mxu0 %v1853_v46 }
  0xaa   : > { %1374 = vmatprep.subr.bf16.mxu0 %v1858_v47 }
  0xad   : > { %1375 = vmatpush1.bf16.msra.mxu0 %v1856_v48 }
  0xae   : > { %1376 = vmatprep.subr.bf16.mxu0 %v1861_v49 }
  0xb1   : > { %1377 = vmatpush1.bf16.msra.mxu0 %v1859_v50 }
  0xb2   : > { %1378 = vmatprep.subr.bf16.mxu0 %v1864_v51 }
  0xb5   : > { %1379 = vmatpush1.bf16.msra.mxu0 %v1862_v52 }
  0xb6   : > { %1380 = vmatprep.subr.bf16.mxu0 %v1867_v53 }
  0xb9   : > { %1381 = vmatpush1.bf16.msra.mxu0 %v1865_v54 }
  0xba   : > { %1382 = vmatprep.subr.bf16.mxu0 %v1870_v55 }
  0xbd   : > { %1383 = vmatpush1.bf16.msra.mxu0 %v1868_v56 }
  0xbe   : > { %1384 = vmatprep.subr.bf16.mxu0 %v1873_v57 }
  0xc1   : > { %1385 = vmatpush1.bf16.msra.mxu0 %v1871_v58 }
  0xc2   : > { %1386 = vmatprep.subr.bf16.mxu0 %v1876_v59 }
  0xc5   : > { %1387 = vmatpush1.bf16.msra.mxu0 %v1874_v60 }
  0xc6   : > { %1388 = vmatprep.subr.bf16.mxu0 %v1879_v61 }
  0xc9   : > { %1389 = vmatpush1.bf16.msra.mxu0 %v1877_v62 }
  0xca   : > { %1390 = vmatprep.subr.bf16.mxu0 %v1882_v63 }
  0xcd   : > { %1391 = vmatpush1.bf16.msra.mxu0 %v1880_v0 }
  0xce   : > { %1392 = vmatprep.subr.bf16.mxu0 %v1885_v1 }
  0xd1   : > { %1393 = vmatpush1.bf16.msra.mxu0 %v1883_v2 }
  0xd2   : > { %1394 = vmatprep.subr.bf16.mxu0 %v1888_v3 }
  0xd5   : > { %1395 = vmatpush1.bf16.msra.mxu0 %v1886_v4 }
  0xd6   : > { %1396 = vmatprep.subr.bf16.mxu0 %v1891_v5 }
  0xd9   : > { %1397 = vmatpush1.bf16.msra.mxu0 %v1889_v6 }
  0xda   : > { %1398 = vmatprep.subr.bf16.mxu0 %v1894_v7 }
  0xdd   : > { %1399 = vmatpush1.bf16.msra.mxu0 %v1892_v8 }
  0xe0   : > { %1401 = vmatmul.mubr.bf16.vlgmr.msra.gmra.mrb[4].mxu0 %v1584_v9 }
 0x173   : > { %v1320_v10 = vpop.f32.mrb[0].mxu0 }
 0x174   : > { %v1361_v11 = vpop.f32.mrb[0].mxu1  ;;  %v1322_v13 = vpop.f32.mrb[1].mxu0 }
 0x175   : > { %v1362_v12 = vadd.f32 %v1361_v11, %v1320_v10  ;;  %v1363_v14 = vpop.f32.mrb[1].mxu1  ;;  %v1324_v16 = vpop.f32.mrb[2].mxu0 }
 0x176   : > { %v1364_v15 = vadd.f32 %v1363_v14, %v1322_v13  ;;  %v1365_v17 = vpop.f32.mrb[2].mxu1  ;;  %v1325_v18 = vpop.f32.mrb[3].mxu0 }
 0x177   : > { %v1366_v19 = vpop.f32.mrb[3].mxu1 }
 0x1b3   : > { %v1402_v21 = vpop.f32.mrb[4].mxu0  ;;  %1416 = sbr.rel (%p1682_p13) target bundleno = 456 (0x1c8), region = 78 }
 0x1b4   : > { %v1403_v22 = vadd.f32 %v1402_v21, %v1362_v12  ;;  %v1404_v24 = vpop.f32.mrb[5].mxu0 }
 0x1b5   : > { %v1405_v25 = vadd.f32 %v1404_v24, %v1364_v15  ;;  %v1406_v26 = vpop.f32.mrb[6].mxu0 }
 0x1b6   : > { %v1409_v27 = vadd.f32 %v1403_v22, %v684_v20  ;;  %v1407_v28 = vpop.f32.mrb[7].mxu0 }
 0x1b7   : > { %v1410_v29 = vadd.f32 %v1405_v25, %v685_v23 }
 0x1b8   : > { %1411 = vst [vmem:[#allocation2] sm:$0xff] %v1409_v27 }
 0x1b9   : > { %1412 = vst [vmem:[#allocation2 + $0x8] sm:$0xff] %v1410_v29 }
 0x1bf   : > { %v1417_v35 = vld [vmem:[#allocation2] sm:$0xff] }
 0x1c0   : > { %v1418_v36 = vld [vmem:[#allocation2 + $0x8] sm:$0xff]  ;;  %v1431_v39 = vadd.f32 %v1424_v37, %v1417_v35 }
 0x1c1   : > { %v1432_v40 = vadd.f32 %v1428_v38, %v1418_v36 }
 0x1c2   : > { %v1433_v41 = vmax.f32 %v1431_v39, 0.0 }
 0x1c3   : > { %v1434_v42 = vmax.f32 %v1432_v40, 0.0 }
 0x1c5   : > { %v1687_v43 = vpack.c.bf16 %v1434_v42, %v1433_v41 }
 0x1c7   : > { %1443 = vst [vmem:[%s2250_s4] sm:$0xff] %v1687_v43 }
 0x1c8 PF: > { %s13_s18 = sadd.s32 1, %s1951_s18   ;;  %s2392_s12 = smov %s1931_s13 }
 0x1c9   : > { %p10_p0 = scmp.ge.s32.totalorder %s13_s18, 14   ;;  %s2393_s13 = smov %s2025_s25 }
 0x1ca   : > { %s2394_s14 = smov %s1943_s16  ;;  %s2395_s15 = smov %s1947_s17 }
 0x1cb   : > { %s2396_s16 = smov %s2399_s19  ;;  %s2397_s17 = smov %s2403_s20 }
 0x1cc   :  { %12 = sbr.rel (!%p10_p0) target bundleno = 4 (0x4), region = 119 }

// kernel: resnet34_forward.75
= control target key start
LH: loop header
LB: loop body
LE: loop exit
PB: predicated region body
PF: predicated region fallthrough
CT: control target
= control target key end

     0   :  { %s980_s0 = inlined_call_operand.vmem [shape: bf16[2,1,512], index: 0, kind: input, shape index: {}]   ;;  %s981_s1 = inlined_call_operand.vmem [shape: f32[512,256], index: 1, kind: input, shape index: {}]   ;;  %s982_s2 = inlined_call_operand.vmem [shape: f32[1,256], index: 2, kind: input, shape index: {}]   ;;  %s983_s3 = inlined_call_operand.hbm [shape: f32[2,256], index: 3, kind: output, shape index: {}]  }
   0x1   :  { %v22_v0 = vld [vmem:[%s981_s1 + $0x8] sm:$0xff]  ;;  %v24_v1 = vld [vmem:[%s981_s1 + $0x18] sm:$0xff]  ;;  %v21_v2 = vld [vmem:[%s981_s1] sm:$0xff] }
   0x2   :  { %v377_v3 = vpack.c.bf16 %v24_v1, %v22_v0  ;;  %v23_v4 = vld [vmem:[%s981_s1 + $0x10] sm:$0xff]  ;;  %v86_v5 = vld [vmem:[%s981_s1 + $0x208] sm:$0xff]  ;;  %v88_v6 = vld [vmem:[%s981_s1 + $0x218] sm:$0xff] }
   0x3   :  { %v379_v7 = vpack.c.bf16 %v23_v4, %v21_v2  ;;  %v441_v8 = vpack.c.bf16 %v88_v6, %v86_v5  ;;  %v85_v9 = vld [vmem:[%s981_s1 + $0x200] sm:$0xff]  ;;  %v87_v10 = vld [vmem:[%s981_s1 + $0x210] sm:$0xff]  ;;  %v26_v11 = vld [vmem:[%s981_s1 + $0x28] sm:$0xff] }
   0x4   :  { %378 = vmatprep.subr.bf16.mxu1 %v377_v3  ;;  %v443_v12 = vpack.c.bf16 %v87_v10, %v85_v9  ;;  %v28_v13 = vld [vmem:[%s981_s1 + $0x38] sm:$0xff]  ;;  %v25_v14 = vld [vmem:[%s981_s1 + $0x20] sm:$0xff]  ;;  %v27_v15 = vld [vmem:[%s981_s1 + $0x30] sm:$0xff] }
   0x5   :  { %380 = vmatpush1.bf16.msra.mxu1 %v379_v7  ;;  %442 = vmatprep.subr.bf16.mxu0 %v441_v8  ;;  %v381_v16 = vpack.c.bf16 %v28_v13, %v26_v11  ;;  %v383_v17 = vpack.c.bf16 %v27_v15, %v25_v14  ;;  %v90_v18 = vld [vmem:[%s981_s1 + $0x228] sm:$0xff]  ;;  %v92_v19 = vld [vmem:[%s981_s1 + $0x238] sm:$0xff]  ;;  %v89_v20 = vld [vmem:[%s981_s1 + $0x220] sm:$0xff] }
   0x6   :  { %444 = vmatpush1.bf16.msra.mxu0 %v443_v12  ;;  %v445_v21 = vpack.c.bf16 %v92_v19, %v90_v18  ;;  %v91_v22 = vld [vmem:[%s981_s1 + $0x230] sm:$0xff]  ;;  %v30_v23 = vld [vmem:[%s981_s1 + $0x48] sm:$0xff]  ;;  %v32_v24 = vld [vmem:[%s981_s1 + $0x58] sm:$0xff] }
   0x7   :  { %382 = vmatprep.subr.bf16.mxu1 %v381_v16  ;;  %v447_v25 = vpack.c.bf16 %v91_v22, %v89_v20  ;;  %v385_v26 = vpack.c.bf16 %v32_v24, %v30_v23  ;;  %v29_v27 = vld [vmem:[%s981_s1 + $0x40] sm:$0xff]  ;;  %v31_v28 = vld [vmem:[%s981_s1 + $0x50] sm:$0xff]  ;;  %v94_v29 = vld [vmem:[%s981_s1 + $0x248] sm:$0xff] }
   0x8   :  { %446 = vmatprep.subr.bf16.mxu0 %v445_v21  ;;  %v96_v30 = vld [vmem:[%s981_s1 + $0x258] sm:$0xff]  ;;  %v93_v31 = vld [vmem:[%s981_s1 + $0x240] sm:$0xff]  ;;  %v95_v32 = vld [vmem:[%s981_s1 + $0x250] sm:$0xff]  ;;  %v387_v33 = vpack.c.bf16 %v31_v28, %v29_v27 }
   0x9   :  { %384 = vmatpush1.bf16.msra.mxu1 %v383_v17  ;;  %v449_v34 = vpack.c.bf16 %v96_v30, %v94_v29  ;;  %v34_v35 = vld [vmem:[%s981_s1 + $0x68] sm:$0xff]  ;;  %v36_v36 = vld [vmem:[%s981_s1 + $0x78] sm:$0xff]  ;;  %v33_v37 = vld [vmem:[%s981_s1 + $0x60] sm:$0xff]  ;;  %v451_v38 = vpack.c.bf16 %v95_v32, %v93_v31 }
   0xa   :  { %448 = vmatpush1.bf16.msra.mxu0 %v447_v25  ;;  %386 = vmatprep.subr.bf16.mxu1 %v385_v26  ;;  %v389_v39 = vpack.c.bf16 %v36_v36, %v34_v35  ;;  %v35_v40 = vld [vmem:[%s981_s1 + $0x70] sm:$0xff]  ;;  %v98_v41 = vld [vmem:[%s981_s1 + $0x268] sm:$0xff]  ;;  %v100_v42 = vld [vmem:[%s981_s1 + $0x278] sm:$0xff] }
   0xb   :  { %450 = vmatprep.subr.bf16.mxu0 %v449_v34  ;;  %v453_v43 = vpack.c.bf16 %v100_v42, %v98_v41  ;;  %v97_v44 = vld [vmem:[%s981_s1 + $0x260] sm:$0xff]  ;;  %v99_v45 = vld [vmem:[%s981_s1 + $0x270] sm:$0xff]  ;;  %v38_v46 = vld [vmem:[%s981_s1 + $0x88] sm:$0xff]  ;;  %v391_v48 = vpack.c.bf16 %v35_v40, %v33_v37 }
   0xc   :  { %v40_v47 = vld [vmem:[%s981_s1 + $0x98] sm:$0xff]  ;;  %v102_v49 = vld [vmem:[%s981_s1 + $0x288] sm:$0xff]  ;;  %v455_v51 = vpack.c.bf16 %v99_v45, %v97_v44  ;;  %v37_v53 = vld [vmem:[%s981_s1 + $0x80] sm:$0xff] }
   0xd   :  { %388 = vmatpush1.bf16.msra.mxu1 %v387_v33  ;;  %v104_v50 = vld [vmem:[%s981_s1 + $0x298] sm:$0xff]  ;;  %v393_v52 = vpack.c.bf16 %v40_v47, %v38_v46  ;;  %v39_v54 = vld [vmem:[%s981_s1 + $0x90] sm:$0xff]  ;;  %v101_v55 = vld [vmem:[%s981_s1 + $0x280] sm:$0xff] }
   0xe   :  { %452 = vmatpush1.bf16.msra.mxu0 %v451_v38  ;;  %390 = vmatprep.subr.bf16.mxu1 %v389_v39  ;;  %v457_v56 = vpack.c.bf16 %v104_v50, %v102_v49  ;;  %v103_v57 = vld [vmem:[%s981_s1 + $0x290] sm:$0xff]  ;;  %v42_v58 = vld [vmem:[%s981_s1 + $0xa8] sm:$0xff]  ;;  %v44_v59 = vld [vmem:[%s981_s1 + $0xb8] sm:$0xff]  ;;  %v395_v62 = vpack.c.bf16 %v39_v54, %v37_v53 }
   0xf   :  { %454 = vmatprep.subr.bf16.mxu0 %v453_v43  ;;  %v106_v60 = vld [vmem:[%s981_s1 + $0x2a8] sm:$0xff]  ;;  %v108_v61 = vld [vmem:[%s981_s1 + $0x2b8] sm:$0xff]  ;;  %v459_v63 = vpack.c.bf16 %v103_v57, %v101_v55  ;;  %v397_v0 = vpack.c.bf16 %v44_v59, %v42_v58  ;;  %v41_v1 = vld [vmem:[%s981_s1 + $0xa0] sm:$0xff] }
  0x10   :  { %v43_v2 = vld [vmem:[%s981_s1 + $0xb0] sm:$0xff]  ;;  %v105_v3 = vld [vmem:[%s981_s1 + $0x2a0] sm:$0xff]  ;;  %v461_v4 = vpack.c.bf16 %v108_v61, %v106_v60  ;;  %v46_v6 = vld [vmem:[%s981_s1 + $0xc8] sm:$0xff] }
  0x11   :  { %392 = vmatpush1.bf16.msra.mxu1 %v391_v48  ;;  %v107_v5 = vld [vmem:[%s981_s1 + $0x2b0] sm:$0xff]  ;;  %v48_v7 = vld [vmem:[%s981_s1 + $0xd8] sm:$0xff]  ;;  %v110_v8 = vld [vmem:[%s981_s1 + $0x2c8] sm:$0xff]  ;;  %v399_v10 = vpack.c.bf16 %v43_v2, %v41_v1 }
  0x12   :  { %456 = vmatpush1.bf16.msra.mxu0 %v455_v51  ;;  %394 = vmatprep.subr.bf16.mxu1 %v393_v52  ;;  %v112_v9 = vld [vmem:[%s981_s1 + $0x2d8] sm:$0xff]  ;;  %v463_v11 = vpack.c.bf16 %v107_v5, %v105_v3  ;;  %v401_v12 = vpack.c.bf16 %v48_v7, %v46_v6  ;;  %v45_v13 = vld [vmem:[%s981_s1 + $0xc0] sm:$0xff]  ;;  %v47_v14 = vld [vmem:[%s981_s1 + $0xd0] sm:$0xff]  ;;  %v151_v52 = vlaneseq }
  0x13   :  { %458 = vmatprep.subr.bf16.mxu0 %v457_v56  ;;  %v109_v15 = vld [vmem:[%s981_s1 + $0x2c0] sm:$0xff]  ;;  %v465_v16 = vpack.c.bf16 %v112_v9, %v110_v8  ;;  %v111_v17 = vld [vmem:[%s981_s1 + $0x2d0] sm:$0xff]  ;;  %v50_v18 = vld [vmem:[%s981_s1 + $0xe8] sm:$0xff]  ;;  %v403_v22 = vpack.c.bf16 %v47_v14, %v45_v13 }
  0x14   :  { %v52_v19 = vld [vmem:[%s981_s1 + $0xf8] sm:$0xff]  ;;  %v114_v20 = vld [vmem:[%s981_s1 + $0x2e8] sm:$0xff]  ;;  %v467_v23 = vpack.c.bf16 %v111_v17, %v109_v15  ;;  %v49_v25 = vld [vmem:[%s981_s1 + $0xe0] sm:$0xff]  ;;  %v816_v1 = vshrl.u32 %v151_v52, 7 }
  0x15   :  { %396 = vmatpush1.bf16.msra.mxu1 %v395_v62  ;;  %v116_v21 = vld [vmem:[%s981_s1 + $0x2f8] sm:$0xff]  ;;  %v405_v24 = vpack.c.bf16 %v52_v19, %v50_v18  ;;  %v51_v26 = vld [vmem:[%s981_s1 + $0xf0] sm:$0xff]  ;;  %v113_v27 = vld [vmem:[%s981_s1 + $0x2e0] sm:$0xff] }
  0x16   :  { %460 = vmatpush1.bf16.msra.mxu0 %v459_v63  ;;  %398 = vmatprep.subr.bf16.mxu1 %v397_v0  ;;  %v469_v28 = vpack.c.bf16 %v116_v21, %v114_v20  ;;  %v115_v29 = vld [vmem:[%s981_s1 + $0x2f0] sm:$0xff]  ;;  %v54_v30 = vld [vmem:[%s981_s1 + $0x108] sm:$0xff]  ;;  %v56_v31 = vld [vmem:[%s981_s1 + $0x118] sm:$0xff]  ;;  %v407_v34 = vpack.c.bf16 %v51_v26, %v49_v25  ;;  %v169_v15 = vsub.s32 2, %v816_v1  ;;  %v177_v20 = vsub.s32 6, %v816_v1 }
  0x17   :  { %462 = vmatprep.subr.bf16.mxu0 %v461_v4  ;;  %v118_v32 = vld [vmem:[%s981_s1 + $0x308] sm:$0xff]  ;;  %v120_v33 = vld [vmem:[%s981_s1 + $0x318] sm:$0xff]  ;;  %v471_v35 = vpack.c.bf16 %v115_v29, %v113_v27  ;;  %v409_v36 = vpack.c.bf16 %v56_v31, %v54_v30  ;;  %v53_v37 = vld [vmem:[%s981_s1 + $0x100] sm:$0xff] }
  0x18   :  { %v55_v38 = vld [vmem:[%s981_s1 + $0x110] sm:$0xff]  ;;  %v117_v39 = vld [vmem:[%s981_s1 + $0x300] sm:$0xff]  ;;  %v473_v40 = vpack.c.bf16 %v120_v33, %v118_v32  ;;  %v58_v42 = vld [vmem:[%s981_s1 + $0x128] sm:$0xff] }
  0x19   :  { %400 = vmatpush1.bf16.msra.mxu1 %v399_v10  ;;  %v119_v41 = vld [vmem:[%s981_s1 + $0x310] sm:$0xff]  ;;  %v60_v43 = vld [vmem:[%s981_s1 + $0x138] sm:$0xff]  ;;  %v122_v44 = vld [vmem:[%s981_s1 + $0x328] sm:$0xff]  ;;  %v411_v46 = vpack.c.bf16 %v55_v38, %v53_v37 }
  0x1a   :  { %464 = vmatpush1.bf16.msra.mxu0 %v463_v11  ;;  %402 = vmatprep.subr.bf16.mxu1 %v401_v12  ;;  %v124_v45 = vld [vmem:[%s981_s1 + $0x338] sm:$0xff]  ;;  %v475_v47 = vpack.c.bf16 %v119_v41, %v117_v39  ;;  %v413_v48 = vpack.c.bf16 %v60_v43, %v58_v42  ;;  %v57_v49 = vld [vmem:[%s981_s1 + $0x120] sm:$0xff]  ;;  %v59_v50 = vld [vmem:[%s981_s1 + $0x130] sm:$0xff] }
  0x1b   :  { %466 = vmatprep.subr.bf16.mxu0 %v465_v16  ;;  %v121_v51 = vld [vmem:[%s981_s1 + $0x320] sm:$0xff]  ;;  %v477_v53 = vpack.c.bf16 %v124_v45, %v122_v44  ;;  %v123_v54 = vld [vmem:[%s981_s1 + $0x330] sm:$0xff]  ;;  %v62_v55 = vld [vmem:[%s981_s1 + $0x148] sm:$0xff]  ;;  %v415_v59 = vpack.c.bf16 %v59_v50, %v57_v49 }
  0x1c   :  { %v64_v56 = vld [vmem:[%s981_s1 + $0x158] sm:$0xff]  ;;  %v126_v57 = vld [vmem:[%s981_s1 + $0x348] sm:$0xff]  ;;  %v479_v60 = vpack.c.bf16 %v123_v54, %v121_v51  ;;  %v61_v62 = vld [vmem:[%s981_s1 + $0x140] sm:$0xff] }
  0x1d   :  { %404 = vmatpush1.bf16.msra.mxu1 %v403_v22  ;;  %v128_v58 = vld [vmem:[%s981_s1 + $0x358] sm:$0xff]  ;;  %v417_v61 = vpack.c.bf16 %v64_v56, %v62_v55  ;;  %v63_v63 = vld [vmem:[%s981_s1 + $0x150] sm:$0xff]  ;;  %v125_v0 = vld [vmem:[%s981_s1 + $0x340] sm:$0xff] }
  0x1e   :  { %468 = vmatpush1.bf16.msra.mxu0 %v467_v23  ;;  %406 = vmatprep.subr.bf16.mxu1 %v405_v24  ;;  %v481_v2 = vpack.c.bf16 %v128_v58, %v126_v57  ;;  %v127_v3 = vld [vmem:[%s981_s1 + $0x350] sm:$0xff]  ;;  %v66_v4 = vld [vmem:[%s981_s1 + $0x168] sm:$0xff]  ;;  %v68_v5 = vld [vmem:[%s981_s1 + $0x178] sm:$0xff]  ;;  %v419_v8 = vpack.c.bf16 %v63_v63, %v61_v62 }
  0x1f   :  { %470 = vmatprep.subr.bf16.mxu0 %v469_v28  ;;  %v130_v6 = vld [vmem:[%s981_s1 + $0x368] sm:$0xff]  ;;  %v132_v7 = vld [vmem:[%s981_s1 + $0x378] sm:$0xff]  ;;  %v65_v9 = vld [vmem:[%s981_s1 + $0x160] sm:$0xff]  ;;  %v483_v10 = vpack.c.bf16 %v127_v3, %v125_v0  ;;  %v421_v11 = vpack.c.bf16 %v68_v5, %v66_v4 }
  0x20   :  { %v67_v12 = vld [vmem:[%s981_s1 + $0x170] sm:$0xff]  ;;  %v129_v13 = vld [vmem:[%s981_s1 + $0x360] sm:$0xff]  ;;  %v485_v16 = vpack.c.bf16 %v132_v7, %v130_v6  ;;  %v70_v17 = vld [vmem:[%s981_s1 + $0x188] sm:$0xff] }
  0x21   :  { %408 = vmatpush1.bf16.msra.mxu1 %v407_v34  ;;  %v131_v14 = vld [vmem:[%s981_s1 + $0x370] sm:$0xff]  ;;  %v72_v18 = vld [vmem:[%s981_s1 + $0x198] sm:$0xff]  ;;  %v374_v19 = vld [vmem:[%s980_s0] sm:$0xff]  }
  0x22   :  { %472 = vmatpush1.bf16.msra.mxu0 %v471_v35  ;;  %410 = vmatprep.subr.bf16.mxu1 %v409_v36  ;;  %v134_v21 = vld [vmem:[%s981_s1 + $0x388] sm:$0xff]  ;;  %v136_v22 = vld [vmem:[%s981_s1 + $0x398] sm:$0xff]  ;;  %v862_v23 = vunpack.c.l.bf16 %v374_v19  ;;  %v864_v24 = vunpack.c.h.bf16 %v374_v19 }
  0x23   :  { %474 = vmatprep.subr.bf16.mxu0 %v473_v40 }
  0x25   :  { %412 = vmatpush1.bf16.msra.mxu1 %v411_v46 }
  0x26   :  { %476 = vmatpush1.bf16.msra.mxu0 %v475_v47  ;;  %414 = vmatprep.subr.bf16.mxu1 %v413_v48 }
  0x27   :  { %478 = vmatprep.subr.bf16.mxu0 %v477_v53 }
  0x29   :  { %416 = vmatpush1.bf16.msra.mxu1 %v415_v59 }
  0x2a   :  { %480 = vmatpush1.bf16.msra.mxu0 %v479_v60  ;;  %418 = vmatprep.subr.bf16.mxu1 %v417_v61 }
  0x2b   :  { %482 = vmatprep.subr.bf16.mxu0 %v481_v2 }
  0x2c   :  { %8 = vsyncpa [#allocation3], 0  ;;  %v423_v25 = vpack.c.bf16 %v67_v12, %v65_v9  ;;  %v487_v26 = vpack.c.bf16 %v131_v14, %v129_v13  ;;  %vm195_vm0 = vcmask 1041409   ;;  %v425_v27 = vpack.c.bf16 %v72_v18, %v70_v17  ;;  %v69_v28 = vld [vmem:[%s981_s1 + $0x180] sm:$0xff]  ;;  %v71_v29 = vld [vmem:[%s981_s1 + $0x190] sm:$0xff]  ;;  %s534_s25 = smov [#allocation2]  }
  0x2d   :  { %420 = vmatpush1.bf16.msra.mxu1 %v419_v8  ;;  %v133_v30 = vld [vmem:[%s981_s1 + $0x380] sm:$0xff]  ;;  %v170_v31 = vrot.slane %v862_v23, %v169_v15  ;;  %v186_v32 = vrot.slane %v864_v24, %v169_v15  ;;  %v489_v33 = vpack.c.bf16 %v136_v22, %v134_v21  ;;  %v135_v34 = vld [vmem:[%s981_s1 + $0x390] sm:$0xff]  ;;  %v74_v35 = vld [vmem:[%s981_s1 + $0x1a8] sm:$0xff]  ;;  %v178_v37 = vrot.slane %v862_v23, %v177_v20  ;;  %s364_s26 = sshll.u32 %s534_s25, 4  ;;  %s365_s26 = int_to_ptr.vmem [resolvable:$true] %s364_s26 }
  0x2e   :  { %484 = vmatpush1.bf16.msra.mxu0 %v483_v10  ;;  %422 = vmatprep.subr.bf16.mxu1 %v421_v11  ;;  %v76_v36 = vld [vmem:[%s981_s1 + $0x1b8] sm:$0xff]  ;;  %v194_v38 = vrot.slane %v864_v24, %v177_v20  ;;  %v138_v39 = vld [vmem:[%s981_s1 + $0x3a8] sm:$0xff]  ;;  %v427_v42 = vpack.c.bf16 %v71_v29, %v69_v28  ;;  %v491_v44 = vpack.c.bf16 %v135_v34, %v133_v30  ;;  %v73_v46 = vld [vmem:[%s981_s1 + $0x1a0] sm:$0xff]  ;;  %v153_v5 = vsub.s32 0, %v816_v1  ;;  %s510_s27 = scalar_lea.vmem %s365_s26, 64  ;;  %p515_p1 = scmp.lt.s32.totalorder %s365_s26, %s365_s26 }
  0x2f   :  { %486 = vmatprep.subr.bf16.mxu0 %v485_v16  ;;  %v140_v40 = vld [vmem:[%s981_s1 + $0x3b8] sm:$0xff]  ;;  %v197_v41 = vsel %vm195_vm0, %v186_v32, %v170_v31  ;;  %v429_v45 = vpack.c.bf16 %v76_v36, %v74_v35  ;;  %v75_v47 = vld [vmem:[%s981_s1 + $0x1b0] sm:$0xff]  ;;  %v137_v48 = vld [vmem:[%s981_s1 + $0x3a0] sm:$0xff]  ;;  %v173_v10 = vsub.s32 4, %v816_v1  ;;  %p511_p0 = scmp.ne.s32.totalorder %s365_s26, %s510_s27  ;;  %p516_p2 = scmp.lt.s32.totalorder %s510_s27, %s510_s27 }
  0x30   :  { %268 = vmatprep.mubr.f32.mxu1 %v197_v41  ;;  %v199_v43 = vsel %vm195_vm0, %v194_v38, %v178_v37  ;;  %v493_v49 = vpack.c.bf16 %v140_v40, %v138_v39  ;;  %v139_v50 = vld [vmem:[%s981_s1 + $0x3b0] sm:$0xff]  ;;  %v78_v51 = vld [vmem:[%s981_s1 + $0x1c8] sm:$0xff]  ;;  %v80_v52 = vld [vmem:[%s981_s1 + $0x1d8] sm:$0xff]  ;;  %v431_v55 = vpack.c.bf16 %v75_v47, %v73_v46  ;;  %v166_v15 = vrot.slane %v862_v23, %v153_v5 }
  0x31   :  { %424 = vmatpush1.bf16.msra.mxu1 %v423_v25  ;;  %339 = vmatprep.mubr.f32.mxu0 %v199_v43  ;;  %v142_v53 = vld [vmem:[%s981_s1 + $0x3c8] sm:$0xff]  ;;  %v144_v54 = vld [vmem:[%s981_s1 + $0x3d8] sm:$0xff]  ;;  %v495_v56 = vpack.c.bf16 %v139_v50, %v137_v48  ;;  %v433_v57 = vpack.c.bf16 %v80_v52, %v78_v51  ;;  %v77_v58 = vld [vmem:[%s981_s1 + $0x1c0] sm:$0xff]  ;;  %v182_v16 = vrot.slane %v864_v24, %v153_v5  ;;  %v157_v25 = vsub.s32 1, %v816_v1  ;;  %p517_p3 = por %p516_p2, %p515_p1 }
  0x32   :  { %488 = vmatpush1.bf16.msra.mxu0 %v487_v26  ;;  %426 = vmatprep.subr.bf16.mxu1 %v425_v27  ;;  %v79_v59 = vld [vmem:[%s981_s1 + $0x1d0] sm:$0xff]  ;;  %v141_v60 = vld [vmem:[%s981_s1 + $0x3c0] sm:$0xff]  ;;  %v497_v61 = vpack.c.bf16 %v144_v54, %v142_v53  ;;  %v82_v63 = vld [vmem:[%s981_s1 + $0x1e8] sm:$0xff]  ;;  %v174_v18 = vrot.slane %v862_v23, %v173_v10  ;;  %v190_v19 = vrot.slane %v864_v24, %v173_v10 }
  0x33   :  { %490 = vmatprep.subr.bf16.mxu0 %v489_v33  ;;  %v143_v62 = vld [vmem:[%s981_s1 + $0x3d0] sm:$0xff]  ;;  %v84_v0 = vld [vmem:[%s981_s1 + $0x1f8] sm:$0xff]  ;;  %v146_v2 = vld [vmem:[%s981_s1 + $0x3e8] sm:$0xff]  ;;  %v435_v4 = vpack.c.bf16 %v79_v59, %v77_v58  ;;  %v196_v20 = vsel %vm195_vm0, %v182_v16, %v166_v15  ;;  %p518_p4 = pnand %p517_p3, %p511_p0 }
  0x34   :  { %v148_v3 = vld [vmem:[%s981_s1 + $0x3f8] sm:$0xff]  ;;  %v499_v6 = vpack.c.bf16 %v143_v62, %v141_v60  ;;  %v437_v7 = vpack.c.bf16 %v84_v0, %v82_v63  ;;  %v81_v8 = vld [vmem:[%s981_s1 + $0x1e0] sm:$0xff]  ;;  %v83_v9 = vld [vmem:[%s981_s1 + $0x1f0] sm:$0xff]  ;;  %v198_v21 = vsel %vm195_vm0, %v190_v19, %v174_v18 }
  0x35   :  { %428 = vmatpush1.bf16.msra.mxu1 %v427_v42  ;;  %v501_v11 = vpack.c.bf16 %v148_v3, %v146_v2  ;;  %v145_v12 = vld [vmem:[%s981_s1 + $0x3e0] sm:$0xff]  ;;  %v147_v13 = vld [vmem:[%s981_s1 + $0x3f0] sm:$0xff]  ;;  %v439_v14 = vpack.c.bf16 %v83_v9, %v81_v8 }
  0x36   :  { %492 = vmatpush1.bf16.msra.mxu0 %v491_v44  ;;  %430 = vmatprep.subr.bf16.mxu1 %v429_v45  ;;  %v503_v17 = vpack.c.bf16 %v147_v13, %v145_v12  ;;  %v149_v22 = vld [vmem:[%s982_s2] sm:$0x3] }
  0x37   :  { %494 = vmatprep.subr.bf16.mxu0 %v493_v49  ;;  %v154_v26 = vrot.slane %v149_v22, %v153_v5  ;;  %v158_v27 = vrot.slane %v149_v22, %v157_v25 }
  0x39   :  { %432 = vmatpush1.bf16.msra.mxu1 %v431_v55 }
  0x3a   :  { %496 = vmatpush1.bf16.msra.mxu0 %v495_v56  ;;  %434 = vmatprep.subr.bf16.mxu1 %v433_v57 }
  0x3b   :  { %498 = vmatprep.subr.bf16.mxu0 %v497_v61 }
  0x3d   :  { %436 = vmatpush1.bf16.msra.mxu1 %v435_v4 }
  0x3e   :  { %500 = vmatpush1.bf16.msra.mxu0 %v499_v6  ;;  %438 = vmatprep.subr.bf16.mxu1 %v437_v7 }
  0x3f   :  { %502 = vmatprep.subr.bf16.mxu0 %v501_v11 }
  0x41   :  { %440 = vmatpush1.bf16.msra.mxu1 %v439_v14 }
  0x42   :  { %504 = vmatpush1.bf16.msra.mxu0 %v503_v17 }
  0x44   :  { %269 = vmatmul.mubr.f32.vlgmr.msra.gmra.mrb[0].mxu1 %v196_v20 }
  0x45   :  { %340 = vmatmul.mubr.f32.vlgmr.msra.gmra.mrb[0].mxu0 %v198_v21 }
 0x117   :  { %v270_v23 = vpop.f32.mrb[0].mxu1 }
 0x118   :  { %v271_v28 = vadd.f32 %v270_v23, %v154_v26  ;;  %v272_v24 = vpop.f32.mrb[1].mxu1  ;;  %v341_v29 = vpop.f32.mrb[0].mxu0 }
 0x119   :  { %v273_v30 = vadd.f32 %v272_v24, %v158_v27  ;;  %v343_v31 = vpop.f32.mrb[1].mxu0 }
 0x11a   :  { %v342_v32 = vadd.f32 %v341_v29, %v271_v28 }
 0x11b   :  { %v344_v33 = vadd.f32 %v343_v31, %v273_v30 }
 0x11d   :  { %v348_v34 = vcombine.low %v342_v32, %v344_v33 }
 0x11f   :  { %372 = vst.sshfl [vmem:[#allocation2] sm:$0x33 pattern:$0x76325410] %v348_v34 }
 0x120   :  { %521 = shalt.err (!%p518_p4)
}
 0x121   :  { %s522_s29 = scalar_lea.hbm %s983_s3, 64 }
 0x122   :  { %p523_p5 = scmp.ne.s32.totalorder %s983_s3, %s522_s29  ;;  %p526_p6 = scmp.lt.u32.totalorder %s522_s29, %s983_s3 }
 0x124   :  { %p528_p7 = pnand %p526_p6, %p523_p5 }
 0x126   :  { %531 = shalt.err (!%p528_p7)
}
 0x127   :  { %367 = dma.vmem_to_hbm [thread:$0]  %s365_s26, 64, %s983_s3, [#allocation3]  }
 0x128   :  { %532 = dma.done.wait [#allocation3], 64  }
 0x129   :  { %533 = vsyncadd [#allocation3], 4294967232 }
 0x12a   :  { %371 = vsyncpa [#allocation3], 1 }

</bundles_post_ra>
